<compile_context>
chip_gen: v7x
topology: tpu7x:2x2x1
jax: 0.10.0
libtpu: 0.0.40
codegen_flags: <defaults>
</compile_context>

<pallas_src>
import functools

import jax
import jax.numpy as jnp
from jax.experimental import pallas as pl
from jax.experimental.pallas import tpu as pltpu


_BYPASS_BYTES = 256 * 1024  # below this total size, pure-JAX is faster than a launch


# ----------------------------- Pallas kernels -------------------------------
def _expand_kernel(x_ref, o_ref, *, ratio):
    # x_ref: (TILE_B, D_in) -> o_ref: (TILE_B, D_in * ratio)
    # out[:, f*ratio + j] = x[:, f]   (elementwise repeat along the lane axis)
    x = x_ref[...]
    tb, d_in = x.shape
    rep = jnp.broadcast_to(x[:, :, None], (tb, d_in, ratio))
    # TODO(synk): per review, r lane-strided stores (o_ref[:, pl.ds(j, d_in, stride=r)])
    # would avoid the interleave relayout; kept the portable broadcast+collapse form.
    o_ref[...] = rep.reshape(tb, d_in * ratio).astype(o_ref.dtype)


def _compress_kernel(x_ref, o_ref, *, ratio):
    # x_ref: (TILE_B, D_in) -> o_ref: (TILE_B, D_in // ratio)
    x = x_ref[...].astype(jnp.float32)
    tb, d_in = x.shape
    d_out = d_in // ratio
    grouped = x.reshape(tb, d_out, ratio)
    # sum * (1/r) is exact for power-of-2 r and identical to the mean.
    # TODO(synk): per review, accumulating r lane-strided slices
    # (x_ref[:, pl.ds(j, d_out, stride=r)]) would stay lane-resident; kept the
    # portable reshape+reduce form.
    o_ref[...] = (grouped.sum(axis=-1) * (1.0 / ratio)).astype(o_ref.dtype)


# ------------------------------ Wrapper helpers ------------------------------
def _vmem_capacity_bytes():
    try:
        return int(pltpu.get_tpu_info().vmem_capacity_bytes)
    except Exception:
        return 64 * 1024 * 1024  # conservative default (v7x per-core VMEM)


def _fold_factor(batch, d_in, d_out):
    """Fold k batch rows into the feature axis so the smaller feature dim becomes
    >= 128 (lane-dense loads/stores). Valid because repeats / contiguous groups are
    preserved under row-major flattening; the wrapper reshapes are free bitcasts."""
    d_min = min(d_in, d_out)
    if d_min >= 128:
        return 1
    k_target = pl.cdiv(128, d_min)
    for k in range(min(k_target, batch), 0, -1):
        if batch % k == 0:
            return k
    return 1


def _pick_batch_tile(batch, d_in, d_out, itemsize, vmem_capacity):
    """Largest batch tile (multiple of the dtype sublane pack) whose VMEM footprint
    (double-buffered in+out tiles plus the in-kernel f32 working copy) fits in a
    generation-aware budget, while keeping ~8 grid blocks for pipelining / megacore."""
    pack = max(1, 4 // itemsize)     # rows per packed 32-bit sublane group
    min_rows = 8 * pack              # 8 f32 / 16 bf16 / 32 int8-fp8
    if batch <= min_rows:
        return batch                 # single full-batch block (block == full dims is legal)

    # Bytes of VMEM per batch row: 2x(in + out) buffering + f32 intermediate.
    per_row = 2 * (d_in + d_out) * itemsize + (d_in + d_out) * 4

    budget = min(vmem_capacity // 3, 40 * 1024 * 1024)  # v7x: ~21 MiB; v5e/v6e: 40 MiB
    tile = max(1, budget // per_row)
    # Keep >= ~8 blocks so the "parallel" axis shards across v7x's 2 TCs and the
    # DMA pipeline has depth (per-step overhead ~0.35 us is negligible).
    tile = min(tile, pl.cdiv(batch, 8), 8192)
    tile = max(min_rows, (tile // min_rows) * min_rows)
    return tile


# ------------------------------ Wrapper --------------------------------------
def _pallas_transform(x, output_dim):
    batch, d_in = x.shape
    is_up = output_dim > d_in
    ratio = (output_dim // d_in) if is_up else (d_in // output_dim)
    itemsize = int(x.dtype.itemsize)

    # Small-problem bypass: launch + DMA setup overhead dominates tiny shapes.
    if batch * (d_in + output_dim) * itemsize < _BYPASS_BYTES:
        return _reference_forward(x, d_in, output_dim)

    # Lane-density fold (free row-major reshapes on both sides).
    k = _fold_factor(batch, d_in, output_dim)
    fb, fd_in, fd_out = batch // k, k * d_in, k * output_dim
    xf = x.reshape(fb, fd_in)

    kernel = functools.partial(
        _expand_kernel if is_up else _compress_kernel, ratio=ratio
    )

    vmem_cap = _vmem_capacity_bytes()
    tile_b = _pick_batch_tile(fb, fd_in, fd_out, itemsize, vmem_cap)
    grid = (pl.cdiv(fb, tile_b),)   # partial last block is fine (elementwise per row)

    bytes_accessed = batch * (d_in + output_dim) * itemsize
    flops = 0 if is_up else batch * d_in  # group-sum adds

    out = pl.pallas_call(
        kernel,
        out_shape=jax.ShapeDtypeStruct((fb, fd_out), x.dtype),
        grid=grid,
        in_specs=[pl.BlockSpec((tile_b, fd_in), lambda i: (i, 0))],
        out_specs=pl.BlockSpec((tile_b, fd_out), lambda i: (i, 0)),
        compiler_params=pltpu.CompilerParams(
            dimension_semantics=("parallel",),
            vmem_limit_bytes=int(min(vmem_cap // 2, 64 * 1024 * 1024)),
        ),
        cost_estimate=pl.CostEstimate(
            flops=flops, transcendentals=0, bytes_accessed=bytes_accessed
        ),
    )(xf)
    return out.reshape(batch, output_dim)


class SimplePowerOf2Transform:
    """JAX/Pallas port of the PyTorch SimplePowerOf2Transform forward pass."""

    def __init__(self, input_dim: int, output_dim: int):
        self.input_dim = input_dim
        self.output_dim = output_dim
        self.is_upward = output_dim > input_dim
        if self.is_upward:
            assert output_dim % input_dim == 0
            self.expand_ratio = output_dim // input_dim
        else:
            assert input_dim % output_dim == 0
            self.compress_ratio = input_dim // output_dim

    def __call__(self, x):
        # x: (batch, input_dim)
        assert x.ndim == 2 and x.shape[-1] == self.input_dim
        return _pallas_transform(x, self.output_dim)


# Pure-JAX reference (mirrors the PyTorch forward exactly) for validation & bypass.
def _reference_forward(x, input_dim, output_dim):
    if output_dim > input_dim:
        r = output_dim // input_dim
        expanded = jnp.broadcast_to(x[:, :, None], (x.shape[0], input_dim, r))
        return expanded.reshape(x.shape[0], -1)
    else:
        r = input_dim // output_dim
        reshaped = x.reshape(x.shape[0], output_dim, r)
        return jnp.mean(reshaped, axis=2)


if __name__ == "__main__":
    key = jax.random.PRNGKey(0)
    k1, k2, k3, k4, k5 = jax.random.split(key, 5)

    # --- tiny demos (take the small-problem bypass path) ---
    x_up = jax.random.normal(k1, (2, 32), dtype=jnp.float32)
    y_up = jax.block_until_ready(SimplePowerOf2Transform(32, 128)(x_up))
    assert y_up.shape == (2, 128)
    assert jnp.allclose(y_up, _reference_forward(x_up, 32, 128), atol=1e-6, rtol=1e-6)

    x_dn = jax.random.normal(k2, (2, 128), dtype=jnp.float32)
    y_dn = jax.block_until_ready(SimplePowerOf2Transform(128, 32)(x_dn))
    assert y_dn.shape == (2, 32)
    assert jnp.allclose(y_dn, _reference_forward(x_dn, 128, 32), atol=1e-6, rtol=1e-6)

    # --- Pallas path: upward 64 -> 256, batch 512 (folded, tiled, pipelined) ---
    x_up2 = jax.random.normal(k3, (512, 64), dtype=jnp.float32)
    y_up2 = jax.block_until_ready(SimplePowerOf2Transform(64, 256)(x_up2))
    assert y_up2.shape == (512, 256)
    assert jnp.allclose(
        y_up2, _reference_forward(x_up2, 64, 256), atol=1e-6, rtol=1e-6
    )

    # --- Pallas path: downward 256 -> 64, batch 512 ---
    x_dn2 = jax.random.normal(k4, (512, 256), dtype=jnp.float32)
    y_dn2 = jax.block_until_ready(SimplePowerOf2Transform(256, 64)(x_dn2))
    assert y_dn2.shape == (512, 64)
    assert jnp.allclose(
        y_dn2, _reference_forward(x_dn2, 256, 64), atol=1e-5, rtol=1e-5
    )

    # --- Pallas path: non-divisible batch (cdiv grid, partial last block) ---
    x_dn3 = jax.random.normal(k5, (300, 256), dtype=jnp.float32)
    y_dn3 = jax.block_until_ready(SimplePowerOf2Transform(256, 64)(x_dn3))
    assert y_dn3.shape == (300, 64)
    assert jnp.allclose(
        y_dn3, _reference_forward(x_dn3, 256, 64), atol=1e-5, rtol=1e-5
    )

    print("KERNEL_OK")
</pallas_src>

<mosaic_0001>
module attributes {stable_mosaic.version = 11 : i64} {
  func.func @_expand_kernel(%arg0: i32, %arg1: memref<32x128xf32, #tpu.memory_space<vmem>>, %arg2: memref<32x512xf32, #tpu.memory_space<vmem>>) attributes {dimension_semantics = [#tpu.dimension_semantics<parallel>], iteration_bounds = array<i64: 8>, scalar_prefetch = 0 : i64, scratch_operands = 0 : i64, tpu.core_type = #tpu.core_type<tc>, window_params = [{transform_indices = @transform_0, window_bounds = array<i64: 32, 128>}, {transform_indices = @transform_1, window_bounds = array<i64: 32, 512>}]} {
    %c0 = arith.constant 0 : index
    %c0_0 = arith.constant 0 : index
    %0 = vector.load %arg1[%c0, %c0_0] : memref<32x128xf32, #tpu.memory_space<vmem>>, vector<32x128xf32>
    %1 = vector.shape_cast %0 : vector<32x128xf32> to vector<32x128x1xf32>
    %2 = vector.shape_cast %1 : vector<32x128x1xf32> to vector<32x128x1xf32>
    %3 = vector.broadcast %2 : vector<32x128x1xf32> to vector<32x128x4xf32>
    %4 = vector.shape_cast %3 : vector<32x128x4xf32> to vector<32x512xf32>
    %c0_1 = arith.constant 0 : index
    %c0_2 = arith.constant 0 : index
    %5 = vector.load %arg2[%c0_1, %c0_2] : memref<32x512xf32, #tpu.memory_space<vmem>>, vector<32x512xf32>
    tpu.vector_store %arg2[%c0_1, %c0_2], %4 {strides = array<i32>} : memref<32x512xf32, #tpu.memory_space<vmem>>, vector<32x512xf32>,
    return
  }
  func.func @transform_0(%arg0: i32) -> (i32, i32) {
    %c0_i32 = arith.constant 0 : i32
    %c0_i32_0 = arith.constant 0 : i32
    return %arg0, %c0_i32 : i32, i32
  }
  func.func @transform_1(%arg0: i32) -> (i32, i32) {
    %c0_i32 = arith.constant 0 : i32
    %c0_i32_0 = arith.constant 0 : i32
    return %arg0, %c0_i32 : i32, i32
  }
}

</mosaic_0001>

<bundles_post_ra>
// kernel: tpu_custom_call.1
= control target key start
LH: loop header
LB: loop body
LE: loop exit
PB: predicated region body
PF: predicated region fallthrough
CT: control target
= control target key end

     0   :  { %s21964_s0 = inlined_call_operand.hbm [shape: f32[256,128], index: 0, kind: input, shape index: {}]   ;;  %s21965_s1 = inlined_call_operand.hbm [shape: f32[256,512], index: 1, kind: output, shape index: {}]  }
   0x1   :  { %22668 = sst [smem:[#allocation537_spill]] %s21964_s0 }
   0x2   :  { %22669 = sst [smem:[#allocation538_spill]] %s21965_s1 }
   0x3   :  { %6 = vsyncpa [#allocation3], 0 }
   0x4   :  { %8 = vsyncpa [#allocation3 + $0x1], 0 }
   0x5   :  { %9 = vsyncpa [#allocation4], 0 }
   0x6   :  { %11 = vsyncpa [#allocation4 + $0x1], 0  ;;  %s13850_s6 = smov 0   ;;  %s13852_s7 = smov 0  }
   0x7   :  { %s13854_s8 = smov 0   ;;  %s13856_s9 = smov 0  }
   0x8 LB: > { %22670 = sst [smem:[#allocation8_spill]] %s13788_s6  ;;  %s13871_s10 = sadd.s32 4294967295, %s13800_s9   ;;  %s13800_s9 = sphi %s13856_s9, %s24734_s9   ;;  %s13796_s8 = sphi %s13854_s8, %s24737_s8   ;;  %s13792_s7 = sphi %s13852_s7, %s24736_s7   ;;  %s13788_s6 = sphi %s13850_s6, %s24735_s6  }
   0x9   : > { %22671 = sst [smem:[#allocation9_spill]] %s13792_s7  ;;  %s13604_s11 = sadd.s32 4294967294, %s13800_s9  }
   0xa   : > { %22672 = sst [smem:[#allocation10_spill]] %s13796_s8  ;;  %s13875_s12 = sadd.s32 1, %s13800_s9  }
   0xb   : > { %22673 = sst [smem:[#allocation11_spill]] %s13800_s9  ;;  %s24_s13 = sadd.s32 1, %s13796_s8 }
   0xc   : > { %22674 = sst [smem:[#allocation12_spill]] %s13871_s10  ;;  %s21_s14 = ssub.s32 %s13800_s9, %s13875_s12 }
   0xd   : > { %22675 = sst [smem:[#allocation13_spill]] %s13875_s12  ;;  %p31_p0 = scmp.ne.s32.totalorder %s13796_s8, %s13792_s7 }
   0xe   : > { %p22_p1 = scmp.eq.s32.totalorder %s21_s14, 0  ;;  %p32_p2 = scmp.eq.s32.totalorder %s13800_s9, 0 }
   0xf   : > { %p37_p3 = scmp.ne.s32.totalorder %s13792_s7, %s13788_s6  ;;  %p38_p4 = scmp.eq.s32.totalorder %s13871_s10, 0 }
  0x10   : > { %s13887_s15 = scalar_select %p22_p1, %s13796_s8, %s24_s13  }
  0x11   : > { %p13889_p5 = por %p32_p2, %p31_p0  ;;  %p13893_p6 = por %p38_p4, %p37_p3 }
  0x12   : > { %22676 = sst [smem:[#allocation14_spill]] %s13887_s15  ;;  %p61_p7 = scmp.eq.s32.totalorder %s13871_s10, 7 }
  0x13   : > { %p67_p8 = scmp.eq.s32.totalorder %s13604_s11, 7  ;;  %p13634_p9 = scmp.lt.s32.totalorder %s13800_s9, 8 }
  0x14   : > { %p13899_p10 = por %p61_p7, %p31_p0  ;;  %s87_s20 = sand.u32 1, %s13796_s8  }
  0x15   : > { %p13903_p11 = por %p67_p8, %p37_p3  ;;  %s13619_s21 = sshll.u32 %s13800_s9, 9 }
  0x16   : > { %s22679_s18 = scalar_select %p13899_p10, 1, 0 }
  0x17   : > { %s22681_s19 = scalar_select %p13903_p11, 1, 0 }
  0x18   : > { %22680 = sst [smem:[#allocation15_spill]] %s22679_s18  ;;  %s13607_s22 = sshll.u32 %s87_s20, 5 }
  0x19   : > { %22682 = sst [smem:[#allocation16_spill]] %s22681_s19  ;;  %s22683_s0 = sld [smem:[#allocation537_spill]] }
  0x1a   : > { %s91_s26 = scalar_lea.vmem [#allocation2], %s13607_s22  ;;  %p13916_p12 = pnand %p13634_p9, %p13889_p5 }
  0x1b   : > { %s98_s27 = sshll.u32 %s91_s26, 4  ;;  %s13922_s29 = scalar_lea.sflag [#allocation3], %s87_s20  ;;  %s13920_s27 = int_to_ptr.vmem [resolvable:$true] %s98_s27 }
  0x1c   : > { %p13706_p0 = pneg %p13916_p12 }
  0x1f   : > { %s13912_s25 = scalar_lea.hbm %s22683_s0, %s13619_s21  ;;  %s13709_s4 = scalar_lea.hbm %s22683_s0, 4096 }
  0x20   : > { %s13704_s30 = scalar_lea.hbm %s13912_s25, 512  ;;  %p13710_p3 = scmp.lt.u32.totalorder %s13912_s25, %s22683_s0 }
  0x21   : > { %p13705_p13 = scmp.ne.s32.totalorder %s13912_s25, %s13704_s30  ;;  %p13711_p4 = scmp.lt.u32.totalorder %s13709_s4, %s13704_s30 }
  0x22   : > { %p13713_p7 = scmp.lt.u32.totalorder %s13704_s30, %s13912_s25 }
  0x23   : > { %p13707_p1 = pnand %p13706_p0, %p13705_p13  ;;  %p13712_p5 = por %p13711_p4, %p13710_p3 }
  0x25   : > { %p13708_p2 = pneg %p13707_p1  ;;  %p13714_p8 = por %p13713_p7, %p13712_p5 }
  0x27   : > { %p13715_p9 = pnand %p13714_p8, %p13708_p2 }
  0x29   : > { %13718 = shalt.err (!%p13715_p9)
}
  0x2a   : > { %s13719_s13 = scalar_lea.vmem %s13920_s27, 512  ;;  %s13802_s14 = smov [#allocation2]  }
  0x2b   : > { %p13720_p13 = scmp.ne.s32.totalorder %s13920_s27, %s13719_s13  ;;  %s13724_s16 = sshll.u32 %s13802_s14, 4  ;;  %s13725_s16 = int_to_ptr.vmem [resolvable:$false] %s13724_s16 }
  0x2c   : > { %s13726_s20 = scalar_lea.vmem %s13725_s16, 1024  ;;  %p13727_p10 = scmp.lt.s32.totalorder %s13920_s27, %s13725_s16 }
  0x2d   : > { %p13722_p1 = pnand %p13720_p13, %p13706_p0  ;;  %p13728_p3 = scmp.lt.s32.totalorder %s13726_s20, %s13719_s13 }
  0x2f   : > { %p13723_p11 = pneg %p13722_p1  ;;  %p13729_p4 = por %p13728_p3, %p13727_p10 }
  0x31   : > { %p13730_p5 = pnand %p13729_p4, %p13723_p11 }
  0x33   : > { %13733 = shalt.err (!%p13730_p5)
}
  0x34   : > { %s13803_s21 = smov 128   ;;  %s13804_s22 = smov 8  }
  0x35   : > { %13629 = dma.hbm_to_vmem [thread:$0]  (!%p13916_p12), %s13912_s25, 512, %s13920_s27, %s13922_s29, %s13803_s21, %s13803_s21, %s13804_s22  }
  0x36   : > { %p13610_p0 = scmp.ge.s32.totalorder %s13800_s9, 1  ;;  %p106_p2 = scmp.lt.s32.totalorder %s13800_s9, 9 }
  0x38   : > { %p107_p7 = pnand %p13610_p0, %p106_p2 }
  0x3a   : > { %110 = sbr.rel (%p107_p7) target bundleno = 2344 (0x928), region = 24 }
  0x41   : > { %s13953_s23 = sand.u32 1, %s13792_s7  }
  0x42   : > { %22685 = sst [smem:[#allocation17_spill]] %s13953_s23  ;;  %s13611_s24 = sshll.u32 %s13953_s23, 5 }
  0x43   : > { %s113_s26 = scalar_lea.sflag [#allocation3], %s13953_s23  ;;  %s13957_s30 = scalar_lea.vmem [#allocation2], %s13611_s24 }
  0x44   : > { %13779 = dma.done.wait (%p13893_p6), %s113_s26, 512  }
  0x45   : > { %13781 = vsyncadd (%p13893_p6), %s113_s26, 4294966784  ;;  %v141_v0 = vlaneseq  ;;  %v13969_v3 = vld [vmem:[%s13957_s30] sm:$0xff]  ;;  %s22617_s17 = smov 4   ;;  %s22623_s25 = smov 8   ;;  %vm12973_vm0 = vcmask 31744   ;;  %vm22633_vm1 = vcmask 64512  }
  0x46   : > { %s22625_s27 = smov 12   ;;  %s22627_s28 = smov 16   ;;  %vm22634_vm2 = vcmask 97280   ;;  %vm12988_vm3 = vcmask 130048   ;;  %vm22639_vm4 = vcmask 162816   ;;  %vm22635_vm5 = vcmask 195584  }
  0x47   : > { %v13963_v1 = vshrl.u32 %v141_v0, 7  ;;  %s22629_s29 = smov 20   ;;  %s22637_s2 = smov 24   ;;  %vm22636_vm6 = vcmask 228352   ;;  %vm22602_vm7 = vcmask 261120   ;;  %vm22603_vm8 = vcmask 293888  }
  0x48   : > { %s22548_s3 = smov 28   ;;  %s22550_s4 = smov 32   ;;  %vm22604_vm9 = vcmask 326656   ;;  %vm22606_vm10 = vcmask 359424   ;;  %vm22605_vm11 = vcmask 392192   ;;  %vm22607_vm12 = vcmask 424960  }
  0x49   : > { %v13966_v2 = vsub.s32 0, %v13963_v1  ;;  %v13974_v5 = vsub.s32 1, %v13963_v1  ;;  %v13979_v7 = vsub.s32 2, %v13963_v1  ;;  %v13984_v9 = vsub.s32 3, %v13963_v1  ;;  %s22552_s5 = smov 36   ;;  %s22562_s11 = smov 40  }
  0x4a   : > { %v13997_v15 = vsub.s32 4, %v13963_v1  ;;  %v14034_v33 = vsub.s32 5, %v13963_v1  ;;  %v14071_v51 = vsub.s32 6, %v13963_v1  ;;  %s22570_s13 = smov 44   ;;  %s22573_s14 = smov 48   ;;  %vm22608_vm13 = vcmask 457728  }
  0x4b   : > { %v144_v4 = vrot.slane %v13969_v3, %v13966_v2  ;;  %v211_v6 = vrot.slane %v13969_v3, %v13974_v5  ;;  %v278_v8 = vrot.slane %v13969_v3, %v13979_v7  ;;  %v345_v10 = vrot.slane %v13969_v3, %v13984_v9  ;;  %s22575_s16 = smov 52   ;;  %s22580_s20 = smov 56  }
  0x4c   : > { %v412_v18 = vrot.slane %v13969_v3, %v13997_v15  ;;  %v479_v36 = vrot.slane %v13969_v3, %v14034_v33  ;;  %v546_v54 = vrot.slane %v13969_v3, %v14071_v51  ;;  %s22582_s21 = smov 60   ;;  %s22584_s22 = smov 64   ;;  %vm22612_vm14 = vcmask 490496  }
  0x4d   : > { %154 = vbcast.lane.b32.xlu1 %v144_v4, 272  ;;  %146 = vbcast.lane.b32.xlu0 %v144_v4, 256  ;;  %s22586_s24 = smov 68   ;;  %s22588_s26 = smov 72   ;;  %vm22611_vm15 = vcmask 523264  }
  0x4e   : > { %s23791_s0 = smov 120   ;;  %s23794_s15 = smov 76  }
  0x4f   : > { %s23797_s8 = smov 124   ;;  %s23802_s7 = smov 80  }
  0x50   : > { %s23809_s12 = smov 4   ;;  %s23820_s19 = smov 84  }
  0x51   : > { %158 = vbcast.lane.b32.xlu1 %v144_v4, 280  ;;  %150 = vbcast.lane.b32.xlu0 %v144_v4, 264  ;;  %s23829_s6 = smov 8   ;;  %s23846_s9 = smov 88  }
  0x52   : > { %s23853_s1 = smov 12   ;;  %s23862_s18 = smov 92  }
  0x53   : > { %s23870_s10 = smov 20  }
  0x55   : > { %166 = vbcast.lane.b32.xlu1 %v144_v4, 296  ;;  %162 = vbcast.lane.b32.xlu0 %v144_v4, 288 }
  0x59   : > { %174 = vbcast.lane.b32.xlu1 %v144_v4, 312  ;;  %170 = vbcast.lane.b32.xlu0 %v144_v4, 304 }
  0x5d   : > { %182 = vbcast.lane.b32.xlu1 %v144_v4, 328  ;;  %178 = vbcast.lane.b32.xlu0 %v144_v4, 320 }
  0x61   : > { %190 = vbcast.lane.b32.xlu1 %v144_v4, 344  ;;  %186 = vbcast.lane.b32.xlu0 %v144_v4, 336 }
  0x65   : > { %198 = vbcast.lane.b32.xlu1 %v144_v4, 360  ;;  %194 = vbcast.lane.b32.xlu0 %v144_v4, 352 }
  0x69   : > { %206 = vbcast.lane.b32.xlu1 %v144_v4, 376  ;;  %202 = vbcast.lane.b32.xlu0 %v144_v4, 368 }
  0x6d   : > { %217 = vbcast.lane.b32.xlu1 %v211_v6, 264  ;;  %213 = vbcast.lane.b32.xlu0 %v211_v6, 256 }
  0x71   : > { %225 = vbcast.lane.b32.xlu1 %v211_v6, 280  ;;  %221 = vbcast.lane.b32.xlu0 %v211_v6, 272 }
  0x75   : > { %233 = vbcast.lane.b32.xlu1 %v211_v6, 296  ;;  %229 = vbcast.lane.b32.xlu0 %v211_v6, 288 }
  0x79   : > { %241 = vbcast.lane.b32.xlu1 %v211_v6, 312  ;;  %237 = vbcast.lane.b32.xlu0 %v211_v6, 304 }
  0x7d   : > { %249 = vbcast.lane.b32.xlu1 %v211_v6, 328  ;;  %245 = vbcast.lane.b32.xlu0 %v211_v6, 320 }
  0x81   : > { %257 = vbcast.lane.b32.xlu1 %v211_v6, 344  ;;  %253 = vbcast.lane.b32.xlu0 %v211_v6, 336 }
  0x85   : > { %265 = vbcast.lane.b32.xlu1 %v211_v6, 360  ;;  %261 = vbcast.lane.b32.xlu0 %v211_v6, 352 }
  0x89   : > { %273 = vbcast.lane.b32.xlu1 %v211_v6, 376  ;;  %269 = vbcast.lane.b32.xlu0 %v211_v6, 368 }
  0x8d   : > { %284 = vbcast.lane.b32.xlu1 %v278_v8, 264  ;;  %280 = vbcast.lane.b32.xlu0 %v278_v8, 256 }
  0x91   : > { %292 = vbcast.lane.b32.xlu1 %v278_v8, 280  ;;  %288 = vbcast.lane.b32.xlu0 %v278_v8, 272 }
  0x95   : > { %300 = vbcast.lane.b32.xlu1 %v278_v8, 296  ;;  %296 = vbcast.lane.b32.xlu0 %v278_v8, 288 }
  0x99   : > { %308 = vbcast.lane.b32.xlu1 %v278_v8, 312  ;;  %304 = vbcast.lane.b32.xlu0 %v278_v8, 304 }
  0x9d   : > { %316 = vbcast.lane.b32.xlu1 %v278_v8, 328  ;;  %312 = vbcast.lane.b32.xlu0 %v278_v8, 320 }
  0xa1   : > { %324 = vbcast.lane.b32.xlu1 %v278_v8, 344  ;;  %320 = vbcast.lane.b32.xlu0 %v278_v8, 336 }
  0xa5   : > { %332 = vbcast.lane.b32.xlu1 %v278_v8, 360  ;;  %328 = vbcast.lane.b32.xlu0 %v278_v8, 352 }
  0xa9   : > { %340 = vbcast.lane.b32.xlu1 %v278_v8, 376  ;;  %336 = vbcast.lane.b32.xlu0 %v278_v8, 368 }
  0xad   : > { %351 = vbcast.lane.b32.xlu1 %v345_v10, 264  ;;  %347 = vbcast.lane.b32.xlu0 %v345_v10, 256 }
  0xb1   : > { %359 = vbcast.lane.b32.xlu1 %v345_v10, 280  ;;  %355 = vbcast.lane.b32.xlu0 %v345_v10, 272 }
  0xb5   : > { %367 = vbcast.lane.b32.xlu1 %v345_v10, 296  ;;  %363 = vbcast.lane.b32.xlu0 %v345_v10, 288 }
  0xb9   : > { %375 = vbcast.lane.b32.xlu1 %v345_v10, 312  ;;  %371 = vbcast.lane.b32.xlu0 %v345_v10, 304 }
  0xbd   : > { %383 = vbcast.lane.b32.xlu1 %v345_v10, 328  ;;  %379 = vbcast.lane.b32.xlu0 %v345_v10, 320 }
  0xbf   : > { %v13988_v11 = vpop.permute.xlu1 %154  ;;  %v13990_v12 = vpop.permute.xlu0 %146 }
  0xc0   : > { %22686 = vst [vmem:[#allocation18_spill] sm:$0xff] %v13988_v11 }
  0xc1   : > { %391 = vbcast.lane.b32.xlu1 %v345_v10, 344  ;;  %387 = vbcast.lane.b32.xlu0 %v345_v10, 336 }
  0xc3   : > { %v13992_v13 = vpop.permute.xlu1 %158  ;;  %v13994_v14 = vpop.permute.xlu0 %150 }
  0xc4   : > { %22687 = vst [vmem:[#allocation19_spill] sm:$0xff] %v13992_v13  ;;  %22688 = vst [vmem:[#allocation20_spill] sm:$0xff] %v13994_v14 }
  0xc5   : > { %399 = vbcast.lane.b32.xlu1 %v345_v10, 360  ;;  %395 = vbcast.lane.b32.xlu0 %v345_v10, 352 }
  0xc7   : > { %v13999_v16 = vpop.permute.xlu1 %166  ;;  %v14001_v17 = vpop.permute.xlu0 %162 }
  0xc8   : > { %22689 = vst [vmem:[#allocation21_spill] sm:$0xff] %v13999_v16  ;;  %22690 = vst [vmem:[#allocation22_spill] sm:$0xff] %v14001_v17 }
  0xc9   : > { %407 = vbcast.lane.b32.xlu1 %v345_v10, 376  ;;  %403 = vbcast.lane.b32.xlu0 %v345_v10, 368 }
  0xcb   : > { %v14005_v19 = vpop.permute.xlu1 %174  ;;  %v14007_v20 = vpop.permute.xlu0 %170 }
  0xcc   : > { %22691 = vst [vmem:[#allocation23_spill] sm:$0xff] %v14005_v19  ;;  %22692 = vst [vmem:[#allocation24_spill] sm:$0xff] %v14007_v20 }
  0xcd   : > { %418 = vbcast.lane.b32.xlu1 %v412_v18, 264  ;;  %414 = vbcast.lane.b32.xlu0 %v412_v18, 256 }
  0xcf   : > { %v14009_v21 = vpop.permute.xlu1 %182  ;;  %v14011_v22 = vpop.permute.xlu0 %178 }
  0xd0   : > { %22693 = vst [vmem:[#allocation25_spill] sm:$0xff] %v14009_v21  ;;  %22694 = vst [vmem:[#allocation26_spill] sm:$0xff] %v14011_v22 }
  0xd1   : > { %426 = vbcast.lane.b32.xlu1 %v412_v18, 280  ;;  %422 = vbcast.lane.b32.xlu0 %v412_v18, 272 }
  0xd3   : > { %v14013_v23 = vpop.permute.xlu1 %190  ;;  %v14015_v24 = vpop.permute.xlu0 %186 }
  0xd4   : > { %22695 = vst [vmem:[#allocation27_spill] sm:$0xff] %v14013_v23  ;;  %22696 = vst [vmem:[#allocation28_spill] sm:$0xff] %v14015_v24 }
  0xd5   : > { %434 = vbcast.lane.b32.xlu1 %v412_v18, 296  ;;  %430 = vbcast.lane.b32.xlu0 %v412_v18, 288 }
  0xd7   : > { %v14017_v25 = vpop.permute.xlu1 %198  ;;  %v14019_v26 = vpop.permute.xlu0 %194 }
  0xd8   : > { %22697 = vst [vmem:[#allocation29_spill] sm:$0xff] %v14017_v25  ;;  %22698 = vst [vmem:[#allocation30_spill] sm:$0xff] %v14019_v26 }
  0xd9   : > { %442 = vbcast.lane.b32.xlu1 %v412_v18, 312  ;;  %438 = vbcast.lane.b32.xlu0 %v412_v18, 304 }
  0xdb   : > { %v14021_v27 = vpop.permute.xlu1 %206  ;;  %v14023_v28 = vpop.permute.xlu0 %202 }
  0xdc   : > { %22699 = vst [vmem:[#allocation31_spill] sm:$0xff] %v14021_v27  ;;  %22700 = vst [vmem:[#allocation32_spill] sm:$0xff] %v14023_v28 }
  0xdd   : > { %450 = vbcast.lane.b32.xlu1 %v412_v18, 328  ;;  %446 = vbcast.lane.b32.xlu0 %v412_v18, 320 }
  0xdf   : > { %v14025_v29 = vpop.permute.xlu1 %217  ;;  %v14027_v30 = vpop.permute.xlu0 %213 }
  0xe0   : > { %22701 = vst [vmem:[#allocation33_spill] sm:$0xff] %v14025_v29 }
  0xe1   : > { %458 = vbcast.lane.b32.xlu1 %v412_v18, 344  ;;  %454 = vbcast.lane.b32.xlu0 %v412_v18, 336 }
  0xe3   : > { %v14029_v31 = vpop.permute.xlu1 %225  ;;  %v14031_v32 = vpop.permute.xlu0 %221 }
  0xe4   : > { %22702 = vst [vmem:[#allocation34_spill] sm:$0xff] %v14029_v31  ;;  %22703 = vst [vmem:[#allocation35_spill] sm:$0xff] %v14031_v32  ;;  %v13805_v31 = vmov 1983009808  }
  0xe5   : > { %466 = vbcast.lane.b32.xlu1 %v412_v18, 360  ;;  %462 = vbcast.lane.b32.xlu0 %v412_v18, 352 }
  0xe7   : > { %v14036_v34 = vpop.permute.xlu1 %233  ;;  %v14038_v35 = vpop.permute.xlu0 %229 }
  0xe8   : > { %22704 = vst [vmem:[#allocation36_spill] sm:$0xff] %v14036_v34  ;;  %22705 = vst [vmem:[#allocation37_spill] sm:$0xff] %v14038_v35 }
  0xe9   : > { %474 = vbcast.lane.b32.xlu1 %v412_v18, 376  ;;  %470 = vbcast.lane.b32.xlu0 %v412_v18, 368  ;;  %v14108_v18 = vsub.s32 7, %v13963_v1 }
  0xeb   : > { %v14042_v37 = vpop.permute.xlu1 %241  ;;  %v14044_v38 = vpop.permute.xlu0 %237 }
  0xec   : > { %22706 = vst [vmem:[#allocation38_spill] sm:$0xff] %v14042_v37  ;;  %22707 = vst [vmem:[#allocation39_spill] sm:$0xff] %v14044_v38 }
  0xed   : > { %485 = vbcast.lane.b32.xlu1 %v479_v36, 264  ;;  %481 = vbcast.lane.b32.xlu0 %v479_v36, 256 }
  0xef   : > { %v14046_v39 = vpop.permute.xlu1 %249  ;;  %v14048_v40 = vpop.permute.xlu0 %245 }
  0xf0   : > { %22708 = vst [vmem:[#allocation40_spill] sm:$0xff] %v14046_v39  ;;  %22709 = vst [vmem:[#allocation41_spill] sm:$0xff] %v14048_v40 }
  0xf1   : > { %493 = vbcast.lane.b32.xlu1 %v479_v36, 280  ;;  %489 = vbcast.lane.b32.xlu0 %v479_v36, 272 }
  0xf3   : > { %v14050_v41 = vpop.permute.xlu1 %257  ;;  %v14052_v42 = vpop.permute.xlu0 %253 }
  0xf4   : > { %22710 = vst [vmem:[#allocation42_spill] sm:$0xff] %v14050_v41  ;;  %22711 = vst [vmem:[#allocation43_spill] sm:$0xff] %v14052_v42  ;;  %v14145_v42 = vld [vmem:[%s13957_s30 + $0x8] sm:$0xff] }
  0xf5   : > { %501 = vbcast.lane.b32.xlu1 %v479_v36, 296  ;;  %497 = vbcast.lane.b32.xlu0 %v479_v36, 288 }
  0xf7   : > { %v14054_v43 = vpop.permute.xlu1 %265  ;;  %v14056_v44 = vpop.permute.xlu0 %261 }
  0xf8   : > { %22712 = vst [vmem:[#allocation44_spill] sm:$0xff] %v14054_v43  ;;  %22713 = vst [vmem:[#allocation45_spill] sm:$0xff] %v14056_v44 }
  0xf9   : > { %509 = vbcast.lane.b32.xlu1 %v479_v36, 312  ;;  %505 = vbcast.lane.b32.xlu0 %v479_v36, 304 }
  0xfb   : > { %v14058_v45 = vpop.permute.xlu1 %273  ;;  %v14060_v46 = vpop.permute.xlu0 %269 }
  0xfc   : > { %22714 = vst [vmem:[#allocation46_spill] sm:$0xff] %v14058_v45  ;;  %22715 = vst [vmem:[#allocation47_spill] sm:$0xff] %v14060_v46 }
  0xfd   : > { %517 = vbcast.lane.b32.xlu1 %v479_v36, 328  ;;  %513 = vbcast.lane.b32.xlu0 %v479_v36, 320 }
  0xff   : > { %v14062_v47 = vpop.permute.xlu1 %284  ;;  %v14064_v48 = vpop.permute.xlu0 %280 }
 0x100   : > { %22716 = vst [vmem:[#allocation48_spill] sm:$0xff] %v14062_v47 }
 0x101   : > { %525 = vbcast.lane.b32.xlu1 %v479_v36, 344  ;;  %521 = vbcast.lane.b32.xlu0 %v479_v36, 336 }
 0x103   : > { %v14066_v49 = vpop.permute.xlu1 %292  ;;  %v14068_v50 = vpop.permute.xlu0 %288 }
 0x104   : > { %22717 = vst [vmem:[#allocation49_spill] sm:$0xff] %v14066_v49  ;;  %22718 = vst [vmem:[#allocation50_spill] sm:$0xff] %v14068_v50  ;;  %v13806_v50 = vmov 1934713408  }
 0x105   : > { %533 = vbcast.lane.b32.xlu1 %v479_v36, 360  ;;  %529 = vbcast.lane.b32.xlu0 %v479_v36, 352 }
 0x107   : > { %v14073_v52 = vpop.permute.xlu1 %300  ;;  %v14075_v53 = vpop.permute.xlu0 %296 }
 0x108   : > { %22719 = vst [vmem:[#allocation51_spill] sm:$0xff] %v14073_v52  ;;  %22720 = vst [vmem:[#allocation52_spill] sm:$0xff] %v14075_v53 }
 0x109   : > { %541 = vbcast.lane.b32.xlu1 %v479_v36, 376  ;;  %537 = vbcast.lane.b32.xlu0 %v479_v36, 368 }
 0x10b   : > { %v14079_v55 = vpop.permute.xlu1 %308  ;;  %v14081_v56 = vpop.permute.xlu0 %304 }
 0x10c   : > { %22721 = vst [vmem:[#allocation53_spill] sm:$0xff] %v14079_v55  ;;  %22722 = vst [vmem:[#allocation54_spill] sm:$0xff] %v14081_v56 }
 0x10d   : > { %552 = vbcast.lane.b32.xlu1 %v546_v54, 264  ;;  %548 = vbcast.lane.b32.xlu0 %v546_v54, 256 }
 0x10f   : > { %v14083_v57 = vpop.permute.xlu1 %316  ;;  %v14085_v58 = vpop.permute.xlu0 %312 }
 0x110   : > { %22723 = vst [vmem:[#allocation55_spill] sm:$0xff] %v14083_v57  ;;  %22724 = vst [vmem:[#allocation56_spill] sm:$0xff] %v14085_v58 }
 0x111   : > { %560 = vbcast.lane.b32.xlu1 %v546_v54, 280  ;;  %556 = vbcast.lane.b32.xlu0 %v546_v54, 272 }
 0x113   : > { %v14087_v59 = vpop.permute.xlu1 %324  ;;  %v14089_v60 = vpop.permute.xlu0 %320 }
 0x114   : > { %22725 = vst [vmem:[#allocation57_spill] sm:$0xff] %v14087_v59  ;;  %22726 = vst [vmem:[#allocation58_spill] sm:$0xff] %v14089_v60 }
 0x115   : > { %568 = vbcast.lane.b32.xlu1 %v546_v54, 296  ;;  %564 = vbcast.lane.b32.xlu0 %v546_v54, 288 }
 0x117   : > { %v14091_v61 = vpop.permute.xlu1 %332  ;;  %v14093_v62 = vpop.permute.xlu0 %328 }
 0x118   : > { %22727 = vst [vmem:[#allocation59_spill] sm:$0xff] %v14091_v61  ;;  %22728 = vst [vmem:[#allocation60_spill] sm:$0xff] %v14093_v62 }
 0x119   : > { %576 = vbcast.lane.b32.xlu1 %v546_v54, 312  ;;  %572 = vbcast.lane.b32.xlu0 %v546_v54, 304 }
 0x11b   : > { %v14095_v63 = vpop.permute.xlu1 %340  ;;  %v14097_v0 = vpop.permute.xlu0 %336 }
 0x11c   : > { %22729 = vst [vmem:[#allocation61_spill] sm:$0xff] %v14095_v63  ;;  %22730 = vst [vmem:[#allocation62_spill] sm:$0xff] %v14097_v0  ;;  %v613_v63 = vrot.slane %v13969_v3, %v14108_v18 }
 0x11d   : > { %584 = vbcast.lane.b32.xlu1 %v546_v54, 328  ;;  %580 = vbcast.lane.b32.xlu0 %v546_v54, 320 }
 0x11f   : > { %v14099_v4 = vpop.permute.xlu1 %351  ;;  %v14101_v6 = vpop.permute.xlu0 %347 }
 0x120   : > { %22731 = vst [vmem:[#allocation63_spill] sm:$0xff] %v14099_v4 }
 0x121   : > { %592 = vbcast.lane.b32.xlu1 %v546_v54, 344  ;;  %588 = vbcast.lane.b32.xlu0 %v546_v54, 336 }
 0x123   : > { %v14103_v8 = vpop.permute.xlu1 %359  ;;  %v14105_v10 = vpop.permute.xlu0 %355 }
 0x124   : > { %22732 = vst [vmem:[#allocation64_spill] sm:$0xff] %v14103_v8  ;;  %22733 = vst [vmem:[#allocation65_spill] sm:$0xff] %v14105_v10 }
 0x125   : > { %600 = vbcast.lane.b32.xlu1 %v546_v54, 360  ;;  %596 = vbcast.lane.b32.xlu0 %v546_v54, 352 }
 0x127   : > { %v14110_v36 = vpop.permute.xlu1 %367  ;;  %v14112_v27 = vpop.permute.xlu0 %363 }
 0x128   : > { %22734 = vst [vmem:[#allocation66_spill] sm:$0xff] %v14110_v36  ;;  %22735 = vst [vmem:[#allocation67_spill] sm:$0xff] %v14112_v27 }
 0x129   : > { %608 = vbcast.lane.b32.xlu1 %v546_v54, 376  ;;  %604 = vbcast.lane.b32.xlu0 %v546_v54, 368 }
 0x12b   : > { %v14116_v45 = vpop.permute.xlu1 %375  ;;  %v14118_v46 = vpop.permute.xlu0 %371 }
 0x12c   : > { %22736 = vst [vmem:[#allocation68_spill] sm:$0xff] %v14116_v45  ;;  %22737 = vst [vmem:[#allocation69_spill] sm:$0xff] %v14118_v46 }
 0x12d   : > { %619 = vbcast.lane.b32.xlu1 %v613_v63, 264  ;;  %615 = vbcast.lane.b32.xlu0 %v613_v63, 256 }
 0x12f   : > { %v14120_v28 = vpop.permute.xlu1 %383  ;;  %v14122_v0 = vpop.permute.xlu0 %379 }
 0x130   : > { %22738 = vst [vmem:[#allocation70_spill] sm:$0xff] %v14120_v28  ;;  %22739 = vst [vmem:[#allocation71_spill] sm:$0xff] %v14122_v0 }
 0x131   : > { %627 = vbcast.lane.b32.xlu1 %v613_v63, 280  ;;  %623 = vbcast.lane.b32.xlu0 %v613_v63, 272 }
 0x133   : > { %v14124_v43 = vpop.permute.xlu1 %391  ;;  %v14126_v25 = vpop.permute.xlu0 %387 }
 0x134   : > { %22740 = vst [vmem:[#allocation72_spill] sm:$0xff] %v14124_v43  ;;  %22741 = vst [vmem:[#allocation73_spill] sm:$0xff] %v14126_v25 }
 0x135   : > { %635 = vbcast.lane.b32.xlu1 %v613_v63, 296  ;;  %631 = vbcast.lane.b32.xlu0 %v613_v63, 288 }
 0x137   : > { %v14128_v3 = vpop.permute.xlu1 %399  ;;  %v14130_v54 = vpop.permute.xlu0 %395 }
 0x138   : > { %22742 = vst [vmem:[#allocation74_spill] sm:$0xff] %v14128_v3  ;;  %22743 = vst [vmem:[#allocation75_spill] sm:$0xff] %v14130_v54 }
 0x139   : > { %643 = vbcast.lane.b32.xlu1 %v613_v63, 312  ;;  %639 = vbcast.lane.b32.xlu0 %v613_v63, 304 }
 0x13b   : > { %v14132_v61 = vpop.permute.xlu1 %407  ;;  %v14134_v41 = vpop.permute.xlu0 %403 }
 0x13c   : > { %22744 = vst [vmem:[#allocation76_spill] sm:$0xff] %v14132_v61  ;;  %22745 = vst [vmem:[#allocation77_spill] sm:$0xff] %v14134_v41  ;;  %v680_v41 = vrot.slane %v14145_v42, %v13966_v2 }
 0x13d   : > { %651 = vbcast.lane.b32.xlu1 %v613_v63, 328  ;;  %647 = vbcast.lane.b32.xlu0 %v613_v63, 320 }
 0x13f   : > { %v14136_v23 = vpop.permute.xlu1 %418  ;;  %v14138_v43 = vpop.permute.xlu0 %414 }
 0x140   : > { %22746 = vst [vmem:[#allocation78_spill] sm:$0xff] %v14136_v23 }
 0x141   : > { %659 = vbcast.lane.b32.xlu1 %v613_v63, 344  ;;  %655 = vbcast.lane.b32.xlu0 %v613_v63, 336 }
 0x143   : > { %v14140_v59 = vpop.permute.xlu1 %426  ;;  %v14142_v3 = vpop.permute.xlu0 %422 }
 0x144   : > { %22747 = vst [vmem:[#allocation79_spill] sm:$0xff] %v14140_v59  ;;  %22748 = vst [vmem:[#allocation80_spill] sm:$0xff] %v14142_v3  ;;  %v2352_v3 = vunpack.c.l.s4 %v13806_v50 }
 0x145   : > { %667 = vbcast.lane.b32.xlu1 %v613_v63, 360  ;;  %663 = vbcast.lane.b32.xlu0 %v613_v63, 352 }
 0x146   : > { %v2353_v50 = vunpack.c.0.s8 %v2352_v3 }
 0x147   : > { %v14147_v25 = vpop.permute.xlu1 %434  ;;  %v14149_v61 = vpop.permute.xlu0 %430 }
 0x148   : > { %22749 = vst [vmem:[#allocation81_spill] sm:$0xff] %v14147_v25  ;;  %22750 = vst [vmem:[#allocation82_spill] sm:$0xff] %v14149_v61 }
 0x149   : > { %675 = vbcast.lane.b32.xlu1 %v613_v63, 376  ;;  %671 = vbcast.lane.b32.xlu0 %v613_v63, 368 }
 0x14b   : > { %v14153_v24 = vpop.permute.xlu1 %442  ;;  %v14155_v60 = vpop.permute.xlu0 %438 }
 0x14c   : > { %22751 = vst [vmem:[#allocation83_spill] sm:$0xff] %v14153_v24  ;;  %22752 = vst [vmem:[#allocation84_spill] sm:$0xff] %v14155_v60 }
 0x14d   : > { %686 = vbcast.lane.b32.xlu1 %v680_v41, 264  ;;  %682 = vbcast.lane.b32.xlu0 %v680_v41, 256 }
 0x14f   : > { %v14157_v39 = vpop.permute.xlu1 %450  ;;  %v14159_v28 = vpop.permute.xlu0 %446 }
 0x150   : > { %22753 = vst [vmem:[#allocation85_spill] sm:$0xff] %v14157_v39  ;;  %22754 = vst [vmem:[#allocation86_spill] sm:$0xff] %v14159_v28 }
 0x151   : > { %694 = vbcast.lane.b32.xlu1 %v680_v41, 280  ;;  %690 = vbcast.lane.b32.xlu0 %v680_v41, 272 }
 0x153   : > { %v14161_v21 = vpop.permute.xlu1 %458  ;;  %v14163_v57 = vpop.permute.xlu0 %454 }
 0x154   : > { %22755 = vst [vmem:[#allocation87_spill] sm:$0xff] %v14161_v21  ;;  %22756 = vst [vmem:[#allocation88_spill] sm:$0xff] %v14163_v57 }
 0x155   : > { %702 = vbcast.lane.b32.xlu1 %v680_v41, 296  ;;  %698 = vbcast.lane.b32.xlu0 %v680_v41, 288 }
 0x157   : > { %v14165_v37 = vpop.permute.xlu1 %466  ;;  %v14167_v63 = vpop.permute.xlu0 %462 }
 0x158   : > { %22757 = vst [vmem:[#allocation89_spill] sm:$0xff] %v14165_v37  ;;  %22758 = vst [vmem:[#allocation90_spill] sm:$0xff] %v14167_v63 }
 0x159   : > { %710 = vbcast.lane.b32.xlu1 %v680_v41, 312  ;;  %706 = vbcast.lane.b32.xlu0 %v680_v41, 304 }
 0x15b   : > { %v14169_v24 = vpop.permute.xlu1 %474  ;;  %v14171_v45 = vpop.permute.xlu0 %470 }
 0x15c   : > { %22759 = vst [vmem:[#allocation91_spill] sm:$0xff] %v14169_v24  ;;  %22760 = vst [vmem:[#allocation92_spill] sm:$0xff] %v14171_v45  ;;  %v747_v24 = vrot.slane %v14145_v42, %v13974_v5 }
 0x15d   : > { %718 = vbcast.lane.b32.xlu1 %v680_v41, 328  ;;  %714 = vbcast.lane.b32.xlu0 %v680_v41, 320 }
 0x15f   : > { %v14173_v39 = vpop.permute.xlu1 %485  ;;  %v14175_v19 = vpop.permute.xlu0 %481 }
 0x160   : > { %22761 = vst [vmem:[#allocation93_spill] sm:$0xff] %v14173_v39 }
 0x161   : > { %726 = vbcast.lane.b32.xlu1 %v680_v41, 344  ;;  %722 = vbcast.lane.b32.xlu0 %v680_v41, 336 }
 0x163   : > { %v14177_v21 = vpop.permute.xlu1 %493  ;;  %v14179_v57 = vpop.permute.xlu0 %489 }
 0x164   : > { %22762 = vst [vmem:[#allocation94_spill] sm:$0xff] %v14177_v21  ;;  %22763 = vst [vmem:[#allocation95_spill] sm:$0xff] %v14179_v57 }
 0x165   : > { %734 = vbcast.lane.b32.xlu1 %v680_v41, 360  ;;  %730 = vbcast.lane.b32.xlu0 %v680_v41, 352 }
 0x167   : > { %v14181_v37 = vpop.permute.xlu1 %501  ;;  %v14183_v55 = vpop.permute.xlu0 %497 }
 0x168   : > { %22764 = vst [vmem:[#allocation96_spill] sm:$0xff] %v14181_v37  ;;  %22765 = vst [vmem:[#allocation97_spill] sm:$0xff] %v14183_v55 }
 0x169   : > { %742 = vbcast.lane.b32.xlu1 %v680_v41, 376  ;;  %738 = vbcast.lane.b32.xlu0 %v680_v41, 368 }
 0x16b   : > { %v14187_v45 = vpop.permute.xlu1 %509  ;;  %v14189_v60 = vpop.permute.xlu0 %505 }
 0x16c   : > { %22766 = vst [vmem:[#allocation98_spill] sm:$0xff] %v14187_v45  ;;  %22767 = vst [vmem:[#allocation99_spill] sm:$0xff] %v14189_v60 }
 0x16d   : > { %753 = vbcast.lane.b32.xlu1 %v747_v24, 264  ;;  %749 = vbcast.lane.b32.xlu0 %v747_v24, 256 }
 0x16f   : > { %v14191_v38 = vpop.permute.xlu1 %517  ;;  %v14193_v46 = vpop.permute.xlu0 %513 }
 0x170   : > { %22768 = vst [vmem:[#allocation100_spill] sm:$0xff] %v14191_v38  ;;  %22769 = vst [vmem:[#allocation101_spill] sm:$0xff] %v14193_v46 }
 0x171   : > { %761 = vbcast.lane.b32.xlu1 %v747_v24, 280  ;;  %757 = vbcast.lane.b32.xlu0 %v747_v24, 272 }
 0x173   : > { %v14195_v20 = vpop.permute.xlu1 %525  ;;  %v14197_v56 = vpop.permute.xlu0 %521 }
 0x174   : > { %22770 = vst [vmem:[#allocation102_spill] sm:$0xff] %v14195_v20  ;;  %22771 = vst [vmem:[#allocation103_spill] sm:$0xff] %v14197_v56 }
 0x175   : > { %769 = vbcast.lane.b32.xlu1 %v747_v24, 296  ;;  %765 = vbcast.lane.b32.xlu0 %v747_v24, 288 }
 0x177   : > { %v14199_v25 = vpop.permute.xlu1 %533  ;;  %v14201_v41 = vpop.permute.xlu0 %529 }
 0x178   : > { %22772 = vst [vmem:[#allocation104_spill] sm:$0xff] %v14199_v25  ;;  %22773 = vst [vmem:[#allocation105_spill] sm:$0xff] %v14201_v41 }
 0x179   : > { %777 = vbcast.lane.b32.xlu1 %v747_v24, 312  ;;  %773 = vbcast.lane.b32.xlu0 %v747_v24, 304 }
 0x17b   : > { %v14203_v45 = vpop.permute.xlu1 %541  ;;  %v14205_v60 = vpop.permute.xlu0 %537 }
 0x17c   : > { %22774 = vst [vmem:[#allocation106_spill] sm:$0xff] %v14203_v45  ;;  %22775 = vst [vmem:[#allocation107_spill] sm:$0xff] %v14205_v60  ;;  %v814_v45 = vrot.slane %v14145_v42, %v13979_v7 }
 0x17d   : > { %785 = vbcast.lane.b32.xlu1 %v747_v24, 328  ;;  %781 = vbcast.lane.b32.xlu0 %v747_v24, 320 }
 0x17f   : > { %v14207_v38 = vpop.permute.xlu1 %552  ;;  %v14209_v34 = vpop.permute.xlu0 %548 }
 0x180   : > { %22776 = vst [vmem:[#allocation108_spill] sm:$0xff] %v14207_v38 }
 0x181   : > { %793 = vbcast.lane.b32.xlu1 %v747_v24, 344  ;;  %789 = vbcast.lane.b32.xlu0 %v747_v24, 336 }
 0x183   : > { %v14211_v20 = vpop.permute.xlu1 %560  ;;  %v14213_v56 = vpop.permute.xlu0 %556 }
 0x184   : > { %22777 = vst [vmem:[#allocation109_spill] sm:$0xff] %v14211_v20  ;;  %22778 = vst [vmem:[#allocation110_spill] sm:$0xff] %v14213_v56  ;;  %v2285_v56 = vcombine.low %v13990_v12, %v14064_v48 }
 0x185   : > { %801 = vbcast.lane.b32.xlu1 %v747_v24, 360  ;;  %797 = vbcast.lane.b32.xlu0 %v747_v24, 352 }
 0x187   : > { %v14215_v25 = vpop.permute.xlu1 %568  ;;  %v14217_v36 = vpop.permute.xlu0 %564 }
 0x188   : > { %22779 = vst [vmem:[#allocation111_spill] sm:$0xff] %v14215_v25  ;;  %22780 = vst [vmem:[#allocation112_spill] sm:$0xff] %v14217_v36  ;;  %v4493_v14 = vcombine.low %v14149_v61, %v14217_v36 }
 0x189   : > { %809 = vbcast.lane.b32.xlu1 %v747_v24, 376  ;;  %805 = vbcast.lane.b32.xlu0 %v747_v24, 368 }
 0x18b   : > { %v14221_v60 = vpop.permute.xlu1 %576  ;;  %v14223_v16 = vpop.permute.xlu0 %572 }
 0x18c   : > { %22781 = vst [vmem:[#allocation113_spill] sm:$0xff] %v14221_v60  ;;  %22782 = vst [vmem:[#allocation114_spill] sm:$0xff] %v14223_v16 }
 0x18d   : > { %820 = vbcast.lane.b32.xlu1 %v814_v45, 264  ;;  %816 = vbcast.lane.b32.xlu0 %v814_v45, 256 }
 0x18f   : > { %v14225_v52 = vpop.permute.xlu1 %584  ;;  %v14227_v37 = vpop.permute.xlu0 %580 }
 0x190   : > { %22783 = vst [vmem:[#allocation115_spill] sm:$0xff] %v14225_v52  ;;  %22784 = vst [vmem:[#allocation116_spill] sm:$0xff] %v14227_v37 }
 0x191   : > { %828 = vbcast.lane.b32.xlu1 %v814_v45, 280  ;;  %824 = vbcast.lane.b32.xlu0 %v814_v45, 272 }
 0x193   : > { %v14229_v25 = vpop.permute.xlu1 %592  ;;  %v14231_v13 = vpop.permute.xlu0 %588 }
 0x194   : > { %22785 = vst [vmem:[#allocation117_spill] sm:$0xff] %v14229_v25  ;;  %22786 = vst [vmem:[#allocation118_spill] sm:$0xff] %v14231_v13 }
 0x195   : > { %836 = vbcast.lane.b32.xlu1 %v814_v45, 296  ;;  %832 = vbcast.lane.b32.xlu0 %v814_v45, 288 }
 0x197   : > { %v14233_v49 = vpop.permute.xlu1 %600  ;;  %v14235_v24 = vpop.permute.xlu0 %596 }
 0x198   : > { %22787 = vst [vmem:[#allocation119_spill] sm:$0xff] %v14233_v49  ;;  %22788 = vst [vmem:[#allocation120_spill] sm:$0xff] %v14235_v24 }
 0x199   : > { %844 = vbcast.lane.b32.xlu1 %v814_v45, 312  ;;  %840 = vbcast.lane.b32.xlu0 %v814_v45, 304 }
 0x19b   : > { %v14237_v60 = vpop.permute.xlu1 %608  ;;  %v14239_v16 = vpop.permute.xlu0 %604 }
 0x19c   : > { %22789 = vst [vmem:[#allocation121_spill] sm:$0xff] %v14237_v60  ;;  %22790 = vst [vmem:[#allocation122_spill] sm:$0xff] %v14239_v16  ;;  %v14255_v60 = vrot.slane %v14145_v42, %v13984_v9 }
 0x19d   : > { %852 = vbcast.lane.b32.xlu1 %v814_v45, 328  ;;  %848 = vbcast.lane.b32.xlu0 %v814_v45, 320 }
 0x19f   : > { %v14241_v52 = vpop.permute.xlu1 %619  ;;  %v14243_v59 = vpop.permute.xlu0 %615 }
 0x1a0   : > { %22791 = vst [vmem:[#allocation123_spill] sm:$0xff] %v14241_v52 }
 0x1a1   : > { %860 = vbcast.lane.b32.xlu1 %v814_v45, 344  ;;  %856 = vbcast.lane.b32.xlu0 %v814_v45, 336 }
 0x1a3   : > { %v14245_v25 = vpop.permute.xlu1 %627  ;;  %v14247_v13 = vpop.permute.xlu0 %623 }
 0x1a4   : > { %22792 = vst [vmem:[#allocation124_spill] sm:$0xff] %v14245_v25  ;;  %22793 = vst [vmem:[#allocation125_spill] sm:$0xff] %v14247_v13 }
 0x1a5   : > { %868 = vbcast.lane.b32.xlu1 %v814_v45, 360  ;;  %864 = vbcast.lane.b32.xlu0 %v814_v45, 352 }
 0x1a7   : > { %v14249_v49 = vpop.permute.xlu1 %635  ;;  %v14251_v20 = vpop.permute.xlu0 %631 }
 0x1a8   : > { %22794 = vst [vmem:[#allocation126_spill] sm:$0xff] %v14249_v49  ;;  %22795 = vst [vmem:[#allocation127_spill] sm:$0xff] %v14251_v20  ;;  %v2288_v49 = vunpack.c.l.s4 %v13805_v31 }
 0x1a9   : > { %876 = vbcast.lane.b32.xlu1 %v814_v45, 376  ;;  %872 = vbcast.lane.b32.xlu0 %v814_v45, 368 }
 0x1aa   : > { %v2289_v45 = vunpack.c.0.s8 %v2288_v49  ;;  %v2317_v49 = vcombine.low %v14138_v43, %v14209_v34 }
 0x1ab   : > { %v14257_v16 = vpop.permute.xlu1 %643  ;;  %v14259_v21 = vpop.permute.xlu0 %639 }
 0x1ac   : > { %22796 = vst [vmem:[#allocation128_spill] sm:$0xff] %v14257_v16  ;;  %22797 = vst [vmem:[#allocation129_spill] sm:$0xff] %v14259_v21  ;;  %v2333_v21 = vcombine.low %v14175_v19, %v14243_v59  ;;  %v14280_v31 = vsub.s32 %v2289_v45, %v13963_v1 }
 0x1ad   : > { %887 = vbcast.lane.b32.xlu1 %v14255_v60, 264  ;;  %883 = vbcast.lane.b32.xlu0 %v14255_v60, 256 }
 0x1ae   : > { %v14301_v10 = vrot.slane %v2317_v49, %v14280_v31  ;;  %v14307_v13 = vrot.slane %v2285_v56, %v14280_v31  ;;  %v4509_v49 = vcombine.low %v14183_v55, %v14251_v20  ;;  %v4477_v56 = vcombine.low %v14038_v35, %v14112_v27 }
 0x1af   : > { %v14263_v25 = vpop.permute.xlu1 %651  ;;  %v14265_v8 = vpop.permute.xlu0 %647  ;;  %v4461_v55 = vcombine.low %v14001_v17, %v14075_v53 }
 0x1b0   : > { %22798 = vst [vmem:[#allocation130_spill] sm:$0xff] %v14263_v25  ;;  %22799 = vst [vmem:[#allocation131_spill] sm:$0xff] %v14265_v8  ;;  %v14337_v20 = vrot.slane %v4509_v49, %v14280_v31  ;;  %v14346_v61 = vrot.slane %v4477_v56, %v14280_v31  ;;  %v6685_v53 = vcombine.low %v14193_v46, %v14265_v8 }
 0x1b1   : > { %895 = vbcast.lane.b32.xlu1 %v14255_v60, 280  ;;  %891 = vbcast.lane.b32.xlu0 %v14255_v60, 272  ;;  %v14357_v36 = vrot.slane %v4461_v55, %v14280_v31 }
 0x1b2   : > { %22810 = vst [vmem:[#allocation142_spill] sm:$0xff] %v14337_v20  ;;  %22813 = vst [vmem:[#allocation145_spill] sm:$0xff] %v14346_v61 }
 0x1b3   : > { %v14269_v11 = vpop.permute.xlu1 %659  ;;  %v14271_v16 = vpop.permute.xlu0 %655  ;;  %22816 = vst [vmem:[#allocation148_spill] sm:$0xff] %v14357_v36  ;;  %v4525_v56 = vcombine.low %v14357_v36, %v14346_v61 }
 0x1b4   : > { %22800 = vst [vmem:[#allocation132_spill] sm:$0xff] %v14269_v11  ;;  %22801 = vst [vmem:[#allocation133_spill] sm:$0xff] %v14271_v16  ;;  %v2301_v11 = vcombine.low %v14027_v30, %v14101_v6 }
 0x1b5   : > { %903 = vbcast.lane.b32.xlu1 %v14255_v60, 296  ;;  %899 = vbcast.lane.b32.xlu0 %v14255_v60, 288 }
 0x1b6   : > { %v14298_v32 = vrot.slane %v2301_v11, %v14280_v31  ;;  %v14315_v11 = vsub.s32 %v2353_v50, %v13963_v1 }
 0x1b7   : > { %v14277_v25 = vpop.permute.xlu1 %667  ;;  %v14286_v16 = vpop.permute.xlu0 %663 }
 0x1b8   : > { %22802 = vst [vmem:[#allocation134_spill] sm:$0xff] %v14277_v25  ;;  %22803 = vst [vmem:[#allocation135_spill] sm:$0xff] %v14286_v16  ;;  %v14292_v25 = vrot.slane %v2333_v21, %v14280_v31  ;;  %v2349_v3 = vcombine.low %v14307_v13, %v14298_v32  ;;  %v14381_v17 = vrot.slane %v4525_v56, %v14315_v11 }
 0x1b9   : > { %911 = vbcast.lane.b32.xlu1 %v14255_v60, 312  ;;  %907 = vbcast.lane.b32.xlu0 %v14255_v60, 304  ;;  %v6637_v56 = vcombine.low %v14011_v22, %v14085_v58 }
 0x1ba   : > { %v2381_v21 = vcombine.low %v14301_v10, %v14292_v25  ;;  %v14342_v35 = vrot.slane %v2349_v3, %v14315_v11  ;;  %22821 = vst [vmem:[#allocation153_spill] sm:$0xff] %v14381_v17 }
 0x1bb   : > { %v14295_v45 = vpop.permute.xlu1 %675  ;;  %v14303_v57 = vpop.permute.xlu0 %671 }
 0x1bc   : > { %22804 = vst [vmem:[#allocation136_spill] sm:$0xff] %v14295_v45  ;;  %22805 = vst [vmem:[#allocation137_spill] sm:$0xff] %v14303_v57  ;;  %v14330_v1 = vrot.slane %v2381_v21, %v14315_v11  ;;  %v14349_v21 = vrot.slane %v4493_v14, %v14280_v31  ;;  %v14366_v14 = vrot.slane %v14145_v42, %v13997_v15 }
 0x1bd   : > { %919 = vbcast.lane.b32.xlu1 %v14255_v60, 328  ;;  %915 = vbcast.lane.b32.xlu0 %v14255_v60, 320  ;;  %22812 = vst [vmem:[#allocation144_spill] sm:$0xff] %v14342_v35 }
 0x1be   : > { %22808 = vst [vmem:[#allocation140_spill] sm:$0xff] %v14330_v1  ;;  %22814 = vst [vmem:[#allocation146_spill] sm:$0xff] %v14349_v21  ;;  %v4557_v3 = vcombine.low %v14349_v21, %v14337_v20  ;;  %v14602_v20 = vld [vmem:[%s13957_s30 + $0x10] sm:$0xff] }
 0x1bf   : > { %v14312_v45 = vpop.permute.xlu1 %686  ;;  %v14321_v57 = vpop.permute.xlu0 %682 }
 0x1c0   : > { %22806 = vst [vmem:[#allocation138_spill] sm:$0xff] %v14312_v45  ;;  %22807 = vst [vmem:[#allocation139_spill] sm:$0xff] %v14321_v57 }
 0x1c1   : > { %927 = vbcast.lane.b32.xlu1 %v14255_v60, 344  ;;  %923 = vbcast.lane.b32.xlu0 %v14255_v60, 336 }
 0x1c3   : > { %v14332_v50 = vpop.permute.xlu1 %694  ;;  %v14339_v45 = vpop.permute.xlu0 %690 }
 0x1c4   : > { %22809 = vst [vmem:[#allocation141_spill] sm:$0xff] %v14332_v50  ;;  %22811 = vst [vmem:[#allocation143_spill] sm:$0xff] %v14339_v45 }
 0x1c5   : > { %935 = vbcast.lane.b32.xlu1 %v14255_v60, 360  ;;  %931 = vbcast.lane.b32.xlu0 %v14255_v60, 352 }
 0x1c7   : > { %v14354_v49 = vpop.permute.xlu1 %702  ;;  %v14361_v27 = vpop.permute.xlu0 %698 }
 0x1c8   : > { %22815 = vst [vmem:[#allocation147_spill] sm:$0xff] %v14354_v49  ;;  %22817 = vst [vmem:[#allocation149_spill] sm:$0xff] %v14361_v27  ;;  %v14376_v49 = vrot.slane %v4557_v3, %v14315_v11  ;;  %v6653_v3 = vcombine.low %v14048_v40, %v14122_v0 }
 0x1c9   : > { %943 = vbcast.lane.b32.xlu1 %v14255_v60, 376  ;;  %939 = vbcast.lane.b32.xlu0 %v14255_v60, 368 }
 0x1ca   : > { %22820 = vst [vmem:[#allocation152_spill] sm:$0xff] %v14376_v49 }
 0x1cb   : > { %v14371_v50 = vpop.permute.xlu1 %710  ;;  %v14373_v55 = vpop.permute.xlu0 %706 }
 0x1cc   : > { %22818 = vst [vmem:[#allocation150_spill] sm:$0xff] %v14371_v50  ;;  %22819 = vst [vmem:[#allocation151_spill] sm:$0xff] %v14373_v55  ;;  %v6669_v55 = vcombine.low %v14159_v28, %v14227_v37  ;;  %v14407_v50 = vrot.slane %v6653_v3, %v14280_v31  ;;  %v14415_v28 = vrot.slane %v6637_v56, %v14280_v31 }
 0x1cd   : > { %954 = vbcast.lane.b32.xlu1 %v14366_v14, 264  ;;  %950 = vbcast.lane.b32.xlu0 %v14366_v14, 256  ;;  %v8829_v56 = vcombine.low %v14056_v44, %v14130_v54 }
 0x1ce   : > { %22827 = vst [vmem:[#allocation159_spill] sm:$0xff] %v14407_v50  ;;  %v14410_v40 = vrot.slane %v6669_v55, %v14280_v31  ;;  %22829 = vst [vmem:[#allocation161_spill] sm:$0xff] %v14415_v28  ;;  %v6701_v3 = vcombine.low %v14415_v28, %v14407_v50  ;;  %v8861_v55 = vcombine.low %v14201_v41, %v14286_v16 }
 0x1cf   : > { %v14385_v36 = vpop.permute.xlu1 %718  ;;  %v14387_v60 = vpop.permute.xlu0 %714  ;;  %v8813_v41 = vcombine.low %v14019_v26, %v14093_v62 }
 0x1d0   : > { %22822 = vst [vmem:[#allocation154_spill] sm:$0xff] %v14385_v36  ;;  %22823 = vst [vmem:[#allocation155_spill] sm:$0xff] %v14387_v60  ;;  %v14400_v36 = vrot.slane %v6685_v53, %v14280_v31  ;;  %v14443_v16 = vrot.slane %v8861_v55, %v14280_v31  ;;  %v14447_v44 = vrot.slane %v6701_v3, %v14315_v11 }
 0x1d1   : > { %962 = vbcast.lane.b32.xlu1 %v14366_v14, 280  ;;  %958 = vbcast.lane.b32.xlu0 %v14366_v14, 272  ;;  %22828 = vst [vmem:[#allocation160_spill] sm:$0xff] %v14410_v40 }
 0x1d2   : > { %22824 = vst [vmem:[#allocation156_spill] sm:$0xff] %v14400_v36  ;;  %v6733_v53 = vcombine.low %v14410_v40, %v14400_v36  ;;  %22835 = vst [vmem:[#allocation167_spill] sm:$0xff] %v14443_v16 }
 0x1d3   : > { %v14402_v46 = vpop.permute.xlu1 %726  ;;  %v14404_v8 = vpop.permute.xlu0 %722  ;;  %22836 = vst [vmem:[#allocation168_spill] sm:$0xff] %v14447_v44 }
 0x1d4   : > { %22825 = vst [vmem:[#allocation157_spill] sm:$0xff] %v14402_v46  ;;  %22826 = vst [vmem:[#allocation158_spill] sm:$0xff] %v14404_v8  ;;  %v8845_v8 = vcombine.low %v14167_v63, %v14235_v24  ;;  %v14463_v24 = vrot.slane %v8813_v41, %v14280_v31 }
 0x1d5   : > { %970 = vbcast.lane.b32.xlu1 %v14366_v14, 296  ;;  %966 = vbcast.lane.b32.xlu0 %v14366_v14, 288 }
 0x1d6   : > { %22841 = vst [vmem:[#allocation173_spill] sm:$0xff] %v14463_v24 }
 0x1d7   : > { %v14419_v37 = vpop.permute.xlu1 %734  ;;  %v14421_v46 = vpop.permute.xlu0 %730 }
 0x1d8   : > { %22830 = vst [vmem:[#allocation162_spill] sm:$0xff] %v14419_v37  ;;  %22831 = vst [vmem:[#allocation163_spill] sm:$0xff] %v14421_v46  ;;  %v14436_v37 = vrot.slane %v6733_v53, %v14315_v11  ;;  %v14454_v53 = vrot.slane %v8845_v8, %v14280_v31 }
 0x1d9   : > { %978 = vbcast.lane.b32.xlu1 %v14366_v14, 312  ;;  %974 = vbcast.lane.b32.xlu0 %v14366_v14, 304 }
 0x1da   : > { %22833 = vst [vmem:[#allocation165_spill] sm:$0xff] %v14436_v37  ;;  %22838 = vst [vmem:[#allocation170_spill] sm:$0xff] %v14454_v53  ;;  %v8909_v3 = vcombine.low %v14454_v53, %v14443_v16 }
 0x1db   : > { %v14433_v0 = vpop.permute.xlu1 %742  ;;  %v14438_v22 = vpop.permute.xlu0 %738 }
 0x1dc   : > { %22832 = vst [vmem:[#allocation164_spill] sm:$0xff] %v14433_v0  ;;  %22834 = vst [vmem:[#allocation166_spill] sm:$0xff] %v14438_v22  ;;  %v14451_v0 = vrot.slane %v8829_v56, %v14280_v31  ;;  %v14477_v63 = vrot.slane %v8909_v3, %v14315_v11 }
 0x1dd   : > { %986 = vbcast.lane.b32.xlu1 %v14366_v14, 328  ;;  %982 = vbcast.lane.b32.xlu0 %v14366_v14, 320 }
 0x1de   : > { %22837 = vst [vmem:[#allocation169_spill] sm:$0xff] %v14451_v0  ;;  %v8877_v8 = vcombine.low %v14463_v24, %v14451_v0  ;;  %22844 = vst [vmem:[#allocation176_spill] sm:$0xff] %v14477_v63  ;;  %v1015_v24 = vrot.slane %v14145_v42, %v14034_v33 }
 0x1df   : > { %v14456_v22 = vpop.permute.xlu1 %753  ;;  %v14460_v55 = vpop.permute.xlu0 %749 }
 0x1e0   : > { %22839 = vst [vmem:[#allocation171_spill] sm:$0xff] %v14456_v22  ;;  %22840 = vst [vmem:[#allocation172_spill] sm:$0xff] %v14460_v55  ;;  %v14483_v26 = vrot.slane %v8877_v8, %v14315_v11 }
 0x1e1   : > { %994 = vbcast.lane.b32.xlu1 %v14366_v14, 344  ;;  %990 = vbcast.lane.b32.xlu0 %v14366_v14, 336 }
 0x1e2   : > { %22846 = vst [vmem:[#allocation178_spill] sm:$0xff] %v14483_v26 }
 0x1e3   : > { %v14471_v56 = vpop.permute.xlu1 %761  ;;  %v14473_v54 = vpop.permute.xlu0 %757 }
 0x1e4   : > { %22842 = vst [vmem:[#allocation174_spill] sm:$0xff] %v14471_v56  ;;  %22843 = vst [vmem:[#allocation175_spill] sm:$0xff] %v14473_v54 }
 0x1e5   : > { %1002 = vbcast.lane.b32.xlu1 %v14366_v14, 360  ;;  %998 = vbcast.lane.b32.xlu0 %v14366_v14, 352 }
 0x1e7   : > { %v14480_v41 = vpop.permute.xlu1 %769  ;;  %v14485_v62 = vpop.permute.xlu0 %765 }
 0x1e8   : > { %22845 = vst [vmem:[#allocation177_spill] sm:$0xff] %v14480_v41  ;;  %22847 = vst [vmem:[#allocation179_spill] sm:$0xff] %v14485_v62 }
 0x1e9   : > { %1010 = vbcast.lane.b32.xlu1 %v14366_v14, 376  ;;  %1006 = vbcast.lane.b32.xlu0 %v14366_v14, 368 }
 0x1eb   : > { %v14493_v3 = vpop.permute.xlu1 %777  ;;  %v14495_v53 = vpop.permute.xlu0 %773 }
 0x1ec   : > { %22848 = vst [vmem:[#allocation180_spill] sm:$0xff] %v14493_v3  ;;  %22849 = vst [vmem:[#allocation181_spill] sm:$0xff] %v14495_v53 }
 0x1ed   : > { %1021 = vbcast.lane.b32.xlu1 %v1015_v24, 264  ;;  %1017 = vbcast.lane.b32.xlu0 %v1015_v24, 256 }
 0x1ef   : > { %v14497_v8 = vpop.permute.xlu1 %785  ;;  %v14499_v16 = vpop.permute.xlu0 %781 }
 0x1f0   : > { %22850 = vst [vmem:[#allocation182_spill] sm:$0xff] %v14497_v8  ;;  %22851 = vst [vmem:[#allocation183_spill] sm:$0xff] %v14499_v16 }
 0x1f1   : > { %1029 = vbcast.lane.b32.xlu1 %v1015_v24, 280  ;;  %1025 = vbcast.lane.b32.xlu0 %v1015_v24, 272 }
 0x1f3   : > { %v14501_v58 = vpop.permute.xlu1 %793  ;;  %v14503_v28 = vpop.permute.xlu0 %789 }
 0x1f4   : > { %22852 = vst [vmem:[#allocation184_spill] sm:$0xff] %v14501_v58  ;;  %22853 = vst [vmem:[#allocation185_spill] sm:$0xff] %v14503_v28 }
 0x1f5   : > { %1037 = vbcast.lane.b32.xlu1 %v1015_v24, 296  ;;  %1033 = vbcast.lane.b32.xlu0 %v1015_v24, 288 }
 0x1f7   : > { %v14505_v0 = vpop.permute.xlu1 %801  ;;  %v14507_v14 = vpop.permute.xlu0 %797 }
 0x1f8   : > { %22854 = vst [vmem:[#allocation186_spill] sm:$0xff] %v14505_v0  ;;  %22855 = vst [vmem:[#allocation187_spill] sm:$0xff] %v14507_v14 }
 0x1f9   : > { %1045 = vbcast.lane.b32.xlu1 %v1015_v24, 312  ;;  %1041 = vbcast.lane.b32.xlu0 %v1015_v24, 304 }
 0x1fb   : > { %v14509_v26 = vpop.permute.xlu1 %809  ;;  %v14511_v63 = vpop.permute.xlu0 %805 }
 0x1fc   : > { %22856 = vst [vmem:[#allocation188_spill] sm:$0xff] %v14509_v26  ;;  %22857 = vst [vmem:[#allocation189_spill] sm:$0xff] %v14511_v63  ;;  %v1082_v26 = vrot.slane %v14145_v42, %v14071_v51 }
 0x1fd   : > { %1053 = vbcast.lane.b32.xlu1 %v1015_v24, 328  ;;  %1049 = vbcast.lane.b32.xlu0 %v1015_v24, 320 }
 0x1ff   : > { %v14513_v8 = vpop.permute.xlu1 %820  ;;  %v14515_v3 = vpop.permute.xlu0 %816 }
 0x200   : > { %22858 = vst [vmem:[#allocation190_spill] sm:$0xff] %v14513_v8  ;;  %22859 = vst [vmem:[#allocation191_spill] sm:$0xff] %v14515_v3 }
 0x201   : > { %1061 = vbcast.lane.b32.xlu1 %v1015_v24, 344  ;;  %1057 = vbcast.lane.b32.xlu0 %v1015_v24, 336 }
 0x203   : > { %v14517_v58 = vpop.permute.xlu1 %828  ;;  %v14519_v28 = vpop.permute.xlu0 %824 }
 0x204   : > { %22860 = vst [vmem:[#allocation192_spill] sm:$0xff] %v14517_v58  ;;  %22861 = vst [vmem:[#allocation193_spill] sm:$0xff] %v14519_v28 }
 0x205   : > { %1069 = vbcast.lane.b32.xlu1 %v1015_v24, 360  ;;  %1065 = vbcast.lane.b32.xlu0 %v1015_v24, 352 }
 0x207   : > { %v14521_v0 = vpop.permute.xlu1 %836  ;;  %v14523_v50 = vpop.permute.xlu0 %832 }
 0x208   : > { %22862 = vst [vmem:[#allocation194_spill] sm:$0xff] %v14521_v0  ;;  %22863 = vst [vmem:[#allocation195_spill] sm:$0xff] %v14523_v50 }
 0x209   : > { %1077 = vbcast.lane.b32.xlu1 %v1015_v24, 376  ;;  %1073 = vbcast.lane.b32.xlu0 %v1015_v24, 368 }
 0x20b   : > { %v14527_v63 = vpop.permute.xlu1 %844  ;;  %v14529_v44 = vpop.permute.xlu0 %840 }
 0x20c   : > { %22864 = vst [vmem:[#allocation196_spill] sm:$0xff] %v14527_v63  ;;  %22865 = vst [vmem:[#allocation197_spill] sm:$0xff] %v14529_v44 }
 0x20d   : > { %1088 = vbcast.lane.b32.xlu1 %v1082_v26, 264  ;;  %1084 = vbcast.lane.b32.xlu0 %v1082_v26, 256 }
 0x20f   : > { %v14531_v37 = vpop.permute.xlu1 %852  ;;  %v14533_v40 = vpop.permute.xlu0 %848 }
 0x210   : > { %22866 = vst [vmem:[#allocation198_spill] sm:$0xff] %v14531_v37  ;;  %22867 = vst [vmem:[#allocation199_spill] sm:$0xff] %v14533_v40  ;;  %v2421_v37 = vcombine.low %v14321_v57, %v14515_v3 }
 0x211   : > { %1096 = vbcast.lane.b32.xlu1 %v1082_v26, 280  ;;  %1092 = vbcast.lane.b32.xlu0 %v1082_v26, 272 }
 0x212   : > { %v14556_v41 = vrot.slane %v2421_v37, %v14280_v31  ;;  %v1149_v37 = vrot.slane %v14145_v42, %v14108_v18 }
 0x213   : > { %v14535_v36 = vpop.permute.xlu1 %860  ;;  %v14537_v53 = vpop.permute.xlu0 %856 }
 0x214   : > { %22868 = vst [vmem:[#allocation200_spill] sm:$0xff] %v14535_v36  ;;  %22869 = vst [vmem:[#allocation201_spill] sm:$0xff] %v14537_v53 }
 0x215   : > { %1104 = vbcast.lane.b32.xlu1 %v1082_v26, 296  ;;  %1100 = vbcast.lane.b32.xlu0 %v1082_v26, 288 }
 0x217   : > { %v14539_v0 = vpop.permute.xlu1 %868  ;;  %v14541_v24 = vpop.permute.xlu0 %864 }
 0x218   : > { %22870 = vst [vmem:[#allocation202_spill] sm:$0xff] %v14539_v0  ;;  %22871 = vst [vmem:[#allocation203_spill] sm:$0xff] %v14541_v24 }
 0x219   : > { %1112 = vbcast.lane.b32.xlu1 %v1082_v26, 312  ;;  %1108 = vbcast.lane.b32.xlu0 %v1082_v26, 304 }
 0x21b   : > { %v14543_v63 = vpop.permute.xlu1 %876  ;;  %v14545_v44 = vpop.permute.xlu0 %872 }
 0x21c   : > { %22872 = vst [vmem:[#allocation204_spill] sm:$0xff] %v14543_v63  ;;  %22873 = vst [vmem:[#allocation205_spill] sm:$0xff] %v14545_v44 }
 0x21d   : > { %1120 = vbcast.lane.b32.xlu1 %v1082_v26, 328  ;;  %1116 = vbcast.lane.b32.xlu0 %v1082_v26, 320 }
 0x21f   : > { %v14549_v36 = vpop.permute.xlu1 %887  ;;  %v14551_v53 = vpop.permute.xlu0 %883 }
 0x220   : > { %22874 = vst [vmem:[#allocation206_spill] sm:$0xff] %v14549_v36  ;;  %22875 = vst [vmem:[#allocation207_spill] sm:$0xff] %v14551_v53  ;;  %v2437_v0 = vcombine.low %v14460_v55, %v14551_v53 }
 0x221   : > { %1128 = vbcast.lane.b32.xlu1 %v1082_v26, 344  ;;  %1124 = vbcast.lane.b32.xlu0 %v1082_v26, 336 }
 0x222   : > { %v14559_v63 = vrot.slane %v2437_v0, %v14280_v31 }
 0x223   : > { %v14561_v44 = vpop.permute.xlu1 %895  ;;  %v14563_v58 = vpop.permute.xlu0 %891 }
 0x224   : > { %22876 = vst [vmem:[#allocation208_spill] sm:$0xff] %v14561_v44  ;;  %22877 = vst [vmem:[#allocation209_spill] sm:$0xff] %v14563_v58 }
 0x225   : > { %1136 = vbcast.lane.b32.xlu1 %v1082_v26, 360  ;;  %1132 = vbcast.lane.b32.xlu0 %v1082_v26, 352 }
 0x227   : > { %v14567_v61 = vpop.permute.xlu1 %903  ;;  %v14569_v17 = vpop.permute.xlu0 %899 }
 0x228   : > { %22878 = vst [vmem:[#allocation210_spill] sm:$0xff] %v14567_v61  ;;  %22879 = vst [vmem:[#allocation211_spill] sm:$0xff] %v14569_v17 }
 0x229   : > { %1144 = vbcast.lane.b32.xlu1 %v1082_v26, 376  ;;  %1140 = vbcast.lane.b32.xlu0 %v1082_v26, 368 }
 0x22b   : > { %v14573_v0 = vpop.permute.xlu1 %911  ;;  %v14575_v49 = vpop.permute.xlu0 %907 }
 0x22c   : > { %22880 = vst [vmem:[#allocation212_spill] sm:$0xff] %v14573_v0  ;;  %22881 = vst [vmem:[#allocation213_spill] sm:$0xff] %v14575_v49 }
 0x22d   : > { %1155 = vbcast.lane.b32.xlu1 %v1149_v37, 264  ;;  %1151 = vbcast.lane.b32.xlu0 %v1149_v37, 256 }
 0x22f   : > { %v14577_v44 = vpop.permute.xlu1 %919  ;;  %v14579_v56 = vpop.permute.xlu0 %915 }
 0x230   : > { %22882 = vst [vmem:[#allocation214_spill] sm:$0xff] %v14577_v44  ;;  %22883 = vst [vmem:[#allocation215_spill] sm:$0xff] %v14579_v56 }
 0x231   : > { %1163 = vbcast.lane.b32.xlu1 %v1149_v37, 280  ;;  %1159 = vbcast.lane.b32.xlu0 %v1149_v37, 272 }
 0x233   : > { %v14581_v61 = vpop.permute.xlu1 %927  ;;  %v14583_v21 = vpop.permute.xlu0 %923 }
 0x234   : > { %22884 = vst [vmem:[#allocation216_spill] sm:$0xff] %v14581_v61  ;;  %22885 = vst [vmem:[#allocation217_spill] sm:$0xff] %v14583_v21 }
 0x235   : > { %1171 = vbcast.lane.b32.xlu1 %v1149_v37, 296  ;;  %1167 = vbcast.lane.b32.xlu0 %v1149_v37, 288 }
 0x237   : > { %v14585_v42 = vpop.permute.xlu1 %935  ;;  %v14587_v26 = vpop.permute.xlu0 %931 }
 0x238   : > { %22886 = vst [vmem:[#allocation218_spill] sm:$0xff] %v14585_v42  ;;  %22887 = vst [vmem:[#allocation219_spill] sm:$0xff] %v14587_v26 }
 0x239   : > { %1179 = vbcast.lane.b32.xlu1 %v1149_v37, 312  ;;  %1175 = vbcast.lane.b32.xlu0 %v1149_v37, 304 }
 0x23b   : > { %v14589_v0 = vpop.permute.xlu1 %943  ;;  %v14591_v44 = vpop.permute.xlu0 %939 }
 0x23c   : > { %22888 = vst [vmem:[#allocation220_spill] sm:$0xff] %v14589_v0  ;;  %22889 = vst [vmem:[#allocation221_spill] sm:$0xff] %v14591_v44  ;;  %v1216_v44 = vrot.slane %v14602_v20, %v13966_v2 }
 0x23d   : > { %1187 = vbcast.lane.b32.xlu1 %v1149_v37, 328  ;;  %1183 = vbcast.lane.b32.xlu0 %v1149_v37, 320 }
 0x23f   : > { %v14593_v49 = vpop.permute.xlu1 %954  ;;  %v14595_v61 = vpop.permute.xlu0 %950 }
 0x240   : > { %22890 = vst [vmem:[#allocation222_spill] sm:$0xff] %v14593_v49  ;;  %22891 = vst [vmem:[#allocation223_spill] sm:$0xff] %v14595_v61 }
 0x241   : > { %1195 = vbcast.lane.b32.xlu1 %v1149_v37, 344  ;;  %1191 = vbcast.lane.b32.xlu0 %v1149_v37, 336 }
 0x243   : > { %v14597_v21 = vpop.permute.xlu1 %962  ;;  %v14599_v42 = vpop.permute.xlu0 %958 }
 0x244   : > { %22892 = vst [vmem:[#allocation224_spill] sm:$0xff] %v14597_v21  ;;  %22893 = vst [vmem:[#allocation225_spill] sm:$0xff] %v14599_v42 }
 0x245   : > { %1203 = vbcast.lane.b32.xlu1 %v1149_v37, 360  ;;  %1199 = vbcast.lane.b32.xlu0 %v1149_v37, 352 }
 0x247   : > { %v14604_v45 = vpop.permute.xlu1 %970  ;;  %v14606_v0 = vpop.permute.xlu0 %966 }
 0x248   : > { %22894 = vst [vmem:[#allocation226_spill] sm:$0xff] %v14604_v45  ;;  %22895 = vst [vmem:[#allocation227_spill] sm:$0xff] %v14606_v0 }
 0x249   : > { %1211 = vbcast.lane.b32.xlu1 %v1149_v37, 376  ;;  %1207 = vbcast.lane.b32.xlu0 %v1149_v37, 368 }
 0x24b   : > { %v14610_v28 = vpop.permute.xlu1 %978  ;;  %v14612_v54 = vpop.permute.xlu0 %974 }
 0x24c   : > { %22896 = vst [vmem:[#allocation228_spill] sm:$0xff] %v14610_v28  ;;  %22897 = vst [vmem:[#allocation229_spill] sm:$0xff] %v14612_v54 }
 0x24d   : > { %1222 = vbcast.lane.b32.xlu1 %v1216_v44, 264  ;;  %1218 = vbcast.lane.b32.xlu0 %v1216_v44, 256 }
 0x24f   : > { %v14614_v21 = vpop.permute.xlu1 %986  ;;  %v14616_v42 = vpop.permute.xlu0 %982 }
 0x250   : > { %22898 = vst [vmem:[#allocation230_spill] sm:$0xff] %v14614_v21  ;;  %22899 = vst [vmem:[#allocation231_spill] sm:$0xff] %v14616_v42 }
 0x251   : > { %1230 = vbcast.lane.b32.xlu1 %v1216_v44, 280  ;;  %1226 = vbcast.lane.b32.xlu0 %v1216_v44, 272 }
 0x253   : > { %v14618_v45 = vpop.permute.xlu1 %994  ;;  %v14620_v58 = vpop.permute.xlu0 %990 }
 0x254   : > { %22900 = vst [vmem:[#allocation232_spill] sm:$0xff] %v14618_v45  ;;  %22901 = vst [vmem:[#allocation233_spill] sm:$0xff] %v14620_v58 }
 0x255   : > { %1238 = vbcast.lane.b32.xlu1 %v1216_v44, 296  ;;  %1234 = vbcast.lane.b32.xlu0 %v1216_v44, 288 }
 0x257   : > { %v14622_v49 = vpop.permute.xlu1 %1002  ;;  %v14624_v37 = vpop.permute.xlu0 %998 }
 0x258   : > { %22902 = vst [vmem:[#allocation234_spill] sm:$0xff] %v14622_v49  ;;  %22903 = vst [vmem:[#allocation235_spill] sm:$0xff] %v14624_v37 }
 0x259   : > { %1246 = vbcast.lane.b32.xlu1 %v1216_v44, 312  ;;  %1242 = vbcast.lane.b32.xlu0 %v1216_v44, 304 }
 0x25b   : > { %v14626_v28 = vpop.permute.xlu1 %1010  ;;  %v14628_v54 = vpop.permute.xlu0 %1006 }
 0x25c   : > { %22904 = vst [vmem:[#allocation236_spill] sm:$0xff] %v14626_v28  ;;  %22905 = vst [vmem:[#allocation237_spill] sm:$0xff] %v14628_v54  ;;  %v1283_v28 = vrot.slane %v14602_v20, %v13974_v5 }
 0x25d   : > { %1254 = vbcast.lane.b32.xlu1 %v1216_v44, 328  ;;  %1250 = vbcast.lane.b32.xlu0 %v1216_v44, 320 }
 0x25f   : > { %v14630_v21 = vpop.permute.xlu1 %1021  ;;  %v14632_v22 = vpop.permute.xlu0 %1017 }
 0x260   : > { %22906 = vst [vmem:[#allocation238_spill] sm:$0xff] %v14630_v21  ;;  %22907 = vst [vmem:[#allocation239_spill] sm:$0xff] %v14632_v22 }
 0x261   : > { %1262 = vbcast.lane.b32.xlu1 %v1216_v44, 344  ;;  %1258 = vbcast.lane.b32.xlu0 %v1216_v44, 336 }
 0x263   : > { %v14634_v45 = vpop.permute.xlu1 %1029  ;;  %v14636_v58 = vpop.permute.xlu0 %1025 }
 0x264   : > { %22908 = vst [vmem:[#allocation240_spill] sm:$0xff] %v14634_v45  ;;  %22909 = vst [vmem:[#allocation241_spill] sm:$0xff] %v14636_v58 }
 0x265   : > { %1270 = vbcast.lane.b32.xlu1 %v1216_v44, 360  ;;  %1266 = vbcast.lane.b32.xlu0 %v1216_v44, 352 }
 0x267   : > { %v14638_v49 = vpop.permute.xlu1 %1037  ;;  %v14640_v36 = vpop.permute.xlu0 %1033 }
 0x268   : > { %22910 = vst [vmem:[#allocation242_spill] sm:$0xff] %v14638_v49  ;;  %22911 = vst [vmem:[#allocation243_spill] sm:$0xff] %v14640_v36 }
 0x269   : > { %1278 = vbcast.lane.b32.xlu1 %v1216_v44, 376  ;;  %1274 = vbcast.lane.b32.xlu0 %v1216_v44, 368 }
 0x26b   : > { %v14644_v54 = vpop.permute.xlu1 %1045  ;;  %v14646_v21 = vpop.permute.xlu0 %1041 }
 0x26c   : > { %22912 = vst [vmem:[#allocation244_spill] sm:$0xff] %v14644_v54  ;;  %22913 = vst [vmem:[#allocation245_spill] sm:$0xff] %v14646_v21 }
 0x26d   : > { %1289 = vbcast.lane.b32.xlu1 %v1283_v28, 264  ;;  %1285 = vbcast.lane.b32.xlu0 %v1283_v28, 256 }
 0x26f   : > { %v14648_v45 = vpop.permute.xlu1 %1053  ;;  %v14650_v58 = vpop.permute.xlu0 %1049 }
 0x270   : > { %22914 = vst [vmem:[#allocation246_spill] sm:$0xff] %v14648_v45  ;;  %22915 = vst [vmem:[#allocation247_spill] sm:$0xff] %v14650_v58 }
 0x271   : > { %1297 = vbcast.lane.b32.xlu1 %v1283_v28, 280  ;;  %1293 = vbcast.lane.b32.xlu0 %v1283_v28, 272 }
 0x273   : > { %v14652_v49 = vpop.permute.xlu1 %1061  ;;  %v14654_v8 = vpop.permute.xlu0 %1057 }
 0x274   : > { %22916 = vst [vmem:[#allocation248_spill] sm:$0xff] %v14652_v49  ;;  %22917 = vst [vmem:[#allocation249_spill] sm:$0xff] %v14654_v8 }
 0x275   : > { %1305 = vbcast.lane.b32.xlu1 %v1283_v28, 296  ;;  %1301 = vbcast.lane.b32.xlu0 %v1283_v28, 288 }
 0x277   : > { %v14656_v57 = vpop.permute.xlu1 %1069  ;;  %v14658_v44 = vpop.permute.xlu0 %1065 }
 0x278   : > { %22918 = vst [vmem:[#allocation250_spill] sm:$0xff] %v14656_v57  ;;  %22919 = vst [vmem:[#allocation251_spill] sm:$0xff] %v14658_v44 }
 0x279   : > { %1313 = vbcast.lane.b32.xlu1 %v1283_v28, 312  ;;  %1309 = vbcast.lane.b32.xlu0 %v1283_v28, 304 }
 0x27b   : > { %v14660_v54 = vpop.permute.xlu1 %1077  ;;  %v14662_v21 = vpop.permute.xlu0 %1073 }
 0x27c   : > { %22920 = vst [vmem:[#allocation252_spill] sm:$0xff] %v14660_v54  ;;  %22921 = vst [vmem:[#allocation253_spill] sm:$0xff] %v14662_v21  ;;  %v1350_v54 = vrot.slane %v14602_v20, %v13979_v7 }
 0x27d   : > { %1321 = vbcast.lane.b32.xlu1 %v1283_v28, 328  ;;  %1317 = vbcast.lane.b32.xlu0 %v1283_v28, 320 }
 0x27f   : > { %v14664_v45 = vpop.permute.xlu1 %1088  ;;  %v14666_v3 = vpop.permute.xlu0 %1084 }
 0x280   : > { %22922 = vst [vmem:[#allocation254_spill] sm:$0xff] %v14664_v45  ;;  %22923 = vst [vmem:[#allocation255_spill] sm:$0xff] %v14666_v3 }
 0x281   : > { %1329 = vbcast.lane.b32.xlu1 %v1283_v28, 344  ;;  %1325 = vbcast.lane.b32.xlu0 %v1283_v28, 336 }
 0x283   : > { %v14668_v49 = vpop.permute.xlu1 %1096  ;;  %v14670_v8 = vpop.permute.xlu0 %1092 }
 0x284   : > { %22924 = vst [vmem:[#allocation256_spill] sm:$0xff] %v14668_v49  ;;  %22925 = vst [vmem:[#allocation257_spill] sm:$0xff] %v14670_v8 }
 0x285   : > { %1337 = vbcast.lane.b32.xlu1 %v1283_v28, 360  ;;  %1333 = vbcast.lane.b32.xlu0 %v1283_v28, 352 }
 0x287   : > { %v14672_v57 = vpop.permute.xlu1 %1104  ;;  %v14674_v55 = vpop.permute.xlu0 %1100 }
 0x288   : > { %22926 = vst [vmem:[#allocation258_spill] sm:$0xff] %v14672_v57  ;;  %22927 = vst [vmem:[#allocation259_spill] sm:$0xff] %v14674_v55 }
 0x289   : > { %1345 = vbcast.lane.b32.xlu1 %v1283_v28, 376  ;;  %1341 = vbcast.lane.b32.xlu0 %v1283_v28, 368 }
 0x28b   : > { %v14678_v21 = vpop.permute.xlu1 %1112  ;;  %v14680_v45 = vpop.permute.xlu0 %1108 }
 0x28c   : > { %22928 = vst [vmem:[#allocation260_spill] sm:$0xff] %v14678_v21  ;;  %22929 = vst [vmem:[#allocation261_spill] sm:$0xff] %v14680_v45 }
 0x28d   : > { %1356 = vbcast.lane.b32.xlu1 %v1350_v54, 264  ;;  %1352 = vbcast.lane.b32.xlu0 %v1350_v54, 256 }
 0x28f   : > { %v14682_v49 = vpop.permute.xlu1 %1120  ;;  %v14684_v8 = vpop.permute.xlu0 %1116 }
 0x290   : > { %22930 = vst [vmem:[#allocation262_spill] sm:$0xff] %v14682_v49  ;;  %22931 = vst [vmem:[#allocation263_spill] sm:$0xff] %v14684_v8  ;;  %v2453_v49 = vcombine.low %v14595_v61, %v14666_v3  ;;  %v1417_v3 = vrot.slane %v14602_v20, %v13984_v9 }
 0x291   : > { %1364 = vbcast.lane.b32.xlu1 %v1350_v54, 280  ;;  %1360 = vbcast.lane.b32.xlu0 %v1350_v54, 272 }
 0x292   : > { %v2461_v23 = vrot.slane %v2453_v49, %v14280_v31 }
 0x293   : > { %v14686_v57 = vpop.permute.xlu1 %1128  ;;  %v14688_v53 = vpop.permute.xlu0 %1124 }
 0x294   : > { %22932 = vst [vmem:[#allocation264_spill] sm:$0xff] %v14686_v57  ;;  %22933 = vst [vmem:[#allocation265_spill] sm:$0xff] %v14688_v53 }
 0x295   : > { %1372 = vbcast.lane.b32.xlu1 %v1350_v54, 296  ;;  %1368 = vbcast.lane.b32.xlu0 %v1350_v54, 288 }
 0x297   : > { %v14690_v47 = vpop.permute.xlu1 %1136  ;;  %v14692_v28 = vpop.permute.xlu0 %1132 }
 0x298   : > { %22934 = vst [vmem:[#allocation266_spill] sm:$0xff] %v14690_v47  ;;  %22935 = vst [vmem:[#allocation267_spill] sm:$0xff] %v14692_v28 }
 0x299   : > { %1380 = vbcast.lane.b32.xlu1 %v1350_v54, 312  ;;  %1376 = vbcast.lane.b32.xlu0 %v1350_v54, 304 }
 0x29b   : > { %v14694_v21 = vpop.permute.xlu1 %1144  ;;  %v14696_v45 = vpop.permute.xlu0 %1140 }
 0x29c   : > { %22936 = vst [vmem:[#allocation268_spill] sm:$0xff] %v14694_v21  ;;  %22937 = vst [vmem:[#allocation269_spill] sm:$0xff] %v14696_v45 }
 0x29d   : > { %1388 = vbcast.lane.b32.xlu1 %v1350_v54, 328  ;;  %1384 = vbcast.lane.b32.xlu0 %v1350_v54, 320 }
 0x29f   : > { %v14700_v57 = vpop.permute.xlu1 %1155  ;;  %v14702_v53 = vpop.permute.xlu0 %1151 }
 0x2a0   : > { %22938 = vst [vmem:[#allocation270_spill] sm:$0xff] %v14700_v57  ;;  %22939 = vst [vmem:[#allocation271_spill] sm:$0xff] %v14702_v53  ;;  %v2469_v47 = vcombine.low %v14632_v22, %v14702_v53 }
 0x2a1   : > { %1396 = vbcast.lane.b32.xlu1 %v1350_v54, 344  ;;  %1392 = vbcast.lane.b32.xlu0 %v1350_v54, 336 }
 0x2a2   : > { %v2477_v21 = vrot.slane %v2469_v47, %v14280_v31 }
 0x2a3   : > { %v14708_v38 = vpop.permute.xlu1 %1163  ;;  %v14710_v45 = vpop.permute.xlu0 %1159 }
 0x2a4   : > { %22940 = vst [vmem:[#allocation272_spill] sm:$0xff] %v14708_v38  ;;  %22941 = vst [vmem:[#allocation273_spill] sm:$0xff] %v14710_v45  ;;  %v2518_v29 = vcombine.high %v2461_v23, %v2477_v21 }
 0x2a5   : > { %1404 = vbcast.lane.b32.xlu1 %v1350_v54, 360  ;;  %1400 = vbcast.lane.b32.xlu0 %v1350_v54, 352 }
 0x2a6   : > { %v14739_v4 = vrot.slane %v2518_v29, %v14315_v11 }
 0x2a7   : > { %v14712_v61 = vpop.permute.xlu1 %1171  ;;  %v14714_v57 = vpop.permute.xlu0 %1167 }
 0x2a8   : > { %22942 = vst [vmem:[#allocation274_spill] sm:$0xff] %v14712_v61  ;;  %22943 = vst [vmem:[#allocation275_spill] sm:$0xff] %v14714_v57 }
 0x2a9   : > { %1412 = vbcast.lane.b32.xlu1 %v1350_v54, 376  ;;  %1408 = vbcast.lane.b32.xlu0 %v1350_v54, 368  ;;  %22954 = vst [vmem:[#allocation286_spill] sm:$0xff] %v14739_v4 }
 0x2ab   : > { %v14718_v22 = vpop.permute.xlu1 %1179  ;;  %v14720_v49 = vpop.permute.xlu0 %1175 }
 0x2ac   : > { %22944 = vst [vmem:[#allocation276_spill] sm:$0xff] %v14718_v22  ;;  %22945 = vst [vmem:[#allocation277_spill] sm:$0xff] %v14720_v49  ;;  %v2517_v49 = vcombine.low %v2461_v23, %v2477_v21  ;;  %v4645_v23 = vcombine.low %v14640_v36, %v14714_v57 }
 0x2ad   : > { %1423 = vbcast.lane.b32.xlu1 %v1417_v3, 264  ;;  %1419 = vbcast.lane.b32.xlu0 %v1417_v3, 256 }
 0x2ae   : > { %v14756_v29 = vrot.slane %v2517_v49, %v14315_v11  ;;  %v4597_v49 = vcombine.low %v14361_v27, %v14523_v50 }
 0x2af   : > { %v14722_v47 = vpop.permute.xlu1 %1187  ;;  %v14724_v38 = vpop.permute.xlu0 %1183 }
 0x2b0   : > { %22946 = vst [vmem:[#allocation278_spill] sm:$0xff] %v14722_v47  ;;  %22947 = vst [vmem:[#allocation279_spill] sm:$0xff] %v14724_v38 }
 0x2b1   : > { %1431 = vbcast.lane.b32.xlu1 %v1417_v3, 280  ;;  %1427 = vbcast.lane.b32.xlu0 %v1417_v3, 272  ;;  %22959 = vst [vmem:[#allocation290_spill] sm:$0xff] %v14756_v29 }
 0x2b3   : > { %v14726_v61 = vpop.permute.xlu1 %1195  ;;  %v14728_v45 = vpop.permute.xlu0 %1191 }
 0x2b4   : > { %22948 = vst [vmem:[#allocation280_spill] sm:$0xff] %v14726_v61  ;;  %22949 = vst [vmem:[#allocation281_spill] sm:$0xff] %v14728_v45  ;;  %v2485_v61 = vcombine.low %v14556_v41, %v14559_v63 }
 0x2b5   : > { %1439 = vbcast.lane.b32.xlu1 %v1417_v3, 296  ;;  %1435 = vbcast.lane.b32.xlu0 %v1417_v3, 288 }
 0x2b7   : > { %v14730_v53 = vpop.permute.xlu1 %1203  ;;  %v14732_v54 = vpop.permute.xlu0 %1199 }
 0x2b8   : > { %22950 = vst [vmem:[#allocation282_spill] sm:$0xff] %v14730_v53  ;;  %22951 = vst [vmem:[#allocation283_spill] sm:$0xff] %v14732_v54  ;;  %v22956_v53 = vcombine.high %v14556_v41, %v14559_v63  ;;  %v4613_v63 = vcombine.low %v14485_v62, %v14569_v17  ;;  %v14767_v41 = vrot.slane %v2485_v61, %v14315_v11 }
 0x2b9   : > { %1447 = vbcast.lane.b32.xlu1 %v1417_v3, 312  ;;  %1443 = vbcast.lane.b32.xlu0 %v1417_v3, 304  ;;  %v14789_v62 = vrot.slane %v4597_v49, %v14280_v31 }
 0x2ba   : > { %v14749_v39 = vrot.slane %v22956_v53, %v14315_v11  ;;  %v4629_v53 = vcombine.low %v14606_v0, %v14674_v55  ;;  %22960 = vst [vmem:[#allocation291_spill] sm:$0xff] %v14767_v41  ;;  %v14781_v0 = vrot.slane %v4613_v63, %v14280_v31 }
 0x2bb   : > { %v14734_v22 = vpop.permute.xlu1 %1211  ;;  %v14736_v47 = vpop.permute.xlu0 %1207  ;;  %22967 = vst [vmem:[#allocation298_spill] sm:$0xff] %v14789_v62 }
 0x2bc   : > { %22952 = vst [vmem:[#allocation284_spill] sm:$0xff] %v14734_v22  ;;  %22953 = vst [vmem:[#allocation285_spill] sm:$0xff] %v14736_v47  ;;  %v14774_v22 = vrot.slane %v4645_v23, %v14280_v31  ;;  %v14784_v61 = vrot.slane %v4629_v53, %v14280_v31  ;;  %v14797_v47 = vrot.slane %v14602_v20, %v13997_v15 }
 0x2bd   : > { %1455 = vbcast.lane.b32.xlu1 %v1417_v3, 328  ;;  %1451 = vbcast.lane.b32.xlu0 %v1417_v3, 320  ;;  %22957 = vst [vmem:[#allocation288_spill] sm:$0xff] %v14749_v39  ;;  %22964 = vst [vmem:[#allocation295_spill] sm:$0xff] %v14781_v0  ;;  %v4661_v63 = vcombine.low %v14789_v62, %v14781_v0 }
 0x2be   : > { %22962 = vst [vmem:[#allocation293_spill] sm:$0xff] %v14774_v22  ;;  %22965 = vst [vmem:[#allocation296_spill] sm:$0xff] %v14784_v61  ;;  %v4693_v23 = vcombine.low %v14784_v61, %v14774_v22  ;;  %v6821_v22 = vcombine.low %v14650_v58, %v14724_v38 }
 0x2bf   : > { %v14743_v45 = vpop.permute.xlu1 %1222  ;;  %v14753_v21 = vpop.permute.xlu0 %1218  ;;  %v14811_v61 = vrot.slane %v4661_v63, %v14315_v11  ;;  %v6773_v63 = vcombine.low %v14387_v60, %v14533_v40 }
 0x2c0   : > { %22955 = vst [vmem:[#allocation287_spill] sm:$0xff] %v14743_v45  ;;  %22958 = vst [vmem:[#allocation289_spill] sm:$0xff] %v14753_v21  ;;  %v14806_v49 = vrot.slane %v4693_v23, %v14315_v11  ;;  %v6789_v23 = vcombine.low %v14499_v16, %v14579_v56  ;;  %v14830_v58 = vrot.slane %v6821_v22, %v14280_v31 }
 0x2c1   : > { %1463 = vbcast.lane.b32.xlu1 %v1417_v3, 344  ;;  %1459 = vbcast.lane.b32.xlu0 %v1417_v3, 336  ;;  %22972 = vst [vmem:[#allocation303_spill] sm:$0xff] %v14811_v61 }
 0x2c2   : > { %22971 = vst [vmem:[#allocation302_spill] sm:$0xff] %v14806_v49  ;;  %22975 = vst [vmem:[#allocation306_spill] sm:$0xff] %v14830_v58 }
 0x2c3   : > { %v14769_v36 = vpop.permute.xlu1 %1230  ;;  %v14776_v57 = vpop.permute.xlu0 %1226 }
 0x2c4   : > { %22961 = vst [vmem:[#allocation292_spill] sm:$0xff] %v14769_v36  ;;  %22963 = vst [vmem:[#allocation294_spill] sm:$0xff] %v14776_v57  ;;  %v15020_v36 = vld [vmem:[%s13957_s30 + $0x18] sm:$0xff]  ;;  %s22648_s30 = smov 76  }
 0x2c5   : > { %1471 = vbcast.lane.b32.xlu1 %v1417_v3, 360  ;;  %1467 = vbcast.lane.b32.xlu0 %v1417_v3, 352 }
 0x2c7   : > { %v14786_v55 = vpop.permute.xlu1 %1238  ;;  %v14793_v17 = vpop.permute.xlu0 %1234 }
 0x2c8   : > { %22966 = vst [vmem:[#allocation297_spill] sm:$0xff] %v14786_v55  ;;  %22968 = vst [vmem:[#allocation299_spill] sm:$0xff] %v14793_v17 }
 0x2c9   : > { %1479 = vbcast.lane.b32.xlu1 %v1417_v3, 376  ;;  %1475 = vbcast.lane.b32.xlu0 %v1417_v3, 368 }
 0x2cb   : > { %v14801_v53 = vpop.permute.xlu1 %1246  ;;  %v14803_v27 = vpop.permute.xlu0 %1242 }
 0x2cc   : > { %22969 = vst [vmem:[#allocation300_spill] sm:$0xff] %v14801_v53  ;;  %22970 = vst [vmem:[#allocation301_spill] sm:$0xff] %v14803_v27  ;;  %v6805_v27 = vcombine.low %v14616_v42, %v14684_v8  ;;  %v14837_v53 = vrot.slane %v6789_v23, %v14280_v31  ;;  %v14845_v42 = vrot.slane %v6773_v63, %v14280_v31 }
 0x2cd   : > { %1490 = vbcast.lane.b32.xlu1 %v14797_v47, 264  ;;  %1486 = vbcast.lane.b32.xlu0 %v14797_v47, 256  ;;  %v8965_v63 = vcombine.low %v14507_v14, %v14587_v26 }
 0x2ce   : > { %22978 = vst [vmem:[#allocation309_spill] sm:$0xff] %v14837_v53  ;;  %v14840_v16 = vrot.slane %v6805_v27, %v14280_v31  ;;  %22980 = vst [vmem:[#allocation311_spill] sm:$0xff] %v14845_v42  ;;  %v6837_v23 = vcombine.low %v14845_v42, %v14837_v53  ;;  %v8997_v27 = vcombine.low %v14658_v44, %v14732_v54 }
 0x2cf   : > { %v14815_v50 = vpop.permute.xlu1 %1254  ;;  %v14817_v3 = vpop.permute.xlu0 %1250  ;;  %v8949_v44 = vcombine.low %v14421_v46, %v14541_v24 }
 0x2d0   : > { %22973 = vst [vmem:[#allocation304_spill] sm:$0xff] %v14815_v50  ;;  %22974 = vst [vmem:[#allocation305_spill] sm:$0xff] %v14817_v3  ;;  %v6869_v22 = vcombine.low %v14840_v16, %v14830_v58  ;;  %v14873_v54 = vrot.slane %v8997_v27, %v14280_v31  ;;  %v14877_v14 = vrot.slane %v6837_v23, %v14315_v11 }
 0x2d1   : > { %1498 = vbcast.lane.b32.xlu1 %v14797_v47, 280  ;;  %1494 = vbcast.lane.b32.xlu0 %v14797_v47, 272  ;;  %22979 = vst [vmem:[#allocation310_spill] sm:$0xff] %v14840_v16 }
 0x2d2   : > { %22986 = vst [vmem:[#allocation317_spill] sm:$0xff] %v14873_v54  ;;  %22987 = vst [vmem:[#allocation318_spill] sm:$0xff] %v14877_v14 }
 0x2d3   : > { %v14832_v38 = vpop.permute.xlu1 %1262  ;;  %v14834_v50 = vpop.permute.xlu0 %1258 }
 0x2d4   : > { %22976 = vst [vmem:[#allocation307_spill] sm:$0xff] %v14832_v38  ;;  %22977 = vst [vmem:[#allocation308_spill] sm:$0xff] %v14834_v50  ;;  %v8981_v50 = vcombine.low %v14624_v37, %v14692_v28  ;;  %v14893_v28 = vrot.slane %v8949_v44, %v14280_v31 }
 0x2d5   : > { %1506 = vbcast.lane.b32.xlu1 %v14797_v47, 296  ;;  %1502 = vbcast.lane.b32.xlu0 %v14797_v47, 288 }
 0x2d6   : > { %22992 = vst [vmem:[#allocation323_spill] sm:$0xff] %v14893_v28 }
 0x2d7   : > { %v14849_v8 = vpop.permute.xlu1 %1270  ;;  %v14851_v38 = vpop.permute.xlu0 %1266 }
 0x2d8   : > { %22981 = vst [vmem:[#allocation312_spill] sm:$0xff] %v14849_v8  ;;  %22982 = vst [vmem:[#allocation313_spill] sm:$0xff] %v14851_v38  ;;  %v14866_v8 = vrot.slane %v6869_v22, %v14315_v11  ;;  %v14884_v22 = vrot.slane %v8981_v50, %v14280_v31 }
 0x2d9   : > { %1514 = vbcast.lane.b32.xlu1 %v14797_v47, 312  ;;  %1510 = vbcast.lane.b32.xlu0 %v14797_v47, 304 }
 0x2da   : > { %22984 = vst [vmem:[#allocation315_spill] sm:$0xff] %v14866_v8  ;;  %22989 = vst [vmem:[#allocation320_spill] sm:$0xff] %v14884_v22  ;;  %v9045_v23 = vcombine.low %v14884_v22, %v14873_v54 }
 0x2db   : > { %v14863_v56 = vpop.permute.xlu1 %1278  ;;  %v14868_v16 = vpop.permute.xlu0 %1274 }
 0x2dc   : > { %22983 = vst [vmem:[#allocation314_spill] sm:$0xff] %v14863_v56  ;;  %22985 = vst [vmem:[#allocation316_spill] sm:$0xff] %v14868_v16  ;;  %v14881_v56 = vrot.slane %v8965_v63, %v14280_v31  ;;  %v14907_v37 = vrot.slane %v9045_v23, %v14315_v11 }
 0x2dd   : > { %1522 = vbcast.lane.b32.xlu1 %v14797_v47, 328  ;;  %1518 = vbcast.lane.b32.xlu0 %v14797_v47, 320 }
 0x2de   : > { %22988 = vst [vmem:[#allocation319_spill] sm:$0xff] %v14881_v56  ;;  %v9013_v50 = vcombine.low %v14893_v28, %v14881_v56  ;;  %22995 = vst [vmem:[#allocation326_spill] sm:$0xff] %v14907_v37  ;;  %v1551_v28 = vrot.slane %v14602_v20, %v14034_v33 }
 0x2df   : > { %v14886_v16 = vpop.permute.xlu1 %1289  ;;  %v14890_v27 = vpop.permute.xlu0 %1285 }
 0x2e0   : > { %22990 = vst [vmem:[#allocation321_spill] sm:$0xff] %v14886_v16  ;;  %22991 = vst [vmem:[#allocation322_spill] sm:$0xff] %v14890_v27  ;;  %v14913_v22 = vrot.slane %v9013_v50, %v14315_v11 }
 0x2e1   : > { %1530 = vbcast.lane.b32.xlu1 %v14797_v47, 344  ;;  %1526 = vbcast.lane.b32.xlu0 %v14797_v47, 336 }
 0x2e2   : > { %22997 = vst [vmem:[#allocation328_spill] sm:$0xff] %v14913_v22 }
 0x2e3   : > { %v14901_v63 = vpop.permute.xlu1 %1297  ;;  %v14903_v26 = vpop.permute.xlu0 %1293 }
 0x2e4   : > { %22993 = vst [vmem:[#allocation324_spill] sm:$0xff] %v14901_v63  ;;  %22994 = vst [vmem:[#allocation325_spill] sm:$0xff] %v14903_v26 }
 0x2e5   : > { %1538 = vbcast.lane.b32.xlu1 %v14797_v47, 360  ;;  %1534 = vbcast.lane.b32.xlu0 %v14797_v47, 352 }
 0x2e7   : > { %v14910_v44 = vpop.permute.xlu1 %1305  ;;  %v14915_v54 = vpop.permute.xlu0 %1301 }
 0x2e8   : > { %22996 = vst [vmem:[#allocation327_spill] sm:$0xff] %v14910_v44  ;;  %22998 = vst [vmem:[#allocation329_spill] sm:$0xff] %v14915_v54 }
 0x2e9   : > { %1546 = vbcast.lane.b32.xlu1 %v14797_v47, 376  ;;  %1542 = vbcast.lane.b32.xlu0 %v14797_v47, 368 }
 0x2eb   : > { %v14923_v23 = vpop.permute.xlu1 %1313  ;;  %v14925_v46 = vpop.permute.xlu0 %1309 }
 0x2ec   : > { %22999 = vst [vmem:[#allocation330_spill] sm:$0xff] %v14923_v23  ;;  %23000 = vst [vmem:[#allocation331_spill] sm:$0xff] %v14925_v46 }
 0x2ed   : > { %1557 = vbcast.lane.b32.xlu1 %v1551_v28, 264  ;;  %1553 = vbcast.lane.b32.xlu0 %v1551_v28, 256 }
 0x2ef   : > { %v14927_v50 = vpop.permute.xlu1 %1321  ;;  %v14929_v24 = vpop.permute.xlu0 %1317 }
 0x2f0   : > { %23001 = vst [vmem:[#allocation332_spill] sm:$0xff] %v14927_v50  ;;  %23002 = vst [vmem:[#allocation333_spill] sm:$0xff] %v14929_v24 }
 0x2f1   : > { %1565 = vbcast.lane.b32.xlu1 %v1551_v28, 280  ;;  %1561 = vbcast.lane.b32.xlu0 %v1551_v28, 272 }
 0x2f3   : > { %v14931_v14 = vpop.permute.xlu1 %1329  ;;  %v14933_v8 = vpop.permute.xlu0 %1325 }
 0x2f4   : > { %23003 = vst [vmem:[#allocation334_spill] sm:$0xff] %v14931_v14  ;;  %23004 = vst [vmem:[#allocation335_spill] sm:$0xff] %v14933_v8 }
 0x2f5   : > { %1573 = vbcast.lane.b32.xlu1 %v1551_v28, 296  ;;  %1569 = vbcast.lane.b32.xlu0 %v1551_v28, 288 }
 0x2f7   : > { %v14935_v56 = vpop.permute.xlu1 %1337  ;;  %v14937_v47 = vpop.permute.xlu0 %1333 }
 0x2f8   : > { %23005 = vst [vmem:[#allocation336_spill] sm:$0xff] %v14935_v56  ;;  %23006 = vst [vmem:[#allocation337_spill] sm:$0xff] %v14937_v47 }
 0x2f9   : > { %1581 = vbcast.lane.b32.xlu1 %v1551_v28, 312  ;;  %1577 = vbcast.lane.b32.xlu0 %v1551_v28, 304 }
 0x2fb   : > { %v14939_v22 = vpop.permute.xlu1 %1345  ;;  %v14941_v37 = vpop.permute.xlu0 %1341 }
 0x2fc   : > { %23007 = vst [vmem:[#allocation338_spill] sm:$0xff] %v14939_v22  ;;  %23008 = vst [vmem:[#allocation339_spill] sm:$0xff] %v14941_v37  ;;  %v1618_v22 = vrot.slane %v14602_v20, %v14071_v51 }
 0x2fd   : > { %1589 = vbcast.lane.b32.xlu1 %v1551_v28, 328  ;;  %1585 = vbcast.lane.b32.xlu0 %v1551_v28, 320 }
 0x2ff   : > { %v14943_v58 = vpop.permute.xlu1 %1356  ;;  %v14945_v42 = vpop.permute.xlu0 %1352 }
 0x300   : > { %23009 = vst [vmem:[#allocation340_spill] sm:$0xff] %v14943_v58  ;;  %23010 = vst [vmem:[#allocation341_spill] sm:$0xff] %v14945_v42 }
 0x301   : > { %1597 = vbcast.lane.b32.xlu1 %v1551_v28, 344  ;;  %1593 = vbcast.lane.b32.xlu0 %v1551_v28, 336 }
 0x303   : > { %v14947_v14 = vpop.permute.xlu1 %1364  ;;  %v14949_v8 = vpop.permute.xlu0 %1360 }
 0x304   : > { %23011 = vst [vmem:[#allocation342_spill] sm:$0xff] %v14947_v14  ;;  %23012 = vst [vmem:[#allocation343_spill] sm:$0xff] %v14949_v8 }
 0x305   : > { %1605 = vbcast.lane.b32.xlu1 %v1551_v28, 360  ;;  %1601 = vbcast.lane.b32.xlu0 %v1551_v28, 352 }
 0x307   : > { %v14951_v56 = vpop.permute.xlu1 %1372  ;;  %v14953_v53 = vpop.permute.xlu0 %1368 }
 0x308   : > { %23013 = vst [vmem:[#allocation344_spill] sm:$0xff] %v14951_v56  ;;  %23014 = vst [vmem:[#allocation345_spill] sm:$0xff] %v14953_v53 }
 0x309   : > { %1613 = vbcast.lane.b32.xlu1 %v1551_v28, 376  ;;  %1609 = vbcast.lane.b32.xlu0 %v1551_v28, 368 }
 0x30b   : > { %v14957_v37 = vpop.permute.xlu1 %1380  ;;  %v14959_v60 = vpop.permute.xlu0 %1376 }
 0x30c   : > { %23015 = vst [vmem:[#allocation346_spill] sm:$0xff] %v14957_v37  ;;  %23016 = vst [vmem:[#allocation347_spill] sm:$0xff] %v14959_v60 }
 0x30d   : > { %1624 = vbcast.lane.b32.xlu1 %v1618_v22, 264  ;;  %1620 = vbcast.lane.b32.xlu0 %v1618_v22, 256 }
 0x30f   : > { %v14961_v40 = vpop.permute.xlu1 %1388  ;;  %v14963_v50 = vpop.permute.xlu0 %1384 }
 0x310   : > { %23017 = vst [vmem:[#allocation348_spill] sm:$0xff] %v14961_v40  ;;  %23018 = vst [vmem:[#allocation349_spill] sm:$0xff] %v14963_v50 }
 0x311   : > { %1632 = vbcast.lane.b32.xlu1 %v1618_v22, 280  ;;  %1628 = vbcast.lane.b32.xlu0 %v1618_v22, 272 }
 0x313   : > { %v14965_v23 = vpop.permute.xlu1 %1396  ;;  %v14967_v46 = vpop.permute.xlu0 %1392 }
 0x314   : > { %23019 = vst [vmem:[#allocation350_spill] sm:$0xff] %v14965_v23  ;;  %23020 = vst [vmem:[#allocation351_spill] sm:$0xff] %v14967_v46 }
 0x315   : > { %1640 = vbcast.lane.b32.xlu1 %v1618_v22, 296  ;;  %1636 = vbcast.lane.b32.xlu0 %v1618_v22, 288 }
 0x317   : > { %v14969_v61 = vpop.permute.xlu1 %1404  ;;  %v14971_v28 = vpop.permute.xlu0 %1400 }
 0x318   : > { %23021 = vst [vmem:[#allocation352_spill] sm:$0xff] %v14969_v61  ;;  %23022 = vst [vmem:[#allocation353_spill] sm:$0xff] %v14971_v28 }
 0x319   : > { %1648 = vbcast.lane.b32.xlu1 %v1618_v22, 312  ;;  %1644 = vbcast.lane.b32.xlu0 %v1618_v22, 304 }
 0x31b   : > { %v14973_v37 = vpop.permute.xlu1 %1412  ;;  %v14975_v60 = vpop.permute.xlu0 %1408 }
 0x31c   : > { %23023 = vst [vmem:[#allocation354_spill] sm:$0xff] %v14973_v37  ;;  %23024 = vst [vmem:[#allocation355_spill] sm:$0xff] %v14975_v60  ;;  %v1685_v37 = vrot.slane %v14602_v20, %v14108_v18 }
 0x31d   : > { %1656 = vbcast.lane.b32.xlu1 %v1618_v22, 328  ;;  %1652 = vbcast.lane.b32.xlu0 %v1618_v22, 320 }
 0x31f   : > { %v14977_v40 = vpop.permute.xlu1 %1423  ;;  %v14979_v49 = vpop.permute.xlu0 %1419 }
 0x320   : > { %23025 = vst [vmem:[#allocation356_spill] sm:$0xff] %v14977_v40 }
 0x321   : > { %1664 = vbcast.lane.b32.xlu1 %v1618_v22, 344  ;;  %1660 = vbcast.lane.b32.xlu0 %v1618_v22, 336 }
 0x323   : > { %v14981_v23 = vpop.permute.xlu1 %1431  ;;  %v14983_v46 = vpop.permute.xlu0 %1427 }
 0x324   : > { %23026 = vst [vmem:[#allocation357_spill] sm:$0xff] %v14981_v23  ;;  %23027 = vst [vmem:[#allocation358_spill] sm:$0xff] %v14983_v46 }
 0x325   : > { %1672 = vbcast.lane.b32.xlu1 %v1618_v22, 360  ;;  %1668 = vbcast.lane.b32.xlu0 %v1618_v22, 352 }
 0x327   : > { %v14985_v61 = vpop.permute.xlu1 %1439  ;;  %v14987_v62 = vpop.permute.xlu0 %1435 }
 0x328   : > { %23028 = vst [vmem:[#allocation359_spill] sm:$0xff] %v14985_v61  ;;  %23029 = vst [vmem:[#allocation360_spill] sm:$0xff] %v14987_v62 }
 0x329   : > { %1680 = vbcast.lane.b32.xlu1 %v1618_v22, 376  ;;  %1676 = vbcast.lane.b32.xlu0 %v1618_v22, 368 }
 0x32b   : > { %v14991_v60 = vpop.permute.xlu1 %1447  ;;  %v14993_v0 = vpop.permute.xlu0 %1443 }
 0x32c   : > { %23030 = vst [vmem:[#allocation361_spill] sm:$0xff] %v14991_v60  ;;  %23031 = vst [vmem:[#allocation362_spill] sm:$0xff] %v14993_v0 }
 0x32d   : > { %1691 = vbcast.lane.b32.xlu1 %v1685_v37, 264  ;;  %1687 = vbcast.lane.b32.xlu0 %v1685_v37, 256 }
 0x32f   : > { %v14995_v55 = vpop.permute.xlu1 %1455  ;;  %v14997_v56 = vpop.permute.xlu0 %1451 }
 0x330   : > { %23032 = vst [vmem:[#allocation363_spill] sm:$0xff] %v14995_v55  ;;  %23033 = vst [vmem:[#allocation364_spill] sm:$0xff] %v14997_v56 }
 0x331   : > { %1699 = vbcast.lane.b32.xlu1 %v1685_v37, 280  ;;  %1695 = vbcast.lane.b32.xlu0 %v1685_v37, 272 }
 0x333   : > { %v14999_v44 = vpop.permute.xlu1 %1463  ;;  %v15001_v61 = vpop.permute.xlu0 %1459 }
 0x334   : > { %23034 = vst [vmem:[#allocation365_spill] sm:$0xff] %v14999_v44  ;;  %23035 = vst [vmem:[#allocation366_spill] sm:$0xff] %v15001_v61 }
 0x335   : > { %1707 = vbcast.lane.b32.xlu1 %v1685_v37, 296  ;;  %1703 = vbcast.lane.b32.xlu0 %v1685_v37, 288 }
 0x337   : > { %v15003_v20 = vpop.permute.xlu1 %1471  ;;  %v15005_v22 = vpop.permute.xlu0 %1467 }
 0x338   : > { %23036 = vst [vmem:[#allocation367_spill] sm:$0xff] %v15003_v20  ;;  %23037 = vst [vmem:[#allocation368_spill] sm:$0xff] %v15005_v22 }
 0x339   : > { %1715 = vbcast.lane.b32.xlu1 %v1685_v37, 312  ;;  %1711 = vbcast.lane.b32.xlu0 %v1685_v37, 304 }
 0x33b   : > { %v15007_v60 = vpop.permute.xlu1 %1479  ;;  %v15009_v55 = vpop.permute.xlu0 %1475 }
 0x33c   : > { %23038 = vst [vmem:[#allocation369_spill] sm:$0xff] %v15007_v60  ;;  %23039 = vst [vmem:[#allocation370_spill] sm:$0xff] %v15009_v55  ;;  %v1752_v55 = vrot.slane %v15020_v36, %v13966_v2 }
 0x33d   : > { %1723 = vbcast.lane.b32.xlu1 %v1685_v37, 328  ;;  %1719 = vbcast.lane.b32.xlu0 %v1685_v37, 320 }
 0x33f   : > { %v15011_v0 = vpop.permute.xlu1 %1490  ;;  %v15013_v44 = vpop.permute.xlu0 %1486 }
 0x340   : > { %23040 = vst [vmem:[#allocation371_spill] sm:$0xff] %v15011_v0  ;;  %23041 = vst [vmem:[#allocation372_spill] sm:$0xff] %v15013_v44 }
 0x341   : > { %1731 = vbcast.lane.b32.xlu1 %v1685_v37, 344  ;;  %1727 = vbcast.lane.b32.xlu0 %v1685_v37, 336 }
 0x343   : > { %v15015_v61 = vpop.permute.xlu1 %1498  ;;  %v15017_v20 = vpop.permute.xlu0 %1494 }
 0x344   : > { %23042 = vst [vmem:[#allocation373_spill] sm:$0xff] %v15015_v61  ;;  %23043 = vst [vmem:[#allocation374_spill] sm:$0xff] %v15017_v20 }
 0x345   : > { %1739 = vbcast.lane.b32.xlu1 %v1685_v37, 360  ;;  %1735 = vbcast.lane.b32.xlu0 %v1685_v37, 352 }
 0x347   : > { %v15022_v14 = vpop.permute.xlu1 %1506  ;;  %v15024_v60 = vpop.permute.xlu0 %1502 }
 0x348   : > { %23044 = vst [vmem:[#allocation375_spill] sm:$0xff] %v15022_v14  ;;  %23045 = vst [vmem:[#allocation376_spill] sm:$0xff] %v15024_v60 }
 0x349   : > { %1747 = vbcast.lane.b32.xlu1 %v1685_v37, 376  ;;  %1743 = vbcast.lane.b32.xlu0 %v1685_v37, 368 }
 0x34b   : > { %v15028_v63 = vpop.permute.xlu1 %1514  ;;  %v15030_v23 = vpop.permute.xlu0 %1510 }
 0x34c   : > { %23046 = vst [vmem:[#allocation377_spill] sm:$0xff] %v15028_v63  ;;  %23047 = vst [vmem:[#allocation378_spill] sm:$0xff] %v15030_v23 }
 0x34d   : > { %1758 = vbcast.lane.b32.xlu1 %v1752_v55, 264  ;;  %1754 = vbcast.lane.b32.xlu0 %v1752_v55, 256 }
 0x34f   : > { %v15032_v61 = vpop.permute.xlu1 %1522  ;;  %v15034_v57 = vpop.permute.xlu0 %1518 }
 0x350   : > { %23048 = vst [vmem:[#allocation379_spill] sm:$0xff] %v15032_v61  ;;  %23049 = vst [vmem:[#allocation380_spill] sm:$0xff] %v15034_v57 }
 0x351   : > { %1766 = vbcast.lane.b32.xlu1 %v1752_v55, 280  ;;  %1762 = vbcast.lane.b32.xlu0 %v1752_v55, 272 }
 0x353   : > { %v15036_v14 = vpop.permute.xlu1 %1530  ;;  %v15038_v8 = vpop.permute.xlu0 %1526 }
 0x354   : > { %23050 = vst [vmem:[#allocation381_spill] sm:$0xff] %v15036_v14  ;;  %23051 = vst [vmem:[#allocation382_spill] sm:$0xff] %v15038_v8 }
 0x355   : > { %1774 = vbcast.lane.b32.xlu1 %v1752_v55, 296  ;;  %1770 = vbcast.lane.b32.xlu0 %v1752_v55, 288 }
 0x357   : > { %v15040_v2 = vpop.permute.xlu1 %1538  ;;  %v15042_v37 = vpop.permute.xlu0 %1534 }
 0x358   : > { %23052 = vst [vmem:[#allocation383_spill] sm:$0xff] %v15040_v2  ;;  %23053 = vst [vmem:[#allocation384_spill] sm:$0xff] %v15042_v37 }
 0x359   : > { %1782 = vbcast.lane.b32.xlu1 %v1752_v55, 312  ;;  %1778 = vbcast.lane.b32.xlu0 %v1752_v55, 304 }
 0x35b   : > { %v15044_v63 = vpop.permute.xlu1 %1546  ;;  %v15046_v23 = vpop.permute.xlu0 %1542 }
 0x35c   : > { %23054 = vst [vmem:[#allocation385_spill] sm:$0xff] %v15044_v63  ;;  %23055 = vst [vmem:[#allocation386_spill] sm:$0xff] %v15046_v23  ;;  %v1819_v63 = vrot.slane %v15020_v36, %v13974_v5 }
 0x35d   : > { %1790 = vbcast.lane.b32.xlu1 %v1752_v55, 328  ;;  %1786 = vbcast.lane.b32.xlu0 %v1752_v55, 320 }
 0x35f   : > { %v15048_v61 = vpop.permute.xlu1 %1557  ;;  %v15050_v20 = vpop.permute.xlu0 %1553 }
 0x360   : > { %23056 = vst [vmem:[#allocation387_spill] sm:$0xff] %v15048_v61 }
 0x361   : > { %1798 = vbcast.lane.b32.xlu1 %v1752_v55, 344  ;;  %1794 = vbcast.lane.b32.xlu0 %v1752_v55, 336 }
 0x363   : > { %v15052_v14 = vpop.permute.xlu1 %1565  ;;  %v15054_v8 = vpop.permute.xlu0 %1561 }
 0x364   : > { %23057 = vst [vmem:[#allocation388_spill] sm:$0xff] %v15052_v14  ;;  %23058 = vst [vmem:[#allocation389_spill] sm:$0xff] %v15054_v8 }
 0x365   : > { %1806 = vbcast.lane.b32.xlu1 %v1752_v55, 360  ;;  %1802 = vbcast.lane.b32.xlu0 %v1752_v55, 352 }
 0x367   : > { %v15056_v2 = vpop.permute.xlu1 %1573  ;;  %v15058_v26 = vpop.permute.xlu0 %1569 }
 0x368   : > { %23059 = vst [vmem:[#allocation390_spill] sm:$0xff] %v15056_v2  ;;  %23060 = vst [vmem:[#allocation391_spill] sm:$0xff] %v15058_v26 }
 0x369   : > { %1814 = vbcast.lane.b32.xlu1 %v1752_v55, 376  ;;  %1810 = vbcast.lane.b32.xlu0 %v1752_v55, 368 }
 0x36b   : > { %v15062_v23 = vpop.permute.xlu1 %1581  ;;  %v15064_v46 = vpop.permute.xlu0 %1577 }
 0x36c   : > { %23061 = vst [vmem:[#allocation392_spill] sm:$0xff] %v15062_v23  ;;  %23062 = vst [vmem:[#allocation393_spill] sm:$0xff] %v15064_v46 }
 0x36d   : > { %1825 = vbcast.lane.b32.xlu1 %v1819_v63, 264  ;;  %1821 = vbcast.lane.b32.xlu0 %v1819_v63, 256 }
 0x36f   : > { %v15066_v14 = vpop.permute.xlu1 %1589  ;;  %v15068_v8 = vpop.permute.xlu0 %1585 }
 0x370   : > { %23063 = vst [vmem:[#allocation394_spill] sm:$0xff] %v15066_v14  ;;  %23064 = vst [vmem:[#allocation395_spill] sm:$0xff] %v15068_v8 }
 0x371   : > { %1833 = vbcast.lane.b32.xlu1 %v1819_v63, 280  ;;  %1829 = vbcast.lane.b32.xlu0 %v1819_v63, 272 }
 0x373   : > { %v15070_v2 = vpop.permute.xlu1 %1597  ;;  %v15072_v4 = vpop.permute.xlu0 %1593 }
 0x374   : > { %23065 = vst [vmem:[#allocation396_spill] sm:$0xff] %v15070_v2  ;;  %23066 = vst [vmem:[#allocation397_spill] sm:$0xff] %v15072_v4 }
 0x375   : > { %1841 = vbcast.lane.b32.xlu1 %v1819_v63, 296  ;;  %1837 = vbcast.lane.b32.xlu0 %v1819_v63, 288 }
 0x377   : > { %v15074_v5 = vpop.permute.xlu1 %1605  ;;  %v15076_v55 = vpop.permute.xlu0 %1601 }
 0x378   : > { %23067 = vst [vmem:[#allocation398_spill] sm:$0xff] %v15074_v5  ;;  %23068 = vst [vmem:[#allocation399_spill] sm:$0xff] %v15076_v55 }
 0x379   : > { %1849 = vbcast.lane.b32.xlu1 %v1819_v63, 312  ;;  %1845 = vbcast.lane.b32.xlu0 %v1819_v63, 304 }
 0x37b   : > { %v15078_v23 = vpop.permute.xlu1 %1613  ;;  %v15080_v46 = vpop.permute.xlu0 %1609 }
 0x37c   : > { %23069 = vst [vmem:[#allocation400_spill] sm:$0xff] %v15078_v23  ;;  %23070 = vst [vmem:[#allocation401_spill] sm:$0xff] %v15080_v46  ;;  %v1886_v23 = vrot.slane %v15020_v36, %v13979_v7 }
 0x37d   : > { %1857 = vbcast.lane.b32.xlu1 %v1819_v63, 328  ;;  %1853 = vbcast.lane.b32.xlu0 %v1819_v63, 320 }
 0x37f   : > { %v15082_v14 = vpop.permute.xlu1 %1624  ;;  %v15084_v39 = vpop.permute.xlu0 %1620 }
 0x380   : > { %23071 = vst [vmem:[#allocation402_spill] sm:$0xff] %v15082_v14  ;;  %23072 = vst [vmem:[#allocation403_spill] sm:$0xff] %v15084_v39 }
 0x381   : > { %1865 = vbcast.lane.b32.xlu1 %v1819_v63, 344  ;;  %1861 = vbcast.lane.b32.xlu0 %v1819_v63, 336 }
 0x383   : > { %v15086_v2 = vpop.permute.xlu1 %1632  ;;  %v15088_v4 = vpop.permute.xlu0 %1628 }
 0x384   : > { %23073 = vst [vmem:[#allocation404_spill] sm:$0xff] %v15086_v2  ;;  %23074 = vst [vmem:[#allocation405_spill] sm:$0xff] %v15088_v4 }
 0x385   : > { %1873 = vbcast.lane.b32.xlu1 %v1819_v63, 360  ;;  %1869 = vbcast.lane.b32.xlu0 %v1819_v63, 352 }
 0x387   : > { %v15090_v5 = vpop.permute.xlu1 %1640  ;;  %v15092_v45 = vpop.permute.xlu0 %1636 }
 0x388   : > { %23075 = vst [vmem:[#allocation406_spill] sm:$0xff] %v15090_v5  ;;  %23076 = vst [vmem:[#allocation407_spill] sm:$0xff] %v15092_v45 }
 0x389   : > { %1881 = vbcast.lane.b32.xlu1 %v1819_v63, 376  ;;  %1877 = vbcast.lane.b32.xlu0 %v1819_v63, 368 }
 0x38b   : > { %v15096_v46 = vpop.permute.xlu1 %1648  ;;  %v15098_v58 = vpop.permute.xlu0 %1644 }
 0x38c   : > { %23077 = vst [vmem:[#allocation408_spill] sm:$0xff] %v15096_v46  ;;  %23078 = vst [vmem:[#allocation409_spill] sm:$0xff] %v15098_v58 }
 0x38d   : > { %1892 = vbcast.lane.b32.xlu1 %v1886_v23, 264  ;;  %1888 = vbcast.lane.b32.xlu0 %v1886_v23, 256 }
 0x38f   : > { %v15100_v2 = vpop.permute.xlu1 %1656  ;;  %v15102_v4 = vpop.permute.xlu0 %1652 }
 0x390   : > { %23079 = vst [vmem:[#allocation410_spill] sm:$0xff] %v15100_v2  ;;  %23080 = vst [vmem:[#allocation411_spill] sm:$0xff] %v15102_v4 }
 0x391   : > { %1900 = vbcast.lane.b32.xlu1 %v1886_v23, 280  ;;  %1896 = vbcast.lane.b32.xlu0 %v1886_v23, 272 }
 0x393   : > { %v15104_v5 = vpop.permute.xlu1 %1664  ;;  %v15106_v0 = vpop.permute.xlu0 %1660 }
 0x394   : > { %23081 = vst [vmem:[#allocation412_spill] sm:$0xff] %v15104_v5  ;;  %23082 = vst [vmem:[#allocation413_spill] sm:$0xff] %v15106_v0 }
 0x395   : > { %1908 = vbcast.lane.b32.xlu1 %v1886_v23, 296  ;;  %1904 = vbcast.lane.b32.xlu0 %v1886_v23, 288 }
 0x397   : > { %v15108_v7 = vpop.permute.xlu1 %1672  ;;  %v15110_v63 = vpop.permute.xlu0 %1668 }
 0x398   : > { %23083 = vst [vmem:[#allocation414_spill] sm:$0xff] %v15108_v7  ;;  %23084 = vst [vmem:[#allocation415_spill] sm:$0xff] %v15110_v63 }
 0x399   : > { %1916 = vbcast.lane.b32.xlu1 %v1886_v23, 312  ;;  %1912 = vbcast.lane.b32.xlu0 %v1886_v23, 304 }
 0x39b   : > { %v15112_v46 = vpop.permute.xlu1 %1680  ;;  %v15114_v58 = vpop.permute.xlu0 %1676 }
 0x39c   : > { %23085 = vst [vmem:[#allocation416_spill] sm:$0xff] %v15112_v46  ;;  %23086 = vst [vmem:[#allocation417_spill] sm:$0xff] %v15114_v58  ;;  %v1953_v46 = vrot.slane %v15020_v36, %v13984_v9 }
 0x39d   : > { %1924 = vbcast.lane.b32.xlu1 %v1886_v23, 328  ;;  %1920 = vbcast.lane.b32.xlu0 %v1886_v23, 320 }
 0x39f   : > { %v15116_v2 = vpop.permute.xlu1 %1691  ;;  %v15118_v14 = vpop.permute.xlu0 %1687 }
 0x3a0   : > { %23087 = vst [vmem:[#allocation418_spill] sm:$0xff] %v15116_v2  ;;  %v2605_v9 = vcombine.low %v15050_v20, %v15118_v14 }
 0x3a1   : > { %1932 = vbcast.lane.b32.xlu1 %v1886_v23, 344  ;;  %1928 = vbcast.lane.b32.xlu0 %v1886_v23, 336 }
 0x3a3   : > { %v15120_v5 = vpop.permute.xlu1 %1699  ;;  %v15122_v0 = vpop.permute.xlu0 %1695 }
 0x3a4   : > { %23088 = vst [vmem:[#allocation419_spill] sm:$0xff] %v15120_v5  ;;  %23089 = vst [vmem:[#allocation420_spill] sm:$0xff] %v15122_v0 }
 0x3a5   : > { %1940 = vbcast.lane.b32.xlu1 %v1886_v23, 360  ;;  %1936 = vbcast.lane.b32.xlu0 %v1886_v23, 352 }
 0x3a7   : > { %v15124_v7 = vpop.permute.xlu1 %1707  ;;  %v15126_v16 = vpop.permute.xlu0 %1703 }
 0x3a8   : > { %23090 = vst [vmem:[#allocation421_spill] sm:$0xff] %v15124_v7  ;;  %23091 = vst [vmem:[#allocation422_spill] sm:$0xff] %v15126_v16 }
 0x3a9   : > { %1948 = vbcast.lane.b32.xlu1 %v1886_v23, 376  ;;  %1944 = vbcast.lane.b32.xlu0 %v1886_v23, 368 }
 0x3ab   : > { %v15130_v58 = vpop.permute.xlu1 %1715  ;;  %v15132_v40 = vpop.permute.xlu0 %1711 }
 0x3ac   : > { %23092 = vst [vmem:[#allocation423_spill] sm:$0xff] %v15130_v58  ;;  %23093 = vst [vmem:[#allocation424_spill] sm:$0xff] %v15132_v40  ;;  %v2573_v58 = vcombine.low %v14890_v27, %v14979_v49 }
 0x3ad   : > { %1959 = vbcast.lane.b32.xlu1 %v1953_v46, 264  ;;  %1955 = vbcast.lane.b32.xlu0 %v1953_v46, 256 }
 0x3af   : > { %v15134_v5 = vpop.permute.xlu1 %1723  ;;  %v15136_v0 = vpop.permute.xlu0 %1719 }
 0x3b0   : > { %23094 = vst [vmem:[#allocation425_spill] sm:$0xff] %v15134_v5  ;;  %23095 = vst [vmem:[#allocation426_spill] sm:$0xff] %v15136_v0  ;;  %v2589_v5 = vcombine.low %v15013_v44, %v15084_v39 }
 0x3b1   : > { %1967 = vbcast.lane.b32.xlu1 %v1953_v46, 280  ;;  %1963 = vbcast.lane.b32.xlu0 %v1953_v46, 272 }
 0x3b2   : > { %v15163_v52 = vrot.slane %v2589_v5, %v14280_v31 }
 0x3b3   : > { %v15138_v7 = vpop.permute.xlu1 %1731  ;;  %v15140_v61 = vpop.permute.xlu0 %1727 }
 0x3b4   : > { %23096 = vst [vmem:[#allocation427_spill] sm:$0xff] %v15138_v7  ;;  %23097 = vst [vmem:[#allocation428_spill] sm:$0xff] %v15140_v61  ;;  %v2557_v7 = vcombine.low %v14753_v21, %v14945_v42  ;;  %v15155_v61 = vrot.slane %v2605_v9, %v14280_v31 }
 0x3b5   : > { %1975 = vbcast.lane.b32.xlu1 %v1953_v46, 296  ;;  %1971 = vbcast.lane.b32.xlu0 %v1953_v46, 288 }
 0x3b6   : > { %v15168_v44 = vrot.slane %v2557_v7, %v14280_v31  ;;  %v2653_v21 = vcombine.low %v15163_v52, %v15155_v61  ;;  %v4781_v7 = vcombine.low %v15058_v26, %v15126_v16  ;;  %v4733_v26 = vcombine.low %v14793_v17, %v14953_v53 }
 0x3b7   : > { %v15144_v23 = vpop.permute.xlu1 %1739  ;;  %v15150_v40 = vpop.permute.xlu0 %1735 }
 0x3b8   : > { %23098 = vst [vmem:[#allocation429_spill] sm:$0xff] %v15144_v23  ;;  %23099 = vst [vmem:[#allocation430_spill] sm:$0xff] %v15150_v40  ;;  %v15160_v23 = vrot.slane %v2573_v58, %v14280_v31  ;;  %v15179_v5 = vrot.slane %v2653_v21, %v14315_v11  ;;  %v15201_v16 = vrot.slane %v4781_v7, %v14280_v31 }
 0x3b9   : > { %1983 = vbcast.lane.b32.xlu1 %v1953_v46, 312  ;;  %1979 = vbcast.lane.b32.xlu0 %v1953_v46, 304  ;;  %v15218_v17 = vrot.slane %v4733_v26, %v14280_v31 }
 0x3ba   : > { %23104 = vst [vmem:[#allocation435_spill] sm:$0xff] %v15179_v5  ;;  %23109 = vst [vmem:[#allocation440_spill] sm:$0xff] %v15201_v16 }
 0x3bb   : > { %v15157_v2 = vpop.permute.xlu1 %1747  ;;  %v15165_v27 = vpop.permute.xlu0 %1743  ;;  %23114 = vst [vmem:[#allocation445_spill] sm:$0xff] %v15218_v17 }
 0x3bc   : > { %23100 = vst [vmem:[#allocation431_spill] sm:$0xff] %v15157_v2  ;;  %23101 = vst [vmem:[#allocation432_spill] sm:$0xff] %v15165_v27  ;;  %v2621_v2 = vcombine.low %v15168_v44, %v15160_v23 }
 0x3bd   : > { %1991 = vbcast.lane.b32.xlu1 %v1953_v46, 328  ;;  %1987 = vbcast.lane.b32.xlu0 %v1953_v46, 320 }
 0x3be   : > { %v15188_v39 = vrot.slane %v2621_v2, %v14315_v11 }
 0x3bf   : > { %v15172_v9 = vpop.permute.xlu1 %1758  ;;  %v15176_v58 = vpop.permute.xlu0 %1754 }
 0x3c0   : > { %23102 = vst [vmem:[#allocation433_spill] sm:$0xff] %v15172_v9  ;;  %23103 = vst [vmem:[#allocation434_spill] sm:$0xff] %v15176_v58  ;;  %v4749_v9 = vcombine.low %v14915_v54, %v14987_v62  ;;  %v4765_v58 = vcombine.low %v15024_v60, %v15092_v45  ;;  %v15207_v54 = vrot.slane %v15020_v36, %v13997_v15 }
 0x3c1   : > { %1999 = vbcast.lane.b32.xlu1 %v1953_v46, 344  ;;  %1995 = vbcast.lane.b32.xlu0 %v1953_v46, 336  ;;  %23107 = vst [vmem:[#allocation438_spill] sm:$0xff] %v15188_v39 }
 0x3c2   : > { %v15210_v60 = vrot.slane %v4749_v9, %v14280_v31  ;;  %v15213_v21 = vrot.slane %v4765_v58, %v14280_v31 }
 0x3c3   : > { %v15181_v27 = vpop.permute.xlu1 %1766  ;;  %v15185_v42 = vpop.permute.xlu0 %1762 }
 0x3c4   : > { %23105 = vst [vmem:[#allocation436_spill] sm:$0xff] %v15181_v27  ;;  %23106 = vst [vmem:[#allocation437_spill] sm:$0xff] %v15185_v42  ;;  %v4829_v7 = vcombine.low %v15213_v21, %v15201_v16  ;;  %v4797_v15 = vcombine.low %v15218_v17, %v15210_v60  ;;  %v2414_v17 = vcombine.high %v14342_v35, %v14330_v1  ;;  %v23222_v16 = vld [vmem:[#allocation402_spill] sm:$0xff]  ;;  %v23223_v42 = vld [vmem:[#allocation371_spill] sm:$0xff] }
 0x3c5   : > { %2007 = vbcast.lane.b32.xlu1 %v1953_v46, 360  ;;  %2003 = vbcast.lane.b32.xlu0 %v1953_v46, 352  ;;  %23111 = vst [vmem:[#allocation442_spill] sm:$0xff] %v15210_v60  ;;  %23112 = vst [vmem:[#allocation443_spill] sm:$0xff] %v15213_v21  ;;  %v2350_v60 = vcombine.high %v14307_v13, %v14298_v32  ;;  %v23221_v21 = vld [vmem:[#allocation321_spill] sm:$0xff] }
 0x3c6   : > { %v15235_v26 = vrot.slane %v4829_v7, %v14315_v11  ;;  %v15244_v45 = vrot.slane %v4797_v15, %v14315_v11 }
 0x3c7   : > { %v15196_v27 = vpop.permute.xlu1 %1774  ;;  %v15203_v2 = vpop.permute.xlu0 %1770  ;;  %v2364_v13 = vrot.slane %v2350_v60, %v14315_v11 }
 0x3c8   : > { %23108 = vst [vmem:[#allocation439_spill] sm:$0xff] %v15196_v27  ;;  %23110 = vst [vmem:[#allocation441_spill] sm:$0xff] %v15203_v2 }
 0x3c9   : > { %2015 = vbcast.lane.b32.xlu1 %v1953_v46, 376  ;;  %2011 = vbcast.lane.b32.xlu0 %v1953_v46, 368  ;;  %v6957_v46 = vcombine.low %v15068_v8, %v15136_v0  ;;  %23118 = vst [vmem:[#allocation449_spill] sm:$0xff] %v15235_v26  ;;  %23119 = vst [vmem:[#allocation450_spill] sm:$0xff] %v15244_v45 }
 0x3cb   : > { %v15215_v27 = vpop.permute.xlu1 %1782  ;;  %v15222_v53 = vpop.permute.xlu0 %1778  ;;  %v15249_v8 = vrot.slane %v6957_v46, %v14280_v31 }
 0x3cc   : > { %23113 = vst [vmem:[#allocation444_spill] sm:$0xff] %v15215_v27  ;;  %23115 = vst [vmem:[#allocation446_spill] sm:$0xff] %v15222_v53  ;;  %v6925_v27 = vcombine.low %v14929_v24, %v14997_v56  ;;  %v6941_v53 = vcombine.low %v15034_v57, %v15102_v4  ;;  %v9117_v56 = vcombine.low %v15042_v37, %v15110_v63 }
 0x3cd   : > { %2026 = vbcast.lane.b32.xlu1 %v15207_v54, 264  ;;  %2022 = vbcast.lane.b32.xlu0 %v15207_v54, 256  ;;  %23120 = vst [vmem:[#allocation451_spill] sm:$0xff] %v15249_v8 }
 0x3ce   : > { %v15258_v4 = vrot.slane %v6925_v27, %v14280_v31  ;;  %v15261_v24 = vrot.slane %v6941_v53, %v14280_v31  ;;  %v15312_v37 = vrot.slane %v9117_v56, %v14280_v31 }
 0x3cf   : > { %v15230_v9 = vpop.permute.xlu1 %1790  ;;  %v15232_v58 = vpop.permute.xlu0 %1786 }
 0x3d0   : > { %23116 = vst [vmem:[#allocation447_spill] sm:$0xff] %v15230_v9  ;;  %23117 = vst [vmem:[#allocation448_spill] sm:$0xff] %v15232_v58  ;;  %v6909_v9 = vcombine.low %v14817_v3, %v14963_v50  ;;  %v7005_v46 = vcombine.low %v15261_v24, %v15249_v8  ;;  %v9101_v50 = vcombine.low %v14937_v47, %v15005_v22 }
 0x3d1   : > { %2034 = vbcast.lane.b32.xlu1 %v15207_v54, 280  ;;  %2030 = vbcast.lane.b32.xlu0 %v15207_v54, 272  ;;  %23123 = vst [vmem:[#allocation454_spill] sm:$0xff] %v15258_v4  ;;  %23124 = vst [vmem:[#allocation455_spill] sm:$0xff] %v15261_v24 }
 0x3d2   : > { %v15266_v15 = vrot.slane %v6909_v9, %v14280_v31  ;;  %v15281_v57 = vrot.slane %v7005_v46, %v14315_v11  ;;  %v9133_v9 = vcombine.low %v15076_v55, %v15150_v40  ;;  %v15309_v47 = vrot.slane %v9101_v50, %v14280_v31  ;;  %23135 = vst [vmem:[#allocation466_spill] sm:$0xff] %v15312_v37 }
 0x3d3   : > { %v15251_v7 = vpop.permute.xlu1 %1798  ;;  %v15253_v0 = vpop.permute.xlu0 %1794 }
 0x3d4   : > { %23121 = vst [vmem:[#allocation452_spill] sm:$0xff] %v15251_v7  ;;  %23122 = vst [vmem:[#allocation453_spill] sm:$0xff] %v15253_v0  ;;  %v6973_v27 = vcombine.low %v15266_v15, %v15258_v4  ;;  %v15303_v55 = vrot.slane %v9133_v9, %v14280_v31 }
 0x3d5   : > { %2042 = vbcast.lane.b32.xlu1 %v15207_v54, 296  ;;  %2038 = vbcast.lane.b32.xlu0 %v15207_v54, 288  ;;  %23125 = vst [vmem:[#allocation456_spill] sm:$0xff] %v15266_v15  ;;  %23129 = vst [vmem:[#allocation460_spill] sm:$0xff] %v15281_v57 }
 0x3d6   : > { %23133 = vst [vmem:[#allocation464_spill] sm:$0xff] %v15303_v55  ;;  %23134 = vst [vmem:[#allocation465_spill] sm:$0xff] %v15309_v47  ;;  %v9181_v9 = vcombine.low %v15312_v37, %v15303_v55 }
 0x3d7   : > { %v15270_v7 = vpop.permute.xlu1 %1806  ;;  %v15272_v0 = vpop.permute.xlu0 %1802 }
 0x3d8   : > { %23126 = vst [vmem:[#allocation457_spill] sm:$0xff] %v15270_v7  ;;  %23127 = vst [vmem:[#allocation458_spill] sm:$0xff] %v15272_v0  ;;  %v15289_v7 = vrot.slane %v6973_v27, %v14315_v11  ;;  %v15333_v22 = vrot.slane %v9181_v9, %v14315_v11 }
 0x3d9   : > { %2050 = vbcast.lane.b32.xlu1 %v15207_v54, 312  ;;  %2046 = vbcast.lane.b32.xlu0 %v15207_v54, 304 }
 0x3da   : > { %23131 = vst [vmem:[#allocation462_spill] sm:$0xff] %v15289_v7  ;;  %23141 = vst [vmem:[#allocation472_spill] sm:$0xff] %v15333_v22 }
 0x3db   : > { %v15278_v53 = vpop.permute.xlu1 %1814  ;;  %v15285_v3 = vpop.permute.xlu0 %1810 }
 0x3dc   : > { %23128 = vst [vmem:[#allocation459_spill] sm:$0xff] %v15278_v53  ;;  %23130 = vst [vmem:[#allocation461_spill] sm:$0xff] %v15285_v3  ;;  %v9085_v3 = vcombine.low %v14851_v38, %v14971_v28 }
 0x3dd   : > { %2058 = vbcast.lane.b32.xlu1 %v15207_v54, 328  ;;  %2054 = vbcast.lane.b32.xlu0 %v15207_v54, 320 }
 0x3de   : > { %v15318_v53 = vrot.slane %v9085_v3, %v14280_v31  ;;  %v2087_v3 = vrot.slane %v15020_v36, %v14034_v33 }
 0x3df   : > { %v15296_v46 = vpop.permute.xlu1 %1825  ;;  %v15305_v27 = vpop.permute.xlu0 %1821 }
 0x3e0   : > { %23132 = vst [vmem:[#allocation463_spill] sm:$0xff] %v15296_v46  ;;  %23137 = vst [vmem:[#allocation468_spill] sm:$0xff] %v15318_v53  ;;  %v9149_v50 = vcombine.low %v15318_v53, %v15309_v47  ;;  %v23274_v46 = vld [vmem:[#allocation358_spill] sm:$0xff] }
 0x3e1   : > { %2066 = vbcast.lane.b32.xlu1 %v15207_v54, 344  ;;  %2062 = vbcast.lane.b32.xlu0 %v15207_v54, 336 }
 0x3e2   : > { %v15340_v40 = vrot.slane %v9149_v50, %v14315_v11 }
 0x3e3   : > { %v15315_v63 = vpop.permute.xlu1 %1833  ;;  %v15322_v38 = vpop.permute.xlu0 %1829 }
 0x3e4   : > { %23136 = vst [vmem:[#allocation467_spill] sm:$0xff] %v15315_v63  ;;  %23138 = vst [vmem:[#allocation469_spill] sm:$0xff] %v15322_v38  ;;  %v23224_v38 = vld [vmem:[#allocation340_spill] sm:$0xff] }
 0x3e5   : > { %2074 = vbcast.lane.b32.xlu1 %v15207_v54, 360  ;;  %2070 = vbcast.lane.b32.xlu0 %v15207_v54, 352  ;;  %23142 = vst [vmem:[#allocation473_spill] sm:$0xff] %v15340_v40 }
 0x3e7   : > { %v15328_v56 = vpop.permute.xlu1 %1841  ;;  %v15330_v28 = vpop.permute.xlu0 %1837 }
 0x3e8   : > { %23139 = vst [vmem:[#allocation470_spill] sm:$0xff] %v15328_v56  ;;  %23140 = vst [vmem:[#allocation471_spill] sm:$0xff] %v15330_v28 }
 0x3e9   : > { %2082 = vbcast.lane.b32.xlu1 %v15207_v54, 376  ;;  %2078 = vbcast.lane.b32.xlu0 %v15207_v54, 368 }
 0x3eb   : > { %v15342_v53 = vpop.permute.xlu1 %1849  ;;  %v15344_v47 = vpop.permute.xlu0 %1845 }
 0x3ec   : > { %23143 = vst [vmem:[#allocation474_spill] sm:$0xff] %v15342_v53  ;;  %23144 = vst [vmem:[#allocation475_spill] sm:$0xff] %v15344_v47 }
 0x3ed   : > { %2093 = vbcast.lane.b32.xlu1 %v2087_v3, 264  ;;  %2089 = vbcast.lane.b32.xlu0 %v2087_v3, 256 }
 0x3ef   : > { %v15348_v9 = vpop.permute.xlu1 %1857  ;;  %v15350_v55 = vpop.permute.xlu0 %1853 }
 0x3f0   : > { %23145 = vst [vmem:[#allocation476_spill] sm:$0xff] %v15348_v9  ;;  %23146 = vst [vmem:[#allocation477_spill] sm:$0xff] %v15350_v55 }
 0x3f1   : > { %2101 = vbcast.lane.b32.xlu1 %v2087_v3, 280  ;;  %2097 = vbcast.lane.b32.xlu0 %v2087_v3, 272 }
 0x3f3   : > { %v15352_v33 = vpop.permute.xlu1 %1865  ;;  %v15354_v54 = vpop.permute.xlu0 %1861 }
 0x3f4   : > { %23147 = vst [vmem:[#allocation478_spill] sm:$0xff] %v15352_v33  ;;  %23148 = vst [vmem:[#allocation479_spill] sm:$0xff] %v15354_v54 }
 0x3f5   : > { %2109 = vbcast.lane.b32.xlu1 %v2087_v3, 296  ;;  %2105 = vbcast.lane.b32.xlu0 %v2087_v3, 288 }
 0x3f7   : > { %v15356_v50 = vpop.permute.xlu1 %1873  ;;  %v15358_v53 = vpop.permute.xlu0 %1869 }
 0x3f8   : > { %23149 = vst [vmem:[#allocation480_spill] sm:$0xff] %v15356_v50  ;;  %23150 = vst [vmem:[#allocation481_spill] sm:$0xff] %v15358_v53 }
 0x3f9   : > { %2117 = vbcast.lane.b32.xlu1 %v2087_v3, 312  ;;  %2113 = vbcast.lane.b32.xlu0 %v2087_v3, 304 }
 0x3fb   : > { %v15360_v37 = vpop.permute.xlu1 %1881  ;;  %v15362_v40 = vpop.permute.xlu0 %1877 }
 0x3fc   : > { %23151 = vst [vmem:[#allocation482_spill] sm:$0xff] %v15360_v37  ;;  %23152 = vst [vmem:[#allocation483_spill] sm:$0xff] %v15362_v40  ;;  %v2154_v37 = vrot.slane %v15020_v36, %v14071_v51 }
 0x3fd   : > { %2125 = vbcast.lane.b32.xlu1 %v2087_v3, 328  ;;  %2121 = vbcast.lane.b32.xlu0 %v2087_v3, 320 }
 0x3ff   : > { %v15364_v22 = vpop.permute.xlu1 %1892  ;;  %v15366_v9 = vpop.permute.xlu0 %1888 }
 0x400   : > { %23153 = vst [vmem:[#allocation484_spill] sm:$0xff] %v15364_v22 }
 0x401   : > { %2133 = vbcast.lane.b32.xlu1 %v2087_v3, 344  ;;  %2129 = vbcast.lane.b32.xlu0 %v2087_v3, 336 }
 0x403   : > { %v15368_v33 = vpop.permute.xlu1 %1900  ;;  %v15370_v54 = vpop.permute.xlu0 %1896 }
 0x404   : > { %23154 = vst [vmem:[#allocation485_spill] sm:$0xff] %v15368_v33  ;;  %23155 = vst [vmem:[#allocation486_spill] sm:$0xff] %v15370_v54  ;;  %v3133_v54 = vcombine.low %v23223_v42, %v23222_v16 }
 0x405   : > { %2141 = vbcast.lane.b32.xlu1 %v2087_v3, 360  ;;  %2137 = vbcast.lane.b32.xlu0 %v2087_v3, 352 }
 0x407   : > { %v15372_v50 = vpop.permute.xlu1 %1908  ;;  %v15374_v15 = vpop.permute.xlu0 %1904 }
 0x408   : > { %23156 = vst [vmem:[#allocation487_spill] sm:$0xff] %v15372_v50  ;;  %23157 = vst [vmem:[#allocation488_spill] sm:$0xff] %v15374_v15 }
 0x409   : > { %2149 = vbcast.lane.b32.xlu1 %v2087_v3, 376  ;;  %2145 = vbcast.lane.b32.xlu0 %v2087_v3, 368 }
 0x40b   : > { %v15378_v40 = vpop.permute.xlu1 %1916  ;;  %v15380_v4 = vpop.permute.xlu0 %1912 }
 0x40c   : > { %23158 = vst [vmem:[#allocation489_spill] sm:$0xff] %v15378_v40  ;;  %23159 = vst [vmem:[#allocation490_spill] sm:$0xff] %v15380_v4 }
 0x40d   : > { %2160 = vbcast.lane.b32.xlu1 %v2154_v37, 264  ;;  %2156 = vbcast.lane.b32.xlu0 %v2154_v37, 256 }
 0x40f   : > { %v15382_v7 = vpop.permute.xlu1 %1924  ;;  %v15384_v57 = vpop.permute.xlu0 %1920 }
 0x410   : > { %23160 = vst [vmem:[#allocation491_spill] sm:$0xff] %v15382_v7  ;;  %23161 = vst [vmem:[#allocation492_spill] sm:$0xff] %v15384_v57 }
 0x411   : > { %2168 = vbcast.lane.b32.xlu1 %v2154_v37, 280  ;;  %2164 = vbcast.lane.b32.xlu0 %v2154_v37, 272 }
 0x413   : > { %v15386_v24 = vpop.permute.xlu1 %1932  ;;  %v15388_v8 = vpop.permute.xlu0 %1928 }
 0x414   : > { %23162 = vst [vmem:[#allocation493_spill] sm:$0xff] %v15386_v24  ;;  %23163 = vst [vmem:[#allocation494_spill] sm:$0xff] %v15388_v8 }
 0x415   : > { %2176 = vbcast.lane.b32.xlu1 %v2154_v37, 296  ;;  %2172 = vbcast.lane.b32.xlu0 %v2154_v37, 288 }
 0x417   : > { %v15390_v51 = vpop.permute.xlu1 %1940  ;;  %v15392_v3 = vpop.permute.xlu0 %1936 }
 0x418   : > { %23164 = vst [vmem:[#allocation495_spill] sm:$0xff] %v15390_v51  ;;  %23165 = vst [vmem:[#allocation496_spill] sm:$0xff] %v15392_v3 }
 0x419   : > { %2184 = vbcast.lane.b32.xlu1 %v2154_v37, 312  ;;  %2180 = vbcast.lane.b32.xlu0 %v2154_v37, 304 }
 0x41b   : > { %v15394_v40 = vpop.permute.xlu1 %1948  ;;  %v15396_v4 = vpop.permute.xlu0 %1944 }
 0x41c   : > { %23166 = vst [vmem:[#allocation497_spill] sm:$0xff] %v15394_v40  ;;  %23167 = vst [vmem:[#allocation498_spill] sm:$0xff] %v15396_v4  ;;  %v2221_v40 = vrot.slane %v15020_v36, %v14108_v18 }
 0x41d   : > { %2192 = vbcast.lane.b32.xlu1 %v2154_v37, 328  ;;  %2188 = vbcast.lane.b32.xlu0 %v2154_v37, 320 }
 0x41f   : > { %v15398_v7 = vpop.permute.xlu1 %1959  ;;  %v15400_v47 = vpop.permute.xlu0 %1955 }
 0x420   : > { %23168 = vst [vmem:[#allocation499_spill] sm:$0xff] %v15398_v7  ;;  %v23275_v7 = vld [vmem:[#allocation325_spill] sm:$0xff] }
 0x421   : > { %2200 = vbcast.lane.b32.xlu1 %v2154_v37, 344  ;;  %2196 = vbcast.lane.b32.xlu0 %v2154_v37, 336 }
 0x423   : > { %v15402_v24 = vpop.permute.xlu1 %1967  ;;  %v15404_v8 = vpop.permute.xlu0 %1963 }
 0x424   : > { %23169 = vst [vmem:[#allocation500_spill] sm:$0xff] %v15402_v24  ;;  %23170 = vst [vmem:[#allocation501_spill] sm:$0xff] %v15404_v8  ;;  %v23225_v8 = vld [vmem:[#allocation287_spill] sm:$0xff] }
 0x425   : > { %2208 = vbcast.lane.b32.xlu1 %v2154_v37, 360  ;;  %2204 = vbcast.lane.b32.xlu0 %v2154_v37, 352 }
 0x427   : > { %v15406_v51 = vpop.permute.xlu1 %1975  ;;  %v15408_v50 = vpop.permute.xlu0 %1971 }
 0x428   : > { %23171 = vst [vmem:[#allocation502_spill] sm:$0xff] %v15406_v51  ;;  %23172 = vst [vmem:[#allocation503_spill] sm:$0xff] %v15408_v50 }
 0x429   : > { %2216 = vbcast.lane.b32.xlu1 %v2154_v37, 376  ;;  %2212 = vbcast.lane.b32.xlu0 %v2154_v37, 368 }
 0x42b   : > { %v15412_v4 = vpop.permute.xlu1 %1983  ;;  %v15414_v56 = vpop.permute.xlu0 %1979 }
 0x42c   : > { %23173 = vst [vmem:[#allocation504_spill] sm:$0xff] %v15412_v4  ;;  %23174 = vst [vmem:[#allocation505_spill] sm:$0xff] %v15414_v56 }
 0x42d   : > { %2227 = vbcast.lane.b32.xlu1 %v2221_v40, 264  ;;  %2223 = vbcast.lane.b32.xlu0 %v2221_v40, 256 }
 0x42f   : > { %v15416_v33 = vpop.permute.xlu1 %1991  ;;  %v15418_v63 = vpop.permute.xlu0 %1987 }
 0x430   : > { %23175 = vst [vmem:[#allocation506_spill] sm:$0xff] %v15416_v33  ;;  %23176 = vst [vmem:[#allocation507_spill] sm:$0xff] %v15418_v63 }
 0x431   : > { %2235 = vbcast.lane.b32.xlu1 %v2221_v40, 280  ;;  %2231 = vbcast.lane.b32.xlu0 %v2221_v40, 272 }
 0x433   : > { %v15420_v51 = vpop.permute.xlu1 %1999  ;;  %v15422_v24 = vpop.permute.xlu0 %1995 }
 0x434   : > { %23177 = vst [vmem:[#allocation508_spill] sm:$0xff] %v15420_v51  ;;  %23178 = vst [vmem:[#allocation509_spill] sm:$0xff] %v15422_v24 }
 0x435   : > { %2243 = vbcast.lane.b32.xlu1 %v2221_v40, 296  ;;  %2239 = vbcast.lane.b32.xlu0 %v2221_v40, 288 }
 0x437   : > { %v15424_v18 = vpop.permute.xlu1 %2007  ;;  %v15426_v36 = vpop.permute.xlu0 %2003 }
 0x438   : > { %23179 = vst [vmem:[#allocation510_spill] sm:$0xff] %v15424_v18  ;;  %23180 = vst [vmem:[#allocation511_spill] sm:$0xff] %v15426_v36 }
 0x439   : > { %2251 = vbcast.lane.b32.xlu1 %v2221_v40, 312  ;;  %2247 = vbcast.lane.b32.xlu0 %v2221_v40, 304 }
 0x43b   : > { %v15428_v37 = vpop.permute.xlu0 %2011  ;;  %v15430_v4 = vpop.permute.xlu1 %2015 }
 0x43c   : > { %23181 = vst [vmem:[#allocation512_spill] sm:$0xff] %v15428_v37  ;;  %23182 = vst [vmem:[#allocation513_spill] sm:$0xff] %v15430_v4  ;;  %v2550_v4 = vcombine.high %v14767_v41, %v14756_v29  ;;  %v2382_v37 = vcombine.high %v14301_v10, %v14292_v25  ;;  %v2654_v29 = vcombine.high %v15163_v52, %v15155_v61 }
 0x43d   : > { %2259 = vbcast.lane.b32.xlu1 %v2221_v40, 328  ;;  %2255 = vbcast.lane.b32.xlu0 %v2221_v40, 320  ;;  %v2686_v25 = vcombine.high %v15188_v39, %v15179_v5  ;;  %v23217_v39 = vld [vmem:[#allocation387_spill] sm:$0xff] }
 0x43e   : > { %v2396_v10 = vrot.slane %v2382_v37, %v14315_v11  ;;  %v2668_v61 = vrot.slane %v2654_v29, %v14315_v11  ;;  %v2302_v37 = vcombine.high %v14027_v30, %v14101_v6  ;;  %v2606_v29 = vcombine.high %v15050_v20, %v15118_v14  ;;  %v23197_v20 = vld [vmem:[#allocation341_spill] sm:$0xff] }
 0x43f   : > { %v15432_v33 = vpop.permute.xlu0 %2022  ;;  %v15434_v51 = vpop.permute.xlu1 %2026 }
 0x440   : > { %23183 = vst [vmem:[#allocation514_spill] sm:$0xff] %v15434_v51  ;;  %v2415_v52 = vcombine.low %v2364_v13, %v2396_v10  ;;  %v2316_v30 = vrot.slane %v2302_v37, %v14280_v31  ;;  %v2620_v37 = vrot.slane %v2606_v29, %v14280_v31 }
 0x441   : > { %2267 = vbcast.lane.b32.xlu1 %v2221_v40, 344  ;;  %2263 = vbcast.lane.b32.xlu0 %v2221_v40, 336 }
 0x443   : > { %v15436_v24 = vpop.permute.xlu0 %2030  ;;  %v15440_v56 = vpop.permute.xlu1 %2034 }
 0x444   : > { %23184 = vst [vmem:[#allocation515_spill] sm:$0xff] %v15436_v24  ;;  %23186 = vst [vmem:[#allocation517_spill] sm:$0xff] %v15440_v56 }
 0x445   : > { %2275 = vbcast.lane.b32.xlu1 %v2221_v40, 360  ;;  %2271 = vbcast.lane.b32.xlu0 %v2221_v40, 352 }
 0x447   : > { %v15438_v18 = vpop.permute.xlu0 %2038 }
 0x448   : > { %23185 = vst [vmem:[#allocation516_spill] sm:$0xff] %v15438_v18 }
 0x449   : > { %2283 = vbcast.lane.b32.xlu1 %v2221_v40, 376  ;;  %2279 = vbcast.lane.b32.xlu0 %v2221_v40, 368  ;;  %v15454_v40 = vpop.permute.xlu1 %2042 }
 0x44a   : > { %23188 = vst [vmem:[#allocation519_spill] sm:$0xff] %v15454_v40 }
 0x44b   : > { %v15446_v62 = vpop.permute.xlu0 %2046 }
 0x44c   : > { %23187 = vst [vmem:[#allocation518_spill] sm:$0xff] %v15446_v62 }
 0x44d   : > { %10995 = vrot.lane.b32.xlu1 %v2550_v4, %s22617_s17  ;;  %10993 = vrot.lane.b32.xlu0 %v2414_v17, %s22617_s17  ;;  %v2622_v4 = vcombine.high %v15168_v44, %v15160_v23  ;;  %v2334_v17 = vcombine.high %v14175_v19, %v14243_v59  ;;  %v15472_v62 = vpop.permute.xlu1 %2050  ;;  %v2318_v44 = vcombine.high %v14138_v43, %v14209_v34  ;;  %v23193_v43 = vld [vmem:[#allocation322_spill] sm:$0xff] }
 0x44e   : > { %23191 = vst [vmem:[#allocation522_spill] sm:$0xff] %v15472_v62  ;;  %v2286_v19 = vcombine.high %v13990_v12, %v14064_v48  ;;  %v2574_v6 = vcombine.high %v23193_v43, %v14979_v49 }
 0x44f   : > { %v15458_v41 = vpop.permute.xlu0 %2054  ;;  %v2636_v60 = vrot.slane %v2622_v4, %v14315_v11  ;;  %v2348_v59 = vrot.slane %v2334_v17, %v14280_v31  ;;  %v2332_v34 = vrot.slane %v2318_v44, %v14280_v31  ;;  %v23195_v4 = vld [vmem:[#allocation372_spill] sm:$0xff]  ;;  %v23198_v17 = vld [vmem:[#allocation289_spill] sm:$0xff]  ;;  %v2416_v44 = vcombine.high %v2364_v13, %v2396_v10 }
 0x450   : > { %23189 = vst [vmem:[#allocation520_spill] sm:$0xff] %v15458_v41  ;;  %v2300_v12 = vrot.slane %v2286_v19, %v14280_v31  ;;  %v2558_v62 = vcombine.high %v23198_v17, %v23197_v20  ;;  %v2588_v49 = vrot.slane %v2574_v6, %v14280_v31 }
 0x451   : > { %10997 = vrot.lane.b32.xlu0 %v2686_v25, %s22617_s17  ;;  %v2687_v25 = vcombine.low %v2636_v60, %v2668_v61  ;;  %v15495_v48 = vpop.permute.xlu1 %2058  ;;  %v2397_v14 = vcombine.low %v2332_v34, %v2348_v59 }
 0x452   : > { %23196 = vst [vmem:[#allocation322_spill] sm:$0xff] %v15495_v48  ;;  %v2365_v5 = vcombine.low %v2300_v12, %v2316_v30  ;;  %v2572_v19 = vrot.slane %v2558_v62, %v14280_v31 }
 0x453   : > { %v15469_v32 = vpop.permute.xlu0 %2062  ;;  %v2405_v20 = vrot.slane %v2397_v14, %v14315_v11 }
 0x454   : > { %23190 = vst [vmem:[#allocation521_spill] sm:$0xff] %v15469_v32  ;;  %v2637_v17 = vcombine.low %v2572_v19, %v2588_v49  ;;  %v2373_v10 = vrot.slane %v2365_v5, %v14315_v11  ;;  %v2638_v48 = vcombine.high %v2572_v19, %v2588_v49 }
 0x455   : > { %11009 = vrot.lane.b32.xlu0 %v2415_v52, %s22623_s25  ;;  %v23194_v52 = vld [vmem:[#allocation403_spill] sm:$0xff]  ;;  %v15509_v29 = vpop.permute.xlu1 %2066 }
 0x456   : > { %v2590_v32 = vcombine.high %v23195_v4, %v23194_v52  ;;  %v2688_v4 = vcombine.high %v2636_v60, %v2668_v61  ;;  %23200 = vst [vmem:[#allocation372_spill] sm:$0xff] %v15509_v29  ;;  %v2645_v62 = vrot.slane %v2637_v17, %v14315_v11  ;;  %v2418_v5 = vcombine.high %v2373_v10, %v2405_v20 }
 0x457   : > { %v15485_v23 = vpop.permute.xlu0 %2070  ;;  %v2366_v29 = vcombine.high %v2300_v12, %v2316_v30  ;;  %v2652_v19 = vrot.slane %v2638_v48, %v14315_v11 }
 0x458   : > { %23192 = vst [vmem:[#allocation523_spill] sm:$0xff] %v15485_v23  ;;  %v2604_v43 = vrot.slane %v2590_v32, %v14280_v31  ;;  %v2417_v32 = vcombine.low %v2373_v10, %v2405_v20  ;;  %v23207_v20 = vld [vmem:[#allocation123_spill] sm:$0xff]  ;;  %v23208_v10 = vld [vmem:[#allocation93_spill] sm:$0xff]  ;;  %v3141_v23 = vrot.slane %v3133_v54, %v14280_v31 }
 0x459   : > { %11013 = vrot.lane.b32.xlu0 %v2687_v25, %s22623_s25  ;;  %v15518_v61 = vpop.permute.xlu1 %2074 }
 0x45a   : > { %v2669_v25 = vcombine.low %v2604_v43, %v2620_v37  ;;  %23202 = vst [vmem:[#allocation289_spill] sm:$0xff] %v15518_v61 }
 0x45b   : > { %v15500_v40 = vpop.permute.xlu0 %2078 }
 0x45c   : > { %23199 = vst [vmem:[#allocation403_spill] sm:$0xff] %v15500_v40  ;;  %v2677_v6 = vrot.slane %v2669_v25, %v14315_v11  ;;  %v2670_v25 = vcombine.high %v2604_v43, %v2620_v37  ;;  %v23210_v43 = vld [vmem:[#allocation63_spill] sm:$0xff] }
 0x45d   : > { %11025 = vrot.lane.b32.xlu0 %v2416_v44, %s22625_s27  ;;  %v2398_v44 = vcombine.high %v2332_v34, %v2348_v59  ;;  %v15525_v40 = vpop.permute.xlu1 %2082  ;;  %v2380_v59 = vrot.slane %v2366_v29, %v14315_v11  ;;  %v23214_v29 = vld [vmem:[#allocation48_spill] sm:$0xff] }
 0x45e   : > { %v2689_v14 = vcombine.low %v2645_v62, %v2677_v6  ;;  %23205 = vst [vmem:[#allocation526_spill] sm:$0xff] %v15525_v40  ;;  %v2690_v17 = vcombine.high %v2645_v62, %v2677_v6  ;;  %v2684_v37 = vrot.slane %v2670_v25, %v14315_v11  ;;  %v23212_v62 = vld [vmem:[#allocation108_spill] sm:$0xff] }
 0x45f   : > { %v15506_v52 = vpop.permute.xlu0 %2089  ;;  %v2412_v61 = vrot.slane %v2398_v44, %v14315_v11  ;;  %v23213_v44 = vld [vmem:[#allocation78_spill] sm:$0xff] }
 0x460   : > { %v2861_v49 = vcombine.low %v23213_v44, %v23212_v62  ;;  %v2691_v35 = vcombine.low %v2652_v19, %v2684_v37 }
 0x461   : > { %11029 = vrot.lane.b32.xlu0 %v2688_v4, %s22625_s27  ;;  %v15533_v34 = vpop.permute.xlu1 %2093  ;;  %v2419_v12 = vcombine.low %v2380_v59, %v2412_v61 }
 0x462   : > { %v2869_v26 = vrot.slane %v2861_v49, %v14280_v31 }
 0x463   : > { %v15513_v13 = vpop.permute.xlu0 %2097 }
 0x464   : > { %23201 = vst [vmem:[#allocation341_spill] sm:$0xff] %v15513_v13  ;;  %v3101_v13 = vcombine.low %v23225_v8, %v23224_v38 }
 0x465   : > { %11041 = vrot.lane.b32.xlu0 %v2417_v32, %s22627_s28  ;;  %v15553_v56 = vpop.permute.xlu1 %2101 }
 0x466   : > { %23219 = vst [vmem:[#allocation63_spill] sm:$0xff] %v15553_v56 }
 0x467   : > { %v15520_v60 = vpop.permute.xlu0 %2105 }
 0x468   : > { %23203 = vst [vmem:[#allocation524_spill] sm:$0xff] %v15520_v60 }
 0x469   : > { %11045 = vrot.lane.b32.xlu0 %v2689_v14, %s22627_s28  ;;  %v2877_v14 = vcombine.low %v23208_v10, %v23207_v20 }
 0x46b   : > { %v15523_v4 = vpop.permute.xlu0 %2113 }
 0x46c   : > { %23204 = vst [vmem:[#allocation525_spill] sm:$0xff] %v15523_v4  ;;  %v2885_v4 = vrot.slane %v2877_v14, %v14280_v31 }
 0x46d   : > { %11057 = vrot.lane.b32.xlu0 %v2418_v5, %s22629_s29  ;;  %v23211_v5 = vld [vmem:[#allocation33_spill] sm:$0xff] }
 0x46e   : > { %v2845_v6 = vcombine.low %v23211_v5, %v23210_v43  ;;  %v2925_v24 = vcombine.low %v2869_v26, %v2885_v4 }
 0x46f   : > { %v15528_v32 = vpop.permute.xlu0 %2121 }
 0x470   : > { %23206 = vst [vmem:[#allocation527_spill] sm:$0xff] %v15528_v32  ;;  %v2853_v45 = vrot.slane %v2845_v6, %v14280_v31  ;;  %v2420_v6 = vcombine.high %v2380_v59, %v2412_v61 }
 0x471   : > { %11061 = vrot.lane.b32.xlu0 %v2690_v17, %s22629_s29  ;;  %v23215_v17 = vld [vmem:[#allocation20_spill] sm:$0xff] }
 0x472   : > { %v2829_v40 = vcombine.low %v23215_v17, %v23214_v29 }
 0x473   : > { %v15537_v30 = vpop.permute.xlu0 %2129 }
 0x474   : > { %23209 = vst [vmem:[#allocation123_spill] sm:$0xff] %v15537_v30  ;;  %v23216_v30 = vld [vmem:[#allocation418_spill] sm:$0xff]  ;;  %v2837_v14 = vrot.slane %v2829_v40, %v14280_v31  ;;  %v3109_v40 = vrot.slane %v3101_v13, %v14280_v31 }
 0x475   : > { %11073 = vrot.lane.b32.xlu0 %v2419_v12, %s22637_s2  ;;  %v3149_v1 = vcombine.low %v23217_v39, %v23216_v30  ;;  %v23220_v12 = vld [vmem:[#allocation356_spill] sm:$0xff] }
 0x476   : > { %v3117_v48 = vcombine.low %v23221_v21, %v23220_v12  ;;  %v2893_v49 = vcombine.low %v2837_v14, %v2853_v45 }
 0x477   : > { %v15551_v25 = vpop.permute.xlu0 %2137  ;;  %v3157_v56 = vrot.slane %v3149_v1, %v14280_v31  ;;  %v2933_v1 = vrot.slane %v2925_v24, %v14315_v11 }
 0x478   : > { %23218 = vst [vmem:[#allocation93_spill] sm:$0xff] %v15551_v25  ;;  %v3125_v3 = vrot.slane %v3117_v48, %v14280_v31  ;;  %v2692_v25 = vcombine.high %v2652_v19, %v2684_v37  ;;  %v2901_v61 = vrot.slane %v2893_v49, %v14315_v11 }
 0x479   : > { %11077 = vrot.lane.b32.xlu0 %v2691_v35, %s22637_s2  ;;  %v15571_v35 = vpop.permute.xlu1 %2109  ;;  %v3197_v53 = vcombine.low %v3141_v23, %v3157_v56 }
 0x47a   : > { %23227 = vst [vmem:[#allocation108_spill] sm:$0xff] %v15571_v35  ;;  %v2957_v54 = vcombine.low %v2901_v61, %v2933_v1  ;;  %v2958_v35 = vcombine.high %v2901_v61, %v2933_v1  ;;  %v3166_v51 = vcombine.high %v3109_v40, %v3125_v3  ;;  %v3150_v1 = vcombine.high %v23217_v39, %v23216_v30 }
 0x47b   : > { %v15566_v0 = vpop.permute.xlu0 %2145  ;;  %v3205_v48 = vrot.slane %v3197_v53, %v14315_v11  ;;  %v3198_v53 = vcombine.high %v3141_v23, %v3157_v56  ;;  %v2846_v23 = vcombine.high %v23211_v5, %v23210_v43  ;;  %v3102_v30 = vcombine.high %v23225_v8, %v23224_v38 }
 0x47c   : > { %23226 = vst [vmem:[#allocation33_spill] sm:$0xff] %v15566_v0  ;;  %v3165_v0 = vcombine.low %v3109_v40, %v3125_v3  ;;  %v3180_v3 = vrot.slane %v3166_v51, %v14315_v11  ;;  %v2830_v40 = vcombine.high %v23215_v17, %v23214_v29  ;;  %v3118_v51 = vcombine.high %v23221_v21, %v23220_v12 }
 0x47d   : > { %11089 = vrot.lane.b32.xlu0 %v2420_v6, %s22548_s3  ;;  %v15582_v6 = vpop.permute.xlu1 %2117  ;;  %v3212_v56 = vrot.slane %v3198_v53, %v14315_v11  ;;  %v3134_v29 = vcombine.high %v23223_v42, %v23222_v16  ;;  %v15639_v61 = vrot.slane %v3150_v1, %v14280_v31  ;;  %v2709_v38 = vcombine.low %v15305_v27, %v15400_v47 }
 0x47e   : > { %23229 = vst [vmem:[#allocation48_spill] sm:$0xff] %v15582_v6  ;;  %v3173_v13 = vrot.slane %v3165_v0, %v14315_v11  ;;  %v15633_v17 = vrot.slane %v2830_v40, %v14280_v31  ;;  %v15648_v42 = vrot.slane %v3118_v51, %v14280_v31 }
 0x47f   : > { %v15574_v36 = vpop.permute.xlu0 %2156  ;;  %v3231_v5 = vcombine.low %v3180_v3, %v3212_v56  ;;  %v3148_v12 = vrot.slane %v3134_v29, %v14280_v31  ;;  %v3232_v53 = vcombine.high %v3180_v3, %v3212_v56 }
 0x480   : > { %v3229_v24 = vcombine.low %v3173_v13, %v3205_v48  ;;  %v2725_v8 = vcombine.low %v15432_v33, %v15574_v36 }
 0x481   : > { %11093 = vrot.lane.b32.xlu0 %v2692_v25, %s22548_s3  ;;  %v15589_v19 = vpop.permute.xlu1 %2125  ;;  %v2926_v25 = vcombine.high %v2869_v26, %v2885_v4  ;;  %v2878_v4 = vcombine.high %v23208_v10, %v23207_v20 }
 0x482   : > { %23231 = vst [vmem:[#allocation418_spill] sm:$0xff] %v15589_v19  ;;  %v2733_v56 = vrot.slane %v2725_v8, %v14280_v31 }
 0x483   : > { %v15579_v59 = vpop.permute.xlu0 %2164  ;;  %v2940_v0 = vrot.slane %v2926_v25, %v14315_v11  ;;  %v15617_v10 = vrot.slane %v2878_v4, %v14280_v31 }
 0x484   : > { %23228 = vst [vmem:[#allocation78_spill] sm:$0xff] %v15579_v59  ;;  %v2894_v59 = vcombine.high %v2837_v14, %v2853_v45 }
 0x485   : > { %11105 = vrot.lane.b32.xlu0 %v2957_v54, %s22550_s4  ;;  %v3230_v54 = vcombine.high %v3173_v13, %v3205_v48  ;;  %v15597_v22 = vpop.permute.xlu1 %2133  ;;  %v15657_v13 = vrot.slane %v3102_v30, %v14280_v31 }
 0x486   : > { %23234 = vst [vmem:[#allocation321_spill] sm:$0xff] %v15597_v22  ;;  %v2908_v26 = vrot.slane %v2894_v59, %v14315_v11  ;;  %v23262_v22 = vld [vmem:[#allocation65_spill] sm:$0xff] }
 0x487   : > { %v15586_v37 = vpop.permute.xlu0 %2172 }
 0x488   : > { %23230 = vst [vmem:[#allocation20_spill] sm:$0xff] %v15586_v37  ;;  %v2959_v14 = vcombine.low %v2908_v26, %v2940_v0  ;;  %v2960_v48 = vcombine.high %v2908_v26, %v2940_v0  ;;  %v23240_v0 = vld [vmem:[#allocation434_spill] sm:$0xff] }
 0x489   : > { %11109 = vrot.lane.b32.xlu0 %v3229_v24, %s22550_s4  ;;  %v15614_v20 = vpop.permute.xlu1 %2141  ;;  %v3213_v24 = vcombine.low %v3148_v12, %v15639_v61  ;;  %v2693_v26 = vcombine.low %v23240_v0, %v15366_v9 }
 0x48a   : > { %23236 = vst [vmem:[#allocation371_spill] sm:$0xff] %v15614_v20 }
 0x48b   : > { %v15591_v49 = vpop.permute.xlu0 %2180  ;;  %v3221_v51 = vrot.slane %v3213_v24, %v14315_v11  ;;  %v2701_v29 = vrot.slane %v2693_v26, %v14280_v31 }
 0x48c   : > { %23232 = vst [vmem:[#allocation387_spill] sm:$0xff] %v15591_v49  ;;  %v23264_v49 = vld [vmem:[#allocation110_spill] sm:$0xff] }
 0x48d   : > { %11121 = vrot.lane.b32.xlu0 %v2958_v35, %s22552_s5  ;;  %v2862_v35 = vcombine.high %v23213_v44, %v23212_v62  ;;  %v15624_v62 = vrot.slane %v2846_v23, %v14280_v31  ;;  %v15643_v21 = vpop.permute.xlu1 %2149 }
 0x48e   : > { %23239 = vst [vmem:[#allocation528_spill] sm:$0xff] %v15643_v21 }
 0x48f   : > { %v15594_v6 = vpop.permute.xlu0 %2188  ;;  %v2876_v44 = vrot.slane %v2862_v35, %v14280_v31  ;;  %v2909_v16 = vcombine.low %v15633_v17, %v15624_v62  ;;  %v2717_v35 = vrot.slane %v2709_v38, %v14280_v31 }
 0x490   : > { %23233 = vst [vmem:[#allocation356_spill] sm:$0xff] %v15594_v6 }
 0x491   : > { %11125 = vrot.lane.b32.xlu0 %v3230_v54, %s22552_s5  ;;  %v2941_v39 = vcombine.low %v2876_v44, %v15617_v10  ;;  %v2917_v23 = vrot.slane %v2909_v16, %v14315_v11  ;;  %v15672_v40 = vpop.permute.xlu1 %2160  ;;  %v2942_v26 = vcombine.high %v2876_v44, %v15617_v10  ;;  %v3214_v10 = vcombine.high %v3148_v12, %v15639_v61  ;;  %v23253_v61 = vld [vmem:[#allocation95_spill] sm:$0xff] }
 0x492   : > { %23241 = vst [vmem:[#allocation434_spill] sm:$0xff] %v15672_v40 }
 0x493   : > { %v15603_v45 = vpop.permute.xlu0 %2196  ;;  %v2949_v54 = vrot.slane %v2941_v39, %v14315_v11 }
 0x494   : > { %23235 = vst [vmem:[#allocation402_spill] sm:$0xff] %v15603_v45  ;;  %v23263_v45 = vld [vmem:[#allocation35_spill] sm:$0xff] }
 0x495   : > { %11137 = vrot.lane.b32.xlu0 %v2959_v14, %s22562_s11  ;;  %v3181_v14 = vcombine.low %v15657_v13, %v15648_v42  ;;  %v15684_v8 = vpop.permute.xlu1 %2168  ;;  %v3389_v19 = vcombine.low %v23263_v45, %v23262_v22 }
 0x496   : > { %23244 = vst [vmem:[#allocation531_spill] sm:$0xff] %v15684_v8  ;;  %v23269_v8 = vld [vmem:[#allocation50_spill] sm:$0xff] }
 0x497   : > { %v15621_v43 = vpop.permute.xlu0 %2204  ;;  %v3189_v30 = vrot.slane %v3181_v14, %v14315_v11 }
 0x498   : > { %23237 = vst [vmem:[#allocation340_spill] sm:$0xff] %v15621_v43 }
 0x499   : > { %11141 = vrot.lane.b32.xlu0 %v3231_v5, %s22562_s11  ;;  %v2961_v5 = vcombine.low %v2917_v23, %v2949_v54  ;;  %v3233_v38 = vcombine.low %v3189_v30, %v3221_v51 }
 0x49b   : > { %v15641_v59 = vpop.permute.xlu0 %2212 }
 0x49c   : > { %23238 = vst [vmem:[#allocation287_spill] sm:$0xff] %v15641_v59  ;;  %v2910_v59 = vcombine.high %v15633_v17, %v15624_v62  ;;  %v3182_v17 = vcombine.high %v15657_v13, %v15648_v42 }
 0x49d   : > { %11153 = vrot.lane.b32.xlu0 %v2960_v48, %s22570_s13  ;;  %v2757_v48 = vcombine.low %v2701_v29, %v2717_v35 }
 0x49f   : > { %v15660_v25 = vpop.permute.xlu0 %2223  ;;  %v15691_v24 = vrot.slane %v2757_v48, %v14315_v11 }
 0x4a0   : > { %v2741_v4 = vcombine.low %v15506_v52, %v15660_v25 }
 0x4a1   : > { %11157 = vrot.lane.b32.xlu0 %v3232_v53, %s22570_s13  ;;  %23246 = vst [vmem:[#allocation533_spill] sm:$0xff] %v15691_v24 }
 0x4a2   : > { %v2749_v3 = vrot.slane %v2741_v4, %v14280_v31 }
 0x4a3   : > { %v15676_v1 = vpop.permute.xlu0 %2231 }
 0x4a4   : > { %23242 = vst [vmem:[#allocation529_spill] sm:$0xff] %v15676_v1  ;;  %v2789_v39 = vcombine.low %v2733_v56, %v2749_v3  ;;  %v2790_v14 = vcombine.high %v2733_v56, %v2749_v3  ;;  %v23250_v56 = vld [vmem:[#allocation271_spill] sm:$0xff]  ;;  %v23270_v1 = vld [vmem:[#allocation18_spill] sm:$0xff] }
 0x4a5   : > { %11169 = vrot.lane.b32.xlu0 %v2961_v5, %s22573_s14  ;;  %v2962_v5 = vcombine.high %v2917_v23, %v2949_v54  ;;  %v3234_v54 = vcombine.high %v3189_v30, %v3221_v51  ;;  %v2956_v23 = vrot.slane %v2942_v26, %v14315_v11  ;;  %v23251_v3 = vld [vmem:[#allocation239_spill] sm:$0xff]  ;;  %v23255_v51 = vld [vmem:[#allocation172_spill] sm:$0xff]  ;;  %v3373_v43 = vcombine.low %v23270_v1, %v23269_v8 }
 0x4a6   : > { %v15687_v53 = vrot.slane %v2789_v39, %v14315_v11  ;;  %v2758_v39 = vcombine.high %v2701_v29, %v2717_v35  ;;  %v2470_v48 = vcombine.high %v23251_v3, %v23250_v56  ;;  %v15711_v62 = vrot.slane %v2790_v14, %v14315_v11  ;;  %v23252_v35 = vld [vmem:[#allocation125_spill] sm:$0xff]  ;;  %v23254_v29 = vld [vmem:[#allocation207_spill] sm:$0xff]  ;;  %v23258_v56 = vld [vmem:[#allocation288_spill] sm:$0xff] }
 0x4a7   : > { %v15682_v16 = vpop.permute.xlu0 %2239  ;;  %v3421_v12 = vcombine.low %v23253_v61, %v23252_v35  ;;  %v2438_v30 = vcombine.high %v23255_v51, %v23254_v29  ;;  %v23256_v26 = vld [vmem:[#allocation255_spill] sm:$0xff]  ;;  %v23259_v14 = vld [vmem:[#allocation286_spill] sm:$0xff]  ;;  %v23265_v29 = vld [vmem:[#allocation80_spill] sm:$0xff] }
 0x4a8   : > { %23243 = vst [vmem:[#allocation530_spill] sm:$0xff] %v15682_v16  ;;  %23245 = vst [vmem:[#allocation532_spill] sm:$0xff] %v15687_v53  ;;  %v2822_v21 = vcombine.high %v15691_v24, %v15687_v53  ;;  %v23260_v3 = vcombine.low %v23258_v56, %v23259_v14  ;;  %v2772_v42 = vrot.slane %v2758_v39, %v14315_v11  ;;  %v23268_v39 = vld [vmem:[#allocation139_spill] sm:$0xff] }
 0x4a9   : > { %11173 = vrot.lane.b32.xlu0 %v3233_v38, %s22573_s14  ;;  %v15701_v38 = vpop.permute.xlu1 %2176  ;;  %v3405_v51 = vcombine.low %v23265_v29, %v23264_v49  ;;  %v23307_v24 = vld [vmem:[#allocation499_spill] sm:$0xff] }
 0x4aa   : > { %23248 = vst [vmem:[#allocation535_spill] sm:$0xff] %v15701_v38  ;;  %10999 = vrot.lane.b32.xlu1 %v2822_v21, %s22617_s17  ;;  %v2924_v21 = vrot.slane %v2910_v59, %v14315_v11  ;;  %v3228_v59 = vrot.slane %v3214_v10, %v14315_v11  ;;  %v3196_v10 = vrot.slane %v3182_v17, %v14315_v11 }
 0x4ab   : > { %v15694_v4 = vpop.permute.xlu0 %2247  ;;  %v2710_v17 = vcombine.high %v15305_v27, %v15400_v47  ;;  %v23276_v27 = vld [vmem:[#allocation405_spill] sm:$0xff] }
 0x4ac   : > { %23247 = vst [vmem:[#allocation534_spill] sm:$0xff] %v15694_v4  ;;  %v23267_v4 = vld [vmem:[#allocation191_spill] sm:$0xff] }
 0x4ad   : > { %11185 = vrot.lane.b32.xlu0 %v2962_v5, %s22575_s16  ;;  %v23257_v5 = vld [vmem:[#allocation223_spill] sm:$0xff]  ;;  %v2422_v38 = vcombine.high %v23268_v39, %v23267_v4 }
 0x4ae   : > { %v2454_v20 = vcombine.high %v23257_v5, %v23256_v26  ;;  %11011 = vrot.lane.b32.xlu1 %v23260_v3, %s22623_s25  ;;  %v15736_v26 = vrot.slane %v2470_v48, %v14280_v31  ;;  %v15738_v5 = vpop.permute.xlu1 %2184  ;;  %v2823_v3 = vcombine.low %v2772_v42, %v15711_v62  ;;  %v15750_v48 = vrot.slane %v3421_v12, %v14280_v31 }
 0x4af   : > { %v15705_v44 = vpop.permute.xlu0 %2255  ;;  %23266 = vst [vmem:[#allocation239_spill] sm:$0xff] %v15738_v5  ;;  %v15753_v5 = vrot.slane %v2438_v30, %v14280_v31  ;;  %v3235_v12 = vcombine.low %v3196_v10, %v3228_v59  ;;  %v15768_v30 = vrot.slane %v3389_v19, %v14280_v31  ;;  %v15778_v47 = vrot.slane %v2422_v38, %v14280_v31  ;;  %v23279_v38 = vld [vmem:[#allocation294_spill] sm:$0xff] }
 0x4b0   : > { %23249 = vst [vmem:[#allocation536_spill] sm:$0xff] %v15705_v44  ;;  %v15756_v40 = vrot.slane %v2454_v20, %v14280_v31  ;;  %v15771_v20 = vrot.slane %v3405_v51, %v14280_v31  ;;  %v15789_v51 = vrot.slane %v3373_v43, %v14280_v31 }
 0x4b1   : > { %11189 = vrot.lane.b32.xlu0 %v3234_v54, %s22575_s16  ;;  %v2963_v54 = vcombine.low %v2924_v21, %v2956_v23 }
 0x4b2   : > { %11015 = vrot.lane.b32.xlu1 %v2823_v3, %s22623_s25  ;;  %v2533_v3 = vcombine.low %v15756_v40, %v15736_v26  ;;  %v15795_v58 = vpop.permute.xlu1 %2192 }
 0x4b3   : > { %v15728_v13 = vpop.permute.xlu0 %2263  ;;  %23280 = vst [vmem:[#allocation95_spill] sm:$0xff] %v15795_v58  ;;  %v3437_v58 = vcombine.low %v15789_v51, %v15768_v30 }
 0x4b4   : > { %23261 = vst [vmem:[#allocation271_spill] sm:$0xff] %v15728_v13  ;;  %v2742_v13 = vcombine.high %v15506_v52, %v15660_v25  ;;  %v23271_v52 = vld [vmem:[#allocation420_spill] sm:$0xff]  ;;  %v23272_v25 = vld [vmem:[#allocation389_spill] sm:$0xff] }
 0x4b5   : > { %11201 = vrot.lane.b32.xlu0 %v2963_v54, %s22580_s20  ;;  %v3693_v4 = vcombine.low %v23272_v25, %v23271_v52  ;;  %v2726_v54 = vcombine.high %v15432_v33, %v15574_v36  ;;  %v3661_v25 = vcombine.low %v23275_v7, %v23274_v46  ;;  %v23277_v33 = vld [vmem:[#allocation374_spill] sm:$0xff]  ;;  %v3469_v7 = vcombine.low %v15771_v20, %v15750_v48  ;;  %v23278_v46 = vld [vmem:[#allocation343_spill] sm:$0xff] }
 0x4b6   : > { %v3677_v36 = vcombine.low %v23277_v33, %v23276_v27  ;;  %v15785_v19 = vrot.slane %v2742_v13, %v14280_v31  ;;  %v3645_v52 = vcombine.low %v23279_v38, %v23278_v46  ;;  %v2501_v13 = vcombine.low %v15778_v47, %v15753_v5 }
 0x4b7   : > { %v15765_v39 = vpop.permute.xlu0 %2271  ;;  %v15804_v43 = vrot.slane %v3693_v4, %v14280_v31  ;;  %v15810_v33 = vrot.slane %v2726_v54, %v14280_v31 }
 0x4b8   : > { %23273 = vst [vmem:[#allocation125_spill] sm:$0xff] %v15765_v39  ;;  %v2694_v39 = vcombine.high %v23240_v0, %v15366_v9  ;;  %v23281_v9 = vcombine.high %v23258_v56, %v23259_v14  ;;  %v2964_v0 = vcombine.high %v2924_v21, %v2956_v23  ;;  %v15817_v56 = vrot.slane %v3661_v25, %v14280_v31 }
 0x4b9   : > { %11205 = vrot.lane.b32.xlu0 %v3235_v12, %s22580_s20  ;;  %v15807_v12 = vrot.slane %v2710_v17, %v14280_v31  ;;  %v2541_v23 = vrot.slane %v2533_v3, %v14315_v11  ;;  %v15821_v21 = vrot.slane %v3677_v36, %v14280_v31  ;;  %v2805_v4 = vcombine.low %v15810_v33, %v15785_v19 }
 0x4ba   : > { %11027 = vrot.lane.b32.xlu1 %v23281_v9, %s22625_s27  ;;  %v15824_v14 = vrot.slane %v2694_v39, %v14280_v31  ;;  %v2824_v17 = vcombine.high %v2772_v42, %v15711_v62  ;;  %v15831_v54 = vrot.slane %v3645_v52, %v14280_v31  ;;  %v3477_v25 = vrot.slane %v3469_v7, %v14315_v11  ;;  %v15844_v52 = vpop.permute.xlu1 %2200 }
 0x4bb   : > { %v15812_v38 = vpop.permute.xlu0 %2279  ;;  %v3741_v3 = vcombine.low %v15821_v21, %v15804_v43  ;;  %v2509_v36 = vrot.slane %v2501_v13, %v14315_v11  ;;  %v3236_v62 = vcombine.high %v3196_v10, %v3228_v59  ;;  %23284 = vst [vmem:[#allocation255_spill] sm:$0xff] %v15844_v52  ;;  %v2813_v7 = vrot.slane %v2805_v4, %v14315_v11 }
 0x4bc   : > { %23282 = vst [vmem:[#allocation207_spill] sm:$0xff] %v15812_v38  ;;  %v2773_v39 = vcombine.low %v15824_v14, %v15807_v12  ;;  %v3709_v42 = vcombine.low %v15831_v54, %v15817_v56  ;;  %v3445_v38 = vrot.slane %v3437_v58, %v14315_v11  ;;  %v4901_v58 = vcombine.low %v15438_v18, %v15586_v37 }
 0x4bd   : > { %11217 = vrot.lane.b32.xlu0 %v2964_v0, %s22582_s21  ;;  %v2553_v0 = vcombine.low %v2509_v36, %v2541_v23  ;;  %v3374_v37 = vcombine.high %v23270_v1, %v23269_v8  ;;  %v2554_v53 = vcombine.high %v2509_v36, %v2541_v23  ;;  %v2502_v1 = vcombine.high %v15778_v47, %v15753_v5  ;;  %v23294_v36 = vld [vmem:[#allocation138_spill] sm:$0xff] }
 0x4be   : > { %11031 = vrot.lane.b32.xlu1 %v2824_v17, %s22625_s27  ;;  %v4917_v17 = vcombine.low %v15520_v60, %v15682_v16  ;;  %v2781_v13 = vrot.slane %v2773_v39, %v14315_v11  ;;  %v3501_v10 = vcombine.low %v3445_v38, %v3477_v25  ;;  %v3717_v52 = vrot.slane %v3709_v42, %v14315_v11  ;;  %v23315_v16 = vld [vmem:[#allocation374_spill] sm:$0xff] }
 0x4bf   : > { %v15840_v9 = vpop.permute.xlu0 %10993  ;;  %v15900_v23 = vrot.slane %v3374_v37, %v14280_v31 }
 0x4c0   : > { %23283 = vst [vmem:[#allocation172_spill] sm:$0xff] %v15840_v9  ;;  %v3749_v9 = vrot.slane %v3741_v3, %v14315_v11  ;;  %v2825_v4 = vcombine.low %v2781_v13, %v2813_v7  ;;  %v4869_v3 = vcombine.low %v15203_v2, %v15374_v15  ;;  %v15869_v42 = vrot.slane %v4917_v17, %v14280_v31  ;;  %v23308_v2 = vld [vmem:[#allocation463_spill] sm:$0xff]  ;;  %v23309_v15 = vld [vmem:[#allocation434_spill] sm:$0xff] }
 0x4c1   : > { %11221 = vrot.lane.b32.xlu0 %v3236_v62, %s22582_s21  ;;  %v4885_v62 = vcombine.low %v15330_v28, %v15408_v50  ;;  %v3390_v17 = vcombine.high %v23263_v45, %v23262_v22  ;;  %v3438_v22 = vcombine.high %v15789_v51, %v15768_v30  ;;  %v3422_v45 = vcombine.high %v23253_v61, %v23252_v35 }
 0x4c2   : > { %11043 = vrot.lane.b32.xlu1 %v2553_v0, %s22627_s28  ;;  %v15864_v0 = vpop.permute.xlu1 %2208  ;;  %23286 = vst [vmem:[#allocation288_spill] sm:$0xff] %v15869_v42  ;;  %v3773_v18 = vcombine.low %v3717_v52, %v3749_v9  ;;  %v3406_v35 = vcombine.high %v23265_v29, %v23264_v49  ;;  %v15922_v61 = vrot.slane %v2502_v1, %v14315_v11  ;;  %v23293_v29 = vld [vmem:[#allocation190_spill] sm:$0xff] }
 0x4c3   : > { %v15853_v59 = vpop.permute.xlu0 %10997  ;;  %23285 = vst [vmem:[#allocation223_spill] sm:$0xff] %v15864_v0  ;;  %v15879_v39 = vrot.slane %v4885_v62, %v14280_v31  ;;  %v15882_v0 = vrot.slane %v4901_v58, %v14280_v31  ;;  %v15917_v30 = vrot.slane %v3390_v17, %v14280_v31  ;;  %v15938_v49 = vrot.slane %v3422_v45, %v14280_v31  ;;  %v23296_v62 = vld [vmem:[#allocation238_spill] sm:$0xff] }
 0x4c4   : > { %v15959_v58 = vrot.slane %v3406_v35, %v14280_v31  ;;  %v23301_v1 = vld [vmem:[#allocation222_spill] sm:$0xff] }
 0x4c5   : > { %11233 = vrot.lane.b32.xlu0 %v3501_v10, %s22584_s22  ;;  %v2534_v10 = vcombine.high %v15756_v40, %v15736_v26  ;;  %23287 = vst [vmem:[#allocation286_spill] sm:$0xff] %v15879_v39  ;;  %23288 = vst [vmem:[#allocation65_spill] sm:$0xff] %v15882_v0  ;;  %v15892_v40 = vrot.slane %v4869_v3, %v14280_v31  ;;  %v4965_v8 = vcombine.low %v15882_v0, %v15869_v42  ;;  %v23298_v3 = vld [vmem:[#allocation206_spill] sm:$0xff]  ;;  %v23327_v42 = vld [vmem:[#allocation481_spill] sm:$0xff] }
 0x4c6   : > { %11047 = vrot.lane.b32.xlu1 %v2825_v4, %s22627_s28  ;;  %v3470_v4 = vcombine.high %v15771_v20, %v15750_v48  ;;  %v15906_v5 = vpop.permute.xlu1 %2216  ;;  %v2826_v20 = vcombine.high %v2781_v13, %v2813_v7  ;;  %v2965_v7 = vcombine.low %v23294_v36, %v23293_v29  ;;  %v23295_v13 = vld [vmem:[#allocation270_spill] sm:$0xff] }
 0x4c7   : > { %v15872_v28 = vpop.permute.xlu0 %11009  ;;  %23289 = vst [vmem:[#allocation35_spill] sm:$0xff] %v15892_v40  ;;  %23291 = vst [vmem:[#allocation80_spill] sm:$0xff] %v15906_v5  ;;  %v4933_v48 = vcombine.low %v15892_v40, %v15879_v39  ;;  %v15914_v37 = vrot.slane %v2534_v10, %v14315_v11  ;;  %v23299_v10 = vld [vmem:[#allocation171_spill] sm:$0xff]  ;;  %v3678_v40 = vcombine.high %v23315_v16, %v23276_v27  ;;  %v23317_v39 = vld [vmem:[#allocation433_spill] sm:$0xff] }
 0x4c8   : > { %v15925_v47 = vrot.slane %v3470_v4, %v14315_v11  ;;  %v2981_v17 = vcombine.low %v23299_v10, %v23298_v3  ;;  %v23300_v4 = vld [vmem:[#allocation254_spill] sm:$0xff] }
 0x4c9   : > { %11237 = vrot.lane.b32.xlu0 %v3773_v18, %s22584_s22  ;;  %v3502_v18 = vcombine.high %v3445_v38, %v3477_v25  ;;  %v3774_v38 = vcombine.high %v3717_v52, %v3749_v9  ;;  %v15935_v25 = vrot.slane %v4965_v8, %v14315_v11  ;;  %v15956_v52 = vrot.slane %v4933_v48, %v14315_v11 }
 0x4ca   : > { %11059 = vrot.lane.b32.xlu1 %v2554_v53, %s22629_s29  ;;  %v2806_v53 = vcombine.high %v15810_v33, %v15785_v19  ;;  %v3742_v33 = vcombine.high %v15821_v21, %v15804_v43  ;;  %v2774_v19 = vcombine.high %v15824_v14, %v15807_v12  ;;  %v3013_v43 = vcombine.low %v23296_v62, %v23295_v13 }
 0x4cb   : > { %v15897_v26 = vpop.permute.xlu0 %11013  ;;  %23292 = vst [vmem:[#allocation191_spill] sm:$0xff] %v15935_v25  ;;  %v15945_v21 = vrot.slane %v3438_v22, %v14315_v11  ;;  %v3710_v12 = vcombine.high %v15831_v54, %v15817_v56  ;;  %v2555_v14 = vcombine.low %v15922_v61, %v15914_v37  ;;  %23297 = vst [vmem:[#allocation139_spill] sm:$0xff] %v15956_v52  ;;  %v15965_v54 = vpop.permute.xlu1 %2227 }
 0x4cc   : > { %23290 = vst [vmem:[#allocation110_spill] sm:$0xff] %v15897_v26  ;;  %v15953_v9 = vrot.slane %v2806_v53, %v14315_v11  ;;  %v2997_v56 = vcombine.low %v23301_v1, %v23300_v4  ;;  %v7093_v8 = vcombine.low %v15528_v32, %v15705_v44  ;;  %v15976_v48 = vrot.slane %v3742_v33, %v14315_v11  ;;  %v23306_v32 = vld [vmem:[#allocation389_spill] sm:$0xff]  ;;  %v23331_v26 = vld [vmem:[#allocation496_spill] sm:$0xff] }
 0x4cd   : > { %11249 = vrot.lane.b32.xlu0 %v3502_v18, %s22586_s24  ;;  %v2788_v18 = vrot.slane %v2774_v19, %v14315_v11  ;;  %v3503_v45 = vcombine.low %v15945_v21, %v15925_v47  ;;  %v15983_v35 = vrot.slane %v3013_v43, %v14280_v31  ;;  %v7061_v19 = vcombine.low %v15350_v55, %v15418_v63  ;;  %v23305_v63 = vld [vmem:[#allocation420_spill] sm:$0xff] }
 0x4ce   : > { %11063 = vrot.lane.b32.xlu1 %v2826_v20, %s22629_s29  ;;  %v3485_v20 = vcombine.low %v15959_v58, %v15938_v49  ;;  %v3285_v33 = vcombine.low %v15533_v34, %v15965_v54  ;;  %v3724_v43 = vrot.slane %v3710_v12, %v14315_v11  ;;  %v15998_v5 = vrot.slane %v2981_v17, %v14280_v31  ;;  %v23310_v12 = vld [vmem:[#allocation514_spill] sm:$0xff] }
 0x4cf   : > { %v15932_v51 = vpop.permute.xlu0 %11025  ;;  %v2827_v53 = vcombine.low %v2788_v18, %v15953_v9  ;;  %v16001_v55 = vrot.slane %v2997_v56, %v14280_v31  ;;  %v3694_v44 = vcombine.high %v23306_v32, %v23305_v63  ;;  %v3269_v50 = vcombine.low %v23310_v12, %v23309_v15 }
 0x4d0   : > { %v3775_v56 = vcombine.low %v3724_v43, %v15976_v48  ;;  %v16023_v63 = vrot.slane %v7061_v19, %v14280_v31  ;;  %v16033_v25 = vrot.slane %v3285_v33, %v14280_v31  ;;  %v2556_v0 = vcombine.high %v15922_v61, %v15914_v37 }
 0x4d1   : > { %11253 = vrot.lane.b32.xlu0 %v3774_v38, %s22586_s24  ;;  %v7077_v38 = vcombine.low %v15458_v41, %v15594_v6  ;;  %v23303_v41 = vld [vmem:[#allocation448_spill] sm:$0xff]  ;;  %v16006_v6 = vrot.slane %v7093_v8, %v14280_v31  ;;  %v23311_v8 = vld [vmem:[#allocation358_spill] sm:$0xff]  ;;  %v3504_v27 = vcombine.high %v15945_v21, %v15925_v47  ;;  %v16056_v61 = vrot.slane %v3269_v50, %v14280_v31 }
 0x4d2   : > { %11075 = vrot.lane.b32.xlu1 %v2555_v14, %s22637_s2  ;;  %v15990_v14 = vrot.slane %v2965_v7, %v14280_v31  ;;  %v7045_v7 = vcombine.low %v23303_v41, %v15384_v57  ;;  %v3061_v41 = vcombine.low %v16001_v55, %v15983_v35  ;;  %v23312_v57 = vld [vmem:[#allocation325_spill] sm:$0xff]  ;;  %23313 = vst [vmem:[#allocation405_spill] sm:$0xff] %v16023_v63 }
 0x4d3   : > { %v15971_v22 = vpop.permute.xlu0 %11029  ;;  %23304 = vst [vmem:[#allocation18_spill] sm:$0xff] %v16006_v6  ;;  %v3662_v60 = vcombine.high %v23312_v57, %v23311_v8  ;;  %v16026_v32 = vrot.slane %v7077_v38, %v14280_v31  ;;  %v23319_v38 = vld [vmem:[#allocation294_spill] sm:$0xff]  ;;  %v16050_v8 = vrot.slane %v3694_v44, %v14280_v31  ;;  %v16070_v21 = vrot.slane %v3678_v40, %v14280_v31 }
 0x4d4   : > { %23302 = vst [vmem:[#allocation50_spill] sm:$0xff] %v15971_v22  ;;  %v3029_v57 = vcombine.low %v15990_v14, %v15998_v5  ;;  %v16041_v19 = vrot.slane %v7045_v7, %v14280_v31  ;;  %v3646_v33 = vcombine.high %v23319_v38, %v23278_v46  ;;  %v3069_v44 = vrot.slane %v3061_v41, %v14315_v11 }
 0x4d5   : > { %11265 = vrot.lane.b32.xlu0 %v3503_v45, %s22588_s26  ;;  %v3253_v45 = vcombine.low %v23308_v2, %v23307_v24  ;;  %23314 = vst [vmem:[#allocation343_spill] sm:$0xff] %v16026_v32  ;;  %v7141_v16 = vcombine.low %v16026_v32, %v16006_v6  ;;  %v16064_v47 = vrot.slane %v3662_v60, %v14280_v31  ;;  %v23326_v6 = vld [vmem:[#allocation511_spill] sm:$0xff] }
 0x4d6   : > { %11079 = vrot.lane.b32.xlu1 %v2827_v53, %s22637_s2  ;;  %v23316_v53 = vld [vmem:[#allocation484_spill] sm:$0xff]  ;;  %23318 = vst [vmem:[#allocation190_spill] sm:$0xff] %v16041_v19  ;;  %v7109_v46 = vcombine.low %v16041_v19, %v16023_v63  ;;  %v3037_v60 = vrot.slane %v3029_v57, %v14315_v11  ;;  %v3493_v38 = vrot.slane %v3485_v20, %v14315_v11  ;;  %v23323_v57 = vld [vmem:[#allocation125_spill] sm:$0xff] }
 0x4d7   : > { %v16015_v17 = vpop.permute.xlu0 %11041  ;;  %v3237_v52 = vcombine.low %v23317_v39, %v23316_v53  ;;  %v16053_v37 = vrot.slane %v3253_v45, %v14280_v31  ;;  %v2828_v45 = vcombine.high %v2788_v18, %v15953_v9  ;;  %v16082_v41 = vrot.slane %v7141_v16, %v14315_v11  ;;  %v23324_v20 = vld [vmem:[#allocation93_spill] sm:$0xff] }
 0x4d8   : > { %v16085_v40 = vrot.slane %v3646_v33, %v14280_v31  ;;  %v3776_v18 = vcombine.high %v3724_v43, %v15976_v48  ;;  %v16098_v16 = vrot.slane %v7109_v46, %v14315_v11  ;;  %v3093_v63 = vcombine.low %v3037_v60, %v3069_v44  ;;  %v23328_v48 = vld [vmem:[#allocation340_spill] sm:$0xff]  ;;  %v23329_v43 = vld [vmem:[#allocation523_spill] sm:$0xff] }
 0x4d9   : > { %11269 = vrot.lane.b32.xlu0 %v3775_v56, %s22588_s26  ;;  %v3453_v56 = vcombine.low %v15900_v23, %v15917_v30  ;;  %v16073_v50 = vrot.slane %v3237_v52, %v14280_v31  ;;  %23321 = vst [vmem:[#allocation270_spill] sm:$0xff] %v16082_v41  ;;  %v3757_v52 = vcombine.low %v16070_v21, %v16050_v8 }
 0x4da   : > { %11091 = vrot.lane.b32.xlu1 %v2556_v0, %s22548_s3  ;;  %v3333_v0 = vcombine.low %v16056_v61, %v16033_v25  ;;  %23325 = vst [vmem:[#allocation206_spill] sm:$0xff] %v16098_v16  ;;  %v3725_v33 = vcombine.low %v16085_v40, %v16064_v47  ;;  %v9253_v22 = vcombine.low %v23329_v43, %v23328_v48 }
 0x4db   : > { %v16059_v7 = vpop.permute.xlu0 %11045  ;;  %v3301_v19 = vcombine.low %v16073_v50, %v16053_v37 }
 0x4dc   : > { %23320 = vst [vmem:[#allocation138_spill] sm:$0xff] %v16059_v7  ;;  %v3341_v32 = vrot.slane %v3333_v0, %v14315_v11  ;;  %v9237_v7 = vcombine.low %v23327_v42, %v23326_v6  ;;  %v3765_v0 = vrot.slane %v3757_v52, %v14315_v11  ;;  %v3733_v46 = vrot.slane %v3725_v33, %v14315_v11 }
 0x4dd   : > { %11281 = vrot.lane.b32.xlu0 %v3504_v27, %s22648_s30  ;;  %v9269_v27 = vcombine.low %v23324_v20, %v23323_v57  ;;  %v3309_v20 = vrot.slane %v3301_v19, %v14315_v11  ;;  %v16127_v19 = vrot.slane %v9253_v22, %v14280_v31  ;;  %v3062_v33 = vcombine.high %v16001_v55, %v15983_v35 }
 0x4de   : > { %11095 = vrot.lane.b32.xlu1 %v2828_v45, %s22548_s3  ;;  %v3461_v45 = vrot.slane %v3453_v56, %v14315_v11  ;;  %v23332_v56 = vld [vmem:[#allocation458_spill] sm:$0xff]  ;;  %s22646_s3 = smov 80   ;;  %v3486_v22 = vcombine.high %v15959_v58, %v15938_v49  ;;  %v3454_v55 = vcombine.high %v15900_v23, %v15917_v30  ;;  %v3334_v49 = vcombine.high %v16056_v61, %v16033_v25 }
 0x4df   : > { %v16092_v9 = vpop.permute.xlu0 %11057  ;;  %v16119_v42 = vrot.slane %v9269_v27, %v14280_v31  ;;  %v3365_v6 = vcombine.low %v3309_v20, %v3341_v32  ;;  %23335 = vst [vmem:[#allocation420_spill] sm:$0xff] %v16127_v19  ;;  %v3366_v58 = vcombine.high %v3309_v20, %v3341_v32  ;;  %v3302_v23 = vcombine.high %v16073_v50, %v16053_v37  ;;  %v23340_v50 = vld [vmem:[#allocation64_spill] sm:$0xff] }
 0x4e0   : > { %23322 = vst [vmem:[#allocation238_spill] sm:$0xff] %v16092_v9  ;;  %v9221_v9 = vcombine.low %v23332_v56, %v23331_v26  ;;  %v3777_v56 = vcombine.low %v3733_v46, %v3765_v0  ;;  %v3506_v43 = vcombine.high %v3461_v45, %v3493_v38  ;;  %v16161_v35 = vrot.slane %v3486_v22, %v14315_v11  ;;  %v23346_v22 = vld [vmem:[#allocation79_spill] sm:$0xff] }
 0x4e1   : > { %11285 = vrot.lane.b32.xlu0 %v3776_v18, %s22648_s30  ;;  %v3505_v18 = vcombine.low %v3461_v45, %v3493_v38  ;;  %23333 = vst [vmem:[#allocation254_spill] sm:$0xff] %v16119_v42  ;;  %v9317_v26 = vcombine.low %v16127_v19, %v16119_v42  ;;  %v3778_v32 = vcombine.high %v3733_v46, %v3765_v0  ;;  %v23341_v38 = vld [vmem:[#allocation34_spill] sm:$0xff]  ;;  %v23342_v45 = vld [vmem:[#allocation124_spill] sm:$0xff] }
 0x4e2   : > { %11107 = vrot.lane.b32.xlu1 %v3093_v63, %s22550_s4  ;;  %v16124_v63 = vrot.slane %v9237_v7, %v14280_v31  ;;  %v16133_v27 = vrot.slane %v9221_v9, %v14280_v31  ;;  %v3030_v7 = vcombine.high %v15990_v14, %v15998_v5  ;;  %v16158_v5 = vrot.slane %v3062_v33, %v14315_v11  ;;  %v23357_v42 = vld [vmem:[#allocation342_spill] sm:$0xff] }
 0x4e3   : > { %v16113_v57 = vpop.permute.xlu0 %11061  ;;  %v16150_v48 = vrot.slane %v9317_v26, %v14315_v11  ;;  %v3758_v26 = vcombine.high %v16070_v21, %v16050_v8  ;;  %v3014_v61 = vcombine.high %v23296_v62, %v23295_v13  ;;  %v16183_v37 = vrot.slane %v3334_v49, %v14315_v11  ;;  %v23343_v13 = vld [vmem:[#allocation94_spill] sm:$0xff] }
 0x4e4   : > { %23330 = vst [vmem:[#allocation171_spill] sm:$0xff] %v16113_v57  ;;  %23334 = vst [vmem:[#allocation222_spill] sm:$0xff] %v16124_v63  ;;  %v3044_v30 = vrot.slane %v3030_v7, %v14315_v11  ;;  %v3468_v21 = vrot.slane %v3454_v55, %v14315_v11  ;;  %v3933_v20 = vcombine.low %v23341_v38, %v23340_v50 }
 0x4e5   : > { %11297 = vrot.lane.b32.xlu0 %v3505_v18, %s22646_s3  ;;  %23336 = vst [vmem:[#allocation389_spill] sm:$0xff] %v16133_v27  ;;  %v3094_v18 = vcombine.high %v3037_v60, %v3069_v44  ;;  %23338 = vst [vmem:[#allocation463_spill] sm:$0xff] %v16150_v48  ;;  %v3726_v60 = vcombine.high %v16085_v40, %v16064_v47  ;;  %v3965_v62 = vcombine.low %v23343_v13, %v23342_v45  ;;  %v16194_v40 = vpop.permute.xlu1 %2235  ;;  %v23353_v44 = vld [vmem:[#allocation324_spill] sm:$0xff] }
 0x4e6   : > { %11111 = vrot.lane.b32.xlu1 %v3365_v6, %s22550_s4  ;;  %v9285_v6 = vcombine.low %v16133_v27, %v16124_v63  ;;  %s22644_s4 = smov 84   ;;  %v3095_v8 = vcombine.low %v3044_v30, %v16158_v5  ;;  %v2998_v47 = vcombine.high %v23301_v1, %v23300_v4  ;;  %v3316_v46 = vrot.slane %v3302_v23, %v14315_v11  ;;  %v23347_v4 = vld [vmem:[#allocation49_spill] sm:$0xff]  ;;  %v23348_v1 = vld [vmem:[#allocation19_spill] sm:$0xff] }
 0x4e7   : > { %v16130_v52 = vpop.permute.xlu0 %11073  ;;  %v3772_v33 = vrot.slane %v3758_v26, %v14315_v11  ;;  %v3917_v7 = vcombine.low %v23348_v1, %v23347_v4  ;;  %v3286_v55 = vcombine.high %v15533_v34, %v15965_v54  ;;  %v16217_v26 = vrot.slane %v3933_v20, %v14280_v31  ;;  %v23349_v34 = vld [vmem:[#allocation419_spill] sm:$0xff]  ;;  %v23350_v54 = vld [vmem:[#allocation388_spill] sm:$0xff] }
 0x4e8   : > { %v16164_v14 = vrot.slane %v9285_v6, %v14315_v11  ;;  %v3367_v49 = vcombine.low %v3316_v46, %v16183_v37  ;;  %v16226_v23 = vrot.slane %v2998_v47, %v14280_v31  ;;  %v3238_v27 = vcombine.high %v23317_v39, %v23316_v53  ;;  %v23358_v39 = vld [vmem:[#allocation292_spill] sm:$0xff] }
 0x4e9   : > { %11301 = vrot.lane.b32.xlu0 %v3777_v56, %s22646_s3  ;;  %v3507_v56 = vcombine.low %v3468_v21, %v16161_v35  ;;  %v16259_v63 = vrot.slane %v3917_v7, %v14280_v31  ;;  %v3508_v19 = vcombine.high %v3468_v21, %v16161_v35  ;;  %v4189_v53 = vcombine.low %v23358_v39, %v23357_v42 }
 0x4ea   : > { %11123 = vrot.lane.b32.xlu1 %v3094_v18, %s22552_s5  ;;  %23339 = vst [vmem:[#allocation434_spill] sm:$0xff] %v16164_v14  ;;  %v23345_v18 = vld [vmem:[#allocation109_spill] sm:$0xff] }
 0x4eb   : > { %v16147_v9 = vpop.permute.xlu0 %11077  ;;  %v3949_v6 = vcombine.low %v23346_v22, %v23345_v18 }
 0x4ec   : > { %23337 = vst [vmem:[#allocation499_spill] sm:$0xff] %v16147_v9  ;;  %v23490_v9 = vld [vmem:[#allocation297_spill] sm:$0xff] }
 0x4ed   : > { %11313 = vrot.lane.b32.xlu0 %v3506_v43, %s22644_s4  ;;  %v2982_v43 = vcombine.high %v23299_v10, %v23298_v3  ;;  %v2966_v3 = vcombine.high %v23294_v36, %v23293_v29  ;;  %v16207_v10 = vrot.slane %v3014_v61, %v14280_v31  ;;  %v16220_v29 = vrot.slane %v3965_v62, %v14280_v31 }
 0x4ee   : > { %11127 = vrot.lane.b32.xlu1 %v3366_v58, %s22552_s5  ;;  %s22642_s5 = smov 88   ;;  %v3740_v58 = vrot.slane %v3726_v60, %v14315_v11  ;;  %v3254_v61 = vcombine.high %v23308_v2, %v23307_v24  ;;  %v3270_v60 = vcombine.high %v23310_v12, %v23309_v15  ;;  %v16238_v62 = vrot.slane %v3949_v6, %v14280_v31  ;;  %v16247_v24 = vpop.permute.xlu1 %2243  ;;  %v23355_v15 = vld [vmem:[#allocation404_spill] sm:$0xff]  ;;  %v23356_v12 = vld [vmem:[#allocation373_spill] sm:$0xff] }
 0x4ef   : > { %v16172_v25 = vpop.permute.xlu0 %11089  ;;  %v16223_v36 = vrot.slane %v2982_v43, %v14280_v31  ;;  %v16241_v43 = vrot.slane %v2966_v3, %v14280_v31  ;;  %v3077_v47 = vcombine.low %v16226_v23, %v16207_v10  ;;  %23354 = vst [vmem:[#allocation325_spill] sm:$0xff] %v16247_v24  ;;  %v16254_v6 = vrot.slane %v3286_v55, %v14280_v31 }
 0x4f0   : > { %v3779_v20 = vcombine.low %v3740_v58, %v3772_v33  ;;  %v3096_v3 = vcombine.high %v3044_v30, %v16158_v5  ;;  %v4013_v14 = vcombine.low %v16238_v62, %v16220_v29  ;;  %v16272_v5 = vrot.slane %v3254_v61, %v14280_v31 }
 0x4f1   : > { %11317 = vrot.lane.b32.xlu0 %v3778_v32, %s22644_s4  ;;  %v4237_v32 = vcombine.low %v23350_v54, %v23349_v34  ;;  %v3045_v48 = vcombine.low %v16241_v43, %v16223_v36  ;;  %v16275_v30 = vrot.slane %v3270_v60, %v14280_v31  ;;  %v3085_v21 = vrot.slane %v3077_v47, %v14315_v11 }
 0x4f2   : > { %11139 = vrot.lane.b32.xlu1 %v3095_v8, %s22562_s11  ;;  %v16290_v61 = vrot.slane %v3238_v27, %v14280_v31  ;;  %v16296_v16 = vpop.permute.xlu1 %2251  ;;  %v4021_v47 = vrot.slane %v4013_v14, %v14315_v11 }
 0x4f3   : > { %v16198_v0 = vpop.permute.xlu0 %11093  ;;  %v16269_v55 = vrot.slane %v4237_v32, %v14280_v31  ;;  %v3349_v60 = vcombine.low %v16275_v30, %v16254_v6  ;;  %23360 = vst [vmem:[#allocation484_spill] sm:$0xff] %v16296_v16 }
 0x4f4   : > { %23344 = vst [vmem:[#allocation514_spill] sm:$0xff] %v16198_v0  ;;  %v3317_v41 = vcombine.low %v16290_v61, %v16272_v5 }
 0x4f5   : > { %11329 = vrot.lane.b32.xlu0 %v3507_v56, %s22642_s5  ;;  %v23352_v56 = vld [vmem:[#allocation357_spill] sm:$0xff]  ;;  %v3357_v14 = vrot.slane %v3349_v60, %v14315_v11 }
 0x4f6   : > { %11143 = vrot.lane.b32.xlu1 %v3367_v49, %s22562_s11  ;;  %v4205_v2 = vcombine.low %v23353_v44, %v23352_v56  ;;  %v4221_v49 = vcombine.low %v23356_v12, %v23355_v15  ;;  %s22640_s11 = smov 92   ;;  %v3325_v16 = vrot.slane %v3317_v41, %v14315_v11  ;;  %v3078_v41 = vcombine.high %v16226_v23, %v16207_v10 }
 0x4f7   : > { %v16235_v8 = vpop.permute.xlu0 %11105  ;;  %v3350_v10 = vcombine.high %v16275_v30, %v16254_v6  ;;  %v23368_v6 = vld [vmem:[#allocation273_spill] sm:$0xff] }
 0x4f8   : > { %23351 = vst [vmem:[#allocation358_spill] sm:$0xff] %v16235_v8  ;;  %v16283_v35 = vrot.slane %v4205_v2, %v14280_v31  ;;  %v16287_v32 = vrot.slane %v4221_v49, %v14280_v31  ;;  %v3053_v2 = vrot.slane %v3045_v48, %v14315_v11  ;;  %v16301_v49 = vrot.slane %v4189_v53, %v14280_v31  ;;  %v23369_v30 = vld [vmem:[#allocation241_spill] sm:$0xff] }
 0x4f9   : > { %11333 = vrot.lane.b32.xlu0 %v3779_v20, %s22642_s5  ;;  %v3981_v20 = vcombine.low %v16259_v63, %v16217_v26  ;;  %v3370_v23 = vcombine.high %v3325_v16, %v3357_v14 }
 0x4fa   : > { %11155 = vrot.lane.b32.xlu1 %v3096_v3, %s22570_s13  ;;  %v3368_v3 = vcombine.high %v3316_v46, %v16183_v37  ;;  %v4285_v27 = vcombine.low %v16287_v32, %v16269_v55  ;;  %v4253_v46 = vcombine.low %v16301_v49, %v16283_v35  ;;  %v3097_v48 = vcombine.low %v3053_v2, %v3085_v21 }
 0x4fb   : > { %v16278_v7 = vpop.permute.xlu0 %11109  ;;  %v3989_v53 = vrot.slane %v3981_v20, %v14315_v11 }
 0x4fc   : > { %23359 = vst [vmem:[#allocation374_spill] sm:$0xff] %v16278_v7  ;;  %v4293_v7 = vrot.slane %v4285_v27, %v14315_v11  ;;  %v4014_v27 = vcombine.high %v16238_v62, %v16220_v29  ;;  %v3092_v29 = vrot.slane %v3078_v41, %v14315_v11  ;;  %v23374_v41 = vld [vmem:[#allocation225_spill] sm:$0xff] }
 0x4fd   : > { %11345 = vrot.lane.b32.xlu0 %v3508_v19, %s22640_s11  ;;  %v3780_v19 = vcombine.high %v3740_v58, %v3772_v33  ;;  %v16320_v33 = vpop.permute.xlu1 %2259  ;;  %v3369_v58 = vcombine.low %v3325_v16, %v3357_v14 }
 0x4fe   : > { %11159 = vrot.lane.b32.xlu1 %v3368_v3, %s22570_s13  ;;  %v4045_v3 = vcombine.low %v3989_v53, %v4021_v47  ;;  %23363 = vst [vmem:[#allocation64_spill] sm:$0xff] %v16320_v33  ;;  %s22620_s13 = smov 96   ;;  %v16346_v62 = vrot.slane %v4014_v27, %v14315_v11 }
 0x4ff   : > { %v16308_v37 = vpop.permute.xlu0 %11121 }
 0x500   : > { %23361 = vst [vmem:[#allocation433_spill] sm:$0xff] %v16308_v37 }
 0x501   : > { %11349 = vrot.lane.b32.xlu0 %v3780_v19, %s22640_s11  ;;  %v4261_v19 = vrot.slane %v4253_v46, %v14315_v11  ;;  %v16332_v33 = vpop.permute.xlu1 %2267 }
 0x502   : > { %11171 = vrot.lane.b32.xlu1 %v3097_v48, %s22573_s14  ;;  %v3098_v48 = vcombine.high %v3053_v2, %v3085_v21  ;;  %23365 = vst [vmem:[#allocation124_spill] sm:$0xff] %v16332_v33  ;;  %v3557_v21 = vcombine.low %v23369_v30, %v23368_v6  ;;  %v23383_v33 = vld [vmem:[#allocation78_spill] sm:$0xff] }
 0x503   : > { %v16317_v24 = vpop.permute.xlu0 %11125  ;;  %v4317_v60 = vcombine.low %v4261_v19, %v4293_v7  ;;  %v4318_v16 = vcombine.high %v4261_v19, %v4293_v7  ;;  %v3966_v7 = vcombine.high %v23343_v13, %v23342_v45  ;;  %v23377_v45 = vld [vmem:[#allocation143_spill] sm:$0xff] }
 0x504   : > { %23362 = vst [vmem:[#allocation294_spill] sm:$0xff] %v16317_v24  ;;  %v3982_v24 = vcombine.high %v16259_v63, %v16217_v26 }
 0x505   : > { %11361 = vrot.lane.b32.xlu0 %v4045_v3, %s22620_s13  ;;  %v3046_v3 = vcombine.high %v16241_v43, %v16223_v36  ;;  %v4286_v36 = vcombine.high %v16287_v32, %v16269_v55  ;;  %v3318_v43 = vcombine.high %v16290_v61, %v16272_v5  ;;  %v16358_v2 = vpop.permute.xlu1 %2275  ;;  %v16364_v55 = vrot.slane %v3350_v10, %v14315_v11  ;;  %v23371_v61 = vld [vmem:[#allocation209_spill] sm:$0xff] }
 0x506   : > { %11175 = vrot.lane.b32.xlu1 %v3369_v58, %s22573_s14  ;;  %v4046_v58 = vcombine.high %v3989_v53, %v4021_v47  ;;  %s22590_s14 = smov 100   ;;  %23370 = vst [vmem:[#allocation79_spill] sm:$0xff] %v16358_v2  ;;  %v4254_v47 = vcombine.high %v16301_v49, %v16283_v35  ;;  %v3996_v5 = vrot.slane %v3982_v24, %v14315_v11  ;;  %v23372_v53 = vld [vmem:[#allocation175_spill] sm:$0xff]  ;;  %v23378_v10 = vld [vmem:[#allocation529_spill] sm:$0xff] }
 0x507   : > { %v16325_v20 = vpop.permute.xlu0 %11137  ;;  %v3060_v63 = vrot.slane %v3046_v3, %v14315_v11  ;;  %v3934_v32 = vcombine.high %v23341_v38, %v23340_v50  ;;  %v3525_v19 = vcombine.low %v23372_v53, %v23371_v61  ;;  %v3332_v49 = vrot.slane %v3318_v43, %v14315_v11  ;;  %v23376_v38 = vld [vmem:[#allocation193_spill] sm:$0xff] }
 0x508   : > { %23364 = vst [vmem:[#allocation34_spill] sm:$0xff] %v16325_v20  ;;  %v4047_v24 = vcombine.low %v3996_v5, %v16346_v62  ;;  %v4300_v27 = vrot.slane %v4286_v36, %v14315_v11  ;;  %v3950_v50 = vcombine.high %v23346_v22, %v23345_v18  ;;  %v3509_v13 = vcombine.low %v23377_v45, %v23376_v38  ;;  %v23382_v2 = vld [vmem:[#allocation469_spill] sm:$0xff] }
 0x509   : > { %11365 = vrot.lane.b32.xlu0 %v4317_v60, %s22620_s13  ;;  %v3099_v14 = vcombine.low %v3060_v63, %v3092_v29  ;;  %v23373_v60 = vld [vmem:[#allocation257_spill] sm:$0xff]  ;;  %v16386_v3 = vrot.slane %v3557_v21, %v14280_v31  ;;  %v4268_v36 = vrot.slane %v4254_v47, %v14315_v11  ;;  %v16396_v18 = vrot.slane %v3934_v32, %v14280_v31  ;;  %v23384_v32 = vld [vmem:[#allocation515_spill] sm:$0xff] }
 0x50a   : > { %11187 = vrot.lane.b32.xlu1 %v3098_v48, %s22575_s16  ;;  %v3541_v35 = vcombine.low %v23374_v41, %v23373_v60  ;;  %v16399_v22 = vrot.slane %v3966_v7, %v14280_v31  ;;  %v16402_v21 = vrot.slane %v3525_v19, %v14280_v31 }
 0x50b   : > { %v16337_v46 = vpop.permute.xlu0 %11141  ;;  %v4319_v19 = vcombine.low %v4268_v36, %v4300_v27 }
 0x50c   : > { %23366 = vst [vmem:[#allocation94_spill] sm:$0xff] %v16337_v46  ;;  %v16419_v46 = vrot.slane %v3950_v50, %v14280_v31  ;;  %v3100_v50 = vcombine.high %v3060_v63, %v3092_v29 }
 0x50d   : > { %11377 = vrot.lane.b32.xlu0 %v4046_v58, %s22590_s14  ;;  %v3918_v58 = vcombine.high %v23348_v1, %v23347_v4  ;;  %v16405_v4 = vrot.slane %v3541_v35, %v14280_v31  ;;  %v16407_v1 = vpop.permute.xlu1 %2283  ;;  %v16422_v35 = vrot.slane %v3509_v13, %v14280_v31 }
 0x50e   : > { %11191 = vrot.lane.b32.xlu1 %v3370_v23, %s22575_s16  ;;  %v23379_v23 = vld [vmem:[#allocation341_spill] sm:$0xff]  ;;  %s22592_s16 = smov 104   ;;  %23380 = vst [vmem:[#allocation19_spill] sm:$0xff] %v16407_v1  ;;  %v4222_v1 = vcombine.high %v23356_v12, %v23355_v15  ;;  %v4029_v20 = vcombine.low %v16419_v46, %v16399_v22  ;;  %v4190_v15 = vcombine.high %v23358_v39, %v23357_v42 }
 0x50f   : > { %v16354_v26 = vpop.permute.xlu0 %11153  ;;  %v3829_v43 = vcombine.low %v23379_v23, %v23378_v10  ;;  %v16437_v13 = vrot.slane %v3918_v58, %v14280_v31 }
 0x510   : > { %23367 = vst [vmem:[#allocation109_spill] sm:$0xff] %v16354_v26  ;;  %v23386_v26 = vld [vmem:[#allocation486_spill] sm:$0xff] }
 0x511   : > { %11381 = vrot.lane.b32.xlu0 %v4318_v16, %s22590_s14  ;;  %v3371_v16 = vcombine.low %v3332_v49, %v16364_v55  ;;  %v16463_v42 = vpop.permute.xlu1 %10995 }
 0x512   : > { %11203 = vrot.lane.b32.xlu1 %v3099_v14, %s22580_s20  ;;  %v4238_v14 = vcombine.high %v23350_v54, %v23349_v34  ;;  %v3605_v34 = vcombine.low %v16405_v4, %v16386_v3  ;;  %v4206_v54 = vcombine.high %v23353_v44, %v23352_v56  ;;  %v3573_v44 = vcombine.low %v16422_v35, %v16402_v21 }
 0x513   : > { %v16377_v48 = vpop.permute.xlu0 %11157  ;;  %v4048_v56 = vcombine.high %v3996_v5, %v16346_v62  ;;  %23389 = vst [vmem:[#allocation357_spill] sm:$0xff] %v16463_v42  ;;  %v16467_v5 = vrot.slane %v4222_v1, %v14280_v31 }
 0x514   : > { %23375 = vst [vmem:[#allocation49_spill] sm:$0xff] %v16377_v48  ;;  %v3813_v48 = vcombine.low %v23384_v32, %v23383_v33  ;;  %v16447_v12 = vrot.slane %v4238_v14, %v14280_v31  ;;  %v16461_v62 = vrot.slane %v4206_v54, %v14280_v31  ;;  %v3613_v39 = vrot.slane %v3605_v34, %v14315_v11 }
 0x515   : > { %11393 = vrot.lane.b32.xlu0 %v4047_v24, %s22592_s16  ;;  %v23381_v24 = vld [vmem:[#allocation501_spill] sm:$0xff]  ;;  %v4037_v54 = vrot.slane %v4029_v20, %v14315_v11  ;;  %v16479_v34 = vrot.slane %v4190_v15, %v14280_v31 }
 0x516   : > { %v3797_v47 = vcombine.low %v23382_v2, %v23381_v24  ;;  %11207 = vrot.lane.b32.xlu1 %v3371_v16, %s22580_s20  ;;  %v23387_v16 = vld [vmem:[#allocation437_spill] sm:$0xff]  ;;  %v16453_v63 = vrot.slane %v3813_v48, %v14280_v31  ;;  %s22594_s20 = smov 108   ;;  %v4301_v1 = vcombine.low %v16467_v5, %v16447_v12 }
 0x517   : > { %v16416_v7 = vpop.permute.xlu0 %11169  ;;  %v3781_v0 = vcombine.low %v23387_v16, %v23386_v26 }
 0x518   : > { %23385 = vst [vmem:[#allocation419_spill] sm:$0xff] %v16416_v7  ;;  %v16433_v7 = vrot.slane %v3829_v43, %v14280_v31  ;;  %v16450_v29 = vrot.slane %v3797_v47, %v14280_v31  ;;  %v3997_v43 = vcombine.low %v16437_v13, %v16396_v18  ;;  %v3372_v47 = vcombine.high %v3332_v49, %v16364_v55 }
 0x519   : > { %11397 = vrot.lane.b32.xlu0 %v4319_v19, %s22592_s16  ;;  %v16470_v48 = vrot.slane %v3781_v0, %v14280_v31  ;;  %v3581_v19 = vrot.slane %v3573_v44, %v14315_v11  ;;  %v4320_v55 = vcombine.high %v4268_v36, %v4300_v27  ;;  %v4269_v44 = vcombine.low %v16479_v34, %v16461_v62 }
 0x51a   : > { %11219 = vrot.lane.b32.xlu1 %v3100_v50, %s22582_s21  ;;  %v3877_v14 = vcombine.low %v16453_v63, %v16433_v7  ;;  %v4005_v15 = vrot.slane %v3997_v43, %v14315_v11  ;;  %v4309_v27 = vrot.slane %v4301_v1, %v14315_v11  ;;  %v4030_v1 = vcombine.high %v16419_v46, %v16399_v22 }
 0x51b   : > { %v16456_v58 = vpop.permute.xlu0 %11173  ;;  %v3845_v0 = vcombine.low %v16470_v48, %v16450_v29  ;;  %v3637_v20 = vcombine.low %v3581_v19, %v3613_v39 }
 0x51c   : > { %23388 = vst [vmem:[#allocation388_spill] sm:$0xff] %v16456_v58  ;;  %v16488_v49 = vpop.permute.xlu1 %10999  ;;  %v4049_v58 = vcombine.low %v4005_v15, %v4037_v54  ;;  %v4044_v22 = vrot.slane %v4030_v1, %v14315_v11 }
 0x51d   : > { %11409 = vrot.lane.b32.xlu0 %v4048_v56, %s22594_s20  ;;  %23391 = vst [vmem:[#allocation404_spill] sm:$0xff] %v16488_v49  ;;  %v3885_v56 = vrot.slane %v3877_v14, %v14315_v11  ;;  %v3853_v42 = vrot.slane %v3845_v0, %v14315_v11  ;;  %v3606_v0 = vcombine.high %v16405_v4, %v16386_v3 }
 0x51e   : > { %11223 = vrot.lane.b32.xlu1 %v3372_v47, %s22582_s21  ;;  %s22596_s21 = smov 112   ;;  %v3878_v3 = vcombine.high %v16453_v63, %v16433_v7 }
 0x51f   : > { %v16486_v50 = vpop.permute.xlu0 %11185  ;;  %v3909_v49 = vcombine.low %v3853_v42, %v3885_v56  ;;  %v3910_v4 = vcombine.high %v3853_v42, %v3885_v56  ;;  %v3620_v46 = vrot.slane %v3606_v0, %v14315_v11  ;;  %v3558_v42 = vcombine.high %v23369_v30, %v23368_v6 }
 0x520   : > { %23390 = vst [vmem:[#allocation324_spill] sm:$0xff] %v16486_v50  ;;  %v16500_v36 = vpop.permute.xlu1 %11011 }
 0x521   : > { %11413 = vrot.lane.b32.xlu0 %v4320_v55, %s22594_s20  ;;  %23393 = vst [vmem:[#allocation342_spill] sm:$0xff] %v16500_v36  ;;  %v4277_v55 = vrot.slane %v4269_v44, %v14315_v11  ;;  %v4050_v44 = vcombine.high %v4005_v15, %v4037_v54  ;;  %v16557_v56 = vrot.slane %v3558_v42, %v14280_v31  ;;  %v23408_v42 = vld [vmem:[#allocation142_spill] sm:$0xff] }
 0x522   : > { %11235 = vrot.lane.b32.xlu1 %v3637_v20, %s22584_s22 }
 0x523   : > { %v16497_v47 = vpop.permute.xlu0 %11189  ;;  %v4321_v14 = vcombine.low %v4277_v55, %v4309_v27  ;;  %v4322_v7 = vcombine.high %v4277_v55, %v4309_v27 }
 0x524   : > { %23392 = vst [vmem:[#allocation373_spill] sm:$0xff] %v16497_v47  ;;  %v16507_v20 = vpop.permute.xlu1 %11015  ;;  %v3638_v47 = vcombine.high %v3581_v19, %v3613_v39  ;;  %v4270_v39 = vcombine.high %v16479_v34, %v16461_v62  ;;  %v3510_v34 = vcombine.high %v23377_v45, %v23376_v38  ;;  %v3798_v38 = vcombine.high %v23382_v2, %v23381_v24 }
 0x525   : > { %11425 = vrot.lane.b32.xlu0 %v4049_v58, %s22596_s21  ;;  %23395 = vst [vmem:[#allocation273_spill] sm:$0xff] %v16507_v20  ;;  %v3574_v58 = vcombine.high %v16422_v35, %v16402_v21  ;;  %v3998_v20 = vcombine.high %v16437_v13, %v16396_v18  ;;  %v4302_v21 = vcombine.high %v16467_v5, %v16447_v12 }
 0x526   : > { %11239 = vrot.lane.b32.xlu1 %v3909_v49, %s22584_s22  ;;  %s22598_s22 = smov 116   ;;  %v3846_v35 = vcombine.high %v16470_v48, %v16450_v29  ;;  %v3892_v29 = vrot.slane %v3878_v3, %v14315_v11  ;;  %v3526_v5 = vcombine.high %v23372_v53, %v23371_v61  ;;  %v3542_v48 = vcombine.high %v23374_v41, %v23373_v60 }
 0x527   : > { %v16505_v43 = vpop.permute.xlu0 %11201  ;;  %v3588_v18 = vrot.slane %v3574_v58, %v14315_v11  ;;  %v4012_v63 = vrot.slane %v3998_v20, %v14315_v11  ;;  %v4316_v54 = vrot.slane %v4302_v21, %v14315_v11  ;;  %v3830_v61 = vcombine.high %v23379_v23, %v23378_v10 }
 0x528   : > { %23394 = vst [vmem:[#allocation292_spill] sm:$0xff] %v16505_v43  ;;  %v3860_v6 = vrot.slane %v3846_v35, %v14315_v11  ;;  %v4284_v41 = vrot.slane %v4270_v39, %v14315_v11  ;;  %v16566_v15 = vrot.slane %v3526_v5, %v14280_v31  ;;  %v3814_v45 = vcombine.high %v23384_v32, %v23383_v33  ;;  %v23409_v39 = vld [vmem:[#allocation146_spill] sm:$0xff] }
 0x529   : > { %11429 = vrot.lane.b32.xlu0 %v4321_v14, %s22596_s21  ;;  %v3639_v12 = vcombine.low %v3588_v18, %v3620_v46  ;;  %v4051_v62 = vcombine.low %v4012_v63, %v4044_v22  ;;  %v16579_v27 = vrot.slane %v3510_v34, %v14280_v31  ;;  %v3782_v14 = vcombine.high %v23387_v16, %v23386_v26  ;;  %v23414_v34 = vld [vmem:[#allocation148_spill] sm:$0xff] }
 0x52a   : > { %11251 = vrot.lane.b32.xlu1 %v3638_v47, %s22586_s24  ;;  %v3911_v60 = vcombine.low %v3860_v6, %v3892_v29  ;;  %v16569_v47 = vrot.slane %v3542_v48, %v14280_v31  ;;  %v4323_v23 = vcombine.low %v4284_v41, %v4316_v54  ;;  %v16586_v20 = vrot.slane %v3830_v61, %v14280_v31  ;;  %v23411_v48 = vld [vmem:[#allocation152_spill] sm:$0xff] }
 0x52b   : > { %v16517_v49 = vpop.permute.xlu0 %11205  ;;  %v3640_v33 = vcombine.high %v3588_v18, %v3620_v46  ;;  %v3589_v24 = vcombine.low %v16579_v27, %v16566_v15  ;;  %v16594_v32 = vrot.slane %v3798_v38, %v14280_v31  ;;  %v16597_v0 = vrot.slane %v3814_v45, %v14280_v31  ;;  %v23416_v38 = vld [vmem:[#allocation440_spill] sm:$0xff]  ;;  %v23417_v45 = vld [vmem:[#allocation443_spill] sm:$0xff] }
 0x52c   : > { %23396 = vst [vmem:[#allocation241_spill] sm:$0xff] %v16517_v49  ;;  %v16521_v36 = vpop.permute.xlu1 %11027  ;;  %v3621_v55 = vcombine.low %v16569_v47, %v16557_v56  ;;  %v4052_v16 = vcombine.high %v4012_v63, %v4044_v22  ;;  %v16603_v1 = vrot.slane %v3782_v14, %v14280_v31  ;;  %v3912_v3 = vcombine.high %v3860_v6, %v3892_v29  ;;  %v23412_v6 = vld [vmem:[#allocation153_spill] sm:$0xff]  ;;  %v23461_v49 = vld [vmem:[#allocation436_spill] sm:$0xff] }
 0x52d   : > { %23397 = vst [vmem:[#allocation209_spill] sm:$0xff] %v16521_v36  ;;  %11441 = vrot.lane.b32.xlu0 %v4050_v44, %s22598_s22  ;;  %v3893_v58 = vcombine.low %v16597_v0, %v16586_v20  ;;  %v3597_v22 = vrot.slane %v3589_v24, %v14315_v11  ;;  %v4324_v35 = vcombine.high %v4284_v41, %v4316_v54  ;;  %v23413_v54 = vld [vmem:[#allocation145_spill] sm:$0xff] }
 0x52e   : > { %11255 = vrot.lane.b32.xlu1 %v3910_v4, %s22586_s24  ;;  %s22600_s24 = smov 120   ;;  %v3629_v4 = vrot.slane %v3621_v55, %v14315_v11  ;;  %v3861_v46 = vcombine.low %v16603_v1, %v16594_v32  ;;  %v4526_v61 = vcombine.high %v23414_v34, %v23413_v54  ;;  %v23419_v14 = vld [vmem:[#allocation449_spill] sm:$0xff] }
 0x52f   : > { %v16534_v13 = vpop.permute.xlu0 %11217  ;;  %v3901_v63 = vrot.slane %v3893_v58, %v14315_v11  ;;  %v3622_v58 = vcombine.high %v16569_v47, %v16557_v56  ;;  %v23425_v54 = vld [vmem:[#allocation97_spill] sm:$0xff] }
 0x530   : > { %23398 = vst [vmem:[#allocation175_spill] sm:$0xff] %v16534_v13  ;;  %v16541_v19 = vpop.permute.xlu1 %11031  ;;  %v3869_v29 = vrot.slane %v3861_v46, %v14315_v11  ;;  %v23422_v46 = vld [vmem:[#allocation445_spill] sm:$0xff] }
 0x531   : > { %23399 = vst [vmem:[#allocation257_spill] sm:$0xff] %v16541_v19  ;;  %11445 = vrot.lane.b32.xlu0 %v4322_v7, %s22598_s22  ;;  %v3641_v7 = vcombine.low %v3597_v22, %v3629_v4  ;;  %v23451_v19 = vld [vmem:[#allocation192_spill] sm:$0xff] }
 0x532   : > { %11267 = vrot.lane.b32.xlu1 %v3639_v12, %s22588_s26  ;;  %v4558_v12 = vcombine.high %v23409_v39, %v23408_v42  ;;  %v3913_v41 = vcombine.low %v3869_v29, %v3901_v63  ;;  %v3642_v42 = vcombine.high %v3597_v22, %v3629_v4  ;;  %v4540_v39 = vrot.slane %v4526_v61, %v14315_v11  ;;  %v23428_v4 = vld [vmem:[#allocation22_spill] sm:$0xff] }
 0x533   : > { %v16551_v30 = vpop.permute.xlu0 %11221 }
 0x534   : > { %23400 = vst [vmem:[#allocation225_spill] sm:$0xff] %v16551_v30  ;;  %v16561_v53 = vpop.permute.xlu1 %11043 }
 0x535   : > { %23401 = vst [vmem:[#allocation193_spill] sm:$0xff] %v16561_v53  ;;  %11457 = vrot.lane.b32.xlu0 %v4051_v62, %s22600_s24  ;;  %v4590_v62 = vcombine.high %v23412_v6, %v23411_v48  ;;  %v23445_v48 = vld [vmem:[#allocation174_spill] sm:$0xff] }
 0x536   : > { %11271 = vrot.lane.b32.xlu1 %v3911_v60, %s22588_s26  ;;  %s22609_s26 = smov 124  }
 0x537   : > { %v16576_v10 = vpop.permute.xlu0 %11233 }
 0x538   : > { %23402 = vst [vmem:[#allocation143_spill] sm:$0xff] %v16576_v10  ;;  %v16588_v2 = vpop.permute.xlu1 %11047 }
 0x539   : > { %23403 = vst [vmem:[#allocation529_spill] sm:$0xff] %v16588_v2  ;;  %11461 = vrot.lane.b32.xlu0 %v4323_v23, %s22600_s24  ;;  %v4830_v23 = vcombine.high %v23417_v45, %v23416_v38  ;;  %v23427_v38 = vld [vmem:[#allocation52_spill] sm:$0xff]  ;;  %v23429_v45 = vld [vmem:[#allocation67_spill] sm:$0xff] }
 0x53a   : > { %11283 = vrot.lane.b32.xlu1 %v3640_v33, %s22648_s30  ;;  %v23420_v33 = vld [vmem:[#allocation450_spill] sm:$0xff]  ;;  %v4462_v22 = vcombine.high %v23428_v4, %v23427_v38 }
 0x53b   : > { %v16600_v26 = vpop.permute.xlu0 %11237  ;;  %v4862_v24 = vcombine.high %v23420_v33, %v23419_v14  ;;  %v16658_v47 = vrot.slane %v4830_v23, %v14315_v11  ;;  %v3636_v23 = vrot.slane %v3622_v58, %v14315_v11  ;;  %v23434_v4 = vld [vmem:[#allocation422_spill] sm:$0xff] }
 0x53c   : > { %23404 = vst [vmem:[#allocation341_spill] sm:$0xff] %v16600_v26  ;;  %v16607_v44 = vpop.permute.xlu1 %11059  ;;  %v23458_v26 = vld [vmem:[#allocation517_spill] sm:$0xff] }
 0x53d   : > { %23405 = vst [vmem:[#allocation501_spill] sm:$0xff] %v16607_v44  ;;  %11473 = vrot.lane.b32.xlu0 %v4052_v16, %s22609_s26  ;;  %v4572_v16 = vrot.slane %v4558_v12, %v14315_v11 }
 0x53e   : > { %11287 = vrot.lane.b32.xlu1 %v3912_v3, %s22648_s30  ;;  %v23421_v3 = vld [vmem:[#allocation442_spill] sm:$0xff] }
 0x53f   : > { %v16615_v21 = vpop.permute.xlu0 %11249  ;;  %v4591_v56 = vcombine.low %v4540_v39, %v4572_v16 }
 0x540   : > { %23406 = vst [vmem:[#allocation469_spill] sm:$0xff] %v16615_v21  ;;  %v16617_v18 = vpop.permute.xlu1 %11063 }
 0x541   : > { %23407 = vst [vmem:[#allocation78_spill] sm:$0xff] %v16617_v18  ;;  %11477 = vrot.lane.b32.xlu0 %v4324_v35, %s22609_s26  ;;  %v4798_v35 = vcombine.high %v23422_v46, %v23421_v3  ;;  %v23431_v3 = vld [vmem:[#allocation112_spill] sm:$0xff]  ;;  %v23432_v46 = vld [vmem:[#allocation82_spill] sm:$0xff] }
 0x542   : > { %11299 = vrot.lane.b32.xlu1 %v3641_v7, %s22646_s3  ;;  %v23447_v18 = vld [vmem:[#allocation224_spill] sm:$0xff] }
 0x543   : > { %v16625_v5 = vpop.permute.xlu0 %11253 }
 0x544   : > { %23410 = vst [vmem:[#allocation515_spill] sm:$0xff] %v16625_v5  ;;  %v16631_v60 = vpop.permute.xlu1 %11075  ;;  %v23457_v5 = vld [vmem:[#allocation531_spill] sm:$0xff] }
 0x545   : > { %23415 = vst [vmem:[#allocation486_spill] sm:$0xff] %v16631_v60  ;;  %11489 = vrot.lane.b32.xlu0 %v4590_v62, %s22617_s17  ;;  %v23424_v62 = vld [vmem:[#allocation127_spill] sm:$0xff]  ;;  %v23452_v60 = vld [vmem:[#allocation141_spill] sm:$0xff] }
 0x546   : > { %11303 = vrot.lane.b32.xlu1 %v3913_v41, %s22646_s3  ;;  %v4510_v34 = vcombine.high %v23425_v54, %v23424_v62  ;;  %v3590_v41 = vcombine.high %v16579_v27, %v16566_v15  ;;  %v4494_v62 = vcombine.high %v23432_v46, %v23431_v3  ;;  %v3894_v15 = vcombine.high %v16597_v0, %v16586_v20  ;;  %v23440_v46 = vld [vmem:[#allocation329_spill] sm:$0xff] }
 0x547   : > { %v16637_v55 = vpop.permute.xlu0 %11265  ;;  %v4812_v54 = vrot.slane %v4798_v35, %v14315_v11  ;;  %v3862_v3 = vcombine.high %v16603_v1, %v16594_v32  ;;  %v23439_v1 = vld [vmem:[#allocation360_spill] sm:$0xff]  ;;  %v4053_v44 = vcombine.low %v23452_v60, %v23451_v19 }
 0x548   : > { %23418 = vst [vmem:[#allocation437_spill] sm:$0xff] %v16637_v55  ;;  %v16646_v7 = vpop.permute.xlu1 %11079  ;;  %v16674_v38 = vrot.slane %v4510_v34, %v14280_v31  ;;  %v3604_v20 = vrot.slane %v3590_v41, %v14315_v11  ;;  %v16692_v35 = vrot.slane %v4494_v62, %v14280_v31  ;;  %v23437_v34 = vld [vmem:[#allocation272_spill] sm:$0xff]  ;;  %v23441_v41 = vld [vmem:[#allocation407_spill] sm:$0xff]  ;;  %v23460_v55 = vld [vmem:[#allocation485_spill] sm:$0xff] }
 0x549   : > { %23423 = vst [vmem:[#allocation142_spill] sm:$0xff] %v16646_v7  ;;  %11493 = vrot.lane.b32.xlu0 %v4862_v24, %s22617_s17  ;;  %v23430_v24 = vld [vmem:[#allocation37_spill] sm:$0xff]  ;;  %v23444_v62 = vld [vmem:[#allocation208_spill] sm:$0xff]  ;;  %v4325_v21 = vcombine.low %v23461_v49, %v23460_v55 }
 0x54a   : > { %11315 = vrot.lane.b32.xlu1 %v3642_v42, %s22644_s4  ;;  %v4478_v61 = vcombine.high %v23430_v24, %v23429_v45  ;;  %v3914_v42 = vcombine.high %v3869_v29, %v3901_v63  ;;  %v23435_v45 = vld [vmem:[#allocation391_spill] sm:$0xff]  ;;  %v4863_v63 = vcombine.low %v4812_v54, %v16658_v47  ;;  %v16686_v29 = vrot.slane %v4462_v22, %v14280_v31  ;;  %v23446_v7 = vld [vmem:[#allocation256_spill] sm:$0xff] }
 0x54b   : > { %v16655_v12 = vpop.permute.xlu0 %11269  ;;  %v4782_v24 = vcombine.high %v23435_v45, %v23434_v4  ;;  %v23442_v4 = vld [vmem:[#allocation376_spill] sm:$0xff]  ;;  %v3643_v33 = vcombine.low %v3604_v20, %v3636_v23  ;;  %v3908_v22 = vrot.slane %v3894_v15, %v14315_v11  ;;  %v4069_v6 = vcombine.low %v23445_v48, %v23444_v62 }
 0x54c   : > { %23426 = vst [vmem:[#allocation146_spill] sm:$0xff] %v16655_v12  ;;  %v16668_v27 = vpop.permute.xlu1 %11091  ;;  %v16689_v58 = vrot.slane %v4478_v61, %v14280_v31  ;;  %v4766_v45 = vcombine.high %v23442_v4, %v23441_v41  ;;  %v4573_v61 = vcombine.low %v16692_v35, %v16674_v38  ;;  %v4085_v2 = vcombine.low %v23447_v18, %v23446_v7  ;;  %v23456_v12 = vld [vmem:[#allocation467_spill] sm:$0xff] }
 0x54d   : > { %23433 = vst [vmem:[#allocation145_spill] sm:$0xff] %v16668_v27  ;;  %11505 = vrot.lane.b32.xlu0 %v4591_v56, %s22623_s25  ;;  %v23438_v56 = vld [vmem:[#allocation240_spill] sm:$0xff]  ;;  %v16713_v41 = vrot.slane %v4782_v24, %v14280_v31  ;;  %v4592_v4 = vcombine.high %v4540_v39, %v4572_v16  ;;  %v16738_v39 = vrot.slane %v4069_v6, %v14280_v31 }
 0x54e   : > { %11319 = vrot.lane.b32.xlu1 %v3914_v42, %s22644_s4  ;;  %v4101_v32 = vcombine.low %v23438_v56, %v23437_v34  ;;  %v4750_v42 = vcombine.high %v23440_v46, %v23439_v1  ;;  %v23448_v1 = vld [vmem:[#allocation345_spill] sm:$0xff]  ;;  %v23449_v46 = vld [vmem:[#allocation299_spill] sm:$0xff]  ;;  %v16730_v24 = vrot.slane %v4766_v45, %v14280_v31  ;;  %v4581_v45 = vrot.slane %v4573_v61, %v14315_v11 }
 0x54f   : > { %v16682_v0 = vpop.permute.xlu0 %11281  ;;  %v4734_v27 = vcombine.high %v23449_v46, %v23448_v1 }
 0x550   : > { %23436 = vst [vmem:[#allocation148_spill] sm:$0xff] %v16682_v0  ;;  %v16700_v14 = vpop.permute.xlu1 %11095  ;;  %v16724_v53 = vrot.slane %v4101_v32, %v14280_v31  ;;  %v16727_v1 = vrot.slane %v4750_v42, %v14280_v31  ;;  %v16741_v32 = vrot.slane %v4085_v2, %v14280_v31  ;;  %v4845_v36 = vcombine.low %v16730_v24, %v16713_v41 }
 0x551   : > { %23443 = vst [vmem:[#allocation440_spill] sm:$0xff] %v16700_v14  ;;  %11509 = vrot.lane.b32.xlu0 %v4863_v63, %s22623_s25  ;;  %v3876_v63 = vrot.slane %v3862_v3, %v14315_v11  ;;  %v4541_v14 = vcombine.low %v16686_v29, %v16689_v58  ;;  %v16744_v42 = vrot.slane %v4734_v27, %v14280_v31 }
 0x552   : > { %11331 = vrot.lane.b32.xlu1 %v3643_v33, %s22642_s5  ;;  %v23453_v33 = vld [vmem:[#allocation63_spill] sm:$0xff]  ;;  %v4864_v2 = vcombine.high %v4812_v54, %v16658_v47  ;;  %v16758_v27 = vrot.slane %v4053_v44, %v14280_v31  ;;  %v4149_v61 = vcombine.low %v16741_v32, %v16724_v53  ;;  %v3644_v47 = vcombine.high %v3604_v20, %v3636_v23 }
 0x553   : > { %v16717_v15 = vpop.permute.xlu0 %11285  ;;  %v4373_v3 = vcombine.low %v23453_v33, %v16194_v40  ;;  %v3915_v16 = vcombine.low %v3876_v63, %v3908_v22  ;;  %v4549_v0 = vrot.slane %v4541_v14, %v14315_v11  ;;  %v4813_v30 = vcombine.low %v16744_v42, %v16727_v1 }
 0x554   : > { %23450 = vst [vmem:[#allocation443_spill] sm:$0xff] %v16717_v15  ;;  %v16734_v46 = vpop.permute.xlu1 %11107  ;;  %v23455_v15 = vld [vmem:[#allocation500_spill] sm:$0xff]  ;;  %v4117_v54 = vcombine.low %v16758_v27, %v16738_v39  ;;  %v4157_v23 = vrot.slane %v4149_v61, %v14315_v11  ;;  %v16787_v20 = vrot.slane %v4325_v21, %v14280_v31 }
 0x555   : > { %23454 = vst [vmem:[#allocation442_spill] sm:$0xff] %v16734_v46  ;;  %11521 = vrot.lane.b32.xlu0 %v4592_v4, %s22625_s27  ;;  %v4341_v46 = vcombine.low %v23456_v12, %v23455_v15  ;;  %v4357_v4 = vcombine.low %v23458_v26, %v23457_v5  ;;  %v4593_v44 = vcombine.low %v4549_v0, %v4581_v45 }
 0x556   : > { %11335 = vrot.lane.b32.xlu1 %v3915_v16, %s22642_s5  ;;  %v16768_v16 = vrot.slane %v4373_v3, %v14280_v31  ;;  %v4853_v3 = vrot.slane %v4845_v36, %v14315_v11  ;;  %v4125_v36 = vrot.slane %v4117_v54, %v14315_v11  ;;  %v4594_v54 = vcombine.high %v4549_v0, %v4581_v45 }
 0x557   : > { %v16754_v6 = vpop.permute.xlu0 %11297  ;;  %v16776_v14 = vrot.slane %v4341_v46, %v14280_v31  ;;  %v16779_v10 = vrot.slane %v4357_v4, %v14280_v31  ;;  %v3916_v46 = vcombine.high %v3876_v63, %v3908_v22  ;;  %v4821_v4 = vrot.slane %v4813_v30, %v14315_v11 }
 0x558   : > { %23459 = vst [vmem:[#allocation445_spill] sm:$0xff] %v16754_v6  ;;  %v16770_v6 = vpop.permute.xlu1 %11111  ;;  %v4181_v43 = vcombine.low %v4125_v36, %v4157_v23  ;;  %v4574_v30 = vcombine.high %v16692_v35, %v16674_v38  ;;  %v4150_v0 = vcombine.high %v16741_v32, %v16724_v53  ;;  %v4182_v45 = vcombine.high %v4125_v36, %v4157_v23  ;;  %v23474_v32 = vld [vmem:[#allocation51_spill] sm:$0xff]  ;;  %v23476_v36 = vld [vmem:[#allocation66_spill] sm:$0xff] }
 0x559   : > { %23462 = vst [vmem:[#allocation127_spill] sm:$0xff] %v16770_v6  ;;  %11525 = vrot.lane.b32.xlu0 %v4864_v2, %s22625_s27  ;;  %v4421_v2 = vcombine.low %v16779_v10, %v16768_v16  ;;  %v4865_v21 = vcombine.low %v4821_v4, %v4853_v3 }
 0x55a   : > { %11347 = vrot.lane.b32.xlu1 %v3644_v47, %s22640_s11  ;;  %v4389_v47 = vcombine.low %v16787_v20, %v16776_v14  ;;  %v4588_v35 = vrot.slane %v4574_v30, %v14315_v11 }
 0x55b   : > { %v16782_v13 = vpop.permute.xlu0 %11301  ;;  %v4429_v22 = vrot.slane %v4421_v2, %v14315_v11  ;;  %v4846_v2 = vcombine.high %v16730_v24, %v16713_v41  ;;  %v23471_v24 = vld [vmem:[#allocation126_spill] sm:$0xff] }
 0x55c   : > { %23463 = vst [vmem:[#allocation97_spill] sm:$0xff] %v16782_v13  ;;  %v16791_v6 = vpop.permute.xlu1 %11123  ;;  %v4397_v63 = vrot.slane %v4389_v47, %v14315_v11 }
 0x55d   : > { %23464 = vst [vmem:[#allocation52_spill] sm:$0xff] %v16791_v6  ;;  %11537 = vrot.lane.b32.xlu0 %v4593_v44, %s22627_s28 }
 0x55e   : > { %11351 = vrot.lane.b32.xlu1 %v3916_v46, %s22640_s11  ;;  %v4542_v46 = vcombine.high %v16686_v29, %v16689_v58  ;;  %v4814_v29 = vcombine.high %v16744_v42, %v16727_v1  ;;  %v16838_v1 = vrot.slane %v4846_v2, %v14315_v11  ;;  %v23475_v42 = vld [vmem:[#allocation21_spill] sm:$0xff]  ;;  %v4164_v2 = vrot.slane %v4150_v0, %v14315_v11 }
 0x55f   : > { %v16799_v61 = vpop.permute.xlu0 %11313  ;;  %v5005_v23 = vcombine.low %v23475_v42, %v23474_v32 }
 0x560   : > { %23465 = vst [vmem:[#allocation22_spill] sm:$0xff] %v16799_v61  ;;  %v16801_v13 = vpop.permute.xlu1 %11127  ;;  %v4556_v41 = vrot.slane %v4542_v46, %v14315_v11  ;;  %v23479_v46 = vld [vmem:[#allocation81_spill] sm:$0xff]  ;;  %v4390_v61 = vcombine.high %v16787_v20, %v16776_v14  ;;  %v4102_v14 = vcombine.high %v23438_v56, %v23437_v34  ;;  %v23484_v20 = vld [vmem:[#allocation359_spill] sm:$0xff]  ;;  %v4086_v34 = vcombine.high %v23447_v18, %v23446_v7  ;;  %v23489_v56 = vld [vmem:[#allocation344_spill] sm:$0xff] }
 0x561   : > { %23466 = vst [vmem:[#allocation67_spill] sm:$0xff] %v16801_v13  ;;  %11541 = vrot.lane.b32.xlu0 %v4865_v21, %s22627_s28  ;;  %v4453_v13 = vcombine.low %v4397_v63, %v4429_v22  ;;  %v23477_v21 = vld [vmem:[#allocation36_spill] sm:$0xff]  ;;  %v5277_v37 = vcombine.low %v23490_v9, %v23489_v56 }
 0x562   : > { %11363 = vrot.lane.b32.xlu1 %v4181_v43, %s22620_s13  ;;  %v4866_v43 = vcombine.high %v4821_v4, %v4853_v3  ;;  %v4118_v3 = vcombine.high %v16758_v27, %v16738_v39  ;;  %v4595_v53 = vcombine.low %v4556_v41, %v4588_v35  ;;  %v5021_v30 = vcombine.low %v23477_v21, %v23476_v36 }
 0x563   : > { %v16809_v44 = vpop.permute.xlu0 %11317  ;;  %v4422_v39 = vcombine.high %v16779_v10, %v16768_v16  ;;  %v16904_v18 = vrot.slane %v4102_v14, %v14280_v31 }
 0x564   : > { %23467 = vst [vmem:[#allocation37_spill] sm:$0xff] %v16809_v44  ;;  %v16813_v6 = vpop.permute.xlu1 %11139  ;;  %v23482_v44 = vld [vmem:[#allocation390_spill] sm:$0xff]  ;;  %v4132_v10 = vrot.slane %v4118_v3, %v14315_v11  ;;  %v16869_v0 = vrot.slane %v5021_v30, %v14280_v31 }
 0x565   : > { %23468 = vst [vmem:[#allocation112_spill] sm:$0xff] %v16813_v6  ;;  %11553 = vrot.lane.b32.xlu0 %v4594_v54, %s22629_s29  ;;  %v23478_v54 = vld [vmem:[#allocation111_spill] sm:$0xff]  ;;  %v23486_v3 = vld [vmem:[#allocation406_spill] sm:$0xff] }
 0x566   : > { %11367 = vrot.lane.b32.xlu1 %v4453_v13, %s22620_s13  ;;  %v23472_v13 = vld [vmem:[#allocation96_spill] sm:$0xff]  ;;  %v4183_v50 = vcombine.low %v4132_v10, %v4164_v2  ;;  %s23582_s13 = smov 56  }
 0x567   : > { %v16819_v38 = vpop.permute.xlu0 %11329  ;;  %v5053_v47 = vcombine.low %v23472_v13, %v23471_v24 }
 0x568   : > { %23469 = vst [vmem:[#allocation82_spill] sm:$0xff] %v16819_v38  ;;  %v16826_v58 = vpop.permute.xlu1 %11143 }
 0x569   : > { %23470 = vst [vmem:[#allocation422_spill] sm:$0xff] %v16826_v58  ;;  %11557 = vrot.lane.b32.xlu0 %v4866_v43, %s22629_s29  ;;  %v5037_v43 = vcombine.low %v23479_v46, %v23478_v54  ;;  %v4828_v58 = vrot.slane %v4814_v29, %v14315_v11  ;;  %v16854_v6 = vrot.slane %v5053_v47, %v14280_v31  ;;  %v23485_v47 = vld [vmem:[#allocation327_spill] sm:$0xff] }
 0x56a   : > { %11379 = vrot.lane.b32.xlu1 %v4182_v45, %s22590_s14  ;;  %v4454_v45 = vcombine.high %v4397_v63, %v4429_v22  ;;  %v16866_v63 = vrot.slane %v5005_v23, %v14280_v31  ;;  %v4436_v23 = vrot.slane %v4422_v39, %v14315_v11 }
 0x56b   : > { %v16835_v4 = vpop.permute.xlu0 %11333  ;;  %v4867_v22 = vcombine.low %v4828_v58, %v16838_v1  ;;  %v16872_v29 = vrot.slane %v5037_v43, %v14280_v31  ;;  %v4070_v43 = vcombine.high %v23445_v48, %v23444_v62  ;;  %v4054_v48 = vcombine.high %v23452_v60, %v23451_v19 }
 0x56c   : > { %23473 = vst [vmem:[#allocation391_spill] sm:$0xff] %v16835_v4  ;;  %v16848_v27 = vpop.permute.xlu1 %11155  ;;  %v23481_v4 = vld [vmem:[#allocation421_spill] sm:$0xff]  ;;  %v5069_v8 = vcombine.low %v16866_v63, %v16869_v0  ;;  %v16921_v19 = vrot.slane %v4086_v34, %v14280_v31  ;;  %v16924_v60 = vrot.slane %v5277_v37, %v14280_v31  ;;  %v4868_v14 = vcombine.high %v4828_v58, %v16838_v1 }
 0x56d   : > { %23480 = vst [vmem:[#allocation272_spill] sm:$0xff] %v16848_v27  ;;  %11569 = vrot.lane.b32.xlu0 %v4595_v53, %s22637_s2  ;;  %v5325_v38 = vcombine.low %v23482_v44, %v23481_v4  ;;  %v5293_v53 = vcombine.low %v23485_v47, %v23484_v20  ;;  %v5101_v30 = vcombine.low %v16872_v29, %v16854_v6 }
 0x56e   : > { %11383 = vrot.lane.b32.xlu1 %v4454_v45, %s22590_s14  ;;  %v23487_v45 = vld [vmem:[#allocation375_spill] sm:$0xff]  ;;  %s23492_s14 = smov 28   ;;  %v16940_v37 = vrot.slane %v4054_v48, %v14280_v31  ;;  %v4184_v58 = vcombine.high %v4132_v10, %v4164_v2  ;;  %v5054_v1 = vcombine.high %v23472_v13, %v23471_v24  ;;  %v5006_v24 = vcombine.high %v23475_v42, %v23474_v32 }
 0x56f   : > { %v16862_v16 = vpop.permute.xlu0 %11345  ;;  %v5309_v27 = vcombine.low %v23487_v45, %v23486_v3  ;;  %v16893_v57 = vrot.slane %v5325_v38, %v14280_v31  ;;  %v16907_v7 = vrot.slane %v5293_v53, %v14280_v31  ;;  %v4165_v53 = vcombine.low %v16921_v19, %v16904_v18 }
 0x570   : > { %23483 = vst [vmem:[#allocation240_spill] sm:$0xff] %v16862_v16  ;;  %v16880_v16 = vpop.permute.xlu1 %11159  ;;  %v5022_v13 = vcombine.high %v23477_v21, %v23476_v36  ;;  %v5038_v10 = vcombine.high %v23479_v46, %v23478_v54  ;;  %v5068_v42 = vrot.slane %v5054_v1, %v14280_v31 }
 0x571   : > { %23488 = vst [vmem:[#allocation360_spill] sm:$0xff] %v16880_v16  ;;  %11573 = vrot.lane.b32.xlu0 %v4867_v22, %s22637_s2  ;;  %v4404_v22 = vrot.slane %v4390_v61, %v14315_v11  ;;  %v4596_v16 = vcombine.high %v4556_v41, %v4588_v35  ;;  %v16910_v62 = vrot.slane %v5309_v27, %v14280_v31 }
 0x572   : > { %11395 = vrot.lane.b32.xlu1 %v4183_v50, %s22592_s16  ;;  %v4374_v50 = vcombine.high %v23453_v33, %v16194_v40  ;;  %v16918_v35 = vrot.slane %v4070_v43, %v14280_v31  ;;  %v16927_v41 = vrot.slane %v5101_v30, %v14315_v11  ;;  %v4342_v33 = vcombine.high %v23456_v12, %v23455_v15 }
 0x573   : > { %v16897_v39 = vpop.permute.xlu0 %11349  ;;  %v4455_v38 = vcombine.low %v4404_v22, %v4436_v23  ;;  %v5373_v40 = vcombine.low %v16910_v62, %v16893_v57  ;;  %v4358_v27 = vcombine.high %v23458_v26, %v23457_v5  ;;  %v5077_v30 = vrot.slane %v5069_v8, %v14315_v11 }
 0x574   : > { %v16914_v61 = vpop.permute.xlu1 %11171  ;;  %v5341_v12 = vcombine.low %v16924_v60, %v16907_v7  ;;  %v4326_v26 = vcombine.high %v23461_v49, %v23460_v55  ;;  %v16950_v5 = vrot.slane %v4374_v50, %v14280_v31  ;;  %v4133_v8 = vcombine.low %v16940_v37, %v16918_v35 }
 0x575   : > { %23491 = vst [vmem:[#allocation329_spill] sm:$0xff] %v16914_v61  ;;  %11585 = vrot.lane.b32.xlu0 %v4596_v16, %s23492_s14  ;;  %v5133_v43 = vcombine.low %v5077_v30, %v16927_v41  ;;  %v16961_v34 = vrot.slane %v4342_v33, %v14280_v31  ;;  %v16964_v49 = vrot.slane %v4358_v27, %v14280_v31 }
 0x576   : > { %11399 = vrot.lane.b32.xlu1 %v4455_v38, %s22592_s16  ;;  %v5381_v2 = vrot.slane %v5373_v40, %v14315_v11  ;;  %v4173_v48 = vrot.slane %v4165_v53, %v14315_v11  ;;  %v16978_v50 = vrot.slane %v4326_v26, %v14280_v31  ;;  %v4456_v40 = vcombine.high %v4404_v22, %v4436_v23  ;;  %s23496_s16 = smov 32   ;;  %v23498_v26 = vld [vmem:[#allocation54_spill] sm:$0xff] }
 0x577   : > { %v16936_v16 = vpop.permute.xlu0 %11361  ;;  %v4437_v38 = vcombine.low %v16964_v49, %v16950_v5  ;;  %v5349_v32 = vrot.slane %v5341_v12, %v14315_v11  ;;  %v4141_v21 = vrot.slane %v4133_v8, %v14315_v11  ;;  %v5036_v27 = vrot.slane %v5022_v13, %v14280_v31  ;;  %v23501_v8 = vld [vmem:[#allocation39_spill] sm:$0xff] }
 0x578   : > { %v16952_v15 = vpop.permute.xlu1 %11175  ;;  %v4405_v36 = vcombine.low %v16978_v50, %v16961_v34  ;;  %v5020_v23 = vrot.slane %v5006_v24, %v14280_v31  ;;  %v5052_v22 = vrot.slane %v5038_v10, %v14280_v31  ;;  %v5102_v13 = vcombine.high %v16872_v29, %v16854_v6  ;;  %v23502_v24 = vld [vmem:[#allocation129_spill] sm:$0xff] }
 0x579   : > { %23493 = vst [vmem:[#allocation407_spill] sm:$0xff] %v16952_v15  ;;  %11589 = vrot.lane.b32.xlu0 %v4868_v14, %s23492_s14  ;;  %v5405_v46 = vcombine.low %v5349_v32, %v5381_v2  ;;  %v4185_v53 = vcombine.low %v4141_v21, %v4173_v48  ;;  %v17000_v12 = vrot.slane %v4437_v38, %v14315_v11  ;;  %v23503_v15 = vld [vmem:[#allocation99_spill] sm:$0xff] }
 0x57a   : > { %11411 = vrot.lane.b32.xlu1 %v4184_v58, %s22594_s20  ;;  %v23499_v58 = vld [vmem:[#allocation24_spill] sm:$0xff]  ;;  %v5597_v10 = vcombine.low %v23503_v15, %v23502_v24  ;;  %v4413_v38 = vrot.slane %v4405_v36, %v14315_v11  ;;  %v5134_v61 = vcombine.high %v5077_v30, %v16927_v41  ;;  %v5118_v6 = vcombine.high %v5052_v22, %v5068_v42 }
 0x57b   : > { %v16967_v55 = vpop.permute.xlu0 %11365  ;;  %v5549_v1 = vcombine.low %v23499_v58, %v23498_v26  ;;  %v5085_v58 = vcombine.low %v5020_v23, %v5036_v27  ;;  %v23504_v26 = vld [vmem:[#allocation114_spill] sm:$0xff]  ;;  %v5086_v29 = vcombine.high %v5020_v23, %v5036_v27  ;;  %v17033_v30 = vrot.slane %v5102_v13, %v14315_v11 }
 0x57c   : > { %23494 = vst [vmem:[#allocation376_spill] sm:$0xff] %v16967_v55  ;;  %v16982_v33 = vpop.permute.xlu1 %11187  ;;  %v4457_v15 = vcombine.low %v4413_v38, %v17000_v12  ;;  %v17030_v41 = vrot.slane %v5597_v10, %v14280_v31  ;;  %v23510_v10 = vld [vmem:[#allocation179_spill] sm:$0xff] }
 0x57d   : > { %23495 = vst [vmem:[#allocation208_spill] sm:$0xff] %v16982_v33  ;;  %11601 = vrot.lane.b32.xlu0 %v5133_v43, %s23496_s16  ;;  %v23500_v43 = vld [vmem:[#allocation69_spill] sm:$0xff]  ;;  %v5117_v33 = vcombine.low %v5052_v22, %v5068_v42  ;;  %v5374_v42 = vcombine.high %v16910_v62, %v16893_v57  ;;  %v17052_v13 = vrot.slane %v5085_v58, %v14315_v11 }
 0x57e   : > { %11415 = vrot.lane.b32.xlu1 %v4456_v40, %s22594_s20  ;;  %v5565_v40 = vcombine.low %v23501_v8, %v23500_v43  ;;  %v23505_v8 = vld [vmem:[#allocation84_spill] sm:$0xff]  ;;  %s23506_s20 = smov 36   ;;  %v17055_v57 = vrot.slane %v5118_v6, %v14315_v11  ;;  %v4166_v62 = vcombine.high %v16921_v19, %v16904_v18  ;;  %v4134_v58 = vcombine.high %v16940_v37, %v16918_v35  ;;  %v23511_v19 = vld [vmem:[#allocation295_spill] sm:$0xff] }
 0x57f   : > { %v16991_v54 = vpop.permute.xlu0 %11377  ;;  %v5581_v43 = vcombine.low %v23505_v8, %v23504_v26  ;;  %v17044_v23 = vrot.slane %v5117_v33, %v14315_v11  ;;  %v4186_v33 = vcombine.high %v4141_v21, %v4173_v48  ;;  %v17081_v6 = vrot.slane %v5374_v42, %v14315_v11 }
 0x580   : > { %v16996_v14 = vpop.permute.xlu1 %11191  ;;  %v4438_v42 = vcombine.high %v16964_v49, %v16950_v5  ;;  %v5326_v5 = vcombine.high %v23482_v44, %v23481_v4  ;;  %v17114_v49 = vrot.slane %v4134_v58, %v14315_v11  ;;  %v5294_v44 = vcombine.high %v23485_v47, %v23484_v20 }
 0x581   : > { %23497 = vst [vmem:[#allocation174_spill] sm:$0xff] %v16996_v14  ;;  %11605 = vrot.lane.b32.xlu0 %v5405_v46, %s23496_s16  ;;  %v5070_v14 = vcombine.high %v16866_v63, %v16869_v0  ;;  %v17024_v63 = vrot.slane %v5549_v1, %v14280_v31  ;;  %v17027_v0 = vrot.slane %v5565_v40, %v14280_v31  ;;  %v23508_v1 = vld [vmem:[#allocation149_spill] sm:$0xff] }
 0x582   : > { %11427 = vrot.lane.b32.xlu1 %v4185_v53, %s22596_s21  ;;  %v17047_v22 = vrot.slane %v5581_v43, %v14280_v31  ;;  %v23507_v53 = vld [vmem:[#allocation195_spill] sm:$0xff]  ;;  %v5137_v35 = vcombine.low %v17052_v13, %v17044_v23  ;;  %v5310_v4 = vcombine.high %v23487_v45, %v23486_v3  ;;  %v17146_v47 = vrot.slane %v5326_v5, %v14280_v31  ;;  %v23518_v3 = vld [vmem:[#allocation172_spill] sm:$0xff] }
 0x583   : > { %v17014_v46 = vpop.permute.xlu0 %11381  ;;  %v17041_v27 = vrot.slane %v5070_v14, %v14315_v11  ;;  %v4598_v40 = vcombine.high %v23508_v1, %v23507_v53  ;;  %v23509_v43 = vld [vmem:[#allocation211_spill] sm:$0xff]  ;;  %v23519_v45 = vld [vmem:[#allocation144_spill] sm:$0xff]  ;;  %v17162_v5 = vrot.slane %v5294_v44, %v14280_v31  ;;  %v23560_v14 = vld [vmem:[#allocation225_spill] sm:$0xff] }
 0x584   : > { %v17019_v55 = vpop.permute.xlu1 %11203  ;;  %v4614_v18 = vcombine.high %v23510_v10, %v23509_v43  ;;  %v23514_v53 = vld [vmem:[#allocation227_spill] sm:$0xff] }
 0x585   : > { %11617 = vrot.lane.b32.xlu0 %v5134_v61, %s23506_s20  ;;  %v5406_v61 = vcombine.high %v5349_v32, %v5381_v2  ;;  %v17065_v32 = vrot.slane %v5086_v29, %v14315_v11  ;;  %v5136_v29 = vcombine.high %v17041_v27, %v17033_v30  ;;  %v17088_v37 = vrot.slane %v4598_v40, %v14280_v31 }
 0x586   : > { %11431 = vrot.lane.b32.xlu1 %v4457_v15, %s22596_s21  ;;  %v5342_v15 = vcombine.high %v16924_v60, %v16907_v7  ;;  %v5135_v7 = vcombine.low %v17041_v27, %v17033_v30  ;;  %v23512_v60 = vld [vmem:[#allocation298_spill] sm:$0xff]  ;;  %v4458_v30 = vcombine.high %v4413_v38, %v17000_v12  ;;  %s23515_s21 = smov 40   ;;  %v17103_v27 = vrot.slane %v4166_v62, %v14315_v11 }
 0x587   : > { %v17038_v36 = vpop.permute.xlu0 %11393  ;;  %v4662_v48 = vcombine.high %v23512_v60, %v23511_v19  ;;  %v17107_v19 = vrot.slane %v4614_v18, %v14280_v31  ;;  %v23516_v60 = vld [vmem:[#allocation275_spill] sm:$0xff]  ;;  %v4406_v12 = vcombine.high %v16978_v50, %v16961_v34  ;;  %v5278_v34 = vcombine.high %v23490_v9, %v23489_v56  ;;  %v23520_v9 = vld [vmem:[#allocation140_spill] sm:$0xff] }
 0x588   : > { %v17061_v2 = vpop.permute.xlu1 %11207  ;;  %v5356_v40 = vrot.slane %v5342_v15, %v14315_v11  ;;  %v4187_v58 = vcombine.low %v17114_v49, %v17103_v27  ;;  %v23521_v56 = vcombine.low %v23519_v45, %v23520_v9 }
 0x589   : > { %11621 = vrot.lane.b32.xlu0 %v5406_v61, %s23506_s20  ;;  %v23513_v61 = vld [vmem:[#allocation259_spill] sm:$0xff]  ;;  %v17123_v15 = vrot.slane %v4662_v48, %v14315_v11  ;;  %v17170_v45 = vrot.slane %v5278_v34, %v14280_v31 }
 0x58a   : > { %11443 = vrot.lane.b32.xlu1 %v4186_v33, %s22598_s22  ;;  %v4630_v1 = vcombine.high %v23514_v53, %v23513_v61  ;;  %v5138_v33 = vcombine.high %v17052_v13, %v17044_v23  ;;  %v23517_v61 = vld [vmem:[#allocation243_spill] sm:$0xff]  ;;  %v5407_v62 = vcombine.low %v5356_v40, %v17081_v6  ;;  %v12974_v48 = vsel %vm12973_vm0, %v23521_v56, %v23518_v3  ;;  %v23528_v56 = vld [vmem:[#allocation238_spill] sm:$0xff] }
 0x58b   : > { %v17078_v21 = vpop.permute.xlu0 %11397  ;;  %v4646_v53 = vcombine.high %v23517_v61, %v23516_v60  ;;  %v4420_v61 = vrot.slane %v4406_v12, %v14315_v11 }
 0x58c   : > { %v17098_v10 = vpop.permute.xlu1 %11219  ;;  %v17126_v18 = vrot.slane %v4630_v1, %v14280_v31  ;;  %v23522_v1 = vld [vmem:[#allocation293_spill] sm:$0xff] }
 0x58d   : > { %11633 = vrot.lane.b32.xlu0 %v5135_v7, %s23515_s21  ;;  %v17140_v7 = vrot.slane %v4438_v42, %v14315_v11  ;;  %v17143_v20 = vrot.slane %v4646_v53, %v14280_v31  ;;  %v12979_v42 = vsel %vm22633_vm1, %v12974_v48, %v15872_v28 }
 0x58e   : > { %11447 = vrot.lane.b32.xlu1 %v4458_v30, %s22598_s22  ;;  %v23523_v30 = vld [vmem:[#allocation296_spill] sm:$0xff]  ;;  %v12984_v3 = vsel %vm22634_vm2, %v12979_v42, %v15932_v51  ;;  %s23524_s22 = smov 44   ;;  %v23526_v51 = vld [vmem:[#allocation435_spill] sm:$0xff]  ;;  %v5408_v42 = vcombine.high %v5356_v40, %v17081_v6  ;;  %v4188_v6 = vcombine.high %v17114_v49, %v17103_v27 }
 0x58f   : > { %v17119_v38 = vpop.permute.xlu0 %11409  ;;  %v4694_v60 = vcombine.high %v23523_v30, %v23522_v1  ;;  %v12989_v28 = vsel %vm12988_vm3, %v12984_v3, %v16015_v17  ;;  %v23529_v17 = vld [vmem:[#allocation110_spill] sm:$0xff]  ;;  %v23534_v40 = vld [vmem:[#allocation171_spill] sm:$0xff] }
 0x590   : > { %v17134_v50 = vpop.permute.xlu1 %11223  ;;  %v12994_v48 = vsel %vm22639_vm4, %v12989_v28, %v23528_v56  ;;  %v23530_v3 = vld [vmem:[#allocation50_spill] sm:$0xff] }
 0x591   : > { %11637 = vrot.lane.b32.xlu0 %v5407_v62, %s23515_s21  ;;  %v17165_v62 = vrot.slane %v5310_v4, %v14280_v31  ;;  %v23525_v4 = vld [vmem:[#allocation438_spill] sm:$0xff]  ;;  %v12999_v30 = vsel %vm22635_vm5, %v12994_v48, %v16130_v52  ;;  %v23535_v48 = vld [vmem:[#allocation433_spill] sm:$0xff] }
 0x592   : > { %11459 = vrot.lane.b32.xlu1 %v4187_v58, %s22600_s24  ;;  %v4459_v58 = vcombine.low %v4420_v61, %v17140_v7  ;;  %v23527_v9 = vcombine.low %v23525_v4, %v23526_v51  ;;  %v13004_v4 = vsel %vm22636_vm6, %v12999_v30, %v16172_v25  ;;  %v23531_v51 = vld [vmem:[#allocation138_spill] sm:$0xff] }
 0x593   : > { %v17159_v53 = vpop.permute.xlu0 %11413  ;;  %v5389_v44 = vcombine.low %v17165_v62, %v17146_v47 }
 0x594   : > { %v17174_v12 = vpop.permute.xlu1 %11235  ;;  %v12976_v34 = vsel %vm12973_vm0, %v23527_v9, %v15853_v59  ;;  %v5357_v59 = vcombine.low %v17170_v45, %v17162_v5  ;;  %v23532_v9 = vld [vmem:[#allocation358_spill] sm:$0xff] }
 0x595   : > { %11649 = vrot.lane.b32.xlu0 %v5136_v29, %s23524_s22  ;;  %v12981_v1 = vsel %vm22633_vm1, %v12976_v34, %v23529_v17  ;;  %v17215_v17 = vrot.slane %v4694_v60, %v14315_v11  ;;  %v17225_v49 = vrot.slane %v5389_v44, %v14315_v11  ;;  %v4460_v44 = vcombine.high %v4420_v61, %v17140_v7 }
 0x596   : > { %11463 = vrot.lane.b32.xlu1 %v4459_v58, %s22600_s24  ;;  %v12986_v28 = vsel %vm22634_vm2, %v12981_v1, %v23530_v3  ;;  %v13009_v58 = vsel %vm22602_vm7, %v13004_v4, %v23532_v9  ;;  %v23536_v1 = vld [vmem:[#allocation499_spill] sm:$0xff]  ;;  %v23537_v3 = vld [vmem:[#allocation34_spill] sm:$0xff]  ;;  %s23542_s24 = smov 48  }
 0x597   : > { %v17192_v29 = vpop.permute.xlu0 %11425  ;;  %v12991_v52 = vsel %vm12988_vm3, %v12986_v28, %v23531_v51  ;;  %v13014_v25 = vsel %vm22603_vm8, %v13009_v58, %v23535_v48  ;;  %v23539_v51 = vld [vmem:[#allocation109_spill] sm:$0xff]  ;;  %v23540_v9 = vld [vmem:[#allocation374_spill] sm:$0xff] }
 0x598   : > { %v17205_v34 = vpop.permute.xlu1 %11239  ;;  %v12996_v56 = vsel %vm22639_vm4, %v12991_v52, %v23534_v40  ;;  %v13019_v28 = vsel %vm22604_vm9, %v13014_v25, %v23537_v3  ;;  %v17232_v52 = vrot.slane %v5357_v59, %v14315_v11  ;;  %v23541_v40 = vld [vmem:[#allocation419_spill] sm:$0xff]  ;;  %v23543_v48 = vld [vmem:[#allocation294_spill] sm:$0xff] }
 0x599   : > { %23533 = vst [vmem:[#allocation256_spill] sm:$0xff] %v17205_v34  ;;  %11653 = vrot.lane.b32.xlu0 %v5408_v42, %s23524_s22  ;;  %v13001_v30 = vsel %vm22635_vm5, %v12996_v56, %v23536_v1  ;;  %v23538_v42 = vld [vmem:[#allocation514_spill] sm:$0xff]  ;;  %v13024_v60 = vsel %vm22606_vm10, %v13019_v28, %v23539_v51  ;;  %v23544_v1 = vld [vmem:[#allocation324_spill] sm:$0xff]  ;;  %v23565_v59 = vld [vmem:[#allocation139_spill] sm:$0xff] }
 0x59a   : > { %11475 = vrot.lane.b32.xlu1 %v4188_v6, %s22609_s26  ;;  %v13006_v4 = vsel %vm22636_vm6, %v13001_v30, %v23538_v42  ;;  %v13029_v6 = vsel %vm22605_vm11, %v13024_v60, %v23541_v40  ;;  %v23545_v3 = vld [vmem:[#allocation94_spill] sm:$0xff]  ;;  %v23546_v42 = vld [vmem:[#allocation292_spill] sm:$0xff]  ;;  %v5409_v61 = vcombine.low %v17232_v52, %v17225_v49  ;;  %v23548_v60 = vld [vmem:[#allocation175_spill] sm:$0xff] }
 0x59b   : > { %v17222_v27 = vpop.permute.xlu0 %11429  ;;  %v13011_v58 = vsel %vm22602_vm7, %v13006_v4, %v23540_v9  ;;  %v13034_v30 = vsel %vm22607_vm12, %v13029_v6, %v23544_v1  ;;  %vm22613_vm7 = vcmask 556032   ;;  %v23547_v4 = vld [vmem:[#allocation49_spill] sm:$0xff]  ;;  %v23550_v40 = vld [vmem:[#allocation303_spill] sm:$0xff] }
 0x59c   : > { %v17238_v56 = vpop.permute.xlu1 %11251  ;;  %v13016_v25 = vsel %vm22603_vm8, %v13011_v58, %v23543_v48  ;;  %v13039_v7 = vsel %vm22608_vm13, %v13034_v30, %v23546_v42  ;;  %vm22614_vm8 = vcmask 588800   ;;  %v23549_v58 = vld [vmem:[#allocation302_spill] sm:$0xff]  ;;  %v23551_v48 = vld [vmem:[#allocation388_spill] sm:$0xff]  ;;  %v23552_v1 = vld [vmem:[#allocation143_spill] sm:$0xff] }
 0x59d   : > { %11665 = vrot.lane.b32.xlu0 %v5137_v35, %s23542_s24  ;;  %v13021_v28 = vsel %vm22604_vm9, %v13016_v25, %v23545_v3  ;;  %v13044_v9 = vsel %vm22612_vm14, %v13039_v7, %v23548_v60  ;;  %v4726_v6 = vcombine.high %v23550_v40, %v23549_v58  ;;  %vm22615_vm9 = vcmask 621568   ;;  %v23554_v42 = vld [vmem:[#allocation373_spill] sm:$0xff]  ;;  %v23657_v34 = vld [vmem:[#allocation83_spill] sm:$0xff] }
 0x59e   : > { %11479 = vrot.lane.b32.xlu1 %v4460_v44, %s22609_s26  ;;  %v13026_v51 = vsel %vm22606_vm10, %v13021_v28, %v23547_v4  ;;  %v13049_v44 = vsel %vm22611_vm15, %v13044_v9, %v23552_v1  ;;  %v4727_v3 = vcombine.low %v17123_v15, %v17215_v17  ;;  %v5358_v28 = vcombine.high %v17170_v45, %v17162_v5  ;;  %v23555_v4 = vld [vmem:[#allocation469_spill] sm:$0xff]  ;;  %v23558_v45 = vld [vmem:[#allocation288_spill] sm:$0xff]  ;;  %s23566_s26 = smov 52  }
 0x59f   : > { %v17256_v35 = vpop.permute.xlu0 %11441  ;;  %v13031_v25 = vsel %vm22605_vm11, %v13026_v51, %v23551_v48  ;;  %v13054_v51 = vsel %vm22613_vm7, %v13049_v44, %v23555_v4  ;;  %vm22616_vm11 = vcmask 654336   ;;  %v5390_v60 = vcombine.high %v17165_v62, %v17146_v47  ;;  %v23556_v9 = vld [vmem:[#allocation241_spill] sm:$0xff]  ;;  %v23561_v4 = vld [vmem:[#allocation148_spill] sm:$0xff] }
 0x5a0   : > { %v17270_v30 = vpop.permute.xlu1 %11255  ;;  %v13036_v7 = vsel %vm22607_vm12, %v13031_v25, %v23554_v42  ;;  %vm13073_vm10 = vcmask 687104   ;;  %v23559_v25 = vld [vmem:[#allocation65_spill] sm:$0xff]  ;;  %vm22619_vm12 = vcmask 719872   ;;  %v5614_v40 = vcombine.high %v17024_v63, %v17027_v0 }
 0x5a1   : > { %23553 = vst [vmem:[#allocation224_spill] sm:$0xff] %v17270_v30  ;;  %11669 = vrot.lane.b32.xlu0 %v5409_v61, %s23542_s24  ;;  %v13041_v48 = vsel %vm22608_vm13, %v13036_v7, %v23556_v9  ;;  %v23557_v61 = vld [vmem:[#allocation437_spill] sm:$0xff]  ;;  %v4966_v42 = vcombine.high %v23559_v25, %v23558_v45  ;;  %vm22622_vm13 = vcmask 752640   ;;  %v5410_v25 = vcombine.high %v17232_v52, %v17225_v49  ;;  %v23652_v30 = vld [vmem:[#allocation23_spill] sm:$0xff] }
 0x5a2   : > { %v13059_v1 = vsel %vm22614_vm8, %v13054_v51, %v23557_v61  ;;  %11491 = vrot.lane.b32.xlu1 %v4726_v6, %s22617_s17  ;;  %v13046_v44 = vsel %vm22612_vm14, %v13041_v48, %v23560_v14  ;;  %v23562_v62 = vld [vmem:[#allocation341_spill] sm:$0xff]  ;;  %v23564_v61 = vld [vmem:[#allocation191_spill] sm:$0xff]  ;;  %vm13093_vm14 = vcmask 818176   ;;  %v17326_v49 = vrot.slane %v5358_v28, %v14315_v11 }
 0x5a3   : > { %v17288_v5 = vpop.permute.xlu0 %11445  ;;  %v13064_v47 = vsel %vm22615_vm9, %v13059_v1, %v23561_v4  ;;  %v13051_v7 = vsel %vm22611_vm15, %v13046_v44, %v23562_v62  ;;  %v23563_v9 = vld [vmem:[#allocation445_spill] sm:$0xff]  ;;  %v4998_v43 = vcombine.high %v23565_v59, %v23564_v61  ;;  %v23567_v14 = vld [vmem:[#allocation515_spill] sm:$0xff]  ;;  %v23568_v1 = vld [vmem:[#allocation22_spill] sm:$0xff]  ;;  %vm13088_vm15 = vcmask 785408  }
 0x5a4   : > { %v13069_v51 = vsel %vm22616_vm11, %v13064_v47, %v23563_v9  ;;  %v17300_v6 = vpop.permute.xlu1 %11267  ;;  %v13056_v48 = vsel %vm22613_vm7, %v13051_v7, %v23567_v14  ;;  %v23569_v44 = vld [vmem:[#allocation286_spill] sm:$0xff]  ;;  %v23570_v4 = vld [vmem:[#allocation35_spill] sm:$0xff]  ;;  %vm13098_vm7 = vcmask 850944   ;;  %v23575_v52 = vld [vmem:[#allocation97_spill] sm:$0xff] }
 0x5a5   : > { %11681 = vrot.lane.b32.xlu0 %v5138_v33, %s23566_s26  ;;  %v13074_v45 = vsel %vm13073_vm10, %v13069_v51, %v23568_v1  ;;  %v4934_v47 = vcombine.high %v23570_v4, %v23569_v44  ;;  %v23571_v62 = vld [vmem:[#allocation146_spill] sm:$0xff]  ;;  %v23573_v33 = vld [vmem:[#allocation443_spill] sm:$0xff]  ;;  %v23574_v51 = vld [vmem:[#allocation240_spill] sm:$0xff]  ;;  %v17336_v1 = vrot.slane %v4966_v42, %v14315_v11  ;;  %v17343_v4 = vrot.slane %v5390_v60, %v14315_v11 }
 0x5a6   : > { %v13061_v9 = vsel %vm22614_vm8, %v13056_v48, %v23571_v62  ;;  %v23572_v61 = vld [vmem:[#allocation82_spill] sm:$0xff]  ;;  %11495 = vrot.lane.b32.xlu1 %v4998_v43, %s22617_s17  ;;  %vm13103_vm8 = vcmask 883712   ;;  %v23578_v62 = vld [vmem:[#allocation391_spill] sm:$0xff]  ;;  %s13612_s17 = sshll.u32 %s13953_s23, 7  ;;  %s23865_s23 = smov 16  }
 0x5a7   : > { %v13079_v23 = vsel %vm22619_vm12, %v13074_v45, %v23572_v61  ;;  %v11458_v13 = vpop.permute.xlu0 %11457  ;;  %v13066_v7 = vsel %vm22615_vm9, %v13061_v9, %v23573_v33  ;;  %v23577_v45 = vld [vmem:[#allocation37_spill] sm:$0xff]  ;;  %vm13108_vm9 = vcmask 916480   ;;  %v4948_v42 = vrot.slane %v4934_v47, %v14315_v11  ;;  %v23580_v33 = vld [vmem:[#allocation524_spill] sm:$0xff] }
 0x5a8   : > { %v13084_v14 = vsel %vm22622_vm13, %v13079_v23, %v23574_v51  ;;  %v13071_v48 = vsel %vm22616_vm11, %v13066_v7, %v23575_v52  ;;  %v17332_v43 = vpop.permute.xlu1 %11271  ;;  %vm13113_vm11 = vcmask 949248   ;;  %v23579_v23 = vld [vmem:[#allocation530_spill] sm:$0xff]  ;;  %v23581_v51 = vld [vmem:[#allocation376_spill] sm:$0xff]  ;;  %v23583_v52 = vcombine.low %v17065_v32, %v17055_v57 }
 0x5a9   : > { %v13089_v61 = vsel %vm13088_vm15, %v13084_v14, %v16936_v16  ;;  %23576 = vst [vmem:[#allocation345_spill] sm:$0xff] %v17332_v43  ;;  %11685 = vrot.lane.b32.xlu0 %v5410_v25, %s23566_s26  ;;  %v13076_v44 = vsel %vm13073_vm10, %v13071_v48, %v23577_v45  ;;  %v4999_v47 = vcombine.low %v4948_v42, %v17336_v1  ;;  %v23585_v48 = vld [vmem:[#allocation393_spill] sm:$0xff] }
 0x5aa   : > { %v13094_v28 = vsel %vm13093_vm14, %v13089_v61, %v16991_v54  ;;  %v13081_v16 = vsel %vm22619_vm12, %v13076_v44, %v23578_v62  ;;  %11507 = vrot.lane.b32.xlu1 %v4727_v3, %s22623_s25  ;;  %v4918_v54 = vcombine.high %v23580_v33, %v23579_v23  ;;  %vm13118_vm12 = vcmask 982016   ;;  %v23586_v44 = vld [vmem:[#allocation503_spill] sm:$0xff] }
 0x5ab   : > { %v13099_v9 = vsel %vm13098_vm7, %v13094_v28, %v17038_v36  ;;  %v11462_v25 = vpop.permute.xlu0 %11461  ;;  %v13086_v60 = vsel %vm22622_vm13, %v13081_v16, %v16897_v39  ;;  %vm13123_vm13 = vcmask 1014784   ;;  %v23584_v39 = vld [vmem:[#allocation424_spill] sm:$0xff]  ;;  %v23587_v28 = vld [vmem:[#allocation471_spill] sm:$0xff] }
 0x5ac   : > { %v13104_v7 = vsel %vm13103_vm8, %v13099_v9, %v17119_v38  ;;  %v13091_v36 = vsel %vm13088_vm15, %v13086_v60, %v23581_v51  ;;  %v17362_v14 = vpop.permute.xlu1 %11283  ;;  %v5869_v38 = vcombine.low %v23585_v48, %v23584_v39  ;;  %v4886_v62 = vcombine.high %v23587_v28, %v23586_v44  ;;  %v23588_v16 = vld [vmem:[#allocation20_spill] sm:$0xff]  ;;  %v23591_v51 = vld [vmem:[#allocation331_spill] sm:$0xff]  ;;  %v23592_v44 = vld [vmem:[#allocation409_spill] sm:$0xff] }
 0x5ad   : > { %v13109_v3 = vsel %vm13108_vm9, %v13104_v7, %v17192_v29  ;;  %11697 = vrot.lane.b32.xlu0 %v23583_v52, %s23582_s13  ;;  %v13096_v61 = vsel %vm13093_vm14, %v13091_v36, %v17014_v46  ;;  %v5411_v29 = vcombine.low %v17326_v49, %v17343_v4  ;;  %v23589_v9 = vld [vmem:[#allocation516_spill] sm:$0xff]  ;;  %v23590_v7 = vld [vmem:[#allocation362_spill] sm:$0xff] }
 0x5ae   : > { %v13114_v45 = vsel %vm13113_vm11, %v13109_v3, %v17256_v35  ;;  %v4902_v23 = vcombine.high %v23589_v9, %v23588_v16  ;;  %v13101_v33 = vsel %vm13098_vm7, %v13096_v61, %v17078_v21  ;;  %11511 = vrot.lane.b32.xlu1 %v4999_v47, %s22623_s25  ;;  %v5837_v35 = vcombine.low %v23591_v51, %v23590_v7  ;;  %v23593_v28 = vld [vmem:[#allocation378_spill] sm:$0xff]  ;;  %v23594_v21 = vld [vmem:[#allocation488_spill] sm:$0xff]  ;;  %v23595_v61 = vld [vmem:[#allocation441_spill] sm:$0xff]  ;;  %s17403_s25 = scalar_lea.vmem [#allocation5], %s13612_s17  ;;  %s23601_s17 = smov 60  }
 0x5af   : > { %v13119_v60 = vsel %vm13118_vm12, %v13114_v45, %v11458_v13  ;;  %v11474_v46 = vpop.permute.xlu0 %11473  ;;  %v13106_v36 = vsel %vm13103_vm8, %v13101_v33, %v17159_v53  ;;  %v4728_v3 = vcombine.high %v17123_v15, %v17215_v17  ;;  %v5853_v16 = vcombine.low %v23593_v28, %v23592_v44  ;;  %v23597_v53 = vld [vmem:[#allocation347_spill] sm:$0xff]  ;;  %v23598_v17 = vld [vmem:[#allocation301_spill] sm:$0xff] }
 0x5b0   : > { %v13124_v52 = vsel %vm13123_vm13, %v13119_v60, %v11474_v46  ;;  %v4870_v13 = vcombine.high %v23595_v61, %v23594_v21  ;;  %v17397_v47 = vrot.slane %v4918_v54, %v14280_v31  ;;  %v13111_v45 = vsel %vm13108_vm9, %v13106_v36, %v17222_v27  ;;  %v17401_v9 = vpop.permute.xlu1 %11287 }
 0x5b1   : > { %23596 = vst [vmem:[#allocation299_spill] sm:$0xff] %v17401_v9  ;;  %13500 = vst [vmem:[%s17403_s25] sm:$0xff] %v13124_v52  ;;  %11701 = vrot.lane.b32.xlu0 %v5411_v29, %s23582_s13  ;;  %v4677_v15 = vcombine.low %v17088_v37, %v17107_v19  ;;  %v5821_v33 = vcombine.low %v23598_v17, %v23597_v53  ;;  %v13116_v54 = vsel %vm13113_vm11, %v13111_v45, %v17288_v5 }
 0x5b2   : > { %v5140_v27 = vcombine.high %v17065_v32, %v17055_v57  ;;  %v17416_v60 = vrot.slane %v5869_v38, %v14280_v31  ;;  %v17419_v46 = vrot.slane %v4886_v62, %v14280_v31  ;;  %v17422_v29 = vrot.slane %v4902_v23, %v14280_v31  ;;  %11523 = vrot.lane.b32.xlu1 %v4728_v3, %s22625_s27 }
 0x5b3   : > { %v13121_v36 = vsel %vm13118_vm12, %v13116_v54, %v11462_v25  ;;  %v11478_v52 = vpop.permute.xlu0 %11477  ;;  %v5613_v5 = vcombine.low %v17024_v63, %v17027_v0  ;;  %v17429_v57 = vrot.slane %v5837_v35, %v14280_v31  ;;  %v23599_v38 = vcombine.low %v17126_v18, %v17143_v20 }
 0x5b4   : > { %v13126_v32 = vsel %vm13123_vm13, %v13121_v36, %v11478_v52  ;;  %v17437_v23 = vrot.slane %v5853_v16, %v14280_v31  ;;  %v17440_v25 = vrot.slane %v4870_v13, %v14280_v31  ;;  %v4981_v3 = vcombine.low %v17422_v29, %v17397_v47  ;;  %v17444_v21 = vpop.permute.xlu1 %11299 }
 0x5b5   : > { %v4717_v62 = vrot.slane %v23599_v38, %v14315_v11  ;;  %23600 = vst [vmem:[#allocation192_spill] sm:$0xff] %v17444_v21  ;;  %v5000_v35 = vcombine.high %v4948_v42, %v17336_v1  ;;  %13508 = vst [vmem:[%s17403_s25 + $0x40] sm:$0xff] %v13126_v32  ;;  %11713 = vrot.lane.b32.xlu0 %v5140_v27, %s23601_s17  ;;  %v4685_v61 = vrot.slane %v4677_v15, %v14315_v11  ;;  %v23656_v21 = vld [vmem:[#allocation113_spill] sm:$0xff] }
 0x5b6   : > { %v23602_v16 = vcombine.low %v17047_v22, %v17030_v41  ;;  %v17455_v13 = vrot.slane %v5821_v33, %v14280_v31  ;;  %v5917_v54 = vcombine.low %v17437_v23, %v17416_v60  ;;  %v4949_v36 = vcombine.low %v17440_v25, %v17419_v46 }
 0x5b7   : > { %11527 = vrot.lane.b32.xlu1 %v5000_v35, %s22625_s27  ;;  %v17462_v1 = vpop.permute.xlu0 %11489  ;;  %v5412_v42 = vcombine.high %v17326_v49, %v17343_v4  ;;  %v4729_v33 = vcombine.low %v4685_v61, %v4717_v62  ;;  %v4989_v52 = vrot.slane %v4981_v3, %v14315_v11  ;;  %v5621_v32 = vrot.slane %v5613_v5, %v14315_v11  ;;  %s23607_s27 = smov 64  }
 0x5b8   : > { %v5653_v45 = vrot.slane %v23602_v16, %v14315_v11  ;;  %23603 = vst [vmem:[#allocation141_spill] sm:$0xff] %v17462_v1  ;;  %v5885_v15 = vcombine.low %v17455_v13, %v17429_v57  ;;  %v17468_v27 = vpop.permute.xlu1 %11303  ;;  %v4957_v38 = vrot.slane %v4949_v36, %v14315_v11  ;;  %v5925_v49 = vrot.slane %v5917_v54, %v14315_v11 }
 0x5b9   : > { %23604 = vst [vmem:[#allocation63_spill] sm:$0xff] %v17468_v27  ;;  %11717 = vrot.lane.b32.xlu0 %v5412_v42, %s23601_s17  ;;  %v4710_v36 = vcombine.high %v17126_v18, %v17143_v20  ;;  %v4730_v58 = vcombine.high %v4685_v61, %v4717_v62  ;;  %v5646_v54 = vcombine.high %v17047_v22, %v17030_v41  ;;  %v23635_v27 = vld [vmem:[#allocation535_spill] sm:$0xff] }
 0x5ba   : > { %v5677_v16 = vcombine.low %v5621_v32, %v5653_v45  ;;  %v5001_v59 = vcombine.low %v4957_v38, %v4989_v52  ;;  %v5893_v42 = vrot.slane %v5885_v15, %v14315_v11  ;;  %v5678_v15 = vcombine.high %v5621_v32, %v5653_v45 }
 0x5bb   : > { %11539 = vrot.lane.b32.xlu1 %v4729_v33, %s22627_s28  ;;  %v17475_v35 = vpop.permute.xlu0 %11493  ;;  %v4982_v18 = vcombine.high %v17422_v29, %v17397_v47  ;;  %v5002_v62 = vcombine.high %v4957_v38, %v4989_v52  ;;  %v4724_v41 = vrot.slane %v4710_v36, %v14315_v11  ;;  %v17506_v22 = vrot.slane %v5646_v54, %v14315_v11  ;;  %v23614_v47 = vld [vmem:[#allocation274_spill] sm:$0xff]  ;;  %v23621_v36 = vld [vmem:[#allocation177_spill] sm:$0xff] }
 0x5bc   : > { %23605 = vst [vmem:[#allocation500_spill] sm:$0xff] %v17475_v35  ;;  %v17478_v4 = vpop.permute.xlu1 %11315  ;;  %v5949_v5 = vcombine.low %v5893_v42, %v5925_v49  ;;  %v23615_v29 = vld [vmem:[#allocation242_spill] sm:$0xff]  ;;  %v5886_v45 = vcombine.high %v17455_v13, %v17429_v57  ;;  %v23628_v35 = vld [vmem:[#allocation24_spill] sm:$0xff]  ;;  %v5854_v9 = vcombine.high %v23593_v28, %v23592_v44  ;;  %v5822_v28 = vcombine.high %v23598_v17, %v23597_v53 }
 0x5bd   : > { %23606 = vst [vmem:[#allocation467_spill] sm:$0xff] %v17478_v4  ;;  %11729 = vrot.lane.b32.xlu0 %v5677_v16, %s23607_s27  ;;  %v4678_v16 = vcombine.high %v17088_v37, %v17107_v19  ;;  %v5918_v37 = vcombine.high %v17437_v23, %v17416_v60  ;;  %v4950_v19 = vcombine.high %v17440_v25, %v17419_v46  ;;  %v23617_v23 = vld [vmem:[#allocation69_spill] sm:$0xff]  ;;  %v23618_v25 = vld [vmem:[#allocation39_spill] sm:$0xff]  ;;  %v23622_v57 = vld [vmem:[#allocation258_spill] sm:$0xff] }
 0x5be   : > { %v5189_v61 = vcombine.low %v23615_v29, %v23614_v47  ;;  %v17524_v60 = vrot.slane %v4982_v18, %v14315_v11  ;;  %v5628_v46 = vrot.slane %v5614_v40, %v14315_v11  ;;  %v5566_v38 = vcombine.high %v23618_v25, %v23617_v23  ;;  %v23623_v13 = vld [vmem:[#allocation226_spill] sm:$0xff]  ;;  %v23626_v23 = vld [vmem:[#allocation147_spill] sm:$0xff] }
 0x5bf   : > { %11543 = vrot.lane.b32.xlu1 %v5001_v59, %s22627_s28  ;;  %v17483_v3 = vpop.permute.xlu0 %11505  ;;  %s23612_s28 = smov 68   ;;  %v4692_v63 = vrot.slane %v4678_v16, %v14315_v11  ;;  %v5173_v16 = vcombine.low %v23623_v13, %v23622_v57  ;;  %v17627_v17 = vrot.slane %v5854_v9, %v14280_v31 }
 0x5c0   : > { %23608 = vst [vmem:[#allocation531_spill] sm:$0xff] %v17483_v3  ;;  %v17487_v33 = vpop.permute.xlu1 %11319  ;;  %v5679_v40 = vcombine.low %v5628_v46, %v17506_v22  ;;  %v5680_v44 = vcombine.high %v5628_v46, %v17506_v22 }
 0x5c1   : > { %23609 = vst [vmem:[#allocation517_spill] sm:$0xff] %v17487_v33  ;;  %11733 = vrot.lane.b32.xlu0 %v5949_v5, %s23607_s27  ;;  %v4731_v32 = vcombine.low %v4692_v63, %v4724_v41  ;;  %v23620_v5 = vld [vmem:[#allocation210_spill] sm:$0xff]  ;;  %v4732_v4 = vcombine.high %v4692_v63, %v4724_v41 }
 0x5c2   : > { %v5157_v54 = vcombine.low %v23621_v36, %v23620_v5  ;;  %v23634_v33 = vld [vmem:[#allocation470_spill] sm:$0xff] }
 0x5c3   : > { %11555 = vrot.lane.b32.xlu1 %v4730_v58, %s22629_s29  ;;  %v17495_v59 = vpop.permute.xlu0 %11509  ;;  %v5950_v58 = vcombine.high %v5893_v42, %v5925_v49  ;;  %v23619_v49 = vld [vmem:[#allocation99_spill] sm:$0xff] }
 0x5c4   : > { %23610 = vst [vmem:[#allocation485_spill] sm:$0xff] %v17495_v59  ;;  %v17501_v20 = vpop.permute.xlu1 %11331  ;;  %v5598_v42 = vcombine.high %v23619_v49, %v23502_v24  ;;  %v23625_v24 = vld [vmem:[#allocation194_spill] sm:$0xff]  ;;  %v17546_v49 = vrot.slane %v5189_v61, %v14280_v31  ;;  %v17564_v61 = vrot.slane %v5157_v54, %v14280_v31 }
 0x5c5   : > { %23611 = vst [vmem:[#allocation436_spill] sm:$0xff] %v17501_v20  ;;  %11745 = vrot.lane.b32.xlu0 %v5678_v15, %s23612_s28  ;;  %v4964_v15 = vrot.slane %v4950_v19, %v14315_v11  ;;  %v5141_v25 = vcombine.low %v23626_v23, %v23625_v24  ;;  %v23627_v59 = vld [vmem:[#allocation54_spill] sm:$0xff]  ;;  %v23630_v19 = vld [vmem:[#allocation108_spill] sm:$0xff]  ;;  %v23638_v20 = vld [vmem:[#allocation487_spill] sm:$0xff] }
 0x5c7   : > { %11559 = vrot.lane.b32.xlu1 %v5002_v62, %s22629_s29  ;;  %v17514_v0 = vpop.permute.xlu0 %11521  ;;  %v5932_v62 = vrot.slane %v5918_v37, %v14315_v11  ;;  %v5003_v1 = vcombine.low %v4964_v15, %v17524_v60  ;;  %s23632_s29 = smov 72   ;;  %v17561_v37 = vrot.slane %v5598_v42, %v14280_v31 }
 0x5c8   : > { %23613 = vst [vmem:[#allocation126_spill] sm:$0xff] %v17514_v0  ;;  %v17520_v52 = vpop.permute.xlu1 %11335  ;;  %v23629_v0 = vld [vmem:[#allocation325_spill] sm:$0xff] }
 0x5c9   : > { %23616 = vst [vmem:[#allocation96_spill] sm:$0xff] %v17520_v52  ;;  %11749 = vrot.lane.b32.xlu0 %v5950_v58, %s23612_s28  ;;  %v5582_v58 = vcombine.high %v23505_v8, %v23504_v26  ;;  %v5461_v3 = vcombine.low %v23630_v19, %v23629_v0  ;;  %v5900_v26 = vrot.slane %v5886_v45, %v14315_v11  ;;  %v23633_v52 = vld [vmem:[#allocation502_spill] sm:$0xff]  ;;  %v23636_v45 = vld [vmem:[#allocation519_spill] sm:$0xff] }
 0x5ca   : > { %v17558_v8 = vrot.slane %v5566_v38, %v14280_v31 }
 0x5cb   : > { %11571 = vrot.lane.b32.xlu1 %v4731_v32, %s22637_s2  ;;  %v17537_v18 = vpop.permute.xlu0 %11525  ;;  %v5550_v32 = vcombine.high %v23628_v35, %v23627_v59  ;;  %v17567_v35 = vrot.slane %v5173_v16, %v14280_v31  ;;  %v5870_v59 = vcombine.high %v23585_v48, %v23584_v39  ;;  %v5951_v42 = vcombine.low %v5900_v26, %v5932_v62 }
 0x5cc   : > { %23624 = vst [vmem:[#allocation51_spill] sm:$0xff] %v17537_v18  ;;  %v17552_v18 = vpop.permute.xlu1 %11347  ;;  %v17579_v54 = vrot.slane %v5582_v58, %v14280_v31  ;;  %v17582_v16 = vrot.slane %v5141_v25, %v14280_v31  ;;  %v5838_v48 = vcombine.high %v23591_v51, %v23590_v7 }
 0x5cd   : > { %23631 = vst [vmem:[#allocation21_spill] sm:$0xff] %v17552_v18  ;;  %11761 = vrot.lane.b32.xlu0 %v5679_v40, %s23632_s29  ;;  %v5429_v40 = vcombine.low %v23634_v33, %v23633_v52  ;;  %v5445_v18 = vcombine.low %v23636_v45, %v23635_v27  ;;  %v5237_v39 = vcombine.low %v17567_v35, %v17546_v49 }
 0x5ce   : > { %v17599_v25 = vrot.slane %v5550_v32, %v14280_v31  ;;  %v5661_v7 = vcombine.low %v17579_v54, %v17561_v37  ;;  %v5205_v51 = vcombine.low %v17582_v16, %v17564_v61  ;;  %v17623_v22 = vrot.slane %v5838_v48, %v14280_v31 }
 0x5cf   : > { %11575 = vrot.lane.b32.xlu1 %v5003_v1, %s22637_s2  ;;  %v17576_v38 = vpop.permute.xlu0 %11537  ;;  %v23639_v1 = vld [vmem:[#allocation439_spill] sm:$0xff]  ;;  %v17612_v41 = vrot.slane %v5429_v40, %v14280_v31  ;;  %v17615_v63 = vrot.slane %v5445_v18, %v14280_v31  ;;  %v5245_v53 = vrot.slane %v5237_v39, %v14315_v11  ;;  %v17641_v39 = vrot.slane %v5822_v28, %v14280_v31  ;;  %s23712_s2 = smov 96  }
 0x5d0   : > { %23637 = vst [vmem:[#allocation66_spill] sm:$0xff] %v17576_v38  ;;  %v5413_v43 = vcombine.low %v23639_v1, %v23638_v20  ;;  %v17593_v38 = vrot.slane %v5461_v3, %v14280_v31  ;;  %v17595_v58 = vpop.permute.xlu1 %11351  ;;  %v17609_v3 = vrot.slane %v5870_v59, %v14280_v31  ;;  %v5004_v59 = vcombine.high %v4964_v15, %v17524_v60 }
 0x5d1   : > { %23640 = vst [vmem:[#allocation36_spill] sm:$0xff] %v17595_v58  ;;  %11765 = vrot.lane.b32.xlu0 %v5951_v42, %s23632_s29  ;;  %v5629_v42 = vcombine.low %v17599_v25, %v17558_v8  ;;  %v5213_v40 = vrot.slane %v5205_v51, %v14315_v11  ;;  %v5669_v48 = vrot.slane %v5661_v7, %v14315_v11 }
 0x5d2   : > { %v17630_v46 = vrot.slane %v5413_v43, %v14280_v31  ;;  %v5509_v18 = vcombine.low %v17615_v63, %v17593_v38  ;;  %v5933_v43 = vcombine.low %v17627_v17, %v17609_v3  ;;  %v5952_v60 = vcombine.high %v5900_v26, %v5932_v62 }
 0x5d3   : > { %11587 = vrot.lane.b32.xlu1 %v4732_v4, %s23492_s14  ;;  %v17618_v32 = vpop.permute.xlu0 %11541  ;;  %v5901_v15 = vcombine.low %v17641_v39, %v17623_v22  ;;  %v5269_v7 = vcombine.low %v5213_v40, %v5245_v53  ;;  %v5637_v28 = vrot.slane %v5629_v42, %v14315_v11 }
 0x5d4   : > { %23641 = vst [vmem:[#allocation111_spill] sm:$0xff] %v17618_v32  ;;  %v17634_v4 = vpop.permute.xlu1 %11363  ;;  %v5477_v9 = vcombine.low %v17630_v46, %v17612_v41  ;;  %v5941_v62 = vrot.slane %v5933_v43, %v14315_v11  ;;  %v23649_v43 = vld [vmem:[#allocation128_spill] sm:$0xff] }
 0x5d5   : > { %23642 = vst [vmem:[#allocation81_spill] sm:$0xff] %v17634_v4  ;;  %11777 = vrot.lane.b32.xlu0 %v5680_v44, %s22648_s30  ;;  %v5517_v44 = vrot.slane %v5509_v18, %v14315_v11 }
 0x5d6   : > { %v5485_v58 = vrot.slane %v5477_v9, %v14315_v11  ;;  %v5238_v9 = vcombine.high %v17567_v35, %v17546_v49  ;;  %v5206_v49 = vcombine.high %v17582_v16, %v17564_v61  ;;  %v5158_v61 = vcombine.high %v23621_v36, %v23620_v5 }
 0x5d7   : > { %11591 = vrot.lane.b32.xlu1 %v5004_v59, %s23492_s14  ;;  %v17648_v32 = vpop.permute.xlu0 %11553  ;;  %v5510_v16 = vcombine.high %v17615_v63, %v17593_v38  ;;  %v5190_v5 = vcombine.high %v23615_v29, %v23614_v47  ;;  %v5934_v38 = vcombine.high %v17627_v17, %v17609_v3  ;;  %v5174_v29 = vcombine.high %v23623_v13, %v23622_v57 }
 0x5d8   : > { %23643 = vst [vmem:[#allocation421_spill] sm:$0xff] %v17648_v32  ;;  %v17652_v51 = vpop.permute.xlu1 %11367  ;;  %v5681_v32 = vcombine.low %v5637_v28, %v5669_v48  ;;  %v5541_v4 = vcombine.low %v5485_v58, %v5517_v44  ;;  %v17735_v3 = vrot.slane %v5158_v61, %v14280_v31 }
 0x5d9   : > { %23644 = vst [vmem:[#allocation390_spill] sm:$0xff] %v17652_v51  ;;  %11781 = vrot.lane.b32.xlu0 %v5952_v60, %s22648_s30  ;;  %v5909_v60 = vrot.slane %v5901_v15, %v14315_v11  ;;  %v23650_v51 = vld [vmem:[#allocation98_spill] sm:$0xff]  ;;  %v23651_v15 = vld [vmem:[#allocation53_spill] sm:$0xff]  ;;  %s23786_s30 = smov 116  }
 0x5db   : > { %11603 = vrot.lane.b32.xlu1 %v5269_v7, %s23496_s16  ;;  %v17659_v59 = vpop.permute.xlu0 %11557  ;;  %v5953_v42 = vcombine.low %v5909_v60, %v5941_v62 }
 0x5dc   : > { %23645 = vst [vmem:[#allocation359_spill] sm:$0xff] %v17659_v59  ;;  %v17662_v26 = vpop.permute.xlu1 %11379  ;;  %v5270_v59 = vcombine.high %v5213_v40, %v5245_v53  ;;  %v5682_v53 = vcombine.high %v5637_v28, %v5669_v48  ;;  %v23654_v40 = vld [vmem:[#allocation68_spill] sm:$0xff]  ;;  %v5542_v48 = vcombine.high %v5485_v58, %v5517_v44  ;;  %v17703_v28 = vrot.slane %v5238_v9, %v14315_v11 }
 0x5dd   : > { %23646 = vst [vmem:[#allocation327_spill] sm:$0xff] %v17662_v26  ;;  %11793 = vrot.lane.b32.xlu0 %v5681_v32, %s22646_s3  ;;  %v6141_v26 = vcombine.low %v23650_v51, %v23649_v43  ;;  %v5662_v32 = vcombine.high %v17579_v54, %v17561_v37  ;;  %v5630_v54 = vcombine.high %v17599_v25, %v17558_v8 }
 0x5de   : > { %v5142_v8 = vcombine.high %v23626_v23, %v23625_v24  ;;  %v5478_v58 = vcombine.high %v17630_v46, %v17612_v41  ;;  %v5220_v25 = vrot.slane %v5206_v49, %v14315_v11  ;;  %v5954_v44 = vcombine.high %v5909_v60, %v5941_v62 }
 0x5df   : > { %11607 = vrot.lane.b32.xlu1 %v5541_v4, %s23496_s16  ;;  %v17667_v18 = vpop.permute.xlu0 %11569  ;;  %v6093_v4 = vcombine.low %v23652_v30, %v23651_v15  ;;  %v17713_v36 = vrot.slane %v5662_v32, %v14315_v11  ;;  %v17732_v23 = vrot.slane %v5630_v54, %v14315_v11  ;;  %v5902_v41 = vcombine.high %v17641_v39, %v17623_v22 }
 0x5e0   : > { %23647 = vst [vmem:[#allocation406_spill] sm:$0xff] %v17667_v18  ;;  %v17671_v7 = vpop.permute.xlu1 %11383  ;;  %v6094_v18 = vcombine.high %v23652_v30, %v23651_v15  ;;  %v6125_v30 = vcombine.low %v23657_v34, %v23656_v21  ;;  %v17706_v15 = vrot.slane %v6141_v26, %v14280_v31  ;;  %v5271_v46 = vcombine.low %v5220_v25, %v17703_v28 }
 0x5e1   : > { %23648 = vst [vmem:[#allocation375_spill] sm:$0xff] %v17671_v7  ;;  %11797 = vrot.lane.b32.xlu0 %v5953_v42, %s22646_s3  ;;  %v23655_v42 = vld [vmem:[#allocation38_spill] sm:$0xff]  ;;  %v17744_v62 = vrot.slane %v5510_v16, %v14315_v11  ;;  %v17747_v57 = vrot.slane %v6093_v4, %v14280_v31  ;;  %v17752_v26 = vrot.slane %v5190_v5, %v14280_v31  ;;  %v23662_v16 = vld [vmem:[#allocation423_spill] sm:$0xff]  ;;  %s23781_s3 = smov 112  }
 0x5e2   : > { %v6109_v7 = vcombine.low %v23655_v42, %v23654_v40  ;;  %v6110_v37 = vcombine.high %v23655_v42, %v23654_v40  ;;  %v17727_v47 = vrot.slane %v6125_v30, %v14280_v31  ;;  %v17755_v22 = vrot.slane %v5142_v8, %v14280_v31 }
 0x5e3   : > { %11619 = vrot.lane.b32.xlu1 %v5270_v59, %s23506_s20  ;;  %v17685_v35 = vpop.permute.xlu0 %11573  ;;  %v5492_v39 = vrot.slane %v5478_v58, %v14315_v11  ;;  %v5683_v9 = vcombine.low %v17732_v23, %v17713_v36  ;;  %v17767_v32 = vrot.slane %v6094_v18, %v14280_v31  ;;  %v5462_v42 = vcombine.high %v23630_v19, %v23629_v0  ;;  %v23664_v0 = vld [vmem:[#allocation361_spill] sm:$0xff]  ;;  %v23665_v19 = vld [vmem:[#allocation330_spill] sm:$0xff] }
 0x5e4   : > { %23653 = vst [vmem:[#allocation344_spill] sm:$0xff] %v17685_v35  ;;  %v17699_v59 = vpop.permute.xlu1 %11395  ;;  %v17724_v24 = vrot.slane %v6109_v7, %v14280_v31  ;;  %v6189_v13 = vcombine.low %v17727_v47, %v17706_v15  ;;  %v17764_v7 = vrot.slane %v5934_v38, %v14315_v11  ;;  %v17770_v4 = vrot.slane %v6110_v37, %v14280_v31  ;;  %v23670_v35 = vld [vmem:[#allocation291_spill] sm:$0xff] }
 0x5e5   : > { %11809 = vrot.lane.b32.xlu0 %v5682_v53, %s22644_s4  ;;  %23660 = vst [vmem:[#allocation114_spill] sm:$0xff] %v17767_v32  ;;  %v17775_v53 = vrot.slane %v5174_v29, %v14280_v31  ;;  %v5221_v40 = vcombine.low %v17755_v22, %v17735_v3  ;;  %v5543_v18 = vcombine.low %v5492_v39, %v17744_v62 }
 0x5e6   : > { %23661 = vst [vmem:[#allocation84_spill] sm:$0xff] %v17770_v4  ;;  %v6157_v49 = vcombine.low %v17747_v57, %v17724_v24  ;;  %v5916_v37 = vrot.slane %v5902_v41, %v14315_v11  ;;  %v17793_v5 = vrot.slane %v6189_v13, %v14315_v11  ;;  %v6381_v38 = vcombine.low %v23665_v19, %v23664_v0 }
 0x5e7   : > { %11623 = vrot.lane.b32.xlu1 %v5542_v48, %s23506_s20  ;;  %v17721_v63 = vpop.permute.xlu0 %11585  ;;  %v5253_v61 = vcombine.low %v17775_v53, %v17752_v26  ;;  %v23663_v48 = vld [vmem:[#allocation392_spill] sm:$0xff]  ;;  %v5430_v58 = vcombine.high %v23634_v33, %v23633_v52  ;;  %v5414_v13 = vcombine.high %v23639_v1, %v23638_v20  ;;  %v17817_v52 = vrot.slane %v5462_v42, %v14280_v31  ;;  %v23674_v1 = vld [vmem:[#allocation346_spill] sm:$0xff] }
 0x5e8   : > { %23658 = vst [vmem:[#allocation297_spill] sm:$0xff] %v17721_v63  ;;  %v17739_v17 = vpop.permute.xlu1 %11399  ;;  %v6413_v8 = vcombine.low %v23663_v48, %v23662_v16  ;;  %v5955_v41 = vcombine.low %v5916_v37, %v17764_v7  ;;  %v23671_v63 = vld [vmem:[#allocation290_spill] sm:$0xff]  ;;  %v5272_v4 = vcombine.high %v5220_v25, %v17703_v28  ;;  %v17826_v20 = vrot.slane %v5221_v40, %v14315_v11  ;;  %v23677_v40 = vld [vmem:[#allocation193_spill] sm:$0xff] }
 0x5e9   : > { %11813 = vrot.lane.b32.xlu0 %v5954_v44, %s22644_s4  ;;  %v5446_v44 = vcombine.high %v23636_v45, %v23635_v27  ;;  %v23672_v32 = vcombine.low %v23670_v35, %v23671_v63  ;;  %v5684_v27 = vcombine.high %v17732_v23, %v17713_v36  ;;  %v23673_v45 = vld [vmem:[#allocation342_spill] sm:$0xff]  ;;  %v23675_v35 = vld [vmem:[#allocation300_spill] sm:$0xff]  ;;  %v23676_v23 = vld [vmem:[#allocation209_spill] sm:$0xff]  ;;  %v17839_v42 = vrot.slane %v6381_v38, %v14280_v31  ;;  %s23777_s4 = smov 108  }
 0x5ea   : > { %v6365_v63 = vcombine.low %v23675_v35, %v23674_v1  ;;  %v17831_v36 = vrot.slane %v6413_v8, %v14280_v31  ;;  %v17842_v28 = vrot.slane %v5430_v58, %v14280_v31  ;;  %v23679_v38 = vld [vmem:[#allocation404_spill] sm:$0xff]  ;;  %v5544_v1 = vcombine.high %v5492_v39, %v17744_v62  ;;  %v23689_v39 = vld [vmem:[#allocation442_spill] sm:$0xff] }
 0x5eb   : > { %11635 = vrot.lane.b32.xlu1 %v5271_v46, %s23515_s21  ;;  %v17759_v60 = vpop.permute.xlu0 %11589  ;;  %v23667_v46 = vld [vmem:[#allocation408_spill] sm:$0xff]  ;;  %v17845_v25 = vrot.slane %v5446_v44, %v14280_v31 }
 0x5ec   : > { %23659 = vst [vmem:[#allocation129_spill] sm:$0xff] %v17759_v60  ;;  %v17781_v54 = vpop.permute.xlu1 %11411  ;;  %v23669_v60 = vld [vmem:[#allocation357_spill] sm:$0xff]  ;;  %v23681_v58 = vld [vmem:[#allocation532_spill] sm:$0xff] }
 0x5ed   : > { %11825 = vrot.lane.b32.xlu0 %v5683_v9, %s22642_s5  ;;  %v23668_v9 = vld [vmem:[#allocation377_spill] sm:$0xff]  ;;  %v12975_v33 = vsel %vm12973_vm0, %v23672_v32, %v23669_v60  ;;  %v17836_v32 = vrot.slane %v5253_v61, %v14315_v11  ;;  %v17856_v61 = vrot.slane %v5414_v13, %v14280_v31 }
 0x5ee   : > { %v6397_v30 = vcombine.low %v23668_v9, %v23667_v46 }
 0x5ef   : > { %11639 = vrot.lane.b32.xlu1 %v5543_v18, %s23515_s21  ;;  %v17802_v29 = vpop.permute.xlu0 %11601  ;;  %v12980_v18 = vsel %vm22633_vm1, %v12975_v33, %v23673_v45  ;;  %v23680_v45 = vld [vmem:[#allocation533_spill] sm:$0xff] }
 0x5f0   : > { %23666 = vst [vmem:[#allocation195_spill] sm:$0xff] %v17802_v29  ;;  %v17821_v29 = vpop.permute.xlu1 %11415  ;;  %v12985_v60 = vsel %vm22634_vm2, %v12980_v18, %v23676_v23  ;;  %v17853_v33 = vrot.slane %v6397_v30, %v14280_v31  ;;  %v23682_v18 = vcombine.low %v23680_v45, %v23681_v58  ;;  %v23683_v23 = vld [vmem:[#allocation501_spill] sm:$0xff]  ;;  %v23685_v30 = vld [vmem:[#allocation486_spill] sm:$0xff] }
 0x5f1   : > { %11829 = vrot.lane.b32.xlu0 %v5955_v41, %s22642_s5  ;;  %v12990_v41 = vsel %vm12988_vm3, %v12985_v60, %v23677_v40  ;;  %v23684_v60 = vld [vmem:[#allocation273_spill] sm:$0xff]  ;;  %s23764_s5 = smov 104  }
 0x5f2   : > { %v12977_v44 = vsel %vm12973_vm0, %v23682_v18, %v23679_v38  ;;  %v12995_v35 = vsel %vm22639_vm4, %v12990_v41, %v23683_v23  ;;  %v17876_v38 = vrot.slane %v6365_v63, %v14280_v31  ;;  %v6461_v41 = vcombine.low %v17853_v33, %v17831_v36  ;;  %v23686_v45 = vld [vmem:[#allocation257_spill] sm:$0xff] }
 0x5f3   : > { %11651 = vrot.lane.b32.xlu1 %v5272_v4, %s23524_s22  ;;  %v17850_v8 = vpop.permute.xlu0 %11605  ;;  %v5525_v4 = vcombine.low %v17845_v25, %v17817_v52  ;;  %v12982_v40 = vsel %vm22633_vm1, %v12977_v44, %v23684_v60  ;;  %v23687_v18 = vld [vmem:[#allocation145_spill] sm:$0xff]  ;;  %vm23690_vm1 = vcmask 261120   ;;  %v5956_v60 = vcombine.high %v5916_v37, %v17764_v7 }
 0x5f4   : > { %23678 = vst [vmem:[#allocation149_spill] sm:$0xff] %v17850_v8  ;;  %v13000_v8 = vsel %vm22635_vm5, %v12995_v35, %v23685_v30  ;;  %v17871_v13 = vpop.permute.xlu1 %11427  ;;  %v12987_v58 = vsel %vm22634_vm2, %v12982_v40, %v23686_v45  ;;  %v5493_v35 = vcombine.low %v17856_v61, %v17842_v28  ;;  %v23688_v23 = vld [vmem:[#allocation529_spill] sm:$0xff]  ;;  %v23692_v30 = vld [vmem:[#allocation78_spill] sm:$0xff]  ;;  %v23693_v45 = vld [vmem:[#allocation52_spill] sm:$0xff]  ;;  %vm23694_vm2 = vcmask 293888  }
 0x5f5   : > { %11841 = vrot.lane.b32.xlu0 %v5684_v27, %s22640_s11  ;;  %v13005_v44 = vsel %vm22636_vm6, %v13000_v8, %v23687_v18  ;;  %v12992_v62 = vsel %vm12988_vm3, %v12987_v58, %v23688_v23  ;;  %v5273_v18 = vcombine.low %v17826_v20, %v17836_v32  ;;  %v17901_v58 = vrot.slane %v6157_v49, %v14315_v11 }
 0x5f6   : > { %v13010_v27 = vsel %vm23690_vm1, %v13005_v44, %v23689_v39  ;;  %v12997_v40 = vsel %vm22639_vm4, %v12992_v62, %v23692_v30  ;;  %v6429_v44 = vcombine.low %v17876_v38, %v17839_v42  ;;  %v23696_v39 = vld [vmem:[#allocation112_spill] sm:$0xff]  ;;  %vm23697_vm1 = vcmask 326656  }
 0x5f7   : > { %11655 = vrot.lane.b32.xlu1 %v5544_v1, %s23524_s22  ;;  %v17891_v63 = vpop.permute.xlu0 %11617  ;;  %v13015_v8 = vsel %vm23694_vm2, %v13010_v27, %v23693_v45  ;;  %v23695_v1 = vld [vmem:[#allocation142_spill] sm:$0xff]  ;;  %v17913_v62 = vrot.slane %v5525_v4, %v14315_v11  ;;  %v6190_v49 = vcombine.high %v17727_v47, %v17706_v15  ;;  %v23698_v27 = vld [vmem:[#allocation440_spill] sm:$0xff]  ;;  %vm23700_vm2 = vcmask 359424  }
 0x5f8   : > { %23691 = vst [vmem:[#allocation211_spill] sm:$0xff] %v17891_v63  ;;  %v13002_v23 = vsel %vm22635_vm5, %v12997_v40, %v23695_v1  ;;  %v13020_v7 = vsel %vm23697_vm1, %v13015_v8, %v23696_v39  ;;  %v17909_v37 = vpop.permute.xlu1 %11431  ;;  %v23699_v45 = vld [vmem:[#allocation272_spill] sm:$0xff]  ;;  %v6221_v40 = vcombine.low %v17901_v58, %v17793_v5  ;;  %v23701_v8 = vld [vmem:[#allocation127_spill] sm:$0xff]  ;;  %vm23702_vm1 = vcmask 261120   ;;  %v23703_v39 = vld [vmem:[#allocation329_spill] sm:$0xff] }
 0x5f9   : > { %11845 = vrot.lane.b32.xlu0 %v5956_v60, %s22640_s11  ;;  %v13007_v30 = vsel %vm22636_vm6, %v13002_v23, %v23698_v27  ;;  %v13025_v63 = vsel %vm23700_vm2, %v13020_v7, %v23699_v45  ;;  %vm23704_vm5 = vcmask 392192   ;;  %v5501_v4 = vrot.slane %v5493_v35, %v14315_v11  ;;  %v23705_v27 = vld [vmem:[#allocation67_spill] sm:$0xff]  ;;  %v23707_v45 = vld [vmem:[#allocation208_spill] sm:$0xff]  ;;  %s23741_s11 = smov 100  }
 0x5fa   : > { %v13012_v1 = vsel %vm23702_vm1, %v13007_v30, %v23701_v8  ;;  %v13030_v60 = vsel %vm23704_vm5, %v13025_v63, %v23703_v39  ;;  %v17932_v47 = vrot.slane %v6461_v41, %v14315_v11  ;;  %v6126_v23 = vcombine.high %v23657_v34, %v23656_v21  ;;  %v23713_v21 = vld [vmem:[#allocation360_spill] sm:$0xff] }
 0x5fb   : > { %11667 = vrot.lane.b32.xlu1 %v5273_v18, %s23542_s24  ;;  %v17929_v15 = vpop.permute.xlu0 %11621  ;;  %v6142_v7 = vcombine.high %v23650_v51, %v23649_v43  ;;  %vm23706_vm2 = vcmask 293888   ;;  %vm23708_vm5 = vcmask 424960   ;;  %v23709_v18 = vld [vmem:[#allocation422_spill] sm:$0xff]  ;;  %vm23710_vm1 = vcmask 326656  }
 0x5fc   : > { %v13017_v30 = vsel %vm23706_vm2, %v13012_v1, %v23705_v27  ;;  %v13035_v63 = vsel %vm23708_vm5, %v13030_v60, %v23707_v45  ;;  %vm23711_vm6 = vcmask 457728   ;;  %v17946_v41 = vpop.permute.xlu1 %11443  ;;  %v5545_v39 = vcombine.low %v5501_v4, %v17913_v62  ;;  %v23717_v27 = vld [vmem:[#allocation197_spill] sm:$0xff]  ;;  %v23719_v45 = vld [vmem:[#allocation407_spill] sm:$0xff] }
 0x5fd   : > { %v13022_v35 = vsel %vm23710_vm1, %v13017_v30, %v23709_v18  ;;  %v13040_v8 = vsel %vm23711_vm6, %v13035_v63, %v17019_v55  ;;  %11857 = vrot.lane.b32.xlu0 %v6221_v40, %s23712_s2  ;;  %v6437_v34 = vrot.slane %v6429_v44, %v14315_v11  ;;  %vm23714_vm4 = vcmask 359424   ;;  %v23718_v30 = vld [vmem:[#allocation151_spill] sm:$0xff]  ;;  %v23722_v18 = vld [vmem:[#allocation174_spill] sm:$0xff] }
 0x5fe   : > { %v13027_v51 = vsel %vm23714_vm4, %v13022_v35, %v23713_v21  ;;  %vm23715_vm2 = vcmask 490496   ;;  %v23716_v1 = vcombine.high %v17747_v57, %v17724_v24  ;;  %v17962_v55 = vrot.slane %v6190_v49, %v14315_v11 }
 0x5ff   : > { %v13045_v43 = vsel %vm23715_vm2, %v13040_v8, %v17098_v10  ;;  %v5685_v40 = vcombine.low %v23718_v30, %v23717_v27  ;;  %vm23720_vm6 = vcmask 392192   ;;  %vm23721_vm4 = vcmask 523264   ;;  %11671 = vrot.lane.b32.xlu1 %v5545_v39, %s23542_s24  ;;  %v17971_v10 = vpop.permute.xlu0 %11633 }
 0x600   : > { %v17959_v60 = vrot.slane %v23716_v1, %v14315_v11  ;;  %v13032_v44 = vsel %vm23720_vm6, %v13027_v51, %v23719_v45  ;;  %v13050_v63 = vsel %vm23721_vm4, %v13045_v43, %v17174_v12  ;;  %v6493_v24 = vcombine.low %v6437_v34, %v17932_v47  ;;  %v23728_v51 = vld [vmem:[#allocation256_spill] sm:$0xff] }
 0x601   : > { %v17975_v57 = vrot.slane %v6126_v23, %v14280_v31  ;;  %v5254_v49 = vcombine.high %v17775_v53, %v17752_v26  ;;  %v13037_v35 = vsel %vm23708_vm5, %v13032_v44, %v23722_v18  ;;  %vm23723_vm1 = vcmask 556032   ;;  %v17990_v23 = vpop.permute.xlu1 %11447 }
 0x602   : > { %v13055_v8 = vsel %vm23723_vm1, %v13050_v63, %v17238_v56  ;;  %v17984_v12 = vrot.slane %v6142_v7, %v14280_v31  ;;  %vm23724_vm2 = vcmask 457728   ;;  %vm23725_vm6 = vcmask 588800   ;;  %11861 = vrot.lane.b32.xlu0 %v6493_v24, %s23712_s2  ;;  %v23737_v24 = vld [vmem:[#allocation345_spill] sm:$0xff] }
 0x603   : > { %v13042_v39 = vsel %vm23724_vm2, %v13037_v35, %v17061_v2  ;;  %v13060_v21 = vsel %vm23725_vm6, %v13055_v8, %v17300_v6  ;;  %v5274_v26 = vcombine.high %v17826_v20, %v17836_v32  ;;  %v5222_v53 = vcombine.high %v17755_v22, %v17735_v3  ;;  %v23730_v32 = vld [vmem:[#allocation192_spill] sm:$0xff]  ;;  %v18011_v3 = vpop.permute.xlu0 %11637  ;;  %v23733_v22 = vld [vmem:[#allocation181_spill] sm:$0xff] }
 0x604   : > { %vm23726_vm4 = vcmask 490496   ;;  %vm23727_vm5 = vcmask 621568   ;;  %v6222_v2 = vcombine.high %v17901_v58, %v17793_v5  ;;  %v18004_v6 = vrot.slane %v5685_v40, %v14280_v31  ;;  %v23734_v5 = vld [vmem:[#allocation224_spill] sm:$0xff]  ;;  %v23736_v40 = vld [vmem:[#allocation467_spill] sm:$0xff] }
 0x605   : > { %v13047_v56 = vsel %vm23726_vm4, %v13042_v39, %v17134_v50  ;;  %v13065_v7 = vsel %vm23727_vm5, %v13060_v21, %v17362_v14  ;;  %vm23729_vm1 = vcmask 523264   ;;  %vm23731_vm2 = vcmask 654336   ;;  %11683 = vrot.lane.b32.xlu1 %v5274_v26, %s23566_s26  ;;  %v23732_v14 = vld [vmem:[#allocation213_spill] sm:$0xff]  ;;  %v23739_v35 = vld [vmem:[#allocation436_spill] sm:$0xff]  ;;  %v11460_v39 = vpop.permute.xlu1 %11459 }
 0x606   : > { %v13052_v20 = vsel %vm23729_vm1, %v13047_v56, %v23728_v51  ;;  %v13070_v43 = vsel %vm23731_vm2, %v13065_v7, %v23730_v32  ;;  %v6223_v50 = vcombine.low %v17959_v60, %v17962_v55  ;;  %v5701_v1 = vcombine.low %v23733_v22, %v23732_v14  ;;  %11873 = vrot.lane.b32.xlu0 %v6222_v2, %s23741_s11  ;;  %v23742_v56 = vld [vmem:[#allocation299_spill] sm:$0xff]  ;;  %v23744_v7 = vld [vmem:[#allocation21_spill] sm:$0xff] }
 0x607   : > { %vm23735_vm6 = vcmask 556032   ;;  %v13075_v45 = vsel %vm13073_vm10, %v13070_v43, %v23736_v40  ;;  %v18022_v44 = vrot.slane %v5254_v49, %v14315_v11  ;;  %v5526_v63 = vcombine.high %v17845_v25, %v17817_v52  ;;  %v23749_v32 = vld [vmem:[#allocation277_spill] sm:$0xff] }
 0x608   : > { %v13057_v58 = vsel %vm23735_vm6, %v13052_v20, %v23734_v5  ;;  %vm23738_vm4 = vcmask 588800   ;;  %vm23740_vm5 = vcmask 719872   ;;  %v5546_v21 = vcombine.high %v5501_v4, %v17913_v62  ;;  %v23746_v20 = vld [vmem:[#allocation63_spill] sm:$0xff]  ;;  %v23748_v4 = vld [vmem:[#allocation81_spill] sm:$0xff] }
 0x609   : > { %v13062_v18 = vsel %vm23738_vm4, %v13057_v58, %v23737_v24  ;;  %v13080_v8 = vsel %vm23740_vm5, %v13075_v45, %v23739_v35  ;;  %v6462_v26 = vcombine.high %v17853_v33, %v17831_v36  ;;  %vm23743_vm1 = vcmask 621568   ;;  %v18048_v36 = vpop.permute.xlu0 %11649  ;;  %v23750_v43 = vld [vmem:[#allocation245_spill] sm:$0xff]  ;;  %v23753_v45 = vld [vmem:[#allocation96_spill] sm:$0xff]  ;;  %vm23754_vm4 = vmmov %vm23740_vm5  ;;  %v11464_v35 = vpop.permute.xlu1 %11463 }
 0x60a   : > { %v13067_v49 = vsel %vm23743_vm1, %v13062_v18, %v23742_v56  ;;  %vm23745_vm2 = vcmask 752640   ;;  %v18039_v25 = vrot.slane %v5222_v53, %v14315_v11  ;;  %v5494_v51 = vcombine.high %v17856_v61, %v17842_v28  ;;  %11687 = vrot.lane.b32.xlu1 %v5546_v21, %s23566_s26  ;;  %v23751_v58 = vld [vmem:[#allocation517_spill] sm:$0xff]  ;;  %v23752_v61 = vld [vmem:[#allocation327_spill] sm:$0xff]  ;;  %v23757_v56 = vld [vmem:[#allocation36_spill] sm:$0xff] }
 0x60b   : > { %v13085_v52 = vsel %vm23745_vm2, %v13080_v8, %v23744_v7  ;;  %vm23747_vm6 = vcmask 654336   ;;  %v6494_v33 = vcombine.high %v6437_v34, %v17932_v47  ;;  %v5733_v5 = vcombine.low %v23750_v43, %v23749_v32  ;;  %v23755_v34 = vld [vmem:[#allocation261_spill] sm:$0xff]  ;;  %vm23758_vm5 = vmmov %vm23745_vm2  ;;  %v23759_v7 = vld [vmem:[#allocation390_spill] sm:$0xff] }
 0x60c   : > { %v13072_v62 = vsel %vm23747_vm6, %v13067_v49, %v23746_v20  ;;  %v13090_v2 = vsel %vm13088_vm15, %v13085_v52, %v23748_v4  ;;  %v6430_v53 = vcombine.high %v17876_v38, %v17839_v42  ;;  %v5275_v47 = vcombine.low %v18039_v25, %v18022_v44  ;;  %v23756_v8 = vld [vmem:[#allocation229_spill] sm:$0xff] }
 0x60d   : > { %v13077_v28 = vsel %vm13073_vm10, %v13072_v62, %v23751_v58  ;;  %v13095_v40 = vsel %vm13093_vm14, %v13090_v2, %v23752_v61  ;;  %11877 = vrot.lane.b32.xlu0 %v6494_v33, %s23741_s11  ;;  %v18067_v42 = vrot.slane %v5526_v63, %v14315_v11  ;;  %v18070_v38 = vrot.slane %v5701_v1, %v14280_v31  ;;  %v18084_v63 = vpop.permute.xlu0 %11653  ;;  %v23761_v2 = vld [vmem:[#allocation375_spill] sm:$0xff]  ;;  %v23762_v58 = vld [vmem:[#allocation534_spill] sm:$0xff] }
 0x60e   : > { %v13082_v24 = vsel %vm23754_vm4, %v13077_v28, %v23753_v45  ;;  %v13100_v18 = vsel %vm13098_vm7, %v13095_v40, %v17699_v59  ;;  %v5717_v21 = vcombine.low %v23756_v8, %v23755_v34  ;;  %11699 = vrot.lane.b32.xlu1 %v5275_v47, %s23582_s13  ;;  %v5508_v1 = vrot.slane %v5494_v51, %v14315_v11  ;;  %v23763_v28 = vld [vmem:[#allocation525_spill] sm:$0xff]  ;;  %v11476_v40 = vpop.permute.xlu1 %11475 }
 0x60f   : > { %v13087_v49 = vsel %vm23758_vm5, %v13082_v24, %v23757_v56  ;;  %v13105_v59 = vsel %vm13103_vm8, %v13100_v18, %v17781_v54  ;;  %23760 = vst [vmem:[#allocation179_spill] sm:$0xff] %v18084_v63  ;;  %v18087_v62 = vrot.slane %v6462_v26, %v14315_v11  ;;  %v18090_v4 = vrot.slane %v5733_v5, %v14280_v31  ;;  %v23765_v18 = vld [vmem:[#allocation505_spill] sm:$0xff]  ;;  %v23768_v56 = vld [vmem:[#allocation518_spill] sm:$0xff] }
 0x610   : > { %v13092_v52 = vsel %vm13088_vm15, %v13087_v49, %v23759_v7  ;;  %v13110_v20 = vsel %vm13108_vm9, %v13105_v59, %v17871_v13  ;;  %v6444_v13 = vrot.slane %v6430_v53, %v14315_v11  ;;  %v6005_v51 = vcombine.low %v23763_v28, %v23762_v58 }
 0x611   : > { %v13097_v54 = vsel %vm13093_vm14, %v13092_v52, %v23761_v2  ;;  %v13115_v33 = vsel %vm13113_vm11, %v13110_v20, %v17946_v41  ;;  %v5547_v5 = vcombine.low %v5508_v1, %v18067_v42  ;;  %11889 = vrot.lane.b32.xlu0 %v6223_v50, %s23764_s5  ;;  %v18105_v45 = vrot.slane %v5717_v21, %v14280_v31  ;;  %v18120_v21 = vpop.permute.xlu0 %11665  ;;  %v23769_v52 = vld [vmem:[#allocation490_spill] sm:$0xff] }
 0x612   : > { %v13102_v61 = vsel %vm13098_vm7, %v13097_v54, %v17739_v17  ;;  %v13120_v26 = vsel %vm13118_vm12, %v13115_v33, %v11460_v39  ;;  %v6414_v41 = vcombine.high %v23663_v48, %v23662_v16  ;;  %v23766_v17 = vld [vmem:[#allocation475_spill] sm:$0xff]  ;;  %v6495_v16 = vcombine.low %v6444_v13, %v18087_v62  ;;  %v23770_v20 = vld [vmem:[#allocation446_spill] sm:$0xff] }
 0x613   : > { %v13107_v53 = vsel %vm13103_vm8, %v13102_v61, %v17821_v29  ;;  %v13125_v24 = vsel %vm13123_vm13, %v13120_v26, %v11476_v40  ;;  %v5973_v47 = vcombine.low %v23766_v17, %v23765_v18  ;;  %v23767_v39 = vld [vmem:[#allocation387_spill] sm:$0xff]  ;;  %11703 = vrot.lane.b32.xlu1 %v5547_v5, %s23582_s13  ;;  %v5781_v48 = vcombine.low %v18105_v45, %v18090_v4  ;;  %v11480_v61 = vpop.permute.xlu1 %11479  ;;  %v23774_v5 = vld [vmem:[#allocation84_spill] sm:$0xff] }
 0x614   : > { %v5989_v49 = vcombine.low %v23768_v56, %v23767_v39  ;;  %v13112_v50 = vsel %vm13108_vm9, %v13107_v53, %v17909_v37  ;;  %13504 = vst [vmem:[%s17403_s25 + $0x20] sm:$0xff] %v13125_v24  ;;  %v6382_v29 = vcombine.high %v23665_v19, %v23664_v0  ;;  %v5276_v37 = vcombine.high %v18039_v25, %v18022_v44  ;;  %v23772_v44 = vld [vmem:[#allocation300_spill] sm:$0xff]  ;;  %v23775_v53 = vld [vmem:[#allocation114_spill] sm:$0xff] }
 0x615   : > { %v13117_v59 = vsel %vm13113_vm11, %v13112_v50, %v17990_v23  ;;  %v6398_v7 = vcombine.high %v23668_v9, %v23667_v46  ;;  %v5957_v2 = vcombine.low %v23770_v20, %v23769_v52  ;;  %v18136_v54 = vrot.slane %v6005_v51, %v14280_v31  ;;  %11893 = vrot.lane.b32.xlu0 %v6495_v16, %s23764_s5  ;;  %v23771_v9 = vld [vmem:[#allocation346_spill] sm:$0xff]  ;;  %v18160_v40 = vpop.permute.xlu0 %11669 }
 0x616   : > { %v13122_v33 = vsel %vm13118_vm12, %v13117_v59, %v11464_v35  ;;  %v6205_v0 = vcombine.low %v17975_v57, %v17984_v12  ;;  %v5749_v19 = vcombine.low %v18004_v6, %v18070_v38  ;;  %v6224_v46 = vcombine.high %v17959_v60, %v17962_v55  ;;  %23773 = vst [vmem:[#allocation295_spill] sm:$0xff] %v18160_v40  ;;  %v23893_v40 = vld [vmem:[#allocation304_spill] sm:$0xff] }
 0x617   : > { %v13127_v23 = vsel %vm13123_vm13, %v13122_v33, %v11480_v61  ;;  %v6366_v25 = vcombine.high %v23772_v44, %v23771_v9  ;;  %v18150_v51 = vrot.slane %v6414_v41, %v14280_v31  ;;  %v18153_v35 = vrot.slane %v5973_v47, %v14280_v31  ;;  %11715 = vrot.lane.b32.xlu1 %v5276_v37, %s23601_s17  ;;  %v18176_v50 = vpop.permute.xlu1 %11491 }
 0x618   : > { %v18156_v26 = vrot.slane %v5989_v49, %v14280_v31  ;;  %13512 = vst [vmem:[%s17403_s25 + $0x60] sm:$0xff] %v13127_v23  ;;  %v6173_v60 = vcombine.low %v23775_v53, %v23774_v5  ;;  %v18165_v55 = vrot.slane %v6382_v29, %v14280_v31  ;;  %v5789_v41 = vrot.slane %v5781_v48, %v14315_v11 }
 0x619   : > { %v18169_v24 = vrot.slane %v6398_v7, %v14280_v31  ;;  %v18172_v47 = vrot.slane %v5957_v2, %v14280_v31  ;;  %23776 = vst [vmem:[#allocation298_spill] sm:$0xff] %v18176_v50  ;;  %v5548_v16 = vcombine.high %v5508_v1, %v18067_v42  ;;  %11905 = vrot.lane.b32.xlu0 %v6224_v46, %s23777_s4  ;;  %v18190_v2 = vpop.permute.xlu0 %11681  ;;  %v23855_v50 = vld [vmem:[#allocation474_spill] sm:$0xff]  ;;  %vm23907_vm1 = vcmask 64512  }
 0x61a   : > { %v6053_v49 = vcombine.low %v18156_v26, %v18136_v54  ;;  %v5757_v29 = vrot.slane %v5749_v19, %v14315_v11  ;;  %v6213_v59 = vrot.slane %v6205_v0, %v14315_v11  ;;  %v18183_v48 = vrot.slane %v6366_v25, %v14280_v31  ;;  %vm23919_vm4 = vmmov %vm23907_vm1 }
 0x61b   : > { %v6477_v37 = vcombine.low %v18169_v24, %v18150_v51  ;;  %v6021_v7 = vcombine.low %v18172_v47, %v18153_v35  ;;  %11719 = vrot.lane.b32.xlu1 %v5548_v16, %s23601_s17  ;;  %v6496_v42 = vcombine.high %v6444_v13, %v18087_v62  ;;  %v18195_v33 = vpop.permute.xlu1 %11495  ;;  %v6181_v19 = vrot.slane %v6173_v60, %v14315_v11 }
 0x61c   : > { %v6445_v1 = vcombine.low %v18183_v48, %v18165_v55  ;;  %23778 = vst [vmem:[#allocation259_spill] sm:$0xff] %v18195_v33  ;;  %v5813_v61 = vcombine.low %v5757_v29, %v5789_v41  ;;  %v6061_v0 = vrot.slane %v6053_v49, %v14315_v11  ;;  %v5782_v16 = vcombine.high %v18105_v45, %v18090_v4 }
 0x61d   : > { %11909 = vrot.lane.b32.xlu0 %v6496_v42, %s23777_s4  ;;  %v6029_v23 = vrot.slane %v6021_v7, %v14315_v11  ;;  %v18202_v46 = vpop.permute.xlu0 %11685  ;;  %v6225_v9 = vcombine.low %v6181_v19, %v6213_v59  ;;  %v6485_v62 = vrot.slane %v6477_v37, %v14315_v11  ;;  %v5814_v42 = vcombine.high %v5757_v29, %v5789_v41 }
 0x61e   : > { %23779 = vst [vmem:[#allocation227_spill] sm:$0xff] %v18202_v46  ;;  %v6453_v25 = vrot.slane %v6445_v1, %v14315_v11  ;;  %v6206_v37 = vcombine.high %v17975_v57, %v17984_v12  ;;  %v6054_v4 = vcombine.high %v18156_v26, %v18136_v54  ;;  %v5796_v57 = vrot.slane %v5782_v16, %v14315_v11 }
 0x61f   : > { %11731 = vrot.lane.b32.xlu1 %v5813_v61, %s23607_s27  ;;  %v18205_v13 = vpop.permute.xlu1 %11507  ;;  %v6085_v44 = vcombine.low %v6029_v23, %v6061_v0  ;;  %v5750_v61 = vcombine.high %v18004_v6, %v18070_v38  ;;  %v6086_v41 = vcombine.high %v6029_v23, %v6061_v0  ;;  %v6478_v6 = vcombine.high %v18169_v24, %v18150_v51 }
 0x620   : > { %23780 = vst [vmem:[#allocation275_spill] sm:$0xff] %v18205_v13  ;;  %v6497_v60 = vcombine.low %v6453_v25, %v6485_v62  ;;  %v6220_v12 = vrot.slane %v6206_v37, %v14315_v11  ;;  %v6022_v38 = vcombine.high %v18172_v47, %v18153_v35  ;;  %v6498_v26 = vcombine.high %v6453_v25, %v6485_v62  ;;  %v23854_v13 = vld [vmem:[#allocation504_spill] sm:$0xff] }
 0x621   : > { %11921 = vrot.lane.b32.xlu0 %v6225_v9, %s23781_s3  ;;  %v18210_v49 = vpop.permute.xlu0 %11697  ;;  %v6226_v9 = vcombine.high %v6181_v19, %v6213_v59  ;;  %v5734_v29 = vcombine.high %v23750_v43, %v23749_v32  ;;  %v6446_v59 = vcombine.high %v18183_v48, %v18165_v55  ;;  %v6068_v35 = vrot.slane %v6054_v4, %v14315_v11 }
 0x622   : > { %23782 = vst [vmem:[#allocation243_spill] sm:$0xff] %v18210_v49  ;;  %v5702_v24 = vcombine.high %v23733_v22, %v23732_v14  ;;  %v5718_v47 = vcombine.high %v23756_v8, %v23755_v34  ;;  %v6036_v32 = vrot.slane %v6022_v38, %v14315_v11  ;;  %v6492_v48 = vrot.slane %v6478_v6, %v14315_v11 }
 0x623   : > { %11735 = vrot.lane.b32.xlu1 %v6085_v44, %s23607_s27  ;;  %v18214_v7 = vpop.permute.xlu1 %11511  ;;  %v6174_v44 = vcombine.high %v23775_v53, %v23774_v5  ;;  %v5764_v5 = vrot.slane %v5750_v61, %v14315_v11  ;;  %v5686_v19 = vcombine.high %v23718_v30, %v23717_v27  ;;  %v18262_v23 = vrot.slane %v5734_v29, %v14280_v31 }
 0x624   : > { %23783 = vst [vmem:[#allocation172_spill] sm:$0xff] %v18214_v7  ;;  %v6006_v14 = vcombine.high %v23763_v28, %v23762_v58  ;;  %v6087_v34 = vcombine.low %v6036_v32, %v6068_v35  ;;  %v6460_v8 = vrot.slane %v6446_v59, %v14315_v11  ;;  %v18271_v62 = vrot.slane %v5702_v24, %v14280_v31  ;;  %v23800_v59 = vld [vmem:[#allocation156_spill] sm:$0xff]  ;;  %v23849_v7 = vld [vmem:[#allocation150_spill] sm:$0xff] }
 0x625   : > { %11925 = vrot.lane.b32.xlu0 %v6497_v60, %s23781_s3  ;;  %v18222_v1 = vpop.permute.xlu0 %11701  ;;  %v6188_v53 = vrot.slane %v6174_v44, %v14315_v11  ;;  %v5815_v51 = vcombine.low %v5764_v5, %v5796_v57  ;;  %v18274_v25 = vrot.slane %v5718_v47, %v14280_v31  ;;  %v5974_v27 = vcombine.high %v23766_v17, %v23765_v18 }
 0x626   : > { %23784 = vst [vmem:[#allocation144_spill] sm:$0xff] %v18222_v1  ;;  %v5990_v30 = vcombine.high %v23768_v56, %v23767_v39  ;;  %v6499_v28 = vcombine.low %v6460_v8, %v6492_v48  ;;  %v18284_v60 = vrot.slane %v5686_v19, %v14280_v31  ;;  %v18291_v37 = vrot.slane %v6006_v14, %v14280_v31  ;;  %v23807_v14 = vld [vmem:[#allocation161_spill] sm:$0xff] }
 0x627   : > { %11747 = vrot.lane.b32.xlu1 %v5814_v42, %s23612_s28  ;;  %v18228_v45 = vpop.permute.xlu1 %11523  ;;  %v6227_v55 = vcombine.low %v6188_v53, %v6220_v12  ;;  %v5797_v16 = vcombine.low %v18274_v25, %v18262_v23  ;;  %v5958_v42 = vcombine.high %v23770_v20, %v23769_v52  ;;  %v5816_v17 = vcombine.high %v5764_v5, %v5796_v57 }
 0x628   : > { %23785 = vst [vmem:[#allocation140_spill] sm:$0xff] %v18228_v45  ;;  %v5765_v39 = vcombine.low %v18284_v60, %v18271_v62  ;;  %v18299_v56 = vrot.slane %v5974_v27, %v14280_v31  ;;  %v18302_v61 = vrot.slane %v5990_v30, %v14280_v31  ;;  %v6228_v20 = vcombine.high %v6188_v53, %v6220_v12  ;;  %v23810_v30 = vld [vmem:[#allocation451_spill] sm:$0xff] }
 0x629   : > { %11937 = vrot.lane.b32.xlu0 %v6226_v9, %s23786_s30  ;;  %v18239_v54 = vpop.permute.xlu0 %11713  ;;  %v18308_v9 = vrot.slane %v5958_v42, %v14280_v31  ;;  %v5805_v57 = vrot.slane %v5797_v16, %v14315_v11  ;;  %v6500_v5 = vcombine.high %v6460_v8, %v6492_v48  ;;  %v23806_v48 = vld [vmem:[#allocation159_spill] sm:$0xff]  ;;  %vm23909_vm2 = vcmask 97280  }
 0x62a   : > { %23787 = vst [vmem:[#allocation293_spill] sm:$0xff] %v18239_v54  ;;  %v6069_v44 = vcombine.low %v18302_v61, %v18291_v37  ;;  %v5773_v12 = vrot.slane %v5765_v39, %v14315_v11  ;;  %v23814_v39 = vld [vmem:[#allocation462_spill] sm:$0xff]  ;;  %vm23917_vm6 = vcmask 162816   ;;  %vm23921_vm5 = vcmask 195584  }
 0x62b   : > { %11751 = vrot.lane.b32.xlu1 %v6086_v41, %s23612_s28  ;;  %v18246_v0 = vpop.permute.xlu1 %11527  ;;  %v6088_v41 = vcombine.high %v6036_v32, %v6068_v35  ;;  %v6037_v6 = vcombine.low %v18308_v9, %v18299_v56  ;;  %v23804_v32 = vld [vmem:[#allocation165_spill] sm:$0xff] }
 0x62c   : > { %23788 = vst [vmem:[#allocation296_spill] sm:$0xff] %v18246_v0  ;;  %v5817_v53 = vcombine.low %v5773_v12, %v5805_v57  ;;  %v6077_v29 = vrot.slane %v6069_v44, %v14315_v11 }
 0x62d   : > { %11941 = vrot.lane.b32.xlu0 %v6498_v26, %s23786_s30  ;;  %v18256_v43 = vpop.permute.xlu0 %11717  ;;  %v6045_v24 = vrot.slane %v6037_v6, %v14315_v11  ;;  %v23815_v6 = vld [vmem:[#allocation454_spill] sm:$0xff] }
 0x62e   : > { %23789 = vst [vmem:[#allocation438_spill] sm:$0xff] %v18256_v43  ;;  %v23860_v43 = vld [vmem:[#allocation444_spill] sm:$0xff] }
 0x62f   : > { %11763 = vrot.lane.b32.xlu1 %v5815_v51, %s23632_s29  ;;  %v18266_v22 = vpop.permute.xlu1 %11539  ;;  %v23801_v51 = vld [vmem:[#allocation160_spill] sm:$0xff]  ;;  %v6089_v27 = vcombine.low %v6045_v24, %v6077_v29 }
 0x630   : > { %23790 = vst [vmem:[#allocation435_spill] sm:$0xff] %v18266_v22  ;;  %v6734_v35 = vcombine.high %v23801_v51, %v23800_v59  ;;  %v5818_v51 = vcombine.high %v5773_v12, %v5805_v57  ;;  %v23823_v57 = vld [vmem:[#allocation26_spill] sm:$0xff] }
 0x631   : > { %11953 = vrot.lane.b32.xlu0 %v6227_v55, %s23791_s0  ;;  %v18281_v58 = vpop.permute.xlu0 %11729  ;;  %v23805_v55 = vld [vmem:[#allocation168_spill] sm:$0xff] }
 0x632   : > { %23792 = vst [vmem:[#allocation238_spill] sm:$0xff] %v18281_v58  ;;  %v6766_v19 = vcombine.high %v23805_v55, %v23804_v32  ;;  %v6748_v44 = vrot.slane %v6734_v35, %v14315_v11  ;;  %v23841_v55 = vld [vmem:[#allocation180_spill] sm:$0xff] }
 0x633   : > { %11767 = vrot.lane.b32.xlu1 %v6087_v34, %s23632_s29  ;;  %v18293_v18 = vpop.permute.xlu1 %11543  ;;  %v6702_v34 = vcombine.high %v23807_v14, %v23806_v48  ;;  %v23818_v48 = vld [vmem:[#allocation131_spill] sm:$0xff]  ;;  %v23819_v14 = vld [vmem:[#allocation101_spill] sm:$0xff] }
 0x634   : > { %23793 = vst [vmem:[#allocation110_spill] sm:$0xff] %v18293_v18  ;;  %v23843_v18 = vld [vmem:[#allocation228_spill] sm:$0xff] }
 0x635   : > { %11957 = vrot.lane.b32.xlu0 %v6499_v28, %s23791_s0  ;;  %v18305_v52 = vpop.permute.xlu0 %11733  ;;  %v23811_v28 = vld [vmem:[#allocation455_spill] sm:$0xff] }
 0x636   : > { %23795 = vst [vmem:[#allocation50_spill] sm:$0xff] %v18305_v52  ;;  %v7006_v16 = vcombine.high %v23811_v28, %v23810_v30  ;;  %v5766_v30 = vcombine.high %v18284_v60, %v18271_v62  ;;  %v23822_v28 = vld [vmem:[#allocation56_spill] sm:$0xff]  ;;  %v6070_v62 = vcombine.high %v18302_v61, %v18291_v37 }
 0x637   : > { %11779 = vrot.lane.b32.xlu1 %v5816_v17, %s23794_s15  ;;  %v18312_v4 = vpop.permute.xlu1 %11555  ;;  %v23813_v17 = vld [vmem:[#allocation460_spill] sm:$0xff]  ;;  %v6638_v12 = vcombine.high %v23823_v57, %v23822_v28  ;;  %v23830_v57 = vld [vmem:[#allocation426_spill] sm:$0xff] }
 0x638   : > { %23796 = vst [vmem:[#allocation138_spill] sm:$0xff] %v18312_v4  ;;  %v5780_v37 = vrot.slane %v5766_v30, %v14315_v11  ;;  %v23837_v30 = vld [vmem:[#allocation411_spill] sm:$0xff] }
 0x639   : > { %11969 = vrot.lane.b32.xlu0 %v6228_v20, %s23797_s8  ;;  %v18320_v38 = vpop.permute.xlu0 %11745  ;;  %v7038_v20 = vcombine.high %v23814_v39, %v23813_v17  ;;  %v23827_v17 = vld [vmem:[#allocation86_spill] sm:$0xff] }
 0x63a   : > { %23798 = vst [vmem:[#allocation358_spill] sm:$0xff] %v18320_v38 }
 0x63b   : > { %11783 = vrot.lane.b32.xlu1 %v6088_v41, %s23794_s15  ;;  %v18322_v26 = vpop.permute.xlu1 %11559  ;;  %v5798_v41 = vcombine.high %v18274_v25, %v18262_v23  ;;  %v18363_v25 = vrot.slane %v7006_v16, %v14315_v11 }
 0x63c   : > { %23799 = vst [vmem:[#allocation171_spill] sm:$0xff] %v18322_v26  ;;  %v23842_v26 = vld [vmem:[#allocation260_spill] sm:$0xff] }
 0x63d   : > { %11973 = vrot.lane.b32.xlu0 %v6500_v5, %s23797_s8  ;;  %v18330_v47 = vpop.permute.xlu0 %11749  ;;  %v23816_v5 = vld [vmem:[#allocation456_spill] sm:$0xff]  ;;  %v5812_v16 = vrot.slane %v5798_v41, %v14315_v11 }
 0x63e   : > { %23803 = vst [vmem:[#allocation433_spill] sm:$0xff] %v18330_v47 }
 0x63f   : > { %11795 = vrot.lane.b32.xlu1 %v5817_v53, %s23802_s7  ;;  %v18336_v8 = vpop.permute.xlu1 %11571  ;;  %v6974_v53 = vcombine.high %v23816_v5, %v23815_v6  ;;  %v23825_v6 = vld [vmem:[#allocation41_spill] sm:$0xff]  ;;  %v23826_v5 = vld [vmem:[#allocation116_spill] sm:$0xff]  ;;  %v5819_v32 = vcombine.low %v5780_v37, %v5812_v16 }
 0x640   : > { %23808 = vst [vmem:[#allocation499_spill] sm:$0xff] %v18336_v8  ;;  %v23848_v8 = vld [vmem:[#allocation196_spill] sm:$0xff] }
 0x641   : > { %11985 = vrot.lane.b32.xlu0 %v6766_v19, %s23809_s12  ;;  %v18342_v42 = vpop.permute.xlu0 %11761  ;;  %v6716_v19 = vrot.slane %v6702_v34, %v14315_v11  ;;  %v6229_v4 = vcombine.low %v23849_v7, %v23848_v8 }
 0x642   : > { %23812 = vst [vmem:[#allocation34_spill] sm:$0xff] %v18342_v42 }
 0x643   : > { %11799 = vrot.lane.b32.xlu1 %v6089_v27, %s23802_s7  ;;  %v18351_v59 = vpop.permute.xlu1 %11575  ;;  %v6686_v27 = vcombine.high %v23819_v14, %v23818_v48  ;;  %v6767_v23 = vcombine.low %v6716_v19, %v6748_v44  ;;  %v6670_v48 = vcombine.high %v23827_v17, %v23826_v5  ;;  %v6988_v14 = vrot.slane %v6974_v53, %v14315_v11  ;;  %v23836_v5 = vld [vmem:[#allocation333_spill] sm:$0xff] }
 0x644   : > { %23817 = vst [vmem:[#allocation514_spill] sm:$0xff] %v18351_v59  ;;  %v6038_v17 = vcombine.high %v18308_v9, %v18299_v56  ;;  %v23835_v9 = vld [vmem:[#allocation364_spill] sm:$0xff] }
 0x645   : > { %11989 = vrot.lane.b32.xlu0 %v7038_v20, %s23809_s12  ;;  %v18360_v35 = vpop.permute.xlu0 %11765  ;;  %v23824_v20 = vld [vmem:[#allocation71_spill] sm:$0xff]  ;;  %v18379_v28 = vrot.slane %v6686_v27, %v14280_v31  ;;  %v18397_v53 = vrot.slane %v6670_v48, %v14280_v31  ;;  %v23833_v27 = vld [vmem:[#allocation276_spill] sm:$0xff] }
 0x646   : > { %23821 = vst [vmem:[#allocation109_spill] sm:$0xff] %v18360_v35  ;;  %v6654_v34 = vcombine.high %v23825_v6, %v23824_v20  ;;  %v23831_v20 = vld [vmem:[#allocation395_spill] sm:$0xff]  ;;  %v23840_v48 = vld [vmem:[#allocation212_spill] sm:$0xff]  ;;  %v23857_v35 = vld [vmem:[#allocation522_spill] sm:$0xff] }
 0x647   : > { %11811 = vrot.lane.b32.xlu1 %v5818_v51, %s23820_s19  ;;  %v18373_v60 = vpop.permute.xlu1 %11587  ;;  %v6090_v51 = vcombine.high %v6045_v24, %v6077_v29  ;;  %v6958_v6 = vcombine.high %v23831_v20, %v23830_v57  ;;  %v7039_v29 = vcombine.low %v6988_v14, %v18363_v25  ;;  %v18391_v24 = vrot.slane %v6638_v12, %v14280_v31  ;;  %v23838_v57 = vld [vmem:[#allocation380_spill] sm:$0xff] }
 0x648   : > { %23828 = vst [vmem:[#allocation374_spill] sm:$0xff] %v18373_v60  ;;  %v18394_v41 = vrot.slane %v6654_v34, %v14280_v31  ;;  %v6942_v20 = vcombine.high %v23838_v57, %v23837_v30  ;;  %v6084_v12 = vrot.slane %v6070_v62, %v14315_v11  ;;  %v6749_v34 = vcombine.low %v18397_v53, %v18379_v28 }
 0x649   : > { %12001 = vrot.lane.b32.xlu0 %v6767_v23, %s23829_s6  ;;  %v18387_v61 = vpop.permute.xlu0 %11777  ;;  %v23834_v23 = vld [vmem:[#allocation244_spill] sm:$0xff]  ;;  %v6245_v59 = vcombine.low %v23841_v55, %v23840_v48  ;;  %v6261_v60 = vcombine.low %v23843_v18, %v23842_v26  ;;  %v18418_v30 = vrot.slane %v6958_v6, %v14280_v31  ;;  %v6768_v57 = vcombine.high %v6716_v19, %v6748_v44 }
 0x64a   : > { %23832 = vst [vmem:[#allocation419_spill] sm:$0xff] %v18387_v61  ;;  %v6277_v56 = vcombine.low %v23834_v23, %v23833_v27  ;;  %v18435_v6 = vrot.slane %v6942_v20, %v14280_v31  ;;  %v6757_v20 = vrot.slane %v6749_v34, %v14315_v11  ;;  %v23859_v61 = vld [vmem:[#allocation489_spill] sm:$0xff] }
 0x64b   : > { %11815 = vrot.lane.b32.xlu1 %v6090_v51, %s23820_s19  ;;  %v6926_v51 = vcombine.high %v23836_v5, %v23835_v9  ;;  %v18405_v39 = vpop.permute.xlu1 %11591  ;;  %v23844_v9 = vld [vmem:[#allocation349_spill] sm:$0xff]  ;;  %v18443_v19 = vrot.slane %v6245_v59, %v14280_v31  ;;  %v6501_v42 = vcombine.low %v23860_v43, %v23859_v61 }
 0x64c   : > { %23839 = vst [vmem:[#allocation294_spill] sm:$0xff] %v18405_v39  ;;  %v23845_v5 = vld [vmem:[#allocation305_spill] sm:$0xff]  ;;  %v6717_v39 = vcombine.low %v18391_v24, %v18394_v41  ;;  %v18429_v33 = vrot.slane %v6277_v56, %v14280_v31  ;;  %v18446_v56 = vrot.slane %v6261_v60, %v14280_v31  ;;  %v7021_v45 = vcombine.low %v18435_v6, %v18418_v30 }
 0x64d   : > { %12005 = vrot.lane.b32.xlu0 %v7039_v29, %s23829_s6  ;;  %v6910_v0 = vcombine.high %v23845_v5, %v23844_v9  ;;  %v6052_v29 = vrot.slane %v6038_v17, %v14315_v11  ;;  %v18422_v62 = vpop.permute.xlu0 %11781  ;;  %v18432_v9 = vrot.slane %v6926_v51, %v14280_v31  ;;  %v23851_v17 = vld [vmem:[#allocation48_spill] sm:$0xff]  ;;  %v7040_v60 = vcombine.high %v6988_v14, %v18363_v25 }
 0x64e   : > { %23847 = vst [vmem:[#allocation324_spill] sm:$0xff] %v18422_v62  ;;  %v23856_v62 = vld [vmem:[#allocation239_spill] sm:$0xff]  ;;  %v6325_v34 = vcombine.low %v18446_v56, %v18429_v33  ;;  %v6725_v47 = vrot.slane %v6717_v39, %v14315_v11  ;;  %v5820_v25 = vcombine.high %v5780_v37, %v5812_v16  ;;  %v18492_v37 = vrot.slane %v6501_v42, %v14280_v31 }
 0x64f   : > { %11827 = vrot.lane.b32.xlu1 %v5819_v32, %s23846_s9  ;;  %v23850_v32 = vld [vmem:[#allocation484_spill] sm:$0xff]  ;;  %v18439_v22 = vpop.permute.xlu1 %11603  ;;  %v6091_v44 = vcombine.low %v6052_v29, %v6084_v12  ;;  %v18449_v51 = vrot.slane %v6910_v0, %v14280_v31  ;;  %v18463_v0 = vrot.slane %v6229_v4, %v14280_v31 }
 0x650   : > { %v6549_v5 = vcombine.low %v23851_v17, %v23850_v32  ;;  %23852 = vst [vmem:[#allocation94_spill] sm:$0xff] %v18439_v22  ;;  %v6517_v22 = vcombine.low %v23855_v50, %v23854_v13  ;;  %v6769_v4 = vcombine.low %v6725_v47, %v6757_v20  ;;  %v6333_v16 = vrot.slane %v6325_v34, %v14315_v11 }
 0x651   : > { %12017 = vrot.lane.b32.xlu0 %v6768_v57, %s23853_s1  ;;  %v6533_v57 = vcombine.low %v23857_v35, %v23856_v62  ;;  %v18459_v59 = vpop.permute.xlu0 %11793  ;;  %v6989_v52 = vcombine.low %v18449_v51, %v18432_v9  ;;  %v6293_v14 = vcombine.low %v18463_v0, %v18443_v19 }
 0x652   : > { %23858 = vst [vmem:[#allocation292_spill] sm:$0xff] %v18459_v59  ;;  %v18481_v39 = vrot.slane %v6517_v22, %v14280_v31  ;;  %v6092_v22 = vcombine.high %v6052_v29, %v6084_v12 }
 0x653   : > { %11831 = vrot.lane.b32.xlu1 %v6091_v44, %s23846_s9  ;;  %v18473_v44 = vrot.slane %v6549_v5, %v14280_v31  ;;  %v18475_v59 = vpop.permute.xlu1 %11607  ;;  %v18484_v1 = vrot.slane %v6533_v57, %v14280_v31  ;;  %v7029_v5 = vrot.slane %v7021_v45, %v14315_v11  ;;  %v6997_v57 = vrot.slane %v6989_v52, %v14315_v11 }
 0x654   : > { %23861 = vst [vmem:[#allocation49_spill] sm:$0xff] %v18475_v59  ;;  %v6301_v45 = vrot.slane %v6293_v14, %v14315_v11  ;;  %v6750_v52 = vcombine.high %v18397_v53, %v18379_v28  ;;  %v6770_v14 = vcombine.high %v6725_v47, %v6757_v20  ;;  %v6326_v47 = vcombine.high %v18446_v56, %v18429_v33  ;;  %v23876_v56 = vld [vmem:[#allocation55_spill] sm:$0xff] }
 0x655   : > { %12021 = vrot.lane.b32.xlu0 %v7040_v60, %s23853_s1  ;;  %v18487_v38 = vpop.permute.xlu0 %11797  ;;  %v6597_v60 = vcombine.low %v18484_v1, %v18473_v44  ;;  %v7041_v42 = vcombine.low %v6997_v57, %v7029_v5 }
 0x656   : > { %23863 = vst [vmem:[#allocation175_spill] sm:$0xff] %v18487_v38  ;;  %v6357_v46 = vcombine.low %v6301_v45, %v6333_v16  ;;  %v6764_v53 = vrot.slane %v6750_v52, %v14315_v11  ;;  %v6358_v20 = vcombine.high %v6301_v45, %v6333_v16  ;;  %v23878_v45 = vld [vmem:[#allocation70_spill] sm:$0xff] }
 0x657   : > { %11843 = vrot.lane.b32.xlu1 %v5820_v25, %s23862_s18  ;;  %v18496_v59 = vpop.permute.xlu1 %11619  ;;  %v6565_v25 = vcombine.low %v18492_v37, %v18481_v39  ;;  %v6605_v12 = vrot.slane %v6597_v60, %v14315_v11  ;;  %v7022_v60 = vcombine.high %v18435_v6, %v18418_v30  ;;  %v23873_v6 = vld [vmem:[#allocation130_spill] sm:$0xff] }
 0x658   : > { %23864 = vst [vmem:[#allocation388_spill] sm:$0xff] %v18496_v59 }
 0x659   : > { %12033 = vrot.lane.b32.xlu0 %v6769_v4, %s23865_s23  ;;  %v18504_v34 = vpop.permute.xlu0 %11809  ;;  %v6573_v29 = vrot.slane %v6565_v25, %v14315_v11 }
 0x65a   : > { %23866 = vst [vmem:[#allocation143_spill] sm:$0xff] %v18504_v34  ;;  %v6566_v34 = vcombine.high %v18492_v37, %v18481_v39  ;;  %v6278_v39 = vcombine.high %v23834_v23, %v23833_v27  ;;  %v23887_v37 = vld [vmem:[#allocation363_spill] sm:$0xff]  ;;  %v6262_v27 = vcombine.high %v23843_v18, %v23842_v26  ;;  %v23892_v23 = vld [vmem:[#allocation348_spill] sm:$0xff] }
 0x65b   : > { %11847 = vrot.lane.b32.xlu1 %v6092_v22, %s23862_s18  ;;  %v18506_v38 = vpop.permute.xlu1 %11623  ;;  %v6718_v22 = vcombine.high %v18391_v24, %v18394_v41  ;;  %v6990_v24 = vcombine.high %v18449_v51, %v18432_v9  ;;  %v18543_v9 = vrot.slane %v7022_v60, %v14315_v11  ;;  %v23877_v51 = vld [vmem:[#allocation25_spill] sm:$0xff]  ;;  %v6340_v60 = vrot.slane %v6326_v47, %v14315_v11 }
 0x65c   : > { %23867 = vst [vmem:[#allocation373_spill] sm:$0xff] %v18506_v38  ;;  %v6629_v38 = vcombine.low %v6573_v29, %v6605_v12  ;;  %v7181_v16 = vcombine.low %v23877_v51, %v23876_v56  ;;  %v7453_v54 = vcombine.low %v23893_v40, %v23892_v23  ;;  %v18609_v18 = vrot.slane %v6278_v39, %v14280_v31 }
 0x65d   : > { %12037 = vrot.lane.b32.xlu0 %v7041_v42, %s23865_s23  ;;  %v18514_v4 = vpop.permute.xlu0 %11813  ;;  %v6732_v30 = vrot.slane %v6718_v22, %v14315_v11  ;;  %v23879_v42 = vld [vmem:[#allocation40_spill] sm:$0xff]  ;;  %v23881_v22 = vld [vmem:[#allocation85_spill] sm:$0xff] }
 0x65e   : > { %23868 = vst [vmem:[#allocation469_spill] sm:$0xff] %v18514_v4  ;;  %v7197_v52 = vcombine.low %v23879_v42, %v23878_v45  ;;  %v23885_v4 = vld [vmem:[#allocation394_spill] sm:$0xff] }
 0x65f   : > { %11859 = vrot.lane.b32.xlu1 %v6357_v46, %s23712_s2  ;;  %v18518_v59 = vpop.permute.xlu1 %11635  ;;  %v7042_v46 = vcombine.high %v6997_v57, %v7029_v5  ;;  %v6294_v5 = vcombine.high %v18463_v0, %v18443_v19  ;;  %v6771_v33 = vcombine.low %v6732_v30, %v6764_v53  ;;  %v6598_v19 = vcombine.high %v18484_v1, %v18473_v44 }
 0x660   : > { %23869 = vst [vmem:[#allocation241_spill] sm:$0xff] %v18518_v59  ;;  %v18574_v47 = vrot.slane %v7197_v52, %v14280_v31 }
 0x661   : > { %12049 = vrot.lane.b32.xlu0 %v6770_v14, %s23870_s10  ;;  %v18524_v28 = vpop.permute.xlu0 %11825  ;;  %v23880_v14 = vld [vmem:[#allocation115_spill] sm:$0xff]  ;;  %v6308_v1 = vrot.slane %v6294_v5, %v14315_v11  ;;  %v23889_v5 = vld [vmem:[#allocation410_spill] sm:$0xff] }
 0x662   : > { %23871 = vst [vmem:[#allocation437_spill] sm:$0xff] %v18524_v28 }
 0x663   : > { %11863 = vrot.lane.b32.xlu1 %v6629_v38, %s23712_s2  ;;  %v18531_v41 = vpop.permute.xlu1 %11639  ;;  %v23874_v38 = vld [vmem:[#allocation100_spill] sm:$0xff]  ;;  %s23883_s2 = smov 24   ;;  %v6359_v58 = vcombine.low %v6308_v1, %v6340_v60 }
 0x664   : > { %23872 = vst [vmem:[#allocation288_spill] sm:$0xff] %v18531_v41  ;;  %v7229_v25 = vcombine.low %v23874_v38, %v23873_v6  ;;  %v7004_v41 = vrot.slane %v6990_v24, %v14315_v11 }
 0x665   : > { %12053 = vrot.lane.b32.xlu0 %v7042_v46, %s23870_s10  ;;  %v18540_v57 = vpop.permute.xlu0 %11829  ;;  %v7213_v46 = vcombine.low %v23881_v22, %v23880_v14 }
 0x666   : > { %23875 = vst [vmem:[#allocation65_spill] sm:$0xff] %v18540_v57  ;;  %v18559_v59 = vrot.slane %v7229_v25, %v14280_v31  ;;  %v23884_v57 = vld [vmem:[#allocation425_spill] sm:$0xff]  ;;  %v23888_v25 = vld [vmem:[#allocation332_spill] sm:$0xff]  ;;  %v7044_v39 = vcombine.high %v7004_v41, %v18543_v9 }
 0x667   : > { %11875 = vrot.lane.b32.xlu1 %v6358_v20, %s23741_s11  ;;  %v18553_v0 = vpop.permute.xlu1 %11651  ;;  %v6630_v20 = vcombine.high %v6573_v29, %v6605_v12  ;;  %v7501_v28 = vcombine.low %v23885_v4, %v23884_v57  ;;  %v7043_v12 = vcombine.low %v7004_v41, %v18543_v9  ;;  %v18571_v29 = vrot.slane %v7181_v16, %v14280_v31 }
 0x668   : > { %23882 = vst [vmem:[#allocation225_spill] sm:$0xff] %v18553_v0  ;;  %v18577_v24 = vrot.slane %v7213_v46, %v14280_v31  ;;  %v6612_v16 = vrot.slane %v6598_v19, %v14315_v11  ;;  %v6246_v46 = vcombine.high %v23841_v55, %v23840_v48  ;;  %v6230_v55 = vcombine.high %v23849_v7, %v23848_v8 }
 0x669   : > { %12065 = vrot.lane.b32.xlu0 %v6771_v33, %s23883_s2  ;;  %v18567_v44 = vpop.permute.xlu0 %11841  ;;  %v7469_v33 = vcombine.low %v23888_v25, %v23887_v37  ;;  %v18598_v63 = vrot.slane %v7501_v28, %v14280_v31  ;;  %v7245_v49 = vcombine.low %v18571_v29, %v18574_v47  ;;  %v18626_v7 = vrot.slane %v6262_v27, %v14280_v31 }
 0x66a   : > { %23886 = vst [vmem:[#allocation148_spill] sm:$0xff] %v18567_v44  ;;  %v7277_v52 = vcombine.low %v18577_v24, %v18559_v59  ;;  %v18629_v8 = vrot.slane %v7453_v54, %v14280_v31  ;;  %v18643_v54 = vrot.slane %v6230_v55, %v14280_v31  ;;  %v6360_v41 = vcombine.high %v6308_v1, %v6340_v60 }
 0x66b   : > { %11879 = vrot.lane.b32.xlu1 %v6630_v20, %s23741_s11  ;;  %v23890_v20 = vld [vmem:[#allocation379_spill] sm:$0xff]  ;;  %v18585_v44 = vpop.permute.xlu1 %11655  ;;  %v18612_v26 = vrot.slane %v7469_v33, %v14280_v31  ;;  %v6341_v33 = vcombine.low %v18626_v7, %v18609_v18 }
 0x66c   : > { %v7485_v0 = vcombine.low %v23890_v20, %v23889_v5  ;;  %23891 = vst [vmem:[#allocation341_spill] sm:$0xff] %v18585_v44  ;;  %v6772_v44 = vcombine.high %v6732_v30, %v6764_v53  ;;  %v18623_v53 = vrot.slane %v6246_v46, %v14280_v31  ;;  %v7285_v30 = vrot.slane %v7277_v52, %v14315_v11 }
 0x66d   : > { %12069 = vrot.lane.b32.xlu0 %v7043_v12, %s23883_s2  ;;  %v6580_v12 = vrot.slane %v6566_v34, %v14315_v11  ;;  %v18602_v19 = vpop.permute.xlu0 %11845  ;;  %v7253_v52 = vrot.slane %v7245_v49, %v14315_v11  ;;  %v6349_v60 = vrot.slane %v6341_v33, %v14315_v11 }
 0x66e   : > { %v18615_v48 = vrot.slane %v7485_v0, %v14280_v31  ;;  %v6309_v46 = vcombine.low %v18643_v54, %v18623_v53 }
 0x66f   : > { %11891 = vrot.lane.b32.xlu1 %v6359_v58, %s23764_s5  ;;  %v6550_v58 = vcombine.high %v23851_v17, %v23850_v32  ;;  %v18619_v34 = vpop.permute.xlu1 %11667  ;;  %v6631_v28 = vcombine.low %v6580_v12, %v6612_v16  ;;  %v6518_v32 = vcombine.high %v23855_v50, %v23854_v13  ;;  %v6534_v17 = vcombine.high %v23857_v35, %v23856_v62 }
 0x670   : > { %v7549_v0 = vcombine.low %v18615_v48, %v18598_v63  ;;  %v7517_v50 = vcombine.low %v18629_v8, %v18612_v26  ;;  %v6502_v13 = vcombine.high %v23860_v43, %v23859_v61  ;;  %v7309_v9 = vcombine.low %v7253_v52, %v7285_v30 }
 0x671   : > { %12081 = vrot.lane.b32.xlu0 %v6772_v44, %s23492_s14  ;;  %v18639_v44 = vpop.permute.xlu0 %11857  ;;  %v18653_v35 = vrot.slane %v6550_v58, %v14280_v31  ;;  %v18661_v49 = vrot.slane %v6518_v32, %v14280_v31  ;;  %v18664_v27 = vrot.slane %v6534_v17, %v14280_v31 }
 0x672   : > { %v7557_v61 = vrot.slane %v7549_v0, %v14315_v11  ;;  %v18672_v1 = vrot.slane %v6502_v13, %v14280_v31  ;;  %v7525_v32 = vrot.slane %v7517_v50, %v14315_v11  ;;  %v6317_v0 = vrot.slane %v6309_v46, %v14315_v11 }
 0x673   : > { %11895 = vrot.lane.b32.xlu1 %v6631_v28, %s23764_s5  ;;  %v18655_v62 = vpop.permute.xlu1 %11671  ;;  %v6613_v55 = vcombine.low %v18664_v27, %v18653_v35  ;;  %v6632_v28 = vcombine.high %v6580_v12, %v6612_v16  ;;  %v7278_v12 = vcombine.high %v18577_v24, %v18559_v59  ;;  %v7310_v46 = vcombine.high %v7253_v52, %v7285_v30 }
 0x674   : > { %23894 = vst [vmem:[#allocation445_spill] sm:$0xff] %v18655_v62  ;;  %v6581_v17 = vcombine.low %v18672_v1, %v18661_v49  ;;  %v7581_v33 = vcombine.low %v7525_v32, %v7557_v61  ;;  %v7582_v24 = vcombine.high %v7525_v32, %v7557_v61  ;;  %v7198_v30 = vcombine.high %v23879_v42, %v23878_v45  ;;  %v23898_v32 = vld [vmem:[#allocation28_spill] sm:$0xff] }
 0x675   : > { %12085 = vrot.lane.b32.xlu0 %v7044_v39, %s23492_s14  ;;  %v18667_v43 = vpop.permute.xlu0 %11861  ;;  %v6621_v16 = vrot.slane %v6613_v55, %v14315_v11  ;;  %v7550_v55 = vcombine.high %v18615_v48, %v18598_v63  ;;  %v7182_v48 = vcombine.high %v23877_v51, %v23876_v56  ;;  %v7230_v61 = vcombine.high %v23874_v38, %v23873_v6 }
 0x676   : > { %v6589_v50 = vrot.slane %v6581_v17, %v14315_v11  ;;  %v7292_v17 = vrot.slane %v7278_v12, %v14315_v11  ;;  %v6310_v45 = vcombine.high %v18643_v54, %v18623_v53  ;;  %v7214_v56 = vcombine.high %v23881_v22, %v23880_v14  ;;  %v23899_v12 = vld [vmem:[#allocation73_spill] sm:$0xff] }
 0x677   : > { %11907 = vrot.lane.b32.xlu1 %v6360_v41, %s23777_s4  ;;  %v18676_v58 = vpop.permute.xlu1 %11683  ;;  %v6361_v41 = vcombine.low %v6317_v0, %v6349_v60  ;;  %v6614_v6 = vcombine.high %v18664_v27, %v18653_v35  ;;  %v7196_v54 = vrot.slane %v7182_v48, %v14280_v31  ;;  %v18747_v14 = vrot.slane %v7230_v61, %v14280_v31  ;;  %v23906_v48 = vld [vmem:[#allocation531_spill] sm:$0xff] }
 0x678   : > { %v6634_v51 = vcombine.high %v6589_v50, %v6621_v16  ;;  %v7502_v22 = vcombine.high %v23885_v4, %v23884_v57  ;;  %v6582_v35 = vcombine.high %v18672_v1, %v18661_v49  ;;  %v6324_v27 = vrot.slane %v6310_v45, %v14315_v11 }
 0x679   : > { %12097 = vrot.lane.b32.xlu0 %v7309_v9, %s23496_s16  ;;  %v18684_v39 = vpop.permute.xlu0 %11873  ;;  %v7470_v4 = vcombine.high %v23888_v25, %v23887_v37  ;;  %v7486_v57 = vcombine.high %v23890_v20, %v23889_v5  ;;  %v7454_v37 = vcombine.high %v23893_v40, %v23892_v23  ;;  %v23902_v25 = vld [vmem:[#allocation141_spill] sm:$0xff]  ;;  %v23904_v20 = vld [vmem:[#allocation152_spill] sm:$0xff] }
 0x67a   : > { %v23903_v5 = vld [vmem:[#allocation153_spill] sm:$0xff]  ;;  %v6596_v45 = vrot.slane %v6582_v35, %v14315_v11  ;;  %v23910_v35 = vld [vmem:[#allocation66_spill] sm:$0xff] }
 0x67b   : > { %11911 = vrot.lane.b32.xlu1 %v6632_v28, %s23777_s4  ;;  %v7246_v28 = vcombine.high %v18571_v29, %v18574_v47  ;;  %v6342_v29 = vcombine.high %v18626_v7, %v18609_v18  ;;  %v7518_v47 = vcombine.high %v18629_v8, %v18612_v26  ;;  %v18727_v26 = vrot.slane %v7550_v55, %v14315_v11 }
 0x67c   : > { %v18686_v13 = vpop.permute.xlu1 %11687  ;;  %v18730_v7 = vrot.slane %v7198_v30, %v14280_v31  ;;  %v18773_v55 = vrot.slane %v6614_v6, %v14315_v11  ;;  %v23908_v6 = vld [vmem:[#allocation126_spill] sm:$0xff] }
 0x67d   : > { %23895 = vst [vmem:[#allocation515_spill] sm:$0xff] %v18686_v13  ;;  %12101 = vrot.lane.b32.xlu0 %v7581_v33, %s23496_s16  ;;  %v6633_v13 = vcombine.low %v6589_v50, %v6621_v16  ;;  %v6362_v33 = vcombine.high %v6317_v0, %v6349_v60  ;;  %v7260_v63 = vrot.slane %v7246_v28, %v14315_v11  ;;  %v23897_v60 = vld [vmem:[#allocation58_spill] sm:$0xff]  ;;  %v23900_v50 = vld [vmem:[#allocation43_spill] sm:$0xff] }
 0x67e   : > { %v18740_v53 = vrot.slane %v6342_v29, %v14315_v11  ;;  %v7532_v8 = vrot.slane %v7518_v47, %v14315_v11  ;;  %v7725_v0 = vcombine.low %v23898_v32, %v23897_v60  ;;  %v7261_v16 = vcombine.low %v7196_v54, %v18730_v7 }
 0x67f   : > { %11923 = vrot.lane.b32.xlu1 %v6361_v41, %s23781_s3  ;;  %v18694_v9 = vpop.permute.xlu0 %11877  ;;  %v7311_v18 = vcombine.low %v7260_v63, %v7292_v17  ;;  %v18762_v28 = vrot.slane %v7214_v56, %v14280_v31  ;;  %v23905_v29 = vcombine.low %v23903_v5, %v23904_v20  ;;  %v7312_v56 = vcombine.high %v7260_v63, %v7292_v17 }
 0x680   : > { %v18698_v62 = vpop.permute.xlu1 %11699  ;;  %v7583_v41 = vcombine.low %v7532_v8, %v18727_v26  ;;  %v6363_v1 = vcombine.low %v6324_v27, %v18740_v53  ;;  %v7262_v40 = vcombine.high %v7196_v54, %v18730_v7  ;;  %v6635_v7 = vcombine.low %v6596_v45, %v18773_v55 }
 0x681   : > { %12113 = vrot.lane.b32.xlu0 %v7310_v46, %s23506_s20  ;;  %v7741_v46 = vcombine.low %v23900_v50, %v23899_v12  ;;  %v7293_v30 = vcombine.low %v18762_v28, %v18747_v14  ;;  %v13128_v47 = vsel %vm12973_vm0, %v23905_v29, %v23902_v25  ;;  %v18818_v54 = vrot.slane %v7454_v37, %v14280_v31  ;;  %v23920_v37 = vld [vmem:[#allocation406_spill] sm:$0xff] }
 0x682   : > { %v13132_v61 = vsel %vm23907_vm1, %v13128_v47, %v23906_v48  ;;  %v23918_v47 = vld [vmem:[#allocation485_spill] sm:$0xff]  ;;  %vm23927_vm1 = vmmov %vm23909_vm2 }
 0x683   : > { %11927 = vrot.lane.b32.xlu1 %v6633_v13, %s23781_s3  ;;  %v18704_v59 = vpop.permute.xlu0 %11889  ;;  %v18798_v23 = vrot.slane %v7741_v46, %v14280_v31  ;;  %v23913_v46 = vld [vmem:[#allocation450_spill] sm:$0xff]  ;;  %v18828_v20 = vrot.slane %v7293_v30, %v14315_v11  ;;  %v23924_v30 = vld [vmem:[#allocation133_spill] sm:$0xff] }
 0x685   : > { %v18713_v52 = vpop.permute.xlu1 %11703  ;;  %12117 = vrot.lane.b32.xlu0 %v7582_v24, %s23506_s20  ;;  %v18776_v24 = vrot.slane %v7725_v0, %v14280_v31  ;;  %v18803_v0 = vrot.slane %v7261_v16, %v14315_v11  ;;  %v23912_v16 = vld [vmem:[#allocation500_spill] sm:$0xff] }
 0x686   : > { %23896 = vst [vmem:[#allocation22_spill] sm:$0xff] %v18713_v52 }
 0x687   : > { %11939 = vrot.lane.b32.xlu1 %v6362_v33, %s23786_s30  ;;  %v18724_v42 = vpop.permute.xlu0 %11893  ;;  %v18788_v33 = vrot.slane %v7502_v22, %v14280_v31  ;;  %v18806_v22 = vrot.slane %v7470_v4, %v14280_v31 }
 0x689   : > { %v18736_v38 = vpop.permute.xlu1 %11715  ;;  %12129 = vrot.lane.b32.xlu0 %v7311_v18, %s23515_s21 }
 0x68b   : > { %11943 = vrot.lane.b32.xlu1 %v6634_v51, %s23786_s30  ;;  %v18755_v13 = vpop.permute.xlu0 %11905  ;;  %v13136_v51 = vsel %vm23909_vm2, %v13132_v61, %v23908_v6  ;;  %v7584_v6 = vcombine.high %v7532_v8, %v18727_v26  ;;  %vm23929_vm2 = vcmask 228352  }
 0x68c   : > { %v13140_v17 = vsel %vm12988_vm3, %v13136_v51, %v23910_v35  ;;  %v23922_v51 = vld [vmem:[#allocation118_spill] sm:$0xff]  ;;  %v23923_v35 = vld [vmem:[#allocation88_spill] sm:$0xff] }
 0x68d   : > { %v18768_v49 = vpop.permute.xlu1 %11719  ;;  %12133 = vrot.lane.b32.xlu0 %v7583_v41, %s23515_s21  ;;  %v18809_v41 = vrot.slane %v7486_v57, %v14280_v31  ;;  %v23916_v57 = vld [vmem:[#allocation421_spill] sm:$0xff] }
 0x68e   : > { %23901 = vst [vmem:[#allocation286_spill] sm:$0xff] %v18768_v49  ;;  %v13144_v5 = vsel %vm23917_vm6, %v13140_v17, %v23916_v57  ;;  %v7757_v17 = vcombine.low %v23923_v35, %v23922_v51  ;;  %v23928_v57 = vld [vmem:[#allocation297_spill] sm:$0xff]  ;;  %vm23932_vm6 = vcmask 261120   ;;  %v6364_v49 = vcombine.high %v6324_v27, %v18740_v53 }
 0x68f   : > { %11955 = vrot.lane.b32.xlu1 %v6363_v1, %s23791_s0  ;;  %v18794_v18 = vpop.permute.xlu0 %11909  ;;  %v23914_v1 = vld [vmem:[#allocation449_spill] sm:$0xff]  ;;  %v7565_v29 = vcombine.low %v18809_v41, %v18788_v33  ;;  %v13148_v61 = vsel %vm23921_vm5, %v13144_v5, %v23920_v37  ;;  %v7533_v5 = vcombine.low %v18818_v54, %v18806_v22  ;;  %v23931_v37 = vld [vmem:[#allocation195_spill] sm:$0xff]  ;;  %vm23937_vm5 = vcmask 293888  }
 0x690   : > { %v23915_v4 = vcombine.low %v23913_v46, %v23914_v1  ;;  %v23926_v1 = vld [vmem:[#allocation51_spill] sm:$0xff] }
 0x691   : > { %v18813_v63 = vpop.permute.xlu1 %11731  ;;  %12145 = vrot.lane.b32.xlu0 %v7312_v56, %s23524_s22 }
 0x692   : > { %23911 = vst [vmem:[#allocation35_spill] sm:$0xff] %v18813_v63  ;;  %v13130_v25 = vsel %vm12973_vm0, %v23915_v4, %v23912_v16  ;;  %v23925_v16 = vld [vmem:[#allocation103_spill] sm:$0xff]  ;;  %v24002_v63 = vld [vmem:[#allocation109_spill] sm:$0xff] }
 0x693   : > { %v13134_v48 = vsel %vm23919_vm4, %v13130_v25, %v23918_v47  ;;  %11959 = vrot.lane.b32.xlu1 %v6635_v7, %s23791_s0  ;;  %v18837_v56 = vpop.permute.xlu0 %11921  ;;  %v7773_v46 = vcombine.low %v23925_v16, %v23924_v30  ;;  %v13152_v25 = vsel %vm23929_vm2, %v13148_v61, %v23928_v57  ;;  %v23930_v7 = vld [vmem:[#allocation111_spill] sm:$0xff]  ;;  %vm23935_vm4 = vcmask 162816  }
 0x694   : > { %v13138_v4 = vsel %vm23927_vm1, %v13134_v48, %v23926_v1  ;;  %v13156_v26 = vsel %vm23932_vm6, %v13152_v25, %v23931_v37  ;;  %v7294_v48 = vcombine.high %v18762_v28, %v18747_v14  ;;  %v23934_v1 = vld [vmem:[#allocation359_spill] sm:$0xff]  ;;  %vm23939_vm1 = vcmask 195584  }
 0x695   : > { %v13142_v47 = vsel %vm12988_vm3, %v13138_v4, %v23930_v7  ;;  %v18854_v8 = vpop.permute.xlu1 %11735  ;;  %12149 = vrot.lane.b32.xlu0 %v7584_v6, %s23524_s22  ;;  %v23936_v57 = vld [vmem:[#allocation211_spill] sm:$0xff]  ;;  %v18865_v4 = vrot.slane %v7262_v40, %v14315_v11  ;;  %v23938_v7 = vld [vmem:[#allocation344_spill] sm:$0xff]  ;;  %vm23940_vm2 = vcmask 326656   ;;  %v7313_v14 = vcombine.low %v18803_v0, %v18828_v20 }
 0x696   : > { %23933 = vst [vmem:[#allocation146_spill] sm:$0xff] %v18854_v8  ;;  %v13146_v61 = vsel %vm23935_vm4, %v13142_v47, %v23934_v1  ;;  %v13160_v52 = vsel %vm23937_vm5, %v13156_v26, %v23936_v57  ;;  %v18877_v28 = vrot.slane %v7565_v29, %v14315_v11  ;;  %v18880_v6 = vrot.slane %v7757_v17, %v14280_v31  ;;  %v23941_v47 = vld [vmem:[#allocation129_spill] sm:$0xff]  ;;  %v23948_v1 = vld [vmem:[#allocation199_spill] sm:$0xff] }
 0x697   : > { %v13150_v25 = vsel %vm23939_vm1, %v13146_v61, %v23938_v7  ;;  %v13164_v53 = vsel %vm23940_vm2, %v13160_v52, %v17971_v10  ;;  %11971 = vrot.lane.b32.xlu1 %v6364_v49, %s23797_s8  ;;  %v18872_v27 = vpop.permute.xlu0 %11925  ;;  %v18883_v40 = vrot.slane %v7773_v46, %v14280_v31  ;;  %vm23942_vm6 = vcmask 228352   ;;  %v23944_v52 = vld [vmem:[#allocation149_spill] sm:$0xff]  ;;  %v23949_v61 = vld [vmem:[#allocation155_spill] sm:$0xff] }
 0x698   : > { %v13154_v37 = vsel %vm23942_vm6, %v13150_v25, %v23941_v47  ;;  %vm23943_vm4 = vcmask 359424   ;;  %vm23945_vm5 = vcmask 261120   ;;  %vm23946_vm1 = vcmask 392192  }
 0x699   : > { %v13168_v10 = vsel %vm23943_vm4, %v13164_v53, %v18048_v36  ;;  %v13158_v49 = vsel %vm23945_vm5, %v13154_v37, %v23944_v52  ;;  %v18893_v29 = vpop.permute.xlu1 %11747  ;;  %v6636_v17 = vcombine.high %v6596_v45, %v18773_v55  ;;  %12161 = vrot.lane.b32.xlu0 %v7313_v14, %s23542_s24  ;;  %v7541_v46 = vrot.slane %v7533_v5, %v14315_v11  ;;  %v23953_v53 = vld [vmem:[#allocation311_spill] sm:$0xff]  ;;  %v23958_v37 = vld [vmem:[#allocation310_spill] sm:$0xff] }
 0x69a   : > { %v13172_v26 = vsel %vm23946_vm1, %v13168_v10, %v18120_v21  ;;  %23947 = vst [vmem:[#allocation82_spill] sm:$0xff] %v18893_v29  ;;  %v6774_v57 = vcombine.high %v23949_v61, %v23948_v1  ;;  %vm23950_vm2 = vcmask 293888   ;;  %vm23951_vm6 = vcmask 424960   ;;  %v23952_v21 = vld [vmem:[#allocation309_spill] sm:$0xff]  ;;  %v23955_v45 = vld [vmem:[#allocation243_spill] sm:$0xff] }
 0x69b   : > { %v13162_v36 = vsel %vm23950_vm2, %v13158_v49, %v17929_v15  ;;  %v13176_v7 = vsel %vm23951_vm6, %v13172_v26, %v18190_v2  ;;  %v18905_v25 = vrot.slane %v7294_v48, %v14315_v11  ;;  %v6838_v47 = vcombine.high %v23953_v53, %v23952_v21  ;;  %11975 = vrot.lane.b32.xlu1 %v6636_v17, %s23797_s8  ;;  %v18914_v14 = vpop.permute.xlu0 %11937  ;;  %v23957_v48 = vld [vmem:[#allocation306_spill] sm:$0xff]  ;;  %v23959_v52 = vld [vmem:[#allocation179_spill] sm:$0xff]  ;;  %v23961_v26 = vld [vmem:[#allocation293_spill] sm:$0xff] }
 0x69c   : > { %vm23954_vm4 = vcmask 326656   ;;  %vm23956_vm5 = vcmask 457728   ;;  %v7585_v15 = vcombine.low %v7541_v46, %v18877_v28  ;;  %v6870_v10 = vcombine.high %v23958_v37, %v23957_v48  ;;  %v23963_v1 = vld [vmem:[#allocation295_spill] sm:$0xff]  ;;  %v23965_v17 = vld [vmem:[#allocation238_spill] sm:$0xff]  ;;  %v23976_v2 = vld [vmem:[#allocation144_spill] sm:$0xff] }
 0x69d   : > { %v13166_v55 = vsel %vm23954_vm4, %v13162_v36, %v18011_v3  ;;  %v13180_v5 = vsel %vm23956_vm5, %v13176_v7, %v23955_v45  ;;  %vm23960_vm1 = vcmask 359424   ;;  %vm23962_vm2 = vcmask 490496   ;;  %v18929_v7 = vpop.permute.xlu1 %11751  ;;  %v23968_v21 = vld [vmem:[#allocation315_spill] sm:$0xff]  ;;  %v23969_v53 = vld [vmem:[#allocation318_spill] sm:$0xff] }
 0x69e   : > { %v13170_v49 = vsel %vm23960_vm1, %v13166_v55, %v23959_v52  ;;  %v13184_v3 = vsel %vm23962_vm2, %v13180_v5, %v23961_v26  ;;  %vm23964_vm6 = vcmask 392192   ;;  %vm23966_vm4 = vcmask 523264   ;;  %23967 = vst [vmem:[#allocation443_spill] sm:$0xff] %v18929_v7  ;;  %12165 = vrot.lane.b32.xlu0 %v7585_v15, %s23542_s24  ;;  %v23970_v5 = vld [vmem:[#allocation227_spill] sm:$0xff]  ;;  %v23972_v52 = vld [vmem:[#allocation358_spill] sm:$0xff] }
 0x69f   : > { %v13174_v61 = vsel %vm23964_vm6, %v13170_v49, %v23963_v1  ;;  %v13188_v36 = vsel %vm23966_vm4, %v13184_v3, %v23965_v17  ;;  %v6902_v45 = vcombine.high %v23969_v53, %v23968_v21  ;;  %v7314_v48 = vcombine.high %v18803_v0, %v18828_v20  ;;  %v23974_v3 = vld [vmem:[#allocation215_spill] sm:$0xff]  ;;  %v23978_v21 = vld [vmem:[#allocation34_spill] sm:$0xff]  ;;  %v18952_v20 = vpop.permute.xlu0 %11941 }
 0x6a0   : > { %v18937_v55 = vrot.slane %v6774_v57, %v14280_v31  ;;  %vm23971_vm5 = vcmask 424960   ;;  %vm23973_vm1 = vcmask 556032   ;;  %v7315_v26 = vcombine.low %v18865_v4, %v18905_v25  ;;  %v23975_v1 = vld [vmem:[#allocation183_spill] sm:$0xff] }
 0x6a1   : > { %v13178_v37 = vsel %vm23971_vm5, %v13174_v61, %v23970_v5  ;;  %v13192_v49 = vsel %vm23973_vm1, %v13188_v36, %v23972_v52  ;;  %v6790_v17 = vcombine.high %v23975_v1, %v23974_v3  ;;  %vm23977_vm2 = vcmask 457728   ;;  %11987 = vrot.lane.b32.xlu1 %v6902_v45, %s23809_s12  ;;  %v23980_v61 = vld [vmem:[#allocation279_spill] sm:$0xff]  ;;  %v23982_v52 = vld [vmem:[#allocation438_spill] sm:$0xff]  ;;  %v18972_v29 = vpop.permute.xlu1 %11763 }
 0x6a2   : > { %v13182_v15 = vsel %vm23977_vm2, %v13178_v37, %v23976_v2  ;;  %vm23979_vm6 = vcmask 588800   ;;  %v18955_v57 = vrot.slane %v6838_v47, %v14315_v11  ;;  %v23981_v36 = vld [vmem:[#allocation247_spill] sm:$0xff]  ;;  %vm23983_vm4 = vcmask 490496   ;;  %v23990_v47 = vld [vmem:[#allocation292_spill] sm:$0xff]  ;;  %23992 = vst [vmem:[#allocation240_spill] sm:$0xff] %v18972_v29  ;;  %12177 = vrot.lane.b32.xlu0 %v7314_v48, %s23566_s26 }
 0x6a3   : > { %v13196_v0 = vsel %vm23979_vm6, %v13192_v49, %v23978_v21  ;;  %v6822_v5 = vcombine.high %v23981_v36, %v23980_v61  ;;  %v13186_v53 = vsel %vm23983_vm4, %v13182_v15, %v23982_v52  ;;  %v23984_v3 = vld [vmem:[#allocation419_spill] sm:$0xff]  ;;  %vm23985_vm5 = vcmask 621568   ;;  %v23986_v21 = vld [vmem:[#allocation18_spill] sm:$0xff] }
 0x6a4   : > { %v13200_v1 = vsel %vm23985_vm5, %v13196_v0, %v23984_v3  ;;  %v18964_v2 = vrot.slane %v6870_v10, %v14315_v11  ;;  %v23987_v37 = vld [vmem:[#allocation343_spill] sm:$0xff]  ;;  %v23988_v49 = vld [vmem:[#allocation50_spill] sm:$0xff]  ;;  %vm23989_vm1 = vcmask 523264   ;;  %vm23991_vm2 = vcmask 654336  }
 0x6a5   : > { %v7142_v45 = vcombine.high %v23987_v37, %v23986_v21  ;;  %v13190_v7 = vsel %vm23989_vm1, %v13186_v53, %v23988_v49  ;;  %v13204_v8 = vsel %vm23991_vm2, %v13200_v1, %v23990_v47  ;;  %v23993_v61 = vld [vmem:[#allocation270_spill] sm:$0xff]  ;;  %v23995_v0 = vld [vmem:[#allocation263_spill] sm:$0xff]  ;;  %v7566_v3 = vcombine.high %v18809_v41, %v18788_v33  ;;  %v23997_v21 = vld [vmem:[#allocation433_spill] sm:$0xff] }
 0x6a6   : > { %v23994_v36 = vld [vmem:[#allocation206_spill] sm:$0xff]  ;;  %v23996_v52 = vld [vmem:[#allocation231_spill] sm:$0xff]  ;;  %vm23998_vm6 = vcmask 556032   ;;  %v24000_v1 = vld [vmem:[#allocation405_spill] sm:$0xff]  ;;  %vm24003_vm4 = vcmask 588800   ;;  %vm24005_vm5 = vcmask 719872   ;;  %v7586_v33 = vcombine.high %v7541_v46, %v18877_v28 }
 0x6a7   : > { %v7174_v15 = vcombine.high %v23994_v36, %v23993_v61  ;;  %v6806_v10 = vcombine.high %v23996_v52, %v23995_v0  ;;  %v13194_v37 = vsel %vm23998_vm6, %v13190_v7, %v23997_v21  ;;  %v23999_v53 = vld [vmem:[#allocation143_spill] sm:$0xff]  ;;  %v24001_v47 = vld [vmem:[#allocation190_spill] sm:$0xff]  ;;  %v24004_v36 = vld [vmem:[#allocation437_spill] sm:$0xff]  ;;  %v11954_v0 = vpop.permute.xlu0 %11953  ;;  %v18994_v41 = vrot.slane %v6822_v5, %v14280_v31 }
 0x6a8   : > { %v13208_v49 = vsel %vm13073_vm10, %v13204_v8, %v23999_v53  ;;  %v7110_v29 = vcombine.high %v24001_v47, %v24000_v1  ;;  %v13198_v61 = vsel %vm24003_vm4, %v13194_v37, %v24002_v63  ;;  %v7534_v8 = vcombine.high %v18818_v54, %v18806_v22  ;;  %v24006_v7 = vld [vmem:[#allocation324_spill] sm:$0xff]  ;;  %v24010_v37 = vld [vmem:[#allocation175_spill] sm:$0xff]  ;;  %v19006_v53 = vpop.permute.xlu1 %11767  ;;  %12181 = vrot.lane.b32.xlu0 %v7586_v33, %s23566_s26  ;;  %v24012_v46 = vld [vmem:[#allocation469_spill] sm:$0xff] }
 0x6a9   : > { %v13212_v48 = vsel %vm24005_vm5, %v13208_v49, %v24004_v36  ;;  %11991 = vrot.lane.b32.xlu1 %v7174_v15, %s23809_s12  ;;  %vm24007_vm1 = vcmask 621568   ;;  %v24008_v21 = vld [vmem:[#allocation148_spill] sm:$0xff]  ;;  %vm24009_vm2 = vcmask 752640   ;;  %vm24011_vm6 = vcmask 654336   ;;  %v24013_v1 = vld [vmem:[#allocation65_spill] sm:$0xff]  ;;  %vm24014_vm4 = vmmov %vm24005_vm5 }
 0x6aa   : > { %v13202_v52 = vsel %vm24007_vm1, %v13198_v61, %v24006_v7  ;;  %v13216_v63 = vsel %vm24009_vm2, %v13212_v48, %v24008_v21  ;;  %v6903_v28 = vcombine.low %v18955_v57, %v18964_v2  ;;  %v19012_v22 = vrot.slane %v7142_v45, %v14315_v11  ;;  %vm24015_vm5 = vmmov %vm24009_vm2  ;;  %v24016_v7 = vld [vmem:[#allocation536_spill] sm:$0xff] }
 0x6ab   : > { %v13206_v36 = vsel %vm24011_vm6, %v13202_v52, %v24010_v37  ;;  %v13220_v15 = vsel %vm13088_vm15, %v13216_v63, %v18639_v44  ;;  %v19015_v54 = vrot.slane %v6806_v10, %v14280_v31  ;;  %v19022_v44 = vrot.slane %v7566_v3, %v14315_v11  ;;  %v11958_v48 = vpop.permute.xlu0 %11957  ;;  %v24017_v52 = vld [vmem:[#allocation527_spill] sm:$0xff] }
 0x6ac   : > { %v13210_v5 = vsel %vm13073_vm10, %v13206_v36, %v24012_v46  ;;  %v13224_v61 = vsel %vm13093_vm14, %v13220_v15, %v18684_v39  ;;  %v19025_v49 = vrot.slane %v6790_v17, %v14280_v31  ;;  %v7124_v10 = vrot.slane %v7110_v29, %v14315_v11  ;;  %v19046_v63 = vpop.permute.xlu1 %11779  ;;  %12193 = vrot.lane.b32.xlu0 %v7315_v26, %s23582_s13  ;;  %v24019_v36 = vld [vmem:[#allocation397_spill] sm:$0xff] }
 0x6ad   : > { %v13214_v47 = vsel %vm24014_vm4, %v13210_v5, %v24013_v1  ;;  %v13228_v45 = vsel %vm13098_vm7, %v13224_v61, %v18704_v59  ;;  %12003 = vrot.lane.b32.xlu1 %v6903_v28, %s23829_s6  ;;  %v6885_v39 = vcombine.low %v19015_v54, %v18994_v41  ;;  %v7548_v33 = vrot.slane %v7534_v8, %v14315_v11  ;;  %v24020_v28 = vld [vmem:[#allocation507_spill] sm:$0xff]  ;;  %v24021_v46 = vld [vmem:[#allocation477_spill] sm:$0xff]  ;;  %v24022_v5 = vld [vmem:[#allocation356_spill] sm:$0xff] }
 0x6ae   : > { %v13218_v3 = vsel %vm24015_vm5, %v13214_v47, %v18602_v19  ;;  %v13232_v17 = vsel %vm13103_vm8, %v13228_v45, %v18755_v13  ;;  %v7094_v21 = vcombine.high %v24017_v52, %v24016_v7  ;;  %v7175_v37 = vcombine.low %v7124_v10, %v19012_v22  ;;  %v24018_v19 = vld [vmem:[#allocation428_spill] sm:$0xff]  ;;  %v24024_v45 = vld [vmem:[#allocation366_spill] sm:$0xff] }
 0x6af   : > { %v13222_v59 = vsel %vm13088_vm15, %v13218_v3, %v18667_v43  ;;  %v13236_v29 = vsel %vm13108_vm9, %v13232_v17, %v18837_v56  ;;  %v8045_v13 = vcombine.low %v24019_v36, %v24018_v19  ;;  %v7587_v43 = vcombine.low %v7548_v33, %v19022_v44  ;;  %v24023_v61 = vld [vmem:[#allocation520_spill] sm:$0xff]  ;;  %v24025_v3 = vld [vmem:[#allocation335_spill] sm:$0xff] }
 0x6b0   : > { %v13226_v8 = vsel %vm13093_vm14, %v13222_v59, %v18694_v9  ;;  %v13240_v15 = vsel %vm13113_vm11, %v13236_v29, %v18914_v14  ;;  %v7062_v56 = vcombine.high %v24021_v46, %v24020_v28  ;;  %v7078_v1 = vcombine.high %v24023_v61, %v24022_v5  ;;  %v11970_v9 = vpop.permute.xlu0 %11969  ;;  %v24026_v59 = vld [vmem:[#allocation413_spill] sm:$0xff]  ;;  %v24027_v29 = vld [vmem:[#allocation382_spill] sm:$0xff]  ;;  %v19081_v46 = vpop.permute.xlu1 %11783 }
 0x6b1   : > { %v13230_v26 = vsel %vm13098_vm7, %v13226_v8, %v18724_v42  ;;  %v13244_v47 = vsel %vm13118_vm12, %v13240_v15, %v11954_v0  ;;  %12007 = vrot.lane.b32.xlu1 %v7175_v37, %s23829_s6  ;;  %v8013_v14 = vcombine.low %v24025_v3, %v24024_v45  ;;  %v6904_v7 = vcombine.high %v18955_v57, %v18964_v2  ;;  %v24028_v42 = vld [vmem:[#allocation492_spill] sm:$0xff]  ;;  %v24030_v57 = vld [vmem:[#allocation351_spill] sm:$0xff] }
 0x6b2   : > { %v13234_v17 = vsel %vm13103_vm8, %v13230_v26, %v18794_v18  ;;  %v13248_v52 = vsel %vm13123_vm13, %v13244_v47, %v11970_v9  ;;  %v8029_v28 = vcombine.low %v24027_v29, %v24026_v59  ;;  %v24029_v8 = vld [vmem:[#allocation448_spill] sm:$0xff]  ;;  %v19077_v37 = vrot.slane %v7094_v21, %v14280_v31  ;;  %12197 = vrot.lane.b32.xlu0 %v7587_v43, %s23582_s13 }
 0x6b3   : > { %v7046_v0 = vcombine.high %v24029_v8, %v24028_v42  ;;  %v13238_v15 = vsel %vm13108_vm9, %v13234_v17, %v18872_v27  ;;  %13501 = vst [vmem:[%s17403_s25 + $0x8] sm:$0xff] %v13248_v52  ;;  %v6853_v18 = vcombine.low %v18937_v55, %v19025_v49  ;;  %v24031_v2 = vld [vmem:[#allocation308_spill] sm:$0xff]  ;;  %v7316_v21 = vcombine.high %v18865_v4, %v18905_v25 }
 0x6b4   : > { %v7997_v5 = vcombine.low %v24031_v2, %v24030_v57  ;;  %v13242_v61 = vsel %vm13113_vm11, %v13238_v15, %v18952_v20  ;;  %v19094_v27 = vrot.slane %v8045_v13, %v14280_v31  ;;  %v19097_v26 = vrot.slane %v7062_v56, %v14280_v31  ;;  %v11974_v9 = vpop.permute.xlu0 %11973  ;;  %v19119_v17 = vpop.permute.xlu1 %11795 }
 0x6b5   : > { %v19100_v43 = vrot.slane %v7078_v1, %v14280_v31  ;;  %v13246_v47 = vsel %vm13118_vm12, %v13242_v61, %v11958_v48  ;;  %12019 = vrot.lane.b32.xlu1 %v6904_v7, %s23853_s1  ;;  %v7789_v20 = vcombine.low %v18776_v24, %v18798_v23  ;;  %v19107_v4 = vrot.slane %v8013_v14, %v14280_v31 }
 0x6b6   : > { %v13250_v25 = vsel %vm13123_vm13, %v13246_v47, %v11974_v9  ;;  %v6893_v13 = vrot.slane %v6885_v39, %v14315_v11  ;;  %v19112_v56 = vrot.slane %v8029_v28, %v14280_v31  ;;  %v19115_v1 = vrot.slane %v7046_v0, %v14280_v31  ;;  %12209 = vrot.lane.b32.xlu0 %v7316_v21, %s23601_s17 }
 0x6b7   : > { %v7157_v48 = vcombine.low %v19100_v43, %v19077_v37  ;;  %v7176_v7 = vcombine.high %v7124_v10, %v19012_v22  ;;  %13509 = vst [vmem:[%s17403_s25 + $0x48] sm:$0xff] %v13250_v25  ;;  %v6861_v14 = vrot.slane %v6853_v18, %v14315_v11  ;;  %v24032_v39 = vcombine.low %v18880_v6, %v18883_v40 }
 0x6b8   : > { %v19130_v28 = vrot.slane %v7997_v5, %v14280_v31  ;;  %v8093_v42 = vcombine.low %v19112_v56, %v19094_v27  ;;  %v7125_v8 = vcombine.low %v19115_v1, %v19097_v26  ;;  %v19137_v22 = vpop.permute.xlu0 %11985  ;;  %v7588_v10 = vcombine.high %v7548_v33, %v19022_v44  ;;  %v19142_v15 = vpop.permute.xlu1 %11799 }
 0x6b9   : > { %v7829_v52 = vrot.slane %v24032_v39, %v14315_v11  ;;  %12023 = vrot.lane.b32.xlu1 %v7176_v7, %s23853_s1  ;;  %24033 = vst [vmem:[#allocation97_spill] sm:$0xff] %v19137_v22  ;;  %24034 = vst [vmem:[#allocation37_spill] sm:$0xff] %v19142_v15  ;;  %v6905_v18 = vcombine.low %v6861_v14, %v6893_v13  ;;  %v7165_v5 = vrot.slane %v7157_v48, %v14315_v11  ;;  %vm24093_vm1 = vcmask 64512  }
 0x6ba   : > { %v8061_v0 = vcombine.low %v19130_v28, %v19107_v4  ;;  %12213 = vrot.lane.b32.xlu0 %v7588_v10, %s23601_s17  ;;  %v7797_v61 = vrot.slane %v7789_v20, %v14315_v11  ;;  %v7133_v21 = vrot.slane %v7125_v8, %v14315_v11  ;;  %v8101_v44 = vrot.slane %v8093_v42, %v14315_v11  ;;  %vm24107_vm4 = vmmov %vm24093_vm1 }
 0x6bb   : > { %v6886_v39 = vcombine.high %v19015_v54, %v18994_v41  ;;  %v6906_v10 = vcombine.high %v6861_v14, %v6893_v13  ;;  %v7822_v42 = vcombine.high %v18880_v6, %v18883_v40  ;;  %v7158_v41 = vcombine.high %v19100_v43, %v19077_v37  ;;  %v24040_v43 = vld [vmem:[#allocation278_spill] sm:$0xff] }
 0x6bc   : > { %v19149_v47 = vpop.permute.xlu0 %11989  ;;  %v7853_v9 = vcombine.low %v7797_v61, %v7829_v52  ;;  %v19152_v33 = vpop.permute.xlu1 %11811  ;;  %v7177_v25 = vcombine.low %v7133_v21, %v7165_v5  ;;  %v8069_v7 = vrot.slane %v8061_v0, %v14315_v11  ;;  %v7178_v13 = vcombine.high %v7133_v21, %v7165_v5  ;;  %v24041_v14 = vld [vmem:[#allocation246_spill] sm:$0xff] }
 0x6bd   : > { %12035 = vrot.lane.b32.xlu1 %v6905_v18, %s23865_s23  ;;  %24035 = vst [vmem:[#allocation391_spill] sm:$0xff] %v19149_v47  ;;  %v6854_v18 = vcombine.high %v18937_v55, %v19025_v49  ;;  %v6900_v6 = vrot.slane %v6886_v39, %v14315_v11  ;;  %v19180_v40 = vrot.slane %v7822_v42, %v14315_v11  ;;  %v24053_v47 = vld [vmem:[#allocation476_spill] sm:$0xff]  ;;  %vm24097_vm2 = vcmask 97280  }
 0x6be   : > { %12225 = vrot.lane.b32.xlu0 %v7853_v9, %s23607_s27  ;;  %v8125_v20 = vcombine.low %v8069_v7, %v8101_v44  ;;  %v7854_v9 = vcombine.high %v7797_v61, %v7829_v52  ;;  %v8094_v55 = vcombine.high %v19112_v56, %v19094_v27  ;;  %v7126_v49 = vcombine.high %v19115_v1, %v19097_v26 }
 0x6bf   : > { %v8126_v37 = vcombine.high %v8069_v7, %v8101_v44  ;;  %v7365_v52 = vcombine.low %v24041_v14, %v24040_v43  ;;  %v8062_v5 = vcombine.high %v19130_v28, %v19107_v4  ;;  %v19198_v27 = vrot.slane %v7158_v41, %v14315_v11  ;;  %v24043_v44 = vld [vmem:[#allocation214_spill] sm:$0xff] }
 0x6c0   : > { %v19157_v48 = vpop.permute.xlu0 %12001  ;;  %v19161_v8 = vpop.permute.xlu1 %11815  ;;  %v7742_v56 = vcombine.high %v23900_v50, %v23899_v12  ;;  %v7774_v1 = vcombine.high %v23925_v16, %v23924_v30  ;;  %v24044_v7 = vld [vmem:[#allocation182_spill] sm:$0xff]  ;;  %v7758_v12 = vcombine.high %v23923_v35, %v23922_v51  ;;  %v7726_v41 = vcombine.high %v23898_v32, %v23897_v60 }
 0x6c1   : > { %12039 = vrot.lane.b32.xlu1 %v7177_v25, %s23865_s23  ;;  %24036 = vst [vmem:[#allocation530_spill] sm:$0xff] %v19157_v48  ;;  %24037 = vst [vmem:[#allocation524_spill] sm:$0xff] %v19161_v8  ;;  %v7790_v25 = vcombine.high %v18776_v24, %v18798_v23  ;;  %v6868_v24 = vrot.slane %v6854_v18, %v14315_v11  ;;  %v24045_v4 = vld [vmem:[#allocation262_spill] sm:$0xff]  ;;  %v8076_v51 = vrot.slane %v8062_v5, %v14315_v11  ;;  %vm24105_vm6 = vcmask 162816  }
 0x6c2   : > { %12229 = vrot.lane.b32.xlu0 %v8125_v20, %s23607_s27  ;;  %v7333_v20 = vcombine.low %v24044_v7, %v24043_v44  ;;  %v24046_v28 = vld [vmem:[#allocation230_spill] sm:$0xff]  ;;  %v19232_v35 = vrot.slane %v7742_v56, %v14280_v31  ;;  %v8046_v32 = vcombine.high %v24019_v36, %v24018_v19  ;;  %v8014_v36 = vcombine.high %v24025_v3, %v24024_v45 }
 0x6c3   : > { %v6907_v21 = vcombine.low %v6868_v24, %v6900_v6  ;;  %v7804_v26 = vrot.slane %v7790_v25, %v14315_v11  ;;  %v7349_v39 = vcombine.low %v24046_v28, %v24045_v4  ;;  %v24048_v50 = vld [vmem:[#allocation198_spill] sm:$0xff]  ;;  %v19220_v25 = vrot.slane %v7365_v52, %v14280_v31 }
 0x6c4   : > { %v19169_v0 = vpop.permute.xlu0 %12005  ;;  %v19175_v54 = vpop.permute.xlu1 %11827  ;;  %v24049_v30 = vld [vmem:[#allocation154_spill] sm:$0xff]  ;;  %v19238_v52 = vrot.slane %v7333_v20, %v14280_v31  ;;  %v19253_v20 = vrot.slane %v7758_v12, %v14280_v31  ;;  %v8030_v22 = vcombine.high %v24027_v29, %v24026_v59  ;;  %v6908_v15 = vcombine.high %v6868_v24, %v6900_v6 }
 0x6c5   : > { %12051 = vrot.lane.b32.xlu1 %v6906_v10, %s23870_s10  ;;  %24038 = vst [vmem:[#allocation376_spill] sm:$0xff] %v19169_v0  ;;  %v7140_v10 = vrot.slane %v7126_v49, %v14315_v11  ;;  %v7855_v18 = vcombine.low %v7804_v26, %v19180_v40  ;;  %v7317_v16 = vcombine.low %v24049_v30, %v24048_v50  ;;  %v24051_v49 = vld [vmem:[#allocation418_spill] sm:$0xff]  ;;  %vm24109_vm5 = vcmask 195584  }
 0x6c6   : > { %12241 = vrot.lane.b32.xlu0 %v7854_v9, %s23612_s28  ;;  %v8108_v9 = vrot.slane %v8094_v55, %v14315_v11  ;;  %v19235_v55 = vrot.slane %v7774_v1, %v14280_v31  ;;  %v19241_v60 = vrot.slane %v7349_v39, %v14280_v31  ;;  %v24052_v0 = vld [vmem:[#allocation506_spill] sm:$0xff]  ;;  %v7856_v59 = vcombine.high %v7804_v26, %v19180_v40 }
 0x6c7   : > { %v24055_v5 = vld [vmem:[#allocation322_spill] sm:$0xff]  ;;  %v19256_v39 = vrot.slane %v7317_v16, %v14280_v31  ;;  %v19273_v16 = vrot.slane %v7726_v41, %v14280_v31  ;;  %v7998_v29 = vcombine.high %v24031_v2, %v24030_v57  ;;  %v19297_v40 = vrot.slane %v8014_v36, %v14280_v31 }
 0x6c8   : > { %v19188_v23 = vpop.permute.xlu0 %12017  ;;  %v19194_v61 = vpop.permute.xlu1 %11831  ;;  %v8127_v1 = vcombine.low %v8076_v51, %v8108_v9  ;;  %v7413_v19 = vcombine.low %v19241_v60, %v19220_v25  ;;  %v7837_v45 = vcombine.low %v19253_v20, %v19235_v55  ;;  %v19301_v2 = vrot.slane %v8030_v22, %v14280_v31 }
 0x6c9   : > { %12055 = vrot.lane.b32.xlu1 %v7178_v13, %s23870_s10  ;;  %24039 = vst [vmem:[#allocation424_spill] sm:$0xff] %v19188_v23  ;;  %24042 = vst [vmem:[#allocation393_spill] sm:$0xff] %v19194_v61  ;;  %v24050_v13 = vld [vmem:[#allocation64_spill] sm:$0xff]  ;;  %v24054_v23 = vld [vmem:[#allocation95_spill] sm:$0xff]  ;;  %v7381_v3 = vcombine.low %v19256_v39, %v19238_v52 }
 0x6ca   : > { %12245 = vrot.lane.b32.xlu0 %v8126_v37, %s23612_s28  ;;  %v7637_v37 = vcombine.low %v24051_v49, %v24050_v13  ;;  %v7621_v48 = vcombine.low %v24055_v5, %v24054_v23  ;;  %v24057_v61 = vld [vmem:[#allocation491_spill] sm:$0xff]  ;;  %v7421_v57 = vrot.slane %v7413_v19, %v14315_v11  ;;  %v7845_v36 = vrot.slane %v7837_v45, %v14315_v11 }
 0x6cb   : > { %v19315_v19 = vrot.slane %v7998_v29, %v14280_v31 }
 0x6cc   : > { %v19211_v42 = vpop.permute.xlu0 %12021  ;;  %v19289_v24 = vrot.slane %v7621_v48, %v14280_v31 }
 0x6cd   : > { %12067 = vrot.lane.b32.xlu1 %v6907_v21, %s23883_s2  ;;  %24047 = vst [vmem:[#allocation503_spill] sm:$0xff] %v19211_v42  ;;  %v19226_v21 = vpop.permute.xlu1 %11843  ;;  %v7179_v42 = vcombine.low %v7140_v10, %v19198_v27 }
 0x6ce   : > { %12257 = vrot.lane.b32.xlu0 %v7855_v18, %s23632_s29  ;;  %v7605_v18 = vcombine.low %v24053_v47, %v24052_v0 }
 0x6d0   : > { %v19250_v56 = vpop.permute.xlu0 %12033  ;;  %v19286_v6 = vrot.slane %v7605_v18, %v14280_v31  ;;  %v7389_v18 = vrot.slane %v7381_v3, %v14315_v11 }
 0x6d1   : > { %12071 = vrot.lane.b32.xlu1 %v7179_v42, %s23883_s2  ;;  %24056 = vst [vmem:[#allocation471_spill] sm:$0xff] %v19250_v56  ;;  %v24058_v42 = vld [vmem:[#allocation447_spill] sm:$0xff]  ;;  %v19267_v56 = vrot.slane %v7637_v37, %v14280_v31  ;;  %v19269_v12 = vpop.permute.xlu1 %11847  ;;  %v19283_v37 = vrot.slane %v8046_v32, %v14280_v31  ;;  %v7180_v32 = vcombine.high %v7140_v10, %v19198_v27 }
 0x6d2   : > { %v7589_v8 = vcombine.low %v24058_v42, %v24057_v61  ;;  %24059 = vst [vmem:[#allocation20_spill] sm:$0xff] %v19269_v12  ;;  %12261 = vrot.lane.b32.xlu0 %v8127_v1, %s23632_s29  ;;  %v7805_v1 = vcombine.low %v19273_v16, %v19232_v35  ;;  %v8128_v27 = vcombine.high %v8076_v51, %v8108_v9 }
 0x6d3   : > { %v7685_v48 = vcombine.low %v19289_v24, %v19267_v56  ;;  %v8109_v22 = vcombine.low %v19301_v2, %v19283_v37  ;;  %v8077_v10 = vcombine.low %v19315_v19, %v19297_v40  ;;  %v7445_v45 = vcombine.low %v7389_v18, %v7421_v57 }
 0x6d4   : > { %v19292_v41 = vpop.permute.xlu0 %12037  ;;  %v19304_v26 = vrot.slane %v7589_v8, %v14280_v31  ;;  %v7813_v29 = vrot.slane %v7805_v1, %v14315_v11 }
 0x6d5   : > { %12083 = vrot.lane.b32.xlu1 %v6908_v15, %s23492_s14  ;;  %24060 = vst [vmem:[#allocation516_spill] sm:$0xff] %v19292_v41  ;;  %v19308_v15 = vpop.permute.xlu1 %11859  ;;  %v8117_v9 = vrot.slane %v8109_v22, %v14315_v11  ;;  %v7838_v22 = vcombine.high %v19253_v20, %v19235_v55  ;;  %v7806_v20 = vcombine.high %v19273_v16, %v19232_v35 }
 0x6d6   : > { %24061 = vst [vmem:[#allocation362_spill] sm:$0xff] %v19308_v15  ;;  %12273 = vrot.lane.b32.xlu0 %v7856_v59, %s23794_s15  ;;  %v7653_v8 = vcombine.low %v19304_v26, %v19286_v6  ;;  %v7693_v59 = vrot.slane %v7685_v48, %v14315_v11  ;;  %v7318_v16 = vcombine.high %v24049_v30, %v24048_v50 }
 0x6d7   : > { %v19403_v30 = vrot.slane %v7806_v20, %v14315_v11 }
 0x6d8   : > { %v19322_v41 = vpop.permute.xlu0 %12049  ;;  %v7661_v12 = vrot.slane %v7653_v8, %v14315_v11  ;;  %v7414_v8 = vcombine.high %v19241_v60, %v19220_v25  ;;  %v7858_v60 = vcombine.high %v7813_v29, %v7845_v36 }
 0x6d9   : > { %12087 = vrot.lane.b32.xlu1 %v7180_v32, %s23492_s14  ;;  %24062 = vst [vmem:[#allocation331_spill] sm:$0xff] %v19322_v41  ;;  %v19326_v3 = vpop.permute.xlu1 %11863  ;;  %v7857_v41 = vcombine.low %v7813_v29, %v7845_v36 }
 0x6da   : > { %24063 = vst [vmem:[#allocation409_spill] sm:$0xff] %v19326_v3  ;;  %12277 = vrot.lane.b32.xlu0 %v8128_v27, %s23794_s15  ;;  %v7717_v15 = vcombine.low %v7661_v12, %v7693_v59  ;;  %v8085_v27 = vrot.slane %v8077_v10, %v14315_v11  ;;  %v24068_v3 = vld [vmem:[#allocation57_spill] sm:$0xff]  ;;  %v7382_v10 = vcombine.high %v19256_v39, %v19238_v52 }
 0x6db   : > { %v7334_v52 = vcombine.high %v24044_v7, %v24043_v44  ;;  %v7686_v39 = vcombine.high %v19289_v24, %v19267_v56  ;;  %v7718_v36 = vcombine.high %v7661_v12, %v7693_v59  ;;  %v19375_v29 = vrot.slane %v7414_v8, %v14315_v11 }
 0x6dc   : > { %v19333_v32 = vpop.permute.xlu0 %12053  ;;  %v8129_v1 = vcombine.low %v8085_v27, %v8117_v9  ;;  %v7366_v44 = vcombine.high %v24041_v14, %v24040_v43  ;;  %v19384_v7 = vrot.slane %v7838_v22, %v14315_v11  ;;  %v8110_v56 = vcombine.high %v19301_v2, %v19283_v37 }
 0x6dd   : > { %12099 = vrot.lane.b32.xlu1 %v7445_v45, %s23496_s16  ;;  %24064 = vst [vmem:[#allocation378_spill] sm:$0xff] %v19333_v32  ;;  %v19336_v51 = vpop.permute.xlu1 %11875  ;;  %v7446_v32 = vcombine.high %v7389_v18, %v7421_v57  ;;  %v24071_v57 = vld [vmem:[#allocation72_spill] sm:$0xff]  ;;  %v24072_v18 = vld [vmem:[#allocation42_spill] sm:$0xff]  ;;  %v7654_v12 = vcombine.high %v19304_v26, %v19286_v6  ;;  %v7396_v24 = vrot.slane %v7382_v10, %v14315_v11 }
 0x6de   : > { %24065 = vst [vmem:[#allocation488_spill] sm:$0xff] %v19336_v51  ;;  %12289 = vrot.lane.b32.xlu0 %v7857_v41, %s23802_s7  ;;  %v24069_v41 = vld [vmem:[#allocation27_spill] sm:$0xff]  ;;  %v8286_v55 = vcombine.high %v24072_v18, %v24071_v57  ;;  %v8130_v8 = vcombine.high %v8085_v27, %v8117_v9  ;;  %v7350_v14 = vcombine.high %v24046_v28, %v24045_v4 }
 0x6df   : > { %v8269_v51 = vcombine.low %v24069_v41, %v24068_v3  ;;  %v19406_v37 = vrot.slane %v7334_v52, %v14280_v31  ;;  %v8078_v6 = vcombine.high %v19315_v19, %v19297_v40  ;;  %v7447_v26 = vcombine.low %v7396_v24, %v19375_v29 }
 0x6e0   : > { %v19341_v48 = vpop.permute.xlu0 %12065  ;;  %v19415_v9 = vrot.slane %v7686_v39, %v14315_v11  ;;  %v19427_v40 = vrot.slane %v7366_v44, %v14280_v31  ;;  %v19430_v19 = vrot.slane %v7318_v16, %v14280_v31  ;;  %v7668_v22 = vrot.slane %v7654_v12, %v14315_v11  ;;  %v24081_v44 = vld [vmem:[#allocation427_spill] sm:$0xff] }
 0x6e1   : > { %12103 = vrot.lane.b32.xlu1 %v7717_v15, %s23496_s16  ;;  %24066 = vst [vmem:[#allocation441_spill] sm:$0xff] %v19341_v48  ;;  %v19345_v45 = vpop.permute.xlu1 %11879  ;;  %v8270_v15 = vcombine.high %v24069_v41, %v24068_v3  ;;  %v24073_v48 = vld [vmem:[#allocation132_spill] sm:$0xff]  ;;  %v24075_v41 = vld [vmem:[#allocation117_spill] sm:$0xff]  ;;  %v19418_v4 = vrot.slane %v8269_v51, %v14280_v31  ;;  %v7859_v51 = vcombine.low %v19403_v30, %v19384_v7 }
 0x6e2   : > { %24067 = vst [vmem:[#allocation347_spill] sm:$0xff] %v19345_v45  ;;  %12293 = vrot.lane.b32.xlu0 %v8129_v1, %s23802_s7  ;;  %v8285_v1 = vcombine.low %v24072_v18, %v24071_v57  ;;  %v24074_v45 = vld [vmem:[#allocation102_spill] sm:$0xff]  ;;  %v24076_v57 = vld [vmem:[#allocation87_spill] sm:$0xff]  ;;  %v19449_v20 = vrot.slane %v7350_v14, %v14280_v31  ;;  %v7638_v52 = vcombine.high %v24051_v49, %v24050_v13  ;;  %v24083_v49 = vld [vmem:[#allocation365_spill] sm:$0xff] }
 0x6e3   : > { %v8317_v3 = vcombine.low %v24074_v45, %v24073_v48  ;;  %v8301_v35 = vcombine.low %v24076_v57, %v24075_v41  ;;  %v19421_v28 = vrot.slane %v8270_v15, %v14280_v31  ;;  %v19439_v15 = vrot.slane %v8110_v56, %v14315_v11  ;;  %v24082_v56 = vld [vmem:[#allocation396_spill] sm:$0xff] }
 0x6e4   : > { %v19357_v25 = vpop.permute.xlu0 %12069  ;;  %v19395_v50 = vrot.slane %v8285_v1, %v14280_v31  ;;  %v7429_v16 = vcombine.low %v19449_v20, %v19427_v40  ;;  %v8589_v12 = vcombine.low %v24082_v56, %v24081_v44  ;;  %v7860_v13 = vcombine.high %v19403_v30, %v19384_v7  ;;  %v24088_v30 = vld [vmem:[#allocation298_spill] sm:$0xff] }
 0x6e5   : > { %12115 = vrot.lane.b32.xlu1 %v7446_v32, %s23506_s20  ;;  %24070 = vst [vmem:[#allocation301_spill] sm:$0xff] %v19357_v25  ;;  %v19371_v32 = vpop.permute.xlu1 %11891  ;;  %v19398_v43 = vrot.slane %v8317_v3, %v14280_v31  ;;  %24078 = vst [vmem:[#allocation242_spill] sm:$0xff] %v19421_v28  ;;  %v19424_v27 = vrot.slane %v8301_v35, %v14280_v31  ;;  %v7397_v3 = vcombine.low %v19430_v19, %v19406_v37  ;;  %v24087_v25 = vld [vmem:[#allocation381_spill] sm:$0xff]  ;;  %v24089_v28 = vld [vmem:[#allocation303_spill] sm:$0xff] }
 0x6e6   : > { %12305 = vrot.lane.b32.xlu0 %v7858_v60, %s23820_s19  ;;  %v19442_v60 = vrot.slane %v8286_v55, %v14280_v31  ;;  %v8333_v18 = vcombine.low %v19418_v4, %v19395_v50  ;;  %v7719_v55 = vcombine.low %v7668_v22, %v19415_v9  ;;  %v7590_v7 = vcombine.high %v24058_v42, %v24057_v61  ;;  %v24094_v42 = vld [vmem:[#allocation350_spill] sm:$0xff] }
 0x6e7   : > { %v8365_v1 = vcombine.low %v19424_v27, %v19398_v43  ;;  %v19500_v61 = vrot.slane %v7397_v3, %v14315_v11  ;;  %v24098_v3 = vld [vmem:[#allocation435_spill] sm:$0xff] }
 0x6e8   : > { %v19392_v59 = vpop.permute.xlu0 %12081  ;;  %24080 = vst [vmem:[#allocation39_spill] sm:$0xff] %v19442_v60  ;;  %v24090_v60 = vld [vmem:[#allocation302_spill] sm:$0xff] }
 0x6e9   : > { %12119 = vrot.lane.b32.xlu1 %v7718_v36, %s23506_s20  ;;  %24077 = vst [vmem:[#allocation274_spill] sm:$0xff] %v19392_v59  ;;  %v19410_v2 = vpop.permute.xlu1 %11895  ;;  %v8092_v36 = vrot.slane %v8078_v6, %v14315_v11  ;;  %v7622_v6 = vcombine.high %v24055_v5, %v24054_v23  ;;  %v19491_v23 = vrot.slane %v7638_v52, %v14280_v31  ;;  %v24092_v5 = vld [vmem:[#allocation275_spill] sm:$0xff]  ;;  %v24096_v52 = vld [vmem:[#allocation140_spill] sm:$0xff] }
 0x6ea   : > { %12309 = vrot.lane.b32.xlu0 %v8130_v8, %s23820_s19  ;;  %v24084_v8 = vld [vmem:[#allocation334_spill] sm:$0xff] }
 0x6eb   : > { %v8557_v14 = vcombine.low %v24084_v8, %v24083_v49  ;;  %v8131_v35 = vcombine.low %v8092_v36, %v19439_v15  ;;  %v24091_v8 = vcombine.low %v24089_v28, %v24090_v60  ;;  %v24095_v28 = vld [vmem:[#allocation307_spill] sm:$0xff] }
 0x6ec   : > { %v19434_v10 = vpop.permute.xlu0 %12085  ;;  %v8541_v60 = vcombine.low %v24095_v28, %v24094_v42  ;;  %v24104_v28 = vld [vmem:[#allocation138_spill] sm:$0xff] }
 0x6ed   : > { %12131 = vrot.lane.b32.xlu1 %v7447_v26, %s23515_s21  ;;  %24079 = vst [vmem:[#allocation69_spill] sm:$0xff] %v19434_v10  ;;  %v19455_v39 = vpop.permute.xlu1 %11907  ;;  %v7606_v26 = vcombine.high %v24053_v47, %v24052_v0  ;;  %v24086_v10 = vld [vmem:[#allocation412_spill] sm:$0xff]  ;;  %v13129_v47 = vsel %vm12973_vm0, %v24091_v8, %v24088_v30  ;;  %v19488_v0 = vrot.slane %v8365_v1, %v14315_v11 }
 0x6ee   : > { %12321 = vrot.lane.b32.xlu0 %v7859_v51, %s23846_s9  ;;  %v8573_v59 = vcombine.low %v24087_v25, %v24086_v10  ;;  %v7448_v25 = vcombine.high %v7396_v24, %v19375_v29  ;;  %v19505_v1 = vrot.slane %v8589_v12, %v14280_v31  ;;  %v19510_v30 = vrot.slane %v7429_v16, %v14315_v11 }
 0x6ef   : > { %v19516_v29 = vrot.slane %v7606_v26, %v14280_v31  ;;  %v19519_v24 = vrot.slane %v7622_v6, %v14280_v31  ;;  %v19530_v16 = vrot.slane %v7590_v7, %v14280_v31  ;;  %v24102_v26 = vld [vmem:[#allocation191_spill] sm:$0xff]  ;;  %v7720_v10 = vcombine.high %v7668_v22, %v19415_v9  ;;  %v24115_v22 = vld [vmem:[#allocation94_spill] sm:$0xff] }
 0x6f0   : > { %v19475_v51 = vpop.permute.xlu0 %12097 }
 0x6f1   : > { %12135 = vrot.lane.b32.xlu1 %v7719_v55, %s23515_s21  ;;  %24085 = vst [vmem:[#allocation99_spill] sm:$0xff] %v19475_v51  ;;  %v13133_v55 = vsel %vm24093_vm1, %v13129_v47, %v24092_v5  ;;  %v19495_v51 = vpop.permute.xlu1 %11911  ;;  %v19513_v47 = vrot.slane %v8557_v14, %v14280_v31  ;;  %v19527_v5 = vrot.slane %v8573_v59, %v14280_v31  ;;  %v24100_v14 = vld [vmem:[#allocation259_spill] sm:$0xff]  ;;  %vm24111_vm1 = vmmov %vm24097_vm2 }
 0x6f2   : > { %12325 = vrot.lane.b32.xlu0 %v8131_v35, %s23846_s9  ;;  %v13137_v8 = vsel %vm24097_vm2, %v13133_v55, %v24096_v52  ;;  %v24101_v55 = vld [vmem:[#allocation139_spill] sm:$0xff]  ;;  %vm24113_vm2 = vcmask 228352  }
 0x6f3   : > { %v13141_v35 = vsel %vm12988_vm3, %v13137_v8, %v24098_v3  ;;  %v24103_v52 = vcombine.low %v24101_v55, %v24102_v26  ;;  %v24106_v8 = vld [vmem:[#allocation172_spill] sm:$0xff]  ;;  %v24108_v59 = vld [vmem:[#allocation499_spill] sm:$0xff]  ;;  %v24112_v26 = vld [vmem:[#allocation374_spill] sm:$0xff] }
 0x6f4   : > { %v19524_v12 = vpop.permute.xlu0 %12101  ;;  %v13145_v42 = vsel %vm24105_vm6, %v13141_v35, %v24104_v28  ;;  %v8637_v28 = vcombine.low %v19527_v5, %v19505_v1  ;;  %v24110_v35 = vld [vmem:[#allocation296_spill] sm:$0xff]  ;;  %vm24116_vm6 = vcmask 261120  }
 0x6f5   : > { %12147 = vrot.lane.b32.xlu1 %v7448_v25, %s23524_s22  ;;  %24099 = vst [vmem:[#allocation210_spill] sm:$0xff] %v19524_v12  ;;  %v13131_v6 = vsel %vm12973_vm0, %v24103_v52, %v24100_v14  ;;  %v7701_v25 = vcombine.low %v19519_v24, %v19491_v23  ;;  %v13149_v12 = vsel %vm24109_vm5, %v13145_v42, %v24108_v59  ;;  %v19545_v7 = vpop.permute.xlu1 %11923  ;;  %v24118_v59 = vld [vmem:[#allocation171_spill] sm:$0xff]  ;;  %vm24121_vm5 = vcmask 293888  }
 0x6f6   : > { %v13135_v3 = vsel %vm24107_vm4, %v13131_v6, %v24106_v8  ;;  %12337 = vrot.lane.b32.xlu0 %v7860_v13, %s23862_s18  ;;  %v19550_v14 = vrot.slane %v8541_v60, %v14280_v31  ;;  %v13153_v52 = vsel %vm24113_vm2, %v13149_v12, %v24112_v26  ;;  %v7669_v42 = vcombine.low %v19530_v16, %v19516_v29  ;;  %v24114_v6 = vld [vmem:[#allocation110_spill] sm:$0xff] }
 0x6f7   : > { %v13139_v55 = vsel %vm24111_vm1, %v13135_v3, %v24110_v35  ;;  %v13157_v13 = vsel %vm24116_vm6, %v13153_v52, %v24115_v22  ;;  %v8132_v8 = vcombine.high %v8092_v36, %v19439_v15  ;;  %vm24119_vm4 = vcmask 162816   ;;  %v24120_v35 = vld [vmem:[#allocation388_spill] sm:$0xff]  ;;  %v24124_v22 = vld [vmem:[#allocation241_spill] sm:$0xff] }
 0x6f8   : > { %v13143_v9 = vsel %vm12988_vm3, %v13139_v55, %v24114_v6  ;;  %v19565_v60 = vpop.permute.xlu0 %12113  ;;  %v13161_v12 = vsel %vm24121_vm5, %v13157_v13, %v24120_v35  ;;  %v7449_v26 = vcombine.low %v19500_v61, %v19510_v30  ;;  %v19575_v55 = vrot.slane %v8333_v18, %v14315_v11  ;;  %v24126_v13 = vld [vmem:[#allocation294_spill] sm:$0xff]  ;;  %v24128_v35 = vld [vmem:[#allocation225_spill] sm:$0xff] }
 0x6f9   : > { %12151 = vrot.lane.b32.xlu1 %v7720_v10, %s23524_s22  ;;  %24117 = vst [vmem:[#allocation177_spill] sm:$0xff] %v19565_v60  ;;  %v13147_v3 = vsel %vm24119_vm4, %v13143_v9, %v24118_v59  ;;  %v8605_v52 = vcombine.low %v19550_v14, %v19513_v47  ;;  %v24122_v10 = vld [vmem:[#allocation514_spill] sm:$0xff]  ;;  %vm24123_vm1 = vcmask 195584   ;;  %vm24125_vm2 = vcmask 326656   ;;  %v19583_v36 = vpop.permute.xlu1 %11927  ;;  %s24139_s22 = smov 96  }
 0x6fa   : > { %v13151_v6 = vsel %vm24123_vm1, %v13147_v3, %v24122_v10  ;;  %v13165_v15 = vsel %vm24125_vm2, %v13161_v12, %v24124_v22  ;;  %12341 = vrot.lane.b32.xlu0 %v8132_v8, %s23862_s18  ;;  %v19587_v9 = vrot.slane %v7701_v25, %v14315_v11  ;;  %v8366_v18 = vcombine.high %v19424_v27, %v19398_v43  ;;  %v24130_v12 = vld [vmem:[#allocation49_spill] sm:$0xff] }
 0x6fb   : > { %vm24127_vm6 = vcmask 228352   ;;  %vm24129_vm4 = vcmask 359424   ;;  %v8397_v3 = vcombine.low %v19575_v55, %v19488_v0  ;;  %vm24131_vm5 = vcmask 261120  }
 0x6fc   : > { %v13155_v59 = vsel %vm24127_vm6, %v13151_v6, %v24126_v13  ;;  %v13169_v60 = vsel %vm24129_vm4, %v13165_v15, %v24128_v35  ;;  %vm24132_vm1 = vcmask 392192   ;;  %v7677_v25 = vrot.slane %v7669_v42, %v14315_v11  ;;  %v19603_v43 = vpop.permute.xlu0 %12117  ;;  %v24133_v15 = vld [vmem:[#allocation373_spill] sm:$0xff] }
 0x6fd   : > { %v13159_v10 = vsel %vm24131_vm5, %v13155_v59, %v24130_v12  ;;  %v13173_v8 = vsel %vm24132_vm1, %v13169_v60, %v18619_v34  ;;  %12163 = vrot.lane.b32.xlu1 %v7449_v26, %s23542_s24  ;;  %v19606_v27 = vrot.slane %v8637_v28, %v14315_v11  ;;  %v8302_v6 = vcombine.high %v24076_v57, %v24075_v41  ;;  %v24136_v60 = vld [vmem:[#allocation288_spill] sm:$0xff]  ;;  %v19620_v28 = vpop.permute.xlu1 %11939  ;;  %v24144_v12 = vld [vmem:[#allocation201_spill] sm:$0xff] }
 0x6fe   : > { %v8318_v22 = vcombine.high %v24074_v45, %v24073_v48  ;;  %vm24134_vm2 = vcmask 293888   ;;  %vm24135_vm6 = vcmask 424960   ;;  %vm24137_vm4 = vcmask 326656   ;;  %12353 = vrot.lane.b32.xlu0 %v8397_v3, %s24139_s22  ;;  %v24140_v45 = vld [vmem:[#allocation341_spill] sm:$0xff] }
 0x6ff   : > { %v13163_v13 = vsel %vm24134_vm2, %v13159_v10, %v24133_v15  ;;  %v13177_v34 = vsel %vm24135_vm6, %v13173_v8, %v18676_v58  ;;  %vm24138_vm5 = vcmask 457728   ;;  %v7721_v59 = vcombine.low %v7677_v25, %v19587_v9  ;;  %v24145_v10 = vld [vmem:[#allocation158_spill] sm:$0xff]  ;;  %v24146_v8 = vld [vmem:[#allocation445_spill] sm:$0xff]  ;;  %v24148_v15 = vld [vmem:[#allocation35_spill] sm:$0xff] }
 0x700   : > { %v13167_v42 = vsel %vm24137_vm4, %v13163_v13, %v24136_v60  ;;  %v13181_v26 = vsel %vm24138_vm5, %v13177_v34, %v18698_v62  ;;  %v8613_v48 = vrot.slane %v8605_v52, %v14315_v11  ;;  %vm24141_vm1 = vcmask 359424   ;;  %v24150_v34 = vld [vmem:[#allocation515_spill] sm:$0xff] }
 0x701   : > { %v13171_v41 = vsel %vm24141_vm1, %v13167_v42, %v24140_v45  ;;  %vm24142_vm2 = vcmask 490496   ;;  %v24143_v57 = vcombine.high %v19418_v4, %v19395_v50  ;;  %v19636_v62 = vrot.slane %v8366_v18, %v14315_v11  ;;  %12167 = vrot.lane.b32.xlu1 %v7721_v59, %s23542_s24  ;;  %v24152_v42 = vld [vmem:[#allocation82_spill] sm:$0xff] }
 0x702   : > { %v13185_v58 = vsel %vm24142_vm2, %v13181_v26, %v18736_v38  ;;  %v7861_v3 = vcombine.low %v24145_v10, %v24144_v12  ;;  %vm24147_vm6 = vcmask 392192   ;;  %vm24149_vm4 = vcmask 523264   ;;  %v19645_v38 = vpop.permute.xlu0 %12129  ;;  %v24154_v59 = vld [vmem:[#allocation22_spill] sm:$0xff] }
 0x703   : > { %v19633_v35 = vrot.slane %v24143_v57, %v14315_v11  ;;  %v13175_v52 = vsel %vm24147_vm6, %v13171_v41, %v24146_v8  ;;  %v13189_v13 = vsel %vm24149_vm4, %v13185_v58, %v24148_v15  ;;  %v8669_v50 = vcombine.low %v8613_v48, %v19606_v27  ;;  %v24156_v58 = vld [vmem:[#allocation240_spill] sm:$0xff]  ;;  %v24158_v8 = vld [vmem:[#allocation286_spill] sm:$0xff] }
 0x704   : > { %v19649_v4 = vrot.slane %v8302_v6, %v14280_v31  ;;  %v7430_v18 = vcombine.high %v19449_v20, %v19427_v40  ;;  %vm24151_vm5 = vcmask 424960   ;;  %vm24153_vm1 = vcmask 556032   ;;  %v19664_v6 = vpop.permute.xlu1 %11943 }
 0x705   : > { %v13179_v60 = vsel %vm24151_vm5, %v13175_v52, %v24150_v34  ;;  %v13193_v26 = vsel %vm24153_vm1, %v13189_v13, %v24152_v42  ;;  %v19658_v45 = vrot.slane %v8318_v22, %v14280_v31  ;;  %vm24155_vm2 = vcmask 457728   ;;  %12357 = vrot.lane.b32.xlu0 %v8669_v50, %s24139_s22  ;;  %v24161_v34 = vld [vmem:[#allocation146_spill] sm:$0xff]  ;;  %v24165_v50 = vld [vmem:[#allocation185_spill] sm:$0xff] }
 0x706   : > { %v13183_v41 = vsel %vm24155_vm2, %v13179_v60, %v24154_v59  ;;  %vm24157_vm6 = vcmask 588800   ;;  %v7450_v40 = vcombine.high %v19500_v61, %v19510_v30  ;;  %v7398_v20 = vcombine.high %v19430_v19, %v19406_v37  ;;  %v19685_v37 = vpop.permute.xlu0 %12133 }
 0x707   : > { %v13197_v57 = vsel %vm24157_vm6, %v13193_v26, %v24156_v58  ;;  %vm24159_vm4 = vcmask 490496   ;;  %vm24160_vm5 = vcmask 621568   ;;  %v8398_v15 = vcombine.high %v19575_v55, %v19488_v0  ;;  %v24166_v0 = vld [vmem:[#allocation443_spill] sm:$0xff] }
 0x708   : > { %v13187_v22 = vsel %vm24159_vm4, %v13183_v41, %v24158_v8  ;;  %v13201_v52 = vsel %vm24160_vm5, %v13197_v57, %v19046_v63  ;;  %v19678_v13 = vrot.slane %v7861_v3, %v14280_v31  ;;  %vm24162_vm1 = vcmask 523264   ;;  %12179 = vrot.lane.b32.xlu1 %v7450_v40, %s23566_s26  ;;  %v24164_v63 = vld [vmem:[#allocation217_spill] sm:$0xff]  ;;  %v11956_v41 = vpop.permute.xlu1 %11955  ;;  %v24177_v8 = vld [vmem:[#allocation524_spill] sm:$0xff] }
 0x709   : > { %v13191_v61 = vsel %vm24162_vm1, %v13187_v22, %v24161_v34  ;;  %vm24163_vm2 = vcmask 654336   ;;  %v8399_v19 = vcombine.low %v19633_v35, %v19636_v62  ;;  %v7877_v60 = vcombine.low %v24165_v50, %v24164_v63  ;;  %12369 = vrot.lane.b32.xlu0 %v8398_v15, %s23741_s11 }
 0x70a   : > { %v13205_v30 = vsel %vm24163_vm2, %v13201_v52, %v19119_v17  ;;  %vm24167_vm6 = vcmask 556032   ;;  %v19696_v42 = vrot.slane %v7430_v18, %v14315_v11  ;;  %v7702_v17 = vcombine.high %v19519_v24, %v19491_v23  ;;  %v24179_v52 = vld [vmem:[#allocation393_spill] sm:$0xff] }
 0x70b   : > { %v13195_v55 = vsel %vm24167_vm6, %v13191_v61, %v24166_v0  ;;  %v13209_v3 = vsel %vm13073_vm10, %v13205_v30, %v19152_v33  ;;  %vm24168_vm4 = vcmask 588800   ;;  %vm24169_vm5 = vcmask 719872   ;;  %v24182_v30 = vld [vmem:[#allocation233_spill] sm:$0xff] }
 0x70c   : > { %v13199_v26 = vsel %vm24168_vm4, %v13195_v55, %v19006_v53  ;;  %v13213_v59 = vsel %vm24169_vm5, %v13209_v3, %v19175_v54  ;;  %v7722_v58 = vcombine.high %v7677_v25, %v19587_v9  ;;  %v8638_v33 = vcombine.high %v19527_v5, %v19505_v1  ;;  %v24172_v54 = vld [vmem:[#allocation37_spill] sm:$0xff]  ;;  %v24174_v25 = vld [vmem:[#allocation362_spill] sm:$0xff]  ;;  %v19722_v1 = vpop.permute.xlu0 %12145  ;;  %vm24180_vm4 = vmmov %vm24169_vm5  ;;  %v11960_v61 = vpop.permute.xlu1 %11959 }
 0x70d   : > { %vm24170_vm1 = vcmask 621568   ;;  %vm24171_vm2 = vcmask 752640   ;;  %v19713_v24 = vrot.slane %v7398_v20, %v14315_v11  ;;  %v7670_v53 = vcombine.high %v19530_v16, %v19516_v29  ;;  %v24175_v5 = vld [vmem:[#allocation281_spill] sm:$0xff]  ;;  %v24178_v16 = vld [vmem:[#allocation488_spill] sm:$0xff] }
 0x70e   : > { %v13203_v18 = vsel %vm24170_vm1, %v13199_v26, %v19081_v46  ;;  %v13217_v23 = vsel %vm24171_vm2, %v13213_v59, %v19226_v21  ;;  %vm24173_vm6 = vcmask 654336   ;;  %12183 = vrot.lane.b32.xlu1 %v7722_v58, %s23566_s26  ;;  %v8670_v46 = vcombine.high %v8613_v48, %v19606_v27  ;;  %v24176_v21 = vld [vmem:[#allocation249_spill] sm:$0xff]  ;;  %v24183_v55 = vld [vmem:[#allocation20_spill] sm:$0xff]  ;;  %vm24184_vm5 = vmmov %vm24171_vm2 }
 0x70f   : > { %v13207_v9 = vsel %vm24173_vm6, %v13203_v18, %v24172_v54  ;;  %v13221_v57 = vsel %vm13088_vm15, %v13217_v23, %v24174_v25  ;;  %v7909_v40 = vcombine.low %v24176_v21, %v24175_v5  ;;  %v8606_v20 = vcombine.high %v19550_v14, %v19513_v47  ;;  %v24181_v48 = vld [vmem:[#allocation265_spill] sm:$0xff]  ;;  %v24187_v54 = vld [vmem:[#allocation347_spill] sm:$0xff] }
 0x710   : > { %v13211_v29 = vsel %vm13073_vm10, %v13207_v9, %v24177_v8  ;;  %v13225_v22 = vsel %vm13093_vm14, %v13221_v57, %v24178_v16  ;;  %v7451_v27 = vcombine.low %v19713_v24, %v19696_v42  ;;  %12373 = vrot.lane.b32.xlu0 %v8670_v46, %s23741_s11  ;;  %v19741_v47 = vrot.slane %v7702_v17, %v14315_v11  ;;  %v24185_v26 = vld [vmem:[#allocation409_spill] sm:$0xff]  ;;  %v19758_v17 = vpop.permute.xlu0 %12149  ;;  %v24188_v25 = vld [vmem:[#allocation271_spill] sm:$0xff]  ;;  %v11972_v8 = vpop.permute.xlu1 %11971 }
 0x711   : > { %v13215_v15 = vsel %vm24180_vm4, %v13211_v29, %v24179_v52  ;;  %v13229_v34 = vsel %vm13098_vm7, %v13225_v22, %v19371_v32  ;;  %v19744_v14 = vrot.slane %v7877_v60, %v14280_v31  ;;  %v7893_v0 = vcombine.low %v24182_v30, %v24181_v48  ;;  %24186 = vst [vmem:[#allocation258_spill] sm:$0xff] %v19758_v17  ;;  %v24189_v57 = vld [vmem:[#allocation123_spill] sm:$0xff]  ;;  %v24190_v22 = vld [vmem:[#allocation509_spill] sm:$0xff] }
 0x712   : > { %v13219_v3 = vsel %vm24184_vm5, %v13215_v15, %v24183_v55  ;;  %v13233_v32 = vsel %vm13103_vm8, %v13229_v34, %v19455_v39  ;;  %12195 = vrot.lane.b32.xlu1 %v7451_v27, %s23582_s13  ;;  %v7684_v60 = vrot.slane %v7670_v53, %v14315_v11  ;;  %v19761_v18 = vrot.slane %v8638_v33, %v14315_v11  ;;  %v24193_v15 = vld [vmem:[#allocation521_spill] sm:$0xff] }
 0x713   : > { %v13223_v59 = vsel %vm13088_vm15, %v13219_v3, %v24185_v26  ;;  %v13237_v58 = vsel %vm13108_vm9, %v13233_v32, %v19545_v7  ;;  %v19764_v23 = vrot.slane %v7909_v40, %v14280_v31  ;;  %v8620_v7 = vrot.slane %v8606_v20, %v14315_v11  ;;  %v24195_v3 = vld [vmem:[#allocation412_spill] sm:$0xff]  ;;  %v24196_v32 = vld [vmem:[#allocation381_spill] sm:$0xff] }
 0x714   : > { %v13227_v39 = vsel %vm13093_vm14, %v13223_v59, %v24187_v54  ;;  %v13241_v9 = vsel %vm13113_vm11, %v13237_v58, %v19620_v28  ;;  %v8181_v53 = vcombine.low %v24189_v57, %v24188_v25  ;;  %v7723_v40 = vcombine.low %v7684_v60, %v19741_v47  ;;  %12385 = vrot.lane.b32.xlu0 %v8399_v19, %s23764_s5  ;;  %v19794_v27 = vpop.permute.xlu0 %12161  ;;  %v24197_v59 = vld [vmem:[#allocation494_spill] sm:$0xff]  ;;  %v24198_v58 = vld [vmem:[#allocation453_spill] sm:$0xff] }
 0x715   : > { %v13231_v46 = vsel %vm13098_vm7, %v13227_v39, %v19410_v2  ;;  %v13245_v33 = vsel %vm13118_vm12, %v13241_v9, %v11956_v41  ;;  %v19779_v29 = vrot.slane %v7893_v0, %v14280_v31  ;;  %v8590_v28 = vcombine.high %v24082_v56, %v24081_v44  ;;  %v24191_v2 = vld [vmem:[#allocation479_spill] sm:$0xff]  ;;  %v24192_v41 = vld [vmem:[#allocation402_spill] sm:$0xff] }
 0x716   : > { %v13235_v20 = vsel %vm13103_vm8, %v13231_v46, %v19495_v51  ;;  %v13249_v16 = vsel %vm13123_vm13, %v13245_v33, %v11972_v8  ;;  %v8149_v52 = vcombine.low %v24191_v2, %v24190_v22  ;;  %v8165_v34 = vcombine.low %v24193_v15, %v24192_v41  ;;  %12199 = vrot.lane.b32.xlu1 %v7723_v40, %s23582_s13  ;;  %v24194_v51 = vld [vmem:[#allocation334_spill] sm:$0xff]  ;;  %v11976_v46 = vpop.permute.xlu1 %11975  ;;  %v24200_v8 = vld [vmem:[#allocation307_spill] sm:$0xff] }
 0x717   : > { %v13239_v19 = vsel %vm13108_vm9, %v13235_v20, %v19583_v36  ;;  %13505 = vst [vmem:[%s17403_s25 + $0x28] sm:$0xff] %v13249_v16  ;;  %v8671_v44 = vcombine.low %v8620_v7, %v19761_v18  ;;  %v7957_v56 = vcombine.low %v19779_v29, %v19764_v23  ;;  %v8558_v0 = vcombine.high %v24194_v51, %v24083_v49  ;;  %v24199_v33 = vld [vmem:[#allocation350_spill] sm:$0xff] }
 0x718   : > { %v13243_v55 = vsel %vm13113_vm11, %v13239_v19, %v19664_v6  ;;  %v7452_v36 = vcombine.high %v19713_v24, %v19696_v42  ;;  %v8574_v26 = vcombine.high %v24196_v32, %v24195_v3  ;;  %v8133_v54 = vcombine.low %v24198_v58, %v24197_v59  ;;  %v19834_v16 = vpop.permute.xlu0 %12165  ;;  %v24202_v19 = vld [vmem:[#allocation39_spill] sm:$0xff] }
 0x719   : > { %v19810_v39 = vrot.slane %v8181_v53, %v14280_v31  ;;  %v13247_v9 = vsel %vm13118_vm12, %v13243_v55, %v11960_v61  ;;  %12389 = vrot.lane.b32.xlu0 %v8671_v44, %s23764_s5  ;;  %v8381_v49 = vcombine.low %v19649_v4, %v19658_v45  ;;  %v7925_v6 = vcombine.low %v19678_v13, %v19744_v14  ;;  %v24203_v44 = vld [vmem:[#allocation242_spill] sm:$0xff] }
 0x71a   : > { %v13251_v42 = vsel %vm13123_vm13, %v13247_v9, %v11976_v46  ;;  %v8400_v24 = vcombine.high %v19633_v35, %v19636_v62  ;;  %v8542_v53 = vcombine.high %v24200_v8, %v24199_v33  ;;  %v19824_v40 = vrot.slane %v8590_v28, %v14280_v31  ;;  %12211 = vrot.lane.b32.xlu1 %v7452_v36, %s23601_s17  ;;  %v19850_v55 = vpop.permute.xlu1 %11987 }
 0x71b   : > { %v19827_v61 = vrot.slane %v8149_v52, %v14280_v31  ;;  %v19830_v20 = vrot.slane %v8165_v34, %v14280_v31  ;;  %13513 = vst [vmem:[%s17403_s25 + $0x68] sm:$0xff] %v13251_v42  ;;  %24201 = vst [vmem:[#allocation226_spill] sm:$0xff] %v19834_v16  ;;  %v8349_v35 = vcombine.low %v24203_v44, %v24202_v19  ;;  %v24305_v16 = vld [vmem:[#allocation312_spill] sm:$0xff]  ;;  %vm24323_vm1 = vcmask 64512  }
 0x71c   : > { %v19839_v62 = vrot.slane %v8558_v0, %v14280_v31  ;;  %v7965_v28 = vrot.slane %v7957_v56, %v14315_v11  ;;  %v19843_v51 = vrot.slane %v8574_v26, %v14280_v31  ;;  %v19846_v52 = vrot.slane %v8133_v54, %v14280_v31  ;;  %24204 = vst [vmem:[#allocation194_spill] sm:$0xff] %v19850_v55  ;;  %v19864_v54 = vpop.permute.xlu0 %12177  ;;  %vm24336_vm4 = vmmov %vm24323_vm1 }
 0x71d   : > { %v8229_v34 = vcombine.low %v19830_v20, %v19810_v39  ;;  %v7724_v36 = vcombine.high %v7684_v60, %v19741_v47  ;;  %12401 = vrot.lane.b32.xlu0 %v8400_v24, %s23777_s4  ;;  %v7933_v0 = vrot.slane %v7925_v6, %v14315_v11  ;;  %v8389_v3 = vrot.slane %v8381_v49, %v14315_v11 }
 0x71e   : > { %v19857_v56 = vrot.slane %v8542_v53, %v14280_v31  ;;  %v8653_v32 = vcombine.low %v19843_v51, %v19824_v40  ;;  %v8197_v26 = vcombine.low %v19846_v52, %v19827_v61  ;;  %v8672_v47 = vcombine.high %v8620_v7, %v19761_v18  ;;  %v19869_v9 = vpop.permute.xlu1 %11991 }
 0x71f   : > { %12215 = vrot.lane.b32.xlu1 %v7724_v36, %s23601_s17  ;;  %24205 = vst [vmem:[#allocation147_spill] sm:$0xff] %v19869_v9  ;;  %v7989_v46 = vcombine.low %v7933_v0, %v7965_v28  ;;  %v8237_v49 = vrot.slane %v8229_v34, %v14315_v11  ;;  %v8357_v6 = vrot.slane %v8349_v35, %v14315_v11  ;;  %vm24325_vm2 = vcmask 97280  }
 0x720   : > { %v8621_v60 = vcombine.low %v19857_v56, %v19839_v62  ;;  %v8205_v42 = vrot.slane %v8197_v26, %v14315_v11  ;;  %v19876_v24 = vpop.permute.xlu0 %12181  ;;  %v8661_v18 = vrot.slane %v8653_v32, %v14315_v11  ;;  %v7958_v36 = vcombine.high %v19779_v29, %v19764_v23 }
 0x721   : > { %12405 = vrot.lane.b32.xlu0 %v8672_v47, %s23777_s4  ;;  %24206 = vst [vmem:[#allocation54_spill] sm:$0xff] %v19876_v24  ;;  %v8401_v33 = vcombine.low %v8357_v6, %v8389_v3  ;;  %v7990_v47 = vcombine.high %v7933_v0, %v7965_v28  ;;  %v8382_v32 = vcombine.high %v19649_v4, %v19658_v45  ;;  %vm24334_vm6 = vcmask 162816  }
 0x722   : > { %v19879_v7 = vpop.permute.xlu1 %12003  ;;  %v8261_v8 = vcombine.low %v8205_v42, %v8237_v49  ;;  %v8629_v53 = vrot.slane %v8621_v60, %v14315_v11  ;;  %v8230_v23 = vcombine.high %v19830_v20, %v19810_v39  ;;  %v8262_v28 = vcombine.high %v8205_v42, %v8237_v49 }
 0x723   : > { %12227 = vrot.lane.b32.xlu1 %v7989_v46, %s23607_s27  ;;  %24207 = vst [vmem:[#allocation24_spill] sm:$0xff] %v19879_v7  ;;  %v7926_v46 = vcombine.high %v19678_v13, %v19744_v14  ;;  %v7972_v4 = vrot.slane %v7958_v36, %v14315_v11  ;;  %v8396_v45 = vrot.slane %v8382_v32, %v14315_v11  ;;  %vm24338_vm5 = vcmask 195584  }
 0x724   : > { %v19884_v34 = vpop.permute.xlu0 %12193  ;;  %v8673_v35 = vcombine.low %v8629_v53, %v8661_v18  ;;  %v8654_v13 = vcombine.high %v19843_v51, %v19824_v40  ;;  %v8198_v14 = vcombine.high %v19846_v52, %v19827_v61  ;;  %v8674_v20 = vcombine.high %v8629_v53, %v8661_v18 }
 0x725   : > { %12417 = vrot.lane.b32.xlu0 %v8401_v33, %s23781_s3  ;;  %24208 = vst [vmem:[#allocation325_spill] sm:$0xff] %v19884_v34  ;;  %v8402_v33 = vcombine.high %v8357_v6, %v8389_v3  ;;  %v7910_v0 = vcombine.high %v24176_v21, %v24175_v5  ;;  %v8622_v3 = vcombine.high %v19857_v56, %v19839_v62 }
 0x726   : > { %v19888_v26 = vpop.permute.xlu1 %12007  ;;  %v8244_v61 = vrot.slane %v8230_v23, %v14315_v11  ;;  %v7878_v51 = vcombine.high %v24165_v50, %v24164_v63  ;;  %v7894_v52 = vcombine.high %v24182_v30, %v24181_v48  ;;  %v8212_v5 = vrot.slane %v8198_v14, %v14315_v11 }
 0x727   : > { %12231 = vrot.lane.b32.xlu1 %v8261_v8, %s23607_s27  ;;  %24209 = vst [vmem:[#allocation108_spill] sm:$0xff] %v19888_v26  ;;  %v8350_v8 = vcombine.high %v24203_v44, %v24202_v19  ;;  %v7940_v19 = vrot.slane %v7926_v46, %v14315_v11  ;;  %v8668_v56 = vrot.slane %v8654_v13, %v14315_v11  ;;  %v24261_v26 = vld [vmem:[#allocation232_spill] sm:$0xff] }
 0x728   : > { %v19896_v60 = vpop.permute.xlu0 %12197  ;;  %v7862_v6 = vcombine.high %v24145_v10, %v24144_v12  ;;  %v19936_v42 = vrot.slane %v7910_v0, %v14280_v31  ;;  %v8182_v63 = vcombine.high %v24189_v57, %v24188_v25  ;;  %v8263_v48 = vcombine.low %v8212_v5, %v8244_v61 }
 0x729   : > { %12421 = vrot.lane.b32.xlu0 %v8673_v35, %s23781_s3  ;;  %24210 = vst [vmem:[#allocation502_spill] sm:$0xff] %v19896_v60  ;;  %v8364_v44 = vrot.slane %v8350_v8, %v14315_v11  ;;  %v7991_v40 = vcombine.low %v7940_v19, %v7972_v4  ;;  %v8636_v30 = vrot.slane %v8622_v3, %v14315_v11  ;;  %v24222_v3 = vld [vmem:[#allocation167_spill] sm:$0xff] }
 0x72a   : > { %v19902_v29 = vpop.permute.xlu1 %12019  ;;  %v19945_v18 = vrot.slane %v7878_v51, %v14280_v31  ;;  %v19948_v53 = vrot.slane %v7894_v52, %v14280_v31  ;;  %v8150_v12 = vcombine.high %v24191_v2, %v24190_v22  ;;  %v8166_v10 = vcombine.high %v24193_v15, %v24192_v41 }
 0x72b   : > { %12243 = vrot.lane.b32.xlu1 %v7990_v47, %s23612_s28  ;;  %24211 = vst [vmem:[#allocation470_spill] sm:$0xff] %v19902_v29  ;;  %v8403_v62 = vcombine.low %v8364_v44, %v8396_v45  ;;  %v8675_v57 = vcombine.low %v8636_v30, %v8668_v56  ;;  %v19958_v35 = vrot.slane %v7862_v6, %v14280_v31  ;;  %v24266_v29 = vld [vmem:[#allocation157_spill] sm:$0xff] }
 0x72c   : > { %v19913_v39 = vpop.permute.xlu0 %12209  ;;  %v7973_v36 = vcombine.low %v19948_v53, %v19936_v42  ;;  %v8134_v47 = vcombine.high %v24198_v58, %v24197_v59  ;;  %v19965_v32 = vrot.slane %v8182_v63, %v14280_v31  ;;  %v7992_v2 = vcombine.high %v7940_v19, %v7972_v4  ;;  %v24228_v63 = vld [vmem:[#allocation173_spill] sm:$0xff] }
 0x72d   : > { %12433 = vrot.lane.b32.xlu0 %v8402_v33, %s23786_s30  ;;  %24212 = vst [vmem:[#allocation535_spill] sm:$0xff] %v19913_v39  ;;  %v7941_v41 = vcombine.low %v19958_v35, %v19945_v18  ;;  %v19973_v15 = vrot.slane %v8150_v12, %v14280_v31  ;;  %v19976_v46 = vrot.slane %v8166_v10, %v14280_v31  ;;  %v24230_v10 = vld [vmem:[#allocation464_spill] sm:$0xff] }
 0x72e   : > { %v19920_v49 = vpop.permute.xlu1 %12023  ;;  %v8404_v58 = vcombine.high %v8364_v44, %v8396_v45  ;;  %v19982_v33 = vrot.slane %v8134_v47, %v14280_v31  ;;  %v7981_v4 = vrot.slane %v7973_v36, %v14315_v11  ;;  %v8676_v19 = vcombine.high %v8636_v30, %v8668_v56  ;;  %v24227_v56 = vld [vmem:[#allocation169_spill] sm:$0xff] }
 0x72f   : > { %12247 = vrot.lane.b32.xlu1 %v8262_v28, %s23612_s28  ;;  %24213 = vst [vmem:[#allocation519_spill] sm:$0xff] %v19920_v49  ;;  %v8245_v8 = vcombine.low %v19976_v46, %v19965_v32  ;;  %v8264_v28 = vcombine.high %v8212_v5, %v8244_v61  ;;  %v7949_v45 = vrot.slane %v7941_v41, %v14315_v11  ;;  %v24225_v5 = vld [vmem:[#allocation176_spill] sm:$0xff]  ;;  %v24234_v41 = vld [vmem:[#allocation473_spill] sm:$0xff] }
 0x730   : > { %v19930_v21 = vpop.permute.xlu0 %12213  ;;  %v8213_v13 = vcombine.low %v19982_v33, %v19973_v15 }
 0x731   : > { %12437 = vrot.lane.b32.xlu0 %v8674_v20, %s23786_s30  ;;  %24214 = vst [vmem:[#allocation487_spill] sm:$0xff] %v19930_v21  ;;  %v7993_v44 = vcombine.low %v7949_v45, %v7981_v4  ;;  %v8253_v0 = vrot.slane %v8245_v8, %v14315_v11  ;;  %v24276_v21 = vld [vmem:[#allocation452_spill] sm:$0xff] }
 0x732   : > { %v19940_v50 = vpop.permute.xlu1 %12035  ;;  %v8221_v51 = vrot.slane %v8213_v13, %v14315_v11  ;;  %v24235_v13 = vld [vmem:[#allocation465_spill] sm:$0xff] }
 0x733   : > { %12259 = vrot.lane.b32.xlu1 %v7991_v40, %s23632_s29  ;;  %24215 = vst [vmem:[#allocation439_spill] sm:$0xff] %v19940_v50  ;;  %v24223_v40 = vld [vmem:[#allocation170_spill] sm:$0xff]  ;;  %v24265_v50 = vld [vmem:[#allocation200_spill] sm:$0xff] }
 0x734   : > { %v19955_v25 = vpop.permute.xlu0 %12225  ;;  %v8910_v61 = vcombine.high %v24223_v40, %v24222_v3  ;;  %v8265_v12 = vcombine.low %v8221_v51, %v8253_v0  ;;  %v7994_v40 = vcombine.high %v7949_v45, %v7981_v4  ;;  %v24242_v4 = vld [vmem:[#allocation30_spill] sm:$0xff]  ;;  %v8405_v7 = vcombine.low %v24266_v29, %v24265_v50 }
 0x735   : > { %12449 = vrot.lane.b32.xlu0 %v8403_v62, %s23791_s0  ;;  %24216 = vst [vmem:[#allocation128_spill] sm:$0xff] %v19955_v25  ;;  %v24226_v62 = vld [vmem:[#allocation178_spill] sm:$0xff] }
 0x736   : > { %v19967_v22 = vpop.permute.xlu1 %12039  ;;  %v8942_v6 = vcombine.high %v24226_v62, %v24225_v5  ;;  %v8924_v8 = vrot.slane %v8910_v61, %v14315_v11 }
 0x737   : > { %12263 = vrot.lane.b32.xlu1 %v8263_v48, %s23632_s29  ;;  %24217 = vst [vmem:[#allocation98_spill] sm:$0xff] %v19967_v22  ;;  %v8878_v48 = vcombine.high %v24228_v63, %v24227_v56  ;;  %v24238_v56 = vld [vmem:[#allocation135_spill] sm:$0xff]  ;;  %v24239_v63 = vld [vmem:[#allocation105_spill] sm:$0xff] }
 0x738   : > { %v19979_v59 = vpop.permute.xlu0 %12229 }
 0x739   : > { %12453 = vrot.lane.b32.xlu0 %v8675_v57, %s23791_s0  ;;  %24218 = vst [vmem:[#allocation53_spill] sm:$0xff] %v19979_v59  ;;  %v24231_v57 = vld [vmem:[#allocation466_spill] sm:$0xff] }
 0x73a   : > { %v19986_v23 = vpop.permute.xlu1 %12051  ;;  %v9182_v36 = vcombine.high %v24231_v57, %v24230_v10  ;;  %v7942_v10 = vcombine.high %v19958_v35, %v19945_v18  ;;  %v24241_v57 = vld [vmem:[#allocation60_spill] sm:$0xff]  ;;  %v8246_v18 = vcombine.high %v19976_v46, %v19965_v32 }
 0x73b   : > { %12275 = vrot.lane.b32.xlu1 %v7992_v2, %s23794_s15  ;;  %24219 = vst [vmem:[#allocation23_spill] sm:$0xff] %v19986_v23  ;;  %v24233_v2 = vld [vmem:[#allocation472_spill] sm:$0xff]  ;;  %v8814_v45 = vcombine.high %v24242_v4, %v24241_v57  ;;  %v24248_v4 = vld [vmem:[#allocation430_spill] sm:$0xff] }
 0x73c   : > { %v19994_v14 = vpop.permute.xlu0 %12241  ;;  %v7956_v32 = vrot.slane %v7942_v10, %v14315_v11  ;;  %v24255_v10 = vld [vmem:[#allocation415_spill] sm:$0xff] }
 0x73d   : > { %12465 = vrot.lane.b32.xlu0 %v8404_v58, %s23797_s8  ;;  %24220 = vst [vmem:[#allocation68_spill] sm:$0xff] %v19994_v14  ;;  %v9214_v58 = vcombine.high %v24234_v41, %v24233_v2  ;;  %v24270_v2 = vld [vmem:[#allocation508_spill] sm:$0xff]  ;;  %v24271_v41 = vld [vmem:[#allocation478_spill] sm:$0xff] }
 0x73e   : > { %v19996_v20 = vpop.permute.xlu1 %12055 }
 0x73f   : > { %12279 = vrot.lane.b32.xlu1 %v8264_v28, %s23794_s15  ;;  %24221 = vst [vmem:[#allocation38_spill] sm:$0xff] %v19996_v20  ;;  %v7974_v28 = vcombine.high %v19948_v53, %v19936_v42  ;;  %v20037_v53 = vrot.slane %v9182_v36, %v14315_v11 }
 0x740   : > { %v20004_v52 = vpop.permute.xlu0 %12245 }
 0x741   : > { %12469 = vrot.lane.b32.xlu0 %v8676_v19, %s23797_s8  ;;  %24224 = vst [vmem:[#allocation113_spill] sm:$0xff] %v20004_v52  ;;  %v24236_v19 = vld [vmem:[#allocation468_spill] sm:$0xff]  ;;  %v7988_v36 = vrot.slane %v7974_v28, %v14315_v11 }
 0x742   : > { %v20010_v30 = vpop.permute.xlu1 %12067 }
 0x743   : > { %12291 = vrot.lane.b32.xlu1 %v7993_v44, %s23802_s7  ;;  %24229 = vst [vmem:[#allocation83_spill] sm:$0xff] %v20010_v30  ;;  %v9150_v44 = vcombine.high %v24236_v19, %v24235_v13  ;;  %v24244_v13 = vld [vmem:[#allocation45_spill] sm:$0xff]  ;;  %v24245_v19 = vld [vmem:[#allocation120_spill] sm:$0xff]  ;;  %v7995_v22 = vcombine.low %v7956_v32, %v7988_v36 }
 0x744   : > { %v20016_v47 = vpop.permute.xlu0 %12257  ;;  %v24260_v30 = vld [vmem:[#allocation264_spill] sm:$0xff] }
 0x745   : > { %12481 = vrot.lane.b32.xlu0 %v8942_v6, %s23809_s12  ;;  %24232 = vst [vmem:[#allocation423_spill] sm:$0xff] %v20016_v47  ;;  %v8892_v6 = vrot.slane %v8878_v48, %v14315_v11  ;;  %v8437_v23 = vcombine.low %v24261_v26, %v24260_v30 }
 0x746   : > { %v20025_v3 = vpop.permute.xlu1 %12071 }
 0x747   : > { %12295 = vrot.lane.b32.xlu1 %v8265_v12, %s23802_s7  ;;  %24237 = vst [vmem:[#allocation392_spill] sm:$0xff] %v20025_v3  ;;  %v8862_v12 = vcombine.high %v24239_v63, %v24238_v56  ;;  %v8943_v42 = vcombine.low %v8892_v6, %v8924_v8  ;;  %v24246_v3 = vld [vmem:[#allocation90_spill] sm:$0xff]  ;;  %v9164_v63 = vrot.slane %v9150_v44, %v14315_v11 }
 0x748   : > { %v20034_v61 = vpop.permute.xlu0 %12261  ;;  %v8846_v56 = vcombine.high %v24246_v3, %v24245_v19  ;;  %v8214_v3 = vcombine.high %v19982_v33, %v19973_v15  ;;  %v24253_v33 = vld [vmem:[#allocation368_spill] sm:$0xff]  ;;  %v24254_v19 = vld [vmem:[#allocation337_spill] sm:$0xff] }
 0x749   : > { %12485 = vrot.lane.b32.xlu0 %v9214_v58, %s23809_s12  ;;  %24240 = vst [vmem:[#allocation361_spill] sm:$0xff] %v20034_v61  ;;  %v24243_v58 = vld [vmem:[#allocation75_spill] sm:$0xff]  ;;  %v20053_v57 = vrot.slane %v8862_v12, %v14280_v31  ;;  %v24251_v12 = vld [vmem:[#allocation280_spill] sm:$0xff] }
 0x74a   : > { %v8830_v48 = vcombine.high %v24244_v13, %v24243_v58  ;;  %v20047_v35 = vpop.permute.xlu1 %12083  ;;  %v24249_v58 = vld [vmem:[#allocation399_spill] sm:$0xff]  ;;  %v20071_v44 = vrot.slane %v8846_v56, %v14280_v31  ;;  %v24258_v56 = vld [vmem:[#allocation216_spill] sm:$0xff] }
 0x74b   : > { %12307 = vrot.lane.b32.xlu1 %v7994_v40, %s23820_s19  ;;  %24247 = vst [vmem:[#allocation330_spill] sm:$0xff] %v20047_v35  ;;  %v8266_v40 = vcombine.high %v8221_v51, %v8253_v0  ;;  %v9134_v13 = vcombine.high %v24249_v58, %v24248_v4  ;;  %v9215_v0 = vcombine.low %v9164_v63, %v20037_v53  ;;  %v24256_v4 = vld [vmem:[#allocation384_spill] sm:$0xff] }
 0x74c   : > { %v20061_v46 = vpop.permute.xlu0 %12273  ;;  %v20065_v51 = vrot.slane %v8814_v45, %v14280_v31  ;;  %v20068_v28 = vrot.slane %v8830_v48, %v14280_v31  ;;  %v9118_v58 = vcombine.high %v24256_v4, %v24255_v10  ;;  %v8260_v45 = vrot.slane %v8246_v18, %v14315_v11  ;;  %v24259_v35 = vld [vmem:[#allocation184_spill] sm:$0xff] }
 0x74d   : > { %12497 = vrot.lane.b32.xlu0 %v8943_v42, %s23829_s6  ;;  %24250 = vst [vmem:[#allocation408_spill] sm:$0xff] %v20061_v46  ;;  %v24252_v42 = vld [vmem:[#allocation248_spill] sm:$0xff]  ;;  %v8925_v48 = vcombine.low %v20071_v44, %v20053_v57  ;;  %v8421_v49 = vcombine.low %v24259_v35, %v24258_v56  ;;  %v20092_v10 = vrot.slane %v9134_v13, %v14280_v31  ;;  %v24275_v46 = vld [vmem:[#allocation493_spill] sm:$0xff] }
 0x74e   : > { %v8453_v15 = vcombine.low %v24252_v42, %v24251_v12  ;;  %v20079_v20 = vpop.permute.xlu1 %12087  ;;  %v8944_v4 = vcombine.high %v8892_v6, %v8924_v8  ;;  %v20109_v13 = vrot.slane %v9118_v58, %v14280_v31  ;;  %v24273_v61 = vld [vmem:[#allocation372_spill] sm:$0xff]  ;;  %v8677_v47 = vcombine.low %v24276_v21, %v24275_v46 }
 0x74f   : > { %12311 = vrot.lane.b32.xlu1 %v8266_v40, %s23820_s19  ;;  %v9102_v40 = vcombine.high %v24254_v19, %v24253_v33  ;;  %24257 = vst [vmem:[#allocation377_spill] sm:$0xff] %v20079_v20  ;;  %v24262_v33 = vld [vmem:[#allocation353_spill] sm:$0xff]  ;;  %v8893_v20 = vcombine.low %v20065_v51, %v20068_v28  ;;  %v20117_v6 = vrot.slane %v8421_v49, %v14280_v31 }
 0x750   : > { %v24263_v19 = vld [vmem:[#allocation313_spill] sm:$0xff]  ;;  %v20096_v18 = vpop.permute.xlu0 %12277  ;;  %v20103_v55 = vrot.slane %v8453_v15, %v14280_v31  ;;  %v20120_v15 = vrot.slane %v8437_v23, %v14280_v31  ;;  %v8933_v58 = vrot.slane %v8925_v48, %v14315_v11  ;;  %v9197_v62 = vcombine.low %v20109_v13, %v20092_v10 }
 0x751   : > { %12501 = vrot.lane.b32.xlu0 %v9215_v0, %s23829_s6  ;;  %v9086_v9 = vcombine.high %v24263_v19, %v24262_v33  ;;  %v8228_v0 = vrot.slane %v8214_v3, %v14315_v11  ;;  %24264 = vst [vmem:[#allocation357_spill] sm:$0xff] %v20096_v18  ;;  %v20106_v33 = vrot.slane %v9102_v40, %v14280_v31  ;;  %v24268_v3 = vld [vmem:[#allocation321_spill] sm:$0xff]  ;;  %v24272_v18 = vld [vmem:[#allocation255_spill] sm:$0xff] }
 0x752   : > { %v20113_v5 = vpop.permute.xlu1 %12099  ;;  %v9216_v23 = vcombine.high %v9164_v63, %v20037_v53  ;;  %v8501_v48 = vcombine.low %v20120_v15, %v20103_v55  ;;  %v8901_v52 = vrot.slane %v8893_v20, %v14315_v11  ;;  %v7996_v53 = vcombine.high %v7956_v32, %v7988_v36 }
 0x753   : > { %12323 = vrot.lane.b32.xlu1 %v7995_v22, %s23846_s9  ;;  %v24267_v22 = vld [vmem:[#allocation124_spill] sm:$0xff]  ;;  %24269 = vst [vmem:[#allocation291_spill] sm:$0xff] %v20113_v5  ;;  %v8267_v8 = vcombine.low %v8228_v0, %v8260_v45  ;;  %v20123_v40 = vrot.slane %v9086_v9, %v14280_v31  ;;  %v8693_v5 = vcombine.low %v24271_v41, %v24270_v2 }
 0x754   : > { %v8725_v19 = vcombine.low %v24268_v3, %v24267_v22  ;;  %v20133_v49 = vpop.permute.xlu0 %12289  ;;  %v20137_v9 = vrot.slane %v8405_v7, %v14280_v31  ;;  %v8945_v7 = vcombine.low %v8901_v52, %v8933_v58  ;;  %v8509_v36 = vrot.slane %v8501_v48, %v14315_v11 }
 0x755   : > { %12513 = vrot.lane.b32.xlu0 %v8944_v4, %s23853_s1  ;;  %v8709_v4 = vcombine.low %v24273_v61, %v24272_v18  ;;  %24274 = vst [vmem:[#allocation290_spill] sm:$0xff] %v20133_v49  ;;  %v9165_v59 = vcombine.low %v20123_v40, %v20106_v33  ;;  %v20155_v20 = vrot.slane %v8693_v5, %v14280_v31 }
 0x756   : > { %v20149_v49 = vpop.permute.xlu1 %12103  ;;  %v8469_v63 = vcombine.low %v20137_v9, %v20117_v6  ;;  %v20166_v32 = vrot.slane %v8677_v47, %v14280_v31  ;;  %v8268_v5 = vcombine.high %v8228_v0, %v8260_v45 }
 0x757   : > { %12327 = vrot.lane.b32.xlu1 %v8267_v8, %s23846_s9  ;;  %v20147_v8 = vrot.slane %v8725_v19, %v14280_v31  ;;  %24277 = vst [vmem:[#allocation342_spill] sm:$0xff] %v20149_v49  ;;  %v20158_v60 = vrot.slane %v8709_v4, %v14280_v31  ;;  %v9205_v19 = vrot.slane %v9197_v62, %v14315_v11 }
 0x758   : > { %v20161_v14 = vpop.permute.xlu0 %12293  ;;  %v9173_v4 = vrot.slane %v9165_v59, %v14315_v11  ;;  %v8477_v62 = vrot.slane %v8469_v63, %v14315_v11  ;;  %v8926_v59 = vcombine.high %v20071_v44, %v20053_v57  ;;  %v8946_v63 = vcombine.high %v8901_v52, %v8933_v58 }
 0x759   : > { %12517 = vrot.lane.b32.xlu0 %v9216_v23, %s23853_s1  ;;  %24278 = vst [vmem:[#allocation209_spill] sm:$0xff] %v20161_v14  ;;  %v8773_v23 = vcombine.low %v20158_v60, %v20147_v8  ;;  %v8502_v52 = vcombine.high %v20120_v15, %v20103_v55  ;;  %v24289_v15 = vld [vmem:[#allocation59_spill] sm:$0xff] }
 0x75a   : > { %v20170_v49 = vpop.permute.xlu1 %12115  ;;  %v9217_v47 = vcombine.low %v9173_v4, %v9205_v19  ;;  %v8533_v24 = vcombine.low %v8477_v62, %v8509_v36  ;;  %v8940_v44 = vrot.slane %v8926_v59, %v14315_v11  ;;  %v8534_v58 = vcombine.high %v8477_v62, %v8509_v36  ;;  %v24291_v62 = vld [vmem:[#allocation74_spill] sm:$0xff] }
 0x75b   : > { %12339 = vrot.lane.b32.xlu1 %v7996_v53, %s23862_s18  ;;  %24279 = vst [vmem:[#allocation193_spill] sm:$0xff] %v20170_v49  ;;  %v8741_v53 = vcombine.low %v20166_v32, %v20155_v20  ;;  %v8781_v45 = vrot.slane %v8773_v23, %v14315_v11  ;;  %v9198_v23 = vcombine.high %v20109_v13, %v20092_v10  ;;  %v24286_v13 = vld [vmem:[#allocation134_spill] sm:$0xff] }
 0x75c   : > { %v20178_v48 = vpop.permute.xlu0 %12305 }
 0x75d   : > { %12529 = vrot.lane.b32.xlu0 %v8945_v7, %s23865_s23  ;;  %24280 = vst [vmem:[#allocation404_spill] sm:$0xff] %v20178_v48  ;;  %v8749_v0 = vrot.slane %v8741_v53, %v14315_v11  ;;  %v8742_v48 = vcombine.high %v20166_v32, %v20155_v20  ;;  %v8454_v20 = vcombine.high %v24252_v42, %v24251_v12  ;;  %v24299_v32 = vld [vmem:[#allocation367_spill] sm:$0xff]  ;;  %v24304_v42 = vld [vmem:[#allocation352_spill] sm:$0xff] }
 0x75e   : > { %v20180_v14 = vpop.permute.xlu1 %12119  ;;  %v8438_v12 = vcombine.high %v24261_v26, %v24260_v30  ;;  %v9629_v39 = vcombine.low %v24305_v16, %v24304_v42 }
 0x75f   : > { %12343 = vrot.lane.b32.xlu1 %v8268_v5, %s23862_s18  ;;  %24281 = vst [vmem:[#allocation533_spill] sm:$0xff] %v20180_v14  ;;  %v8894_v5 = vcombine.high %v20065_v51, %v20068_v28  ;;  %v8805_v14 = vcombine.low %v8749_v0, %v8781_v45  ;;  %v9166_v51 = vcombine.high %v20123_v40, %v20106_v33  ;;  %v24290_v40 = vld [vmem:[#allocation29_spill] sm:$0xff] }
 0x760   : > { %v20188_v7 = vpop.permute.xlu0 %12309  ;;  %v20217_v33 = vrot.slane %v9198_v23, %v14315_v11  ;;  %v9357_v36 = vcombine.low %v24290_v40, %v24289_v15  ;;  %v8516_v23 = vrot.slane %v8502_v52, %v14315_v11  ;;  %v20283_v26 = vrot.slane %v8454_v20, %v14280_v31 }
 0x761   : > { %12533 = vrot.lane.b32.xlu0 %v9217_v47, %s23865_s23  ;;  %24282 = vst [vmem:[#allocation532_spill] sm:$0xff] %v20188_v7  ;;  %v8908_v10 = vrot.slane %v8894_v5, %v14315_v11  ;;  %v24292_v47 = vld [vmem:[#allocation44_spill] sm:$0xff]  ;;  %v24294_v5 = vld [vmem:[#allocation89_spill] sm:$0xff]  ;;  %v24297_v7 = vld [vmem:[#allocation398_spill] sm:$0xff] }
 0x762   : > { %v20192_v49 = vpop.permute.xlu1 %12131  ;;  %v9373_v59 = vcombine.low %v24292_v47, %v24291_v62 }
 0x763   : > { %12355 = vrot.lane.b32.xlu1 %v8533_v24, %s24139_s22  ;;  %24283 = vst [vmem:[#allocation501_spill] sm:$0xff] %v20192_v49  ;;  %v9218_v24 = vcombine.high %v9173_v4, %v9205_v19  ;;  %v8470_v19 = vcombine.high %v20137_v9, %v20117_v6  ;;  %v8947_v55 = vcombine.low %v8908_v10, %v8940_v44 }
 0x764   : > { %v20198_v57 = vpop.permute.xlu0 %12321  ;;  %v8774_v6 = vcombine.high %v20158_v60, %v20147_v8  ;;  %v20248_v52 = vrot.slane %v9373_v59, %v14280_v31 }
 0x765   : > { %12545 = vrot.lane.b32.xlu0 %v8946_v63, %s23870_s10  ;;  %24284 = vst [vmem:[#allocation273_spill] sm:$0xff] %v20198_v57  ;;  %v24293_v63 = vld [vmem:[#allocation119_spill] sm:$0xff]  ;;  %v8484_v60 = vrot.slane %v8470_v19, %v14315_v11  ;;  %v24301_v19 = vld [vmem:[#allocation414_spill] sm:$0xff] }
 0x766   : > { %v20205_v28 = vpop.permute.xlu1 %12135 }
 0x767   : > { %12359 = vrot.lane.b32.xlu1 %v8805_v14, %s24139_s22  ;;  %24285 = vst [vmem:[#allocation486_spill] sm:$0xff] %v20205_v28  ;;  %v24287_v14 = vld [vmem:[#allocation104_spill] sm:$0xff]  ;;  %v9180_v28 = vrot.slane %v9166_v51, %v14315_v11  ;;  %v8535_v25 = vcombine.low %v8484_v60, %v8516_v23 }
 0x768   : > { %v9405_v53 = vcombine.low %v24287_v14, %v24286_v13  ;;  %v20214_v4 = vpop.permute.xlu0 %12325 }
 0x769   : > { %12549 = vrot.lane.b32.xlu0 %v9218_v24, %s23870_s10  ;;  %24288 = vst [vmem:[#allocation257_spill] sm:$0xff] %v20214_v4  ;;  %v9389_v24 = vcombine.low %v24294_v5, %v24293_v63  ;;  %v24296_v4 = vld [vmem:[#allocation429_spill] sm:$0xff]  ;;  %v9220_v20 = vcombine.high %v9180_v28, %v20217_v33 }
 0x76a   : > { %v20227_v9 = vpop.permute.xlu1 %12147  ;;  %v20233_v49 = vrot.slane %v9405_v53, %v14280_v31  ;;  %v9677_v57 = vcombine.low %v24297_v7, %v24296_v4  ;;  %v24300_v53 = vld [vmem:[#allocation336_spill] sm:$0xff] }
 0x76b   : > { %12371 = vrot.lane.b32.xlu1 %v8534_v58, %s23741_s11  ;;  %24295 = vst [vmem:[#allocation145_spill] sm:$0xff] %v20227_v9  ;;  %v8806_v58 = vcombine.high %v8749_v0, %v8781_v45  ;;  %v9219_v45 = vcombine.low %v9180_v28, %v20217_v33  ;;  %v20245_v0 = vrot.slane %v9357_v36, %v14280_v31 }
 0x76c   : > { %v20241_v8 = vpop.permute.xlu0 %12337  ;;  %v20251_v51 = vrot.slane %v9389_v24, %v14280_v31  ;;  %v8788_v36 = vrot.slane %v8774_v6, %v14315_v11  ;;  %v8422_v24 = vcombine.high %v24259_v35, %v24258_v56  ;;  %v20272_v17 = vrot.slane %v9677_v57, %v14280_v31 }
 0x76d   : > { %12561 = vrot.lane.b32.xlu0 %v8947_v55, %s23883_s2  ;;  %24298 = vst [vmem:[#allocation529_spill] sm:$0xff] %v20241_v8  ;;  %v9645_v55 = vcombine.low %v24300_v53, %v24299_v32  ;;  %v9421_v34 = vcombine.low %v20245_v0, %v20248_v52  ;;  %v8406_v35 = vcombine.high %v24266_v29, %v24265_v50 }
 0x76e   : > { %v20259_v8 = vpop.permute.xlu1 %12151  ;;  %v9453_v59 = vcombine.low %v20251_v51, %v20233_v49  ;;  %v20300_v29 = vrot.slane %v8438_v12, %v14280_v31  ;;  %v20303_v50 = vrot.slane %v9629_v39, %v14280_v31  ;;  %v8536_v28 = vcombine.high %v8484_v60, %v8516_v23 }
 0x76f   : > { %12375 = vrot.lane.b32.xlu1 %v8806_v58, %s23741_s11  ;;  %v24302_v58 = vld [vmem:[#allocation383_spill] sm:$0xff]  ;;  %24303 = vst [vmem:[#allocation442_spill] sm:$0xff] %v20259_v8  ;;  %v8948_v8 = vcombine.high %v8908_v10, %v8940_v44  ;;  %v20286_v30 = vrot.slane %v9645_v55, %v14280_v31  ;;  %v20297_v44 = vrot.slane %v8422_v24, %v14280_v31 }
 0x770   : > { %v9661_v9 = vcombine.low %v24302_v58, %v24301_v19  ;;  %v20276_v6 = vpop.permute.xlu0 %12341  ;;  %v9461_v10 = vrot.slane %v9453_v59, %v14315_v11  ;;  %v20317_v39 = vrot.slane %v8406_v35, %v14280_v31  ;;  %v8517_v55 = vcombine.low %v20300_v29, %v20283_v26 }
 0x771   : > { %12565 = vrot.lane.b32.xlu0 %v9219_v45, %s23883_s2  ;;  %v8756_v45 = vrot.slane %v8742_v48, %v14315_v11  ;;  %v9429_v59 = vrot.slane %v9421_v34, %v14315_v11 }
 0x772   : > { %v20289_v56 = vrot.slane %v9661_v9, %v14280_v31  ;;  %v20293_v48 = vpop.permute.xlu1 %12163  ;;  %v8485_v24 = vcombine.low %v20317_v39, %v20297_v44  ;;  %v8525_v23 = vrot.slane %v8517_v55, %v14315_v11 }
 0x773   : > { %12387 = vrot.lane.b32.xlu1 %v8535_v25, %s23764_s5  ;;  %v8726_v25 = vcombine.high %v24268_v3, %v24267_v22  ;;  %24306 = vst [vmem:[#allocation78_spill] sm:$0xff] %v20293_v48  ;;  %v8807_v57 = vcombine.low %v8756_v45, %v8788_v36  ;;  %v8694_v22 = vcombine.high %v24271_v41, %v24270_v2 }
 0x774   : > { %v9725_v9 = vcombine.low %v20289_v56, %v20272_v17  ;;  %v8710_v3 = vcombine.high %v24273_v61, %v24272_v18  ;;  %v9693_v2 = vcombine.low %v20303_v50, %v20286_v30  ;;  %v8678_v41 = vcombine.high %v24276_v21, %v24275_v46 }
 0x775   : > { %12577 = vrot.lane.b32.xlu0 %v8948_v8, %s23492_s14  ;;  %v20313_v8 = vpop.permute.xlu0 %12353  ;;  %v20327_v61 = vrot.slane %v8726_v25, %v14280_v31  ;;  %v9485_v33 = vcombine.low %v9429_v59, %v9461_v10  ;;  %v20335_v34 = vrot.slane %v8694_v22, %v14280_v31 }
 0x776   : > { %v20329_v18 = vpop.permute.xlu1 %12167  ;;  %v20338_v12 = vrot.slane %v8710_v3, %v14280_v31  ;;  %v9733_v46 = vrot.slane %v9725_v9, %v14315_v11  ;;  %v20346_v60 = vrot.slane %v8678_v41, %v14280_v31  ;;  %v9701_v22 = vrot.slane %v9693_v2, %v14315_v11 }
 0x777   : > { %12391 = vrot.lane.b32.xlu1 %v8807_v57, %s23764_s5  ;;  %24307 = vst [vmem:[#allocation52_spill] sm:$0xff] %v20329_v18  ;;  %v8808_v57 = vcombine.high %v8756_v45, %v8788_v36  ;;  %v8493_v9 = vrot.slane %v8485_v24, %v14315_v11  ;;  %v9454_v45 = vcombine.high %v20251_v51, %v20233_v49 }
 0x778   : > { %v8789_v35 = vcombine.low %v20338_v12, %v20327_v61  ;;  %v8757_v3 = vcombine.low %v20346_v60, %v20335_v34  ;;  %v9757_v55 = vcombine.low %v9701_v22, %v9733_v46  ;;  %v9486_v24 = vcombine.high %v9429_v59, %v9461_v10 }
 0x779   : > { %12581 = vrot.lane.b32.xlu0 %v9220_v20, %s23492_s14  ;;  %v20341_v21 = vpop.permute.xlu0 %12357  ;;  %v9758_v51 = vcombine.high %v9701_v22, %v9733_v46  ;;  %v9374_v10 = vcombine.high %v24292_v47, %v24291_v62  ;;  %v9406_v46 = vcombine.high %v24287_v14, %v24286_v13  ;;  %v8486_v62 = vcombine.high %v20317_v39, %v20297_v44  ;;  %v24314_v22 = vld [vmem:[#allocation32_spill] sm:$0xff] }
 0x77a   : > { %v20350_v25 = vpop.permute.xlu1 %12179  ;;  %v8797_v36 = vrot.slane %v8789_v35, %v14315_v11  ;;  %v8765_v2 = vrot.slane %v8757_v3, %v14315_v11  ;;  %v9726_v35 = vcombine.high %v20289_v56, %v20272_v17  ;;  %v9468_v3 = vrot.slane %v9454_v45, %v14315_v11  ;;  %v24315_v45 = vld [vmem:[#allocation77_spill] sm:$0xff] }
 0x77b   : > { %12403 = vrot.lane.b32.xlu1 %v8536_v28, %s23777_s4  ;;  %24308 = vst [vmem:[#allocation142_spill] sm:$0xff] %v20350_v25  ;;  %v8537_v28 = vcombine.low %v8493_v9, %v8525_v23  ;;  %v9358_v56 = vcombine.high %v24290_v40, %v24289_v15  ;;  %v9390_v15 = vcombine.high %v24294_v5, %v24293_v63  ;;  %v24484_v25 = vld [vmem:[#allocation106_spill] sm:$0xff] }
 0x77c   : > { %v8790_v13 = vcombine.high %v20338_v12, %v20327_v61  ;;  %v8810_v40 = vcombine.high %v8765_v2, %v8797_v36  ;;  %v20421_v63 = vrot.slane %v9406_v46, %v14280_v31  ;;  %v9678_v5 = vcombine.high %v24297_v7, %v24296_v4 }
 0x77d   : > { %12593 = vrot.lane.b32.xlu0 %v9485_v33, %s23496_s16  ;;  %v20358_v20 = vpop.permute.xlu0 %12369  ;;  %v9372_v39 = vrot.slane %v9358_v56, %v14280_v31  ;;  %v8758_v61 = vcombine.high %v20346_v60, %v20335_v34  ;;  %v8500_v12 = vrot.slane %v8486_v62, %v14315_v11  ;;  %v9646_v7 = vcombine.high %v24300_v53, %v24299_v32  ;;  %v24318_v53 = vld [vmem:[#allocation97_spill] sm:$0xff]  ;;  %v24322_v56 = vld [vmem:[#allocation530_spill] sm:$0xff] }
 0x77e   : > { %v9662_v4 = vcombine.high %v24302_v58, %v24301_v19  ;;  %v9630_v32 = vcombine.high %v24305_v16, %v24304_v42  ;;  %v24319_v19 = vld [vmem:[#allocation168_spill] sm:$0xff]  ;;  %v24320_v58 = vld [vmem:[#allocation165_spill] sm:$0xff] }
 0x77f   : > { %12407 = vrot.lane.b32.xlu1 %v8808_v57, %s23777_s4  ;;  %v9422_v57 = vcombine.high %v20245_v0, %v20248_v52  ;;  %v8518_v0 = vcombine.high %v20300_v29, %v20283_v26  ;;  %v9694_v52 = vcombine.high %v20303_v50, %v20286_v30  ;;  %v20401_v30 = vrot.slane %v9726_v35, %v14315_v11 }
 0x780   : > { %v20360_v41 = vpop.permute.xlu1 %12183  ;;  %v20404_v29 = vrot.slane %v9374_v10, %v14280_v31  ;;  %v20447_v35 = vrot.slane %v8790_v13, %v14315_v11  ;;  %v8772_v62 = vrot.slane %v8758_v61, %v14315_v11  ;;  %v24324_v13 = vld [vmem:[#allocation424_spill] sm:$0xff]  ;;  %v24326_v61 = vld [vmem:[#allocation471_spill] sm:$0xff] }
 0x781   : > { %24309 = vst [vmem:[#allocation112_spill] sm:$0xff] %v20360_v41  ;;  %12597 = vrot.lane.b32.xlu0 %v9757_v55, %s23496_s16  ;;  %v8809_v41 = vcombine.low %v8765_v2, %v8797_v36  ;;  %v8538_v55 = vcombine.high %v8493_v9, %v8525_v23  ;;  %v9436_v17 = vrot.slane %v9422_v57, %v14315_v11  ;;  %v24313_v23 = vld [vmem:[#allocation62_spill] sm:$0xff]  ;;  %v24316_v2 = vld [vmem:[#allocation47_spill] sm:$0xff] }
 0x782   : > { %v20368_v33 = vpop.permute.xlu0 %12373  ;;  %v20414_v44 = vrot.slane %v8518_v0, %v14315_v11  ;;  %v9708_v50 = vrot.slane %v9694_v52, %v14315_v11  ;;  %v9901_v9 = vcombine.low %v24314_v22, %v24313_v23  ;;  %v9437_v36 = vcombine.low %v9372_v39, %v20404_v29 }
 0x783   : > { %12419 = vrot.lane.b32.xlu1 %v8537_v28, %s23781_s3  ;;  %v9487_v26 = vcombine.low %v9436_v17, %v9468_v3  ;;  %v20436_v57 = vrot.slane %v9390_v15, %v14280_v31  ;;  %v24321_v0 = vcombine.low %v24319_v19, %v24320_v58  ;;  %v9488_v15 = vcombine.high %v9436_v17, %v9468_v3 }
 0x784   : > { %v20372_v18 = vpop.permute.xlu1 %12195  ;;  %v9759_v28 = vcombine.low %v9708_v50, %v20401_v30  ;;  %v8539_v60 = vcombine.low %v8500_v12, %v20414_v44  ;;  %v9438_v16 = vcombine.high %v9372_v39, %v20404_v29  ;;  %v8811_v29 = vcombine.low %v8772_v62, %v20447_v35 }
 0x785   : > { %24310 = vst [vmem:[#allocation440_spill] sm:$0xff] %v20372_v18  ;;  %12609 = vrot.lane.b32.xlu0 %v9486_v24, %s23506_s20  ;;  %v9917_v24 = vcombine.low %v24316_v2, %v24315_v45  ;;  %v9469_v10 = vcombine.low %v20436_v57, %v20421_v63  ;;  %v13252_v52 = vsel %vm12973_vm0, %v24321_v0, %v24318_v53 }
 0x786   : > { %v20378_v49 = vpop.permute.xlu0 %12385  ;;  %v13256_v46 = vsel %vm24323_vm1, %v13252_v52, %v24322_v56  ;;  %v20492_v39 = vrot.slane %v9630_v32, %v14280_v31  ;;  %v24335_v52 = vld [vmem:[#allocation376_spill] sm:$0xff]  ;;  %v24337_v32 = vld [vmem:[#allocation441_spill] sm:$0xff]  ;;  %vm24344_vm1 = vmmov %vm24325_vm2 }
 0x787   : > { %12423 = vrot.lane.b32.xlu1 %v8809_v41, %s23781_s3  ;;  %v20472_v42 = vrot.slane %v9917_v24, %v14280_v31  ;;  %v24330_v24 = vld [vmem:[#allocation462_spill] sm:$0xff]  ;;  %v20502_v58 = vrot.slane %v9469_v10, %v14315_v11  ;;  %v24341_v10 = vld [vmem:[#allocation137_spill] sm:$0xff] }
 0x788   : > { %v20387_v59 = vpop.permute.xlu1 %12199 }
 0x789   : > { %24311 = vst [vmem:[#allocation272_spill] sm:$0xff] %v20387_v59  ;;  %12613 = vrot.lane.b32.xlu0 %v9758_v51, %s23506_s20  ;;  %v20450_v51 = vrot.slane %v9901_v9, %v14280_v31  ;;  %v20477_v9 = vrot.slane %v9437_v36, %v14315_v11  ;;  %v24329_v36 = vld [vmem:[#allocation391_spill] sm:$0xff] }
 0x78b   : > { %12435 = vrot.lane.b32.xlu1 %v8538_v55, %s23786_s30  ;;  %v20398_v47 = vpop.permute.xlu0 %12389  ;;  %v20462_v55 = vrot.slane %v9678_v5, %v14280_v31  ;;  %v20480_v5 = vrot.slane %v9646_v7, %v14280_v31 }
 0x78c   : > { %v20410_v14 = vpop.permute.xlu1 %12211 }
 0x78d   : > { %24312 = vst [vmem:[#allocation127_spill] sm:$0xff] %v20410_v14  ;;  %12625 = vrot.lane.b32.xlu0 %v9487_v26, %s23515_s21 }
 0x78f   : > { %12439 = vrot.lane.b32.xlu1 %v8810_v40, %s23786_s30  ;;  %v20429_v41 = vpop.permute.xlu0 %12401  ;;  %v13260_v40 = vsel %vm24325_vm2, %v13256_v46, %v24324_v13  ;;  %s24328_s30 = smov 44   ;;  %v9760_v13 = vcombine.high %v9708_v50, %v20401_v30  ;;  %vm24346_vm2 = vcmask 228352  }
 0x790   : > { %v13264_v3 = vsel %vm12988_vm3, %v13260_v40, %v24326_v61  ;;  %v24339_v40 = vld [vmem:[#allocation122_spill] sm:$0xff]  ;;  %v24340_v61 = vld [vmem:[#allocation92_spill] sm:$0xff] }
 0x791   : > { %v20442_v34 = vpop.permute.xlu1 %12215  ;;  %12629 = vrot.lane.b32.xlu0 %v9759_v28, %s23515_s21  ;;  %v20483_v28 = vrot.slane %v9662_v4, %v14280_v31  ;;  %v24333_v4 = vld [vmem:[#allocation331_spill] sm:$0xff] }
 0x792   : > { %24317 = vst [vmem:[#allocation329_spill] sm:$0xff] %v20442_v34  ;;  %v13268_v19 = vsel %vm24334_vm6, %v13264_v3, %v24333_v4  ;;  %v9933_v3 = vcombine.low %v24340_v61, %v24339_v40  ;;  %v24345_v4 = vld [vmem:[#allocation274_spill] sm:$0xff]  ;;  %vm24349_vm6 = vcmask 261120   ;;  %v8540_v34 = vcombine.high %v8500_v12, %v20414_v44 }
 0x793   : > { %12451 = vrot.lane.b32.xlu1 %v8539_v60, %s23791_s0  ;;  %v20468_v26 = vpop.permute.xlu0 %12405  ;;  %v24331_v60 = vld [vmem:[#allocation460_spill] sm:$0xff]  ;;  %v9741_v0 = vcombine.low %v20483_v28, %v20462_v55  ;;  %v13272_v46 = vsel %vm24338_vm5, %v13268_v19, %v24337_v32  ;;  %v9709_v19 = vcombine.low %v20492_v39, %v20480_v5  ;;  %v24348_v32 = vld [vmem:[#allocation99_spill] sm:$0xff]  ;;  %vm24354_vm5 = vcmask 293888  }
 0x794   : > { %v24332_v7 = vcombine.low %v24330_v24, %v24331_v60  ;;  %v24343_v60 = vld [vmem:[#allocation503_spill] sm:$0xff] }
 0x795   : > { %v20487_v17 = vpop.permute.xlu1 %12227  ;;  %12641 = vrot.lane.b32.xlu0 %v9488_v15, %s24328_s30 }
 0x796   : > { %24327 = vst [vmem:[#allocation67_spill] sm:$0xff] %v20487_v17  ;;  %v13254_v53 = vsel %vm12973_vm0, %v24332_v7, %v24329_v36  ;;  %v24342_v36 = vld [vmem:[#allocation107_spill] sm:$0xff]  ;;  %v24419_v17 = vld [vmem:[#allocation361_spill] sm:$0xff] }
 0x797   : > { %v13258_v56 = vsel %vm24336_vm4, %v13254_v53, %v24335_v52  ;;  %12455 = vrot.lane.b32.xlu1 %v8811_v29, %s23791_s0  ;;  %v20511_v15 = vpop.permute.xlu0 %12417  ;;  %v9949_v24 = vcombine.low %v24342_v36, %v24341_v10  ;;  %v13276_v53 = vsel %vm24346_vm2, %v13272_v46, %v24345_v4  ;;  %v24347_v29 = vld [vmem:[#allocation516_spill] sm:$0xff]  ;;  %vm24352_vm4 = vcmask 162816   ;;  %v24353_v4 = vld [vmem:[#allocation177_spill] sm:$0xff] }
 0x798   : > { %v13262_v7 = vsel %vm24344_vm1, %v13258_v56, %v24343_v60  ;;  %v13280_v30 = vsel %vm24349_vm6, %v13276_v53, %v24348_v32  ;;  %v9470_v56 = vcombine.high %v20436_v57, %v20421_v63  ;;  %v24351_v60 = vld [vmem:[#allocation378_spill] sm:$0xff]  ;;  %vm24356_vm1 = vcmask 195584  }
 0x799   : > { %v13266_v52 = vsel %vm12988_vm3, %v13262_v7, %v24347_v29  ;;  %v20528_v50 = vpop.permute.xlu1 %12231  ;;  %12645 = vrot.lane.b32.xlu0 %v9760_v13, %s24328_s30  ;;  %v13284_v59 = vsel %vm24354_vm5, %v13280_v30, %v24353_v4  ;;  %v20539_v7 = vrot.slane %v9438_v16, %v14315_v11  ;;  %v24355_v29 = vld [vmem:[#allocation301_spill] sm:$0xff]  ;;  %vm24357_vm2 = vcmask 326656  }
 0x79a   : > { %24350 = vst [vmem:[#allocation208_spill] sm:$0xff] %v20528_v50  ;;  %v13270_v46 = vsel %vm24352_vm4, %v13266_v52, %v24351_v60  ;;  %v13288_v44 = vsel %vm24357_vm2, %v13284_v59, %v19645_v38  ;;  %v9489_v63 = vcombine.low %v20477_v9, %v20502_v58  ;;  %v20551_v57 = vrot.slane %v9741_v0, %v14315_v11  ;;  %v24358_v52 = vld [vmem:[#allocation69_spill] sm:$0xff]  ;;  %v24361_v59 = vld [vmem:[#allocation210_spill] sm:$0xff]  ;;  %v24365_v60 = vld [vmem:[#allocation203_spill] sm:$0xff] }
 0x79b   : > { %v13274_v53 = vsel %vm24356_vm1, %v13270_v46, %v24355_v29  ;;  %12467 = vrot.lane.b32.xlu1 %v8540_v34, %s23797_s8  ;;  %v20546_v12 = vpop.permute.xlu0 %12421  ;;  %v20554_v13 = vrot.slane %v9933_v3, %v14280_v31  ;;  %v20557_v16 = vrot.slane %v9949_v24, %v14280_v31  ;;  %vm24359_vm6 = vcmask 228352   ;;  %v24366_v46 = vld [vmem:[#allocation163_spill] sm:$0xff] }
 0x79c   : > { %v13278_v32 = vsel %vm24359_vm6, %v13274_v53, %v24358_v52  ;;  %vm24360_vm4 = vcmask 359424   ;;  %vm24362_vm5 = vcmask 261120   ;;  %vm24363_vm1 = vcmask 392192  }
 0x79d   : > { %v13292_v38 = vsel %vm24360_vm4, %v13288_v44, %v19722_v1  ;;  %v13282_v34 = vsel %vm24362_vm5, %v13278_v32, %v24361_v59  ;;  %v20567_v0 = vpop.permute.xlu1 %12243  ;;  %v8812_v3 = vcombine.high %v8772_v62, %v20447_v35  ;;  %12657 = vrot.lane.b32.xlu0 %v9489_v63, %s23542_s24  ;;  %v9717_v24 = vrot.slane %v9709_v19, %v14315_v11  ;;  %v24370_v44 = vld [vmem:[#allocation323_spill] sm:$0xff]  ;;  %v24372_v62 = vld [vmem:[#allocation325_spill] sm:$0xff]  ;;  %v24375_v32 = vld [vmem:[#allocation320_spill] sm:$0xff] }
 0x79e   : > { %v13296_v30 = vsel %vm24363_vm1, %v13292_v38, %v19794_v27  ;;  %24364 = vst [vmem:[#allocation422_spill] sm:$0xff] %v20567_v0  ;;  %v8950_v4 = vcombine.high %v24366_v46, %v24365_v60  ;;  %vm24367_vm2 = vcmask 293888   ;;  %vm24368_vm6 = vcmask 424960   ;;  %v24369_v27 = vld [vmem:[#allocation319_spill] sm:$0xff]  ;;  %v24376_v59 = vld [vmem:[#allocation258_spill] sm:$0xff] }
 0x79f   : > { %v13286_v1 = vsel %vm24367_vm2, %v13282_v34, %v19603_v43  ;;  %v13300_v29 = vsel %vm24368_vm6, %v13296_v30, %v19864_v54  ;;  %v20579_v53 = vrot.slane %v9470_v56, %v14315_v11  ;;  %v9014_v52 = vcombine.high %v24370_v44, %v24369_v27  ;;  %12471 = vrot.lane.b32.xlu1 %v8812_v3, %s23797_s8  ;;  %v20588_v63 = vpop.permute.xlu0 %12433  ;;  %v24374_v56 = vld [vmem:[#allocation317_spill] sm:$0xff]  ;;  %v24378_v30 = vld [vmem:[#allocation535_spill] sm:$0xff]  ;;  %v24380_v60 = vld [vmem:[#allocation226_spill] sm:$0xff] }
 0x7a0   : > { %vm24371_vm4 = vcmask 326656   ;;  %vm24373_vm5 = vcmask 457728   ;;  %v9761_v43 = vcombine.low %v9717_v24, %v20551_v57  ;;  %v9046_v38 = vcombine.high %v24375_v32, %v24374_v56  ;;  %v24382_v3 = vld [vmem:[#allocation128_spill] sm:$0xff]  ;;  %v24385_v27 = vld [vmem:[#allocation326_spill] sm:$0xff] }
 0x7a1   : > { %v13290_v35 = vsel %vm24371_vm4, %v13286_v1, %v19685_v37  ;;  %v13304_v19 = vsel %vm24373_vm5, %v13300_v29, %v24372_v62  ;;  %vm24377_vm1 = vcmask 359424   ;;  %vm24379_vm2 = vcmask 490496   ;;  %v20603_v29 = vpop.permute.xlu1 %12247  ;;  %v24386_v44 = vld [vmem:[#allocation328_spill] sm:$0xff]  ;;  %v24393_v54 = vld [vmem:[#allocation502_spill] sm:$0xff] }
 0x7a2   : > { %v13294_v34 = vsel %vm24377_vm1, %v13290_v35, %v24376_v59  ;;  %v13308_v37 = vsel %vm24379_vm2, %v13304_v19, %v24378_v30  ;;  %vm24381_vm6 = vcmask 392192   ;;  %vm24383_vm4 = vcmask 523264   ;;  %24384 = vst [vmem:[#allocation360_spill] sm:$0xff] %v20603_v29  ;;  %12661 = vrot.lane.b32.xlu0 %v9761_v43, %s23542_s24  ;;  %v24387_v19 = vld [vmem:[#allocation54_spill] sm:$0xff]  ;;  %v24389_v59 = vld [vmem:[#allocation68_spill] sm:$0xff] }
 0x7a3   : > { %v13298_v46 = vsel %vm24381_vm6, %v13294_v34, %v24380_v60  ;;  %v13312_v1 = vsel %vm24383_vm4, %v13308_v37, %v24382_v3  ;;  %v9078_v62 = vcombine.high %v24386_v44, %v24385_v27  ;;  %v9490_v56 = vcombine.high %v20477_v9, %v20502_v58  ;;  %v24391_v37 = vld [vmem:[#allocation219_spill] sm:$0xff]  ;;  %v20626_v58 = vpop.permute.xlu0 %12437 }
 0x7a4   : > { %v20611_v35 = vrot.slane %v8950_v4, %v14280_v31  ;;  %vm24388_vm5 = vcmask 424960   ;;  %vm24390_vm1 = vcmask 556032   ;;  %v9491_v30 = vcombine.low %v20539_v7, %v20579_v53  ;;  %v24392_v60 = vld [vmem:[#allocation187_spill] sm:$0xff] }
 0x7a5   : > { %v13302_v32 = vsel %vm24388_vm5, %v13298_v46, %v24387_v19  ;;  %v13316_v34 = vsel %vm24390_vm1, %v13312_v1, %v24389_v59  ;;  %v8966_v3 = vcombine.high %v24392_v60, %v24391_v37  ;;  %vm24394_vm2 = vcmask 457728   ;;  %v24395_v27 = vld [vmem:[#allocation423_spill] sm:$0xff]  ;;  %12483 = vrot.lane.b32.xlu1 %v9078_v62, %s23809_s12  ;;  %v24401_v37 = vld [vmem:[#allocation408_spill] sm:$0xff]  ;;  %v20646_v0 = vpop.permute.xlu1 %12259 }
 0x7a6   : > { %v13306_v43 = vsel %vm24394_vm2, %v13302_v32, %v24393_v54  ;;  %vm24396_vm6 = vcmask 588800   ;;  %v20629_v4 = vrot.slane %v9014_v52, %v14315_v11  ;;  %v24397_v46 = vld [vmem:[#allocation283_spill] sm:$0xff]  ;;  %vm24400_vm4 = vcmask 490496   ;;  %v24404_v32 = vld [vmem:[#allocation420_spill] sm:$0xff]  ;;  %v24407_v52 = vld [vmem:[#allocation290_spill] sm:$0xff]  ;;  %24409 = vst [vmem:[#allocation197_spill] sm:$0xff] %v20646_v0  ;;  %12673 = vrot.lane.b32.xlu0 %v9490_v56, %s23566_s26 }
 0x7a7   : > { %v13320_v9 = vsel %vm24396_vm6, %v13316_v34, %v24395_v27  ;;  %v24398_v1 = vld [vmem:[#allocation251_spill] sm:$0xff]  ;;  %vm24402_vm5 = vcmask 621568   ;;  %v20638_v54 = vrot.slane %v9046_v38, %v14315_v11  ;;  %v24403_v27 = vld [vmem:[#allocation254_spill] sm:$0xff]  ;;  %v24405_v34 = vld [vmem:[#allocation53_spill] sm:$0xff]  ;;  %vm24406_vm1 = vcmask 523264  }
 0x7a8   : > { %v8998_v19 = vcombine.high %v24398_v1, %v24397_v46  ;;  %v24399_v59 = vld [vmem:[#allocation487_spill] sm:$0xff]  ;;  %v13324_v60 = vsel %vm24402_vm5, %v13320_v9, %v24401_v37  ;;  %v9318_v62 = vcombine.high %v24404_v32, %v24403_v27  ;;  %vm24408_vm2 = vcmask 654336   ;;  %v24411_v1 = vld [vmem:[#allocation434_spill] sm:$0xff]  ;;  %v24414_v27 = vld [vmem:[#allocation113_spill] sm:$0xff] }
 0x7a9   : > { %v13310_v44 = vsel %vm24400_vm4, %v13306_v43, %v24399_v59  ;;  %v13328_v50 = vsel %vm24408_vm2, %v13324_v60, %v24407_v52  ;;  %v24410_v46 = vld [vmem:[#allocation463_spill] sm:$0xff]  ;;  %v9742_v37 = vcombine.high %v20483_v28, %v20462_v55  ;;  %vm24415_vm6 = vcmask 556032   ;;  %v24417_v60 = vld [vmem:[#allocation222_spill] sm:$0xff]  ;;  %v24418_v52 = vld [vmem:[#allocation389_spill] sm:$0xff] }
 0x7aa   : > { %v13314_v29 = vsel %vm24406_vm1, %v13310_v44, %v24405_v34  ;;  %v9350_v43 = vcombine.high %v24411_v1, %v24410_v46  ;;  %v24412_v9 = vld [vmem:[#allocation267_spill] sm:$0xff]  ;;  %v24416_v44 = vld [vmem:[#allocation404_spill] sm:$0xff]  ;;  %v9286_v0 = vcombine.high %v24418_v52, %v24417_v60  ;;  %vm24420_vm4 = vcmask 588800   ;;  %v24421_v1 = vld [vmem:[#allocation273_spill] sm:$0xff] }
 0x7ab   : > { %v24413_v59 = vld [vmem:[#allocation235_spill] sm:$0xff]  ;;  %v13318_v32 = vsel %vm24415_vm6, %v13314_v29, %v24414_v27  ;;  %v13332_v34 = vsel %vm13073_vm10, %v13328_v50, %v24416_v44  ;;  %vm24422_vm5 = vcmask 719872   ;;  %v9762_v55 = vcombine.high %v9717_v24, %v20551_v57  ;;  %v24423_v29 = vld [vmem:[#allocation357_spill] sm:$0xff]  ;;  %v20680_v44 = vpop.permute.xlu1 %12263  ;;  %v24430_v24 = vld [vmem:[#allocation532_spill] sm:$0xff] }
 0x7ac   : > { %v8982_v38 = vcombine.high %v24413_v59, %v24412_v9  ;;  %v13322_v46 = vsel %vm24420_vm4, %v13318_v32, %v24419_v17  ;;  %v13336_v56 = vsel %vm24422_vm5, %v13332_v34, %v24421_v1  ;;  %12487 = vrot.lane.b32.xlu1 %v9350_v43, %s23809_s12  ;;  %v12450_v9 = vpop.permute.xlu0 %12449  ;;  %v20668_v28 = vrot.slane %v8998_v19, %v14280_v31  ;;  %v24425_v27 = vld [vmem:[#allocation529_spill] sm:$0xff]  ;;  %vm24432_vm4 = vmmov %vm24422_vm5 }
 0x7ad   : > { %v9710_v50 = vcombine.high %v20492_v39, %v20480_v5  ;;  %vm24424_vm1 = vcmask 621568   ;;  %vm24426_vm2 = vcmask 752640   ;;  %v24427_v32 = vld [vmem:[#allocation209_spill] sm:$0xff]  ;;  %vm24428_vm6 = vcmask 654336   ;;  %24429 = vst [vmem:[#allocation151_spill] sm:$0xff] %v20680_v44  ;;  %12677 = vrot.lane.b32.xlu0 %v9762_v55, %s23566_s26 }
 0x7ae   : > { %v13326_v59 = vsel %vm24424_vm1, %v13322_v46, %v24423_v29  ;;  %v13340_v17 = vsel %vm24426_vm2, %v13336_v56, %v24425_v27  ;;  %v9079_v57 = vcombine.low %v20629_v4, %v20638_v54  ;;  %v20686_v5 = vrot.slane %v9318_v62, %v14315_v11  ;;  %v24431_v60 = vld [vmem:[#allocation257_spill] sm:$0xff]  ;;  %vm24433_vm5 = vmmov %vm24426_vm2 }
 0x7af   : > { %v13330_v1 = vsel %vm24428_vm6, %v13326_v59, %v24427_v32  ;;  %v13344_v43 = vsel %vm13088_vm15, %v13340_v17, %v20313_v8  ;;  %v20689_v39 = vrot.slane %v8982_v38, %v14280_v31  ;;  %v20696_v8 = vrot.slane %v9742_v37, %v14315_v11  ;;  %v24434_v29 = vld [vmem:[#allocation125_spill] sm:$0xff]  ;;  %v20720_v17 = vpop.permute.xlu1 %12275 }
 0x7b0   : > { %v13334_v19 = vsel %vm13073_vm10, %v13330_v1, %v24430_v24  ;;  %v13348_v46 = vsel %vm13093_vm14, %v13344_v43, %v20358_v20  ;;  %v20699_v34 = vrot.slane %v8966_v3, %v14280_v31  ;;  %12499 = vrot.lane.b32.xlu1 %v9079_v57, %s23829_s6  ;;  %v9300_v38 = vrot.slane %v9286_v0, %v14315_v11  ;;  %v12454_v56 = vpop.permute.xlu0 %12453  ;;  %v24435_v59 = vld [vmem:[#allocation93_spill] sm:$0xff]  ;;  %v24439_v57 = vld [vmem:[#allocation511_spill] sm:$0xff] }
 0x7b1   : > { %v13338_v52 = vsel %vm24432_vm4, %v13334_v19, %v24431_v60  ;;  %v13352_v62 = vsel %vm13098_vm7, %v13348_v46, %v20378_v49  ;;  %v9061_v20 = vcombine.low %v20689_v39, %v20668_v28  ;;  %v9724_v55 = vrot.slane %v9710_v50, %v14315_v11  ;;  %24436 = vst [vmem:[#allocation407_spill] sm:$0xff] %v20720_v17  ;;  %v24438_v1 = vld [vmem:[#allocation401_spill] sm:$0xff]  ;;  %v24441_v19 = vld [vmem:[#allocation340_spill] sm:$0xff]  ;;  %v24442_v46 = vld [vmem:[#allocation523_spill] sm:$0xff] }
 0x7b2   : > { %v13342_v37 = vsel %vm24433_vm5, %v13338_v52, %v20276_v6  ;;  %v13356_v3 = vsel %vm13103_vm8, %v13352_v62, %v20429_v41  ;;  %v9270_v27 = vcombine.high %v24435_v59, %v24434_v29  ;;  %v9351_v32 = vcombine.low %v9300_v38, %v20686_v5  ;;  %12689 = vrot.lane.b32.xlu0 %v9491_v30, %s23582_s13  ;;  %v24437_v6 = vld [vmem:[#allocation432_spill] sm:$0xff]  ;;  %v24440_v24 = vld [vmem:[#allocation481_spill] sm:$0xff]  ;;  %v24443_v62 = vld [vmem:[#allocation370_spill] sm:$0xff] }
 0x7b3   : > { %v13346_v49 = vsel %vm13088_vm15, %v13342_v37, %v20341_v21  ;;  %v13360_v0 = vsel %vm13108_vm9, %v13356_v3, %v20511_v15  ;;  %v10221_v41 = vcombine.low %v24438_v1, %v24437_v6  ;;  %v9763_v21 = vcombine.low %v9724_v55, %v20696_v8  ;;  %v24444_v37 = vld [vmem:[#allocation339_spill] sm:$0xff]  ;;  %v24475_v44 = vld [vmem:[#allocation457_spill] sm:$0xff] }
 0x7b4   : > { %v13350_v50 = vsel %vm13093_vm14, %v13346_v49, %v20368_v33  ;;  %v13364_v43 = vsel %vm13113_vm11, %v13360_v0, %v20588_v63  ;;  %v9238_v15 = vcombine.high %v24440_v24, %v24439_v57  ;;  %v9254_v60 = vcombine.high %v24442_v46, %v24441_v19  ;;  %12503 = vrot.lane.b32.xlu1 %v9351_v32, %s23829_s6  ;;  %v12466_v33 = vpop.permute.xlu0 %12465  ;;  %v24445_v49 = vld [vmem:[#allocation417_spill] sm:$0xff]  ;;  %v24446_v0 = vld [vmem:[#allocation386_spill] sm:$0xff]  ;;  %v20755_v24 = vpop.permute.xlu1 %12279  ;;  %s24726_s6 = sld [smem:[#allocation17_spill]] }
 0x7b5   : > { %v13354_v30 = vsel %vm13098_vm7, %v13350_v50, %v20398_v47  ;;  %v13368_v52 = vsel %vm13118_vm12, %v13364_v43, %v12450_v9  ;;  %v10189_v63 = vcombine.low %v24444_v37, %v24443_v62  ;;  %v9080_v29 = vcombine.high %v20629_v4, %v20638_v54  ;;  %v24447_v47 = vld [vmem:[#allocation496_spill] sm:$0xff]  ;;  %v24448_v50 = vld [vmem:[#allocation458_spill] sm:$0xff]  ;;  %24449 = vst [vmem:[#allocation174_spill] sm:$0xff] %v20755_v24  ;;  %v24450_v4 = vld [vmem:[#allocation355_spill] sm:$0xff] }
 0x7b6   : > { %v13358_v3 = vsel %vm13103_vm8, %v13354_v30, %v20468_v26  ;;  %v13372_v59 = vsel %vm13123_vm13, %v13368_v52, %v12466_v33  ;;  %v10205_v57 = vcombine.low %v24446_v0, %v24445_v49  ;;  %v9222_v9 = vcombine.high %v24448_v50, %v24447_v47  ;;  %12693 = vrot.lane.b32.xlu0 %v9763_v21, %s23582_s13  ;;  %v24451_v54 = vld [vmem:[#allocation316_spill] sm:$0xff] }
 0x7b7   : > { %v20751_v32 = vrot.slane %v9270_v27, %v14280_v31  ;;  %v13362_v43 = vsel %vm13108_vm9, %v13358_v3, %v20546_v12  ;;  %13502 = vst [vmem:[%s17403_s25 + $0x10] sm:$0xff] %v13372_v59  ;;  %v9029_v26 = vcombine.low %v20611_v35, %v20699_v34  ;;  %v10173_v19 = vcombine.low %v24451_v54, %v24450_v4 }
 0x7b8   : > { %v13366_v46 = vsel %vm13113_vm11, %v13362_v43, %v20626_v58  ;;  %v9492_v27 = vcombine.high %v20539_v7, %v20579_v53  ;;  %v20768_v12 = vrot.slane %v10221_v41, %v14280_v31  ;;  %v20771_v30 = vrot.slane %v9238_v15, %v14280_v31  ;;  %12515 = vrot.lane.b32.xlu1 %v9080_v29, %s23853_s1  ;;  %v12470_v33 = vpop.permute.xlu0 %12469  ;;  %v20793_v3 = vpop.permute.xlu1 %12291 }
 0x7b9   : > { %v20774_v21 = vrot.slane %v9254_v60, %v14280_v31  ;;  %v13370_v52 = vsel %vm13118_vm12, %v13366_v46, %v12454_v56  ;;  %v9965_v58 = vcombine.low %v20450_v51, %v20472_v42  ;;  %v20781_v7 = vrot.slane %v10189_v63, %v14280_v31  ;;  %24452 = vst [vmem:[#allocation256_spill] sm:$0xff] %v20793_v3 }
 0x7ba   : > { %v13374_v53 = vsel %vm13123_vm13, %v13370_v52, %v12470_v33  ;;  %v9069_v41 = vrot.slane %v9061_v20, %v14315_v11  ;;  %v20786_v15 = vrot.slane %v10205_v57, %v14280_v31  ;;  %v20789_v60 = vrot.slane %v9222_v9, %v14280_v31  ;;  %12705 = vrot.lane.b32.xlu0 %v9492_v27, %s23601_s17 }
 0x7bb   : > { %v9333_v56 = vcombine.low %v20774_v21, %v20751_v32  ;;  %v9352_v29 = vcombine.high %v9300_v38, %v20686_v5  ;;  %13510 = vst [vmem:[%s17403_s25 + $0x50] sm:$0xff] %v13374_v53  ;;  %v9037_v63 = vrot.slane %v9029_v26, %v14315_v11  ;;  %v24453_v20 = vcombine.low %v20554_v13, %v20557_v16 }
 0x7bc   : > { %v20804_v57 = vrot.slane %v10173_v19, %v14280_v31  ;;  %v10269_v47 = vcombine.low %v20786_v15, %v20768_v12  ;;  %v9301_v50 = vcombine.low %v20789_v60, %v20771_v30  ;;  %v20811_v5 = vpop.permute.xlu0 %12481  ;;  %v9764_v38 = vcombine.high %v9724_v55, %v20696_v8  ;;  %v20816_v43 = vpop.permute.xlu1 %12295 }
 0x7bd   : > { %v10005_v59 = vrot.slane %v24453_v20, %v14315_v11  ;;  %12519 = vrot.lane.b32.xlu1 %v9352_v29, %s23853_s1  ;;  %24454 = vst [vmem:[#allocation192_spill] sm:$0xff] %v20816_v43  ;;  %v9081_v26 = vcombine.low %v9037_v63, %v9069_v41  ;;  %v9341_v19 = vrot.slane %v9333_v56, %v14315_v11  ;;  %v24471_v43 = vld [vmem:[#allocation480_spill] sm:$0xff]  ;;  %vm24491_vm1 = vcmask 64512   ;;  %s24643_s1 = smov 116  }
 0x7be   : > { %v10237_v9 = vcombine.low %v20804_v57, %v20781_v7  ;;  %12709 = vrot.lane.b32.xlu0 %v9764_v38, %s23601_s17  ;;  %v9973_v46 = vrot.slane %v9965_v58, %v14315_v11  ;;  %v9309_v27 = vrot.slane %v9301_v50, %v14315_v11  ;;  %v10277_v8 = vrot.slane %v10269_v47, %v14315_v11  ;;  %vm24496_vm6 = vmmov %vm24491_vm1 }
 0x7bf   : > { %v9062_v20 = vcombine.high %v20689_v39, %v20668_v28  ;;  %v9082_v38 = vcombine.high %v9037_v63, %v9069_v41  ;;  %v9998_v47 = vcombine.high %v20554_v13, %v20557_v16  ;;  %v9334_v28 = vcombine.high %v20774_v21, %v20751_v32  ;;  %v24458_v21 = vld [vmem:[#allocation282_spill] sm:$0xff] }
 0x7c0   : > { %v20823_v52 = vpop.permute.xlu0 %12485  ;;  %v10029_v33 = vcombine.low %v9973_v46, %v10005_v59  ;;  %v20826_v55 = vpop.permute.xlu1 %12307  ;;  %v9353_v53 = vcombine.low %v9309_v27, %v9341_v19  ;;  %v10245_v29 = vrot.slane %v10237_v9, %v14315_v11  ;;  %v9354_v41 = vcombine.high %v9309_v27, %v9341_v19  ;;  %v24459_v63 = vld [vmem:[#allocation250_spill] sm:$0xff] }
 0x7c1   : > { %12531 = vrot.lane.b32.xlu1 %v9081_v26, %s23865_s23  ;;  %24455 = vst [vmem:[#allocation213_spill] sm:$0xff] %v20826_v55  ;;  %v9030_v26 = vcombine.high %v20611_v35, %v20699_v34  ;;  %v9076_v13 = vrot.slane %v9062_v20, %v14315_v11  ;;  %v20854_v16 = vrot.slane %v9998_v47, %v14315_v11  ;;  %vm24492_vm2 = vcmask 97280  }
 0x7c2   : > { %12721 = vrot.lane.b32.xlu0 %v10029_v33, %s23607_s27  ;;  %v10301_v58 = vcombine.low %v10245_v29, %v10277_v8  ;;  %v10030_v33 = vcombine.high %v9973_v46, %v10005_v59  ;;  %v10270_v35 = vcombine.high %v20786_v15, %v20768_v12  ;;  %v9302_v34 = vcombine.high %v20789_v60, %v20771_v30  ;;  %vm24498_vm5 = vmmov %vm24492_vm2 }
 0x7c3   : > { %v10302_v32 = vcombine.high %v10245_v29, %v10277_v8  ;;  %v9541_v59 = vcombine.low %v24459_v63, %v24458_v21  ;;  %v10238_v19 = vcombine.high %v20804_v57, %v20781_v7  ;;  %v20872_v12 = vrot.slane %v9334_v28, %v14315_v11  ;;  %v24461_v8 = vld [vmem:[#allocation218_spill] sm:$0xff] }
 0x7c4   : > { %v20831_v56 = vpop.permute.xlu0 %12497  ;;  %v20835_v50 = vpop.permute.xlu1 %12311  ;;  %v9918_v15 = vcombine.high %v24316_v2, %v24315_v45  ;;  %v9950_v60 = vcombine.high %v24342_v36, %v24341_v10  ;;  %v24462_v29 = vld [vmem:[#allocation186_spill] sm:$0xff]  ;;  %v9934_v45 = vcombine.high %v24340_v61, %v24339_v40  ;;  %v9902_v28 = vcombine.high %v24314_v22, %v24313_v23 }
 0x7c5   : > { %12535 = vrot.lane.b32.xlu1 %v9353_v53, %s23865_s23  ;;  %24456 = vst [vmem:[#allocation181_spill] sm:$0xff] %v20835_v50  ;;  %v9966_v53 = vcombine.high %v20450_v51, %v20472_v42  ;;  %v9044_v51 = vrot.slane %v9030_v26, %v14315_v11  ;;  %v24463_v7 = vld [vmem:[#allocation266_spill] sm:$0xff]  ;;  %v10252_v40 = vrot.slane %v10238_v19, %v14315_v11  ;;  %v24473_v19 = vld [vmem:[#allocation289_spill] sm:$0xff]  ;;  %vm24497_vm4 = vcmask 162816  }
 0x7c6   : > { %12725 = vrot.lane.b32.xlu0 %v10301_v58, %s23607_s27  ;;  %v9509_v58 = vcombine.low %v24462_v29, %v24461_v8  ;;  %v24464_v57 = vld [vmem:[#allocation234_spill] sm:$0xff]  ;;  %v20908_v61 = vrot.slane %v9918_v15, %v14280_v31  ;;  %v10222_v22 = vcombine.high %v24438_v1, %v24437_v6  ;;  %v10190_v1 = vcombine.high %v24444_v37, %v24443_v62 }
 0x7c7   : > { %v9083_v27 = vcombine.low %v9044_v51, %v9076_v13  ;;  %v9980_v30 = vrot.slane %v9966_v53, %v14315_v11  ;;  %v9525_v20 = vcombine.low %v24464_v57, %v24463_v7  ;;  %v24465_v2 = vld [vmem:[#allocation202_spill] sm:$0xff]  ;;  %v20896_v53 = vrot.slane %v9541_v59, %v14280_v31 }
 0x7c8   : > { %v20843_v9 = vpop.permute.xlu0 %12501  ;;  %v20849_v39 = vpop.permute.xlu1 %12323  ;;  %v24466_v10 = vld [vmem:[#allocation162_spill] sm:$0xff]  ;;  %v20911_v59 = vrot.slane %v9950_v60, %v14280_v31  ;;  %v9084_v17 = vcombine.high %v9044_v51, %v9076_v13 }
 0x7c9   : > { %12547 = vrot.lane.b32.xlu1 %v9082_v38, %s23870_s10  ;;  %24457 = vst [vmem:[#allocation224_spill] sm:$0xff] %v20849_v39  ;;  %v9316_v38 = vrot.slane %v9302_v34, %v14315_v11  ;;  %v10031_v26 = vcombine.low %v9980_v30, %v20854_v16  ;;  %v9493_v36 = vcombine.low %v24466_v10, %v24465_v2  ;;  %v24468_v34 = vld [vmem:[#allocation371_spill] sm:$0xff]  ;;  %v24470_v50 = vld [vmem:[#allocation510_spill] sm:$0xff] }
 0x7ca   : > { %12737 = vrot.lane.b32.xlu0 %v10030_v33, %s23612_s28  ;;  %v20889_v33 = vrot.slane %v10270_v35, %v14315_v11  ;;  %v20917_v23 = vrot.slane %v9525_v20, %v14280_v31  ;;  %v10206_v39 = vcombine.high %v24446_v0, %v24445_v49  ;;  %v10032_v49 = vcombine.high %v9980_v30, %v20854_v16 }
 0x7cb   : > { %v9355_v35 = vcombine.low %v9316_v38, %v20872_v12  ;;  %v20933_v20 = vrot.slane %v9493_v36, %v14280_v31  ;;  %v20950_v36 = vrot.slane %v9902_v28, %v14280_v31  ;;  %v10174_v0 = vcombine.high %v24451_v54, %v24450_v4 }
 0x7cc   : > { %v20862_v42 = vpop.permute.xlu0 %12513  ;;  %v20868_v46 = vpop.permute.xlu1 %12327  ;;  %v10303_v60 = vcombine.low %v10252_v40, %v20889_v33  ;;  %v9589_v6 = vcombine.low %v20917_v23, %v20896_v53  ;;  %v20974_v16 = vrot.slane %v10190_v1, %v14280_v31  ;;  %v20980_v54 = vrot.slane %v10206_v39, %v14280_v31  ;;  %v24479_v1 = vld [vmem:[#allocation46_spill] sm:$0xff] }
 0x7cd   : > { %12551 = vrot.lane.b32.xlu1 %v9354_v41, %s23870_s10  ;;  %24460 = vst [vmem:[#allocation467_spill] sm:$0xff] %v20868_v46  ;;  %v24467_v41 = vld [vmem:[#allocation79_spill] sm:$0xff]  ;;  %v20914_v46 = vrot.slane %v9509_v58, %v14280_v31  ;;  %v20930_v58 = vrot.slane %v9934_v45, %v14280_v31 }
 0x7ce   : > { %12741 = vrot.lane.b32.xlu0 %v10302_v32, %s23612_s28  ;;  %v9813_v32 = vcombine.low %v24468_v34, %v24467_v41  ;;  %v20977_v4 = vrot.slane %v9589_v6, %v14315_v11 }
 0x7cf   : > { %v10013_v62 = vcombine.low %v20930_v58, %v20911_v59  ;;  %v9557_v37 = vcombine.low %v20933_v20, %v20914_v46 }
 0x7d0   : > { %v20885_v47 = vpop.permute.xlu0 %12517  ;;  %v20944_v3 = vrot.slane %v9813_v32, %v14280_v31  ;;  %v20960_v32 = vrot.slane %v10222_v22, %v14280_v31  ;;  %v9356_v22 = vcombine.high %v9316_v38, %v20872_v12  ;;  %v10304_v38 = vcombine.high %v10252_v40, %v20889_v33 }
 0x7d1   : > { %12563 = vrot.lane.b32.xlu1 %v9083_v27, %s23883_s2  ;;  %v20902_v27 = vpop.permute.xlu1 %12339  ;;  %v9565_v6 = vrot.slane %v9557_v37, %v14315_v11  ;;  %v20995_v39 = vrot.slane %v10013_v62, %v14315_v11  ;;  %v24482_v37 = vld [vmem:[#allocation31_spill] sm:$0xff]  ;;  %v24483_v62 = vld [vmem:[#allocation136_spill] sm:$0xff] }
 0x7d2   : > { %24469 = vst [vmem:[#allocation345_spill] sm:$0xff] %v20902_v27  ;;  %12753 = vrot.lane.b32.xlu0 %v10031_v26, %s23632_s29  ;;  %v9781_v26 = vcombine.low %v24471_v43, %v24470_v50  ;;  %v24472_v27 = vld [vmem:[#allocation223_spill] sm:$0xff]  ;;  %v10285_v14 = vcombine.low %v20980_v54, %v20960_v32  ;;  %v10493_v48 = vcombine.low %v24484_v25, %v24483_v62 }
 0x7d3   : > { %v9797_v24 = vcombine.low %v24473_v19, %v24472_v27  ;;  %v24486_v19 = vld [vmem:[#allocation121_spill] sm:$0xff]  ;;  %v24487_v27 = vld [vmem:[#allocation91_spill] sm:$0xff] }
 0x7d4   : > { %v20926_v15 = vpop.permute.xlu0 %12529  ;;  %v20963_v13 = vrot.slane %v9781_v26, %v14280_v31  ;;  %v24478_v26 = vld [vmem:[#allocation76_spill] sm:$0xff]  ;;  %v10477_v43 = vcombine.low %v24487_v27, %v24486_v19 }
 0x7d5   : > { %12567 = vrot.lane.b32.xlu1 %v9355_v35, %s23883_s2  ;;  %v24474_v35 = vld [vmem:[#allocation495_spill] sm:$0xff]  ;;  %v20946_v45 = vpop.permute.xlu1 %12343  ;;  %v20966_v51 = vrot.slane %v9797_v24, %v14280_v31 }
 0x7d6   : > { %v9765_v55 = vcombine.low %v24475_v44, %v24474_v35  ;;  %24476 = vst [vmem:[#allocation436_spill] sm:$0xff] %v20946_v45  ;;  %12757 = vrot.lane.b32.xlu0 %v10303_v60, %s23632_s29  ;;  %v9981_v60 = vcombine.low %v20950_v36, %v20908_v61  ;;  %v10461_v45 = vcombine.low %v24479_v1, %v24478_v26 }
 0x7d7   : > { %v9621_v35 = vcombine.low %v9565_v6, %v20977_v4 }
 0x7d8   : > { %v20969_v28 = vpop.permute.xlu0 %12533  ;;  %v20983_v30 = vrot.slane %v9765_v55, %v14280_v31  ;;  %v20998_v55 = vrot.slane %v10174_v0, %v14280_v31  ;;  %v9989_v33 = vrot.slane %v9981_v60, %v14315_v11  ;;  %v10469_v40 = vrot.slane %v10461_v45, %v14280_v31 }
 0x7d9   : > { %12579 = vrot.lane.b32.xlu1 %v9084_v17, %s23492_s14  ;;  %v9861_v17 = vcombine.low %v20966_v51, %v20944_v3  ;;  %v20987_v24 = vpop.permute.xlu1 %12355  ;;  %v21037_v45 = vrot.slane %v10493_v48, %v14280_v31  ;;  %v9982_v48 = vcombine.high %v20950_v36, %v20908_v61  ;;  %v9590_v61 = vcombine.high %v20917_v23, %v20896_v53 }
 0x7da   : > { %24477 = vst [vmem:[#allocation299_spill] sm:$0xff] %v20987_v24  ;;  %12769 = vrot.lane.b32.xlu0 %v10032_v49, %s23794_s15  ;;  %v9829_v24 = vcombine.low %v20983_v30, %v20963_v13  ;;  %v24481_v49 = vld [vmem:[#allocation61_spill] sm:$0xff]  ;;  %v10253_v0 = vcombine.low %v20998_v55, %v20974_v16  ;;  %v9558_v36 = vcombine.high %v20933_v20, %v20914_v46 }
 0x7db   : > { %v10445_v18 = vcombine.low %v24482_v37, %v24481_v49  ;;  %v21081_v53 = vrot.slane %v9982_v48, %v14315_v11  ;;  %v10034_v20 = vcombine.high %v9989_v33, %v20995_v39  ;;  %v9830_v48 = vcombine.high %v20983_v30, %v20963_v13  ;;  %v24494_v30 = vld [vmem:[#allocation176_spill] sm:$0xff] }
 0x7dc   : > { %v21005_v12 = vpop.permute.xlu0 %12545  ;;  %v9837_v50 = vrot.slane %v9829_v24, %v14315_v11  ;;  %v10014_v24 = vcombine.high %v20930_v58, %v20911_v59  ;;  %v10494_v59 = vcombine.high %v24484_v25, %v24483_v62  ;;  %v9622_v25 = vcombine.high %v9565_v6, %v20977_v4 }
 0x7dd   : > { %12583 = vrot.lane.b32.xlu1 %v9356_v22, %s23492_s14  ;;  %24480 = vst [vmem:[#allocation21_spill] sm:$0xff] %v21005_v12  ;;  %v21014_v44 = vpop.permute.xlu1 %12359  ;;  %v21019_v22 = vrot.slane %v9861_v17, %v14315_v11  ;;  %v10446_v17 = vcombine.high %v24482_v37, %v24481_v49  ;;  %v10453_v60 = vrot.slane %v10445_v18, %v14280_v31 }
 0x7de   : > { %24485 = vst [vmem:[#allocation63_spill] sm:$0xff] %v21014_v44  ;;  %12773 = vrot.lane.b32.xlu0 %v10304_v38, %s23794_s15  ;;  %v10033_v44 = vcombine.low %v9989_v33, %v20995_v39  ;;  %v21031_v38 = vrot.slane %v10285_v14, %v14315_v11  ;;  %v10261_v14 = vrot.slane %v10253_v0, %v14315_v11 }
 0x7df   : > { %v9893_v41 = vcombine.low %v9837_v50, %v21019_v22  ;;  %v10509_v49 = vcombine.low %v10453_v60, %v10469_v40  ;;  %v10510_v37 = vcombine.high %v10453_v60, %v10469_v40  ;;  %v21051_v18 = vrot.slane %v10477_v43, %v14280_v31 }
 0x7e0   : > { %v21027_v12 = vpop.permute.xlu0 %12549  ;;  %v21066_v43 = vrot.slane %v10446_v17, %v14280_v31  ;;  %v21093_v4 = vrot.slane %v10494_v59, %v14280_v31  ;;  %v9510_v40 = vcombine.high %v24462_v29, %v24461_v8  ;;  %v9542_v17 = vcombine.high %v24459_v63, %v24458_v21 }
 0x7e1   : > { %12595 = vrot.lane.b32.xlu1 %v9621_v35, %s23496_s16  ;;  %v10462_v35 = vcombine.high %v24479_v1, %v24478_v26  ;;  %v21043_v34 = vpop.permute.xlu1 %12371  ;;  %v10478_v26 = vcombine.high %v24487_v27, %v24486_v19  ;;  %v10541_v1 = vcombine.low %v21051_v18, %v21037_v45  ;;  %v21084_v23 = vrot.slane %v10509_v49, %v14315_v11 }
 0x7e2   : > { %12785 = vrot.lane.b32.xlu0 %v10033_v44, %s23802_s7  ;;  %v10305_v44 = vcombine.low %v10261_v14, %v21031_v38  ;;  %v21087_v62 = vrot.slane %v10510_v37, %v14315_v11  ;;  %v21104_v60 = vrot.slane %v9590_v61, %v14315_v11  ;;  %v9894_v37 = vcombine.high %v9837_v50, %v21019_v22 }
 0x7e3   : > { %v21069_v27 = vrot.slane %v10462_v35, %v14280_v31  ;;  %v21090_v0 = vrot.slane %v10478_v26, %v14280_v31  ;;  %v21107_v35 = vrot.slane %v10541_v1, %v14315_v11  ;;  %v9494_v63 = vcombine.high %v24466_v10, %v24465_v2 }
 0x7e4   : > { %v21058_v58 = vpop.permute.xlu0 %12561  ;;  %v9526_v29 = vcombine.high %v24464_v57, %v24463_v7  ;;  %v21129_v22 = vrot.slane %v9558_v36, %v14315_v11  ;;  %v10286_v33 = vcombine.high %v20980_v54, %v20960_v32  ;;  %v10306_v57 = vcombine.high %v10261_v14, %v21031_v38  ;;  %v24493_v54 = vld [vmem:[#allocation178_spill] sm:$0xff] }
 0x7e5   : > { %12599 = vrot.lane.b32.xlu1 %v9893_v41, %s23496_s16  ;;  %v21071_v19 = vpop.permute.xlu1 %12375  ;;  %v21076_v41 = vrot.slane %v10014_v24, %v14315_v11  ;;  %v9862_v24 = vcombine.high %v20966_v51, %v20944_v3  ;;  %v24488_v3 = vld [vmem:[#allocation473_spill] sm:$0xff]  ;;  %v24489_v51 = vld [vmem:[#allocation472_spill] sm:$0xff]  ;;  %v21140_v10 = vrot.slane %v9510_v40, %v14280_v31  ;;  %v24495_v26 = vcombine.low %v24493_v54, %v24494_v30  ;;  %v24502_v40 = vld [vmem:[#allocation371_spill] sm:$0xff] }
 0x7e6   : > { %12789 = vrot.lane.b32.xlu0 %v10305_v44, %s23802_s7  ;;  %v24490_v39 = vcombine.low %v24488_v3, %v24489_v51  ;;  %v9623_v13 = vcombine.low %v21129_v22, %v21104_v60  ;;  %v21165_v44 = vrot.slane %v9494_v63, %v14280_v31  ;;  %v9844_v61 = vrot.slane %v9830_v48, %v14315_v11  ;;  %v24505_v51 = vld [vmem:[#allocation369_spill] sm:$0xff]  ;;  %v24512_v54 = vld [vmem:[#allocation510_spill] sm:$0xff]  ;;  %v24513_v30 = vld [vmem:[#allocation480_spill] sm:$0xff] }
 0x7e7   : > { %v10035_v8 = vcombine.low %v21081_v53, %v21076_v41  ;;  %v10036_v21 = vcombine.high %v21081_v53, %v21076_v41  ;;  %v13376_v38 = vsel %vm12973_vm0, %v24495_v26, %v20811_v5  ;;  %v21180_v36 = vrot.slane %v10286_v33, %v14315_v11  ;;  %v24508_v33 = vld [vmem:[#allocation385_spill] sm:$0xff]  ;;  %v24546_v41 = vld [vmem:[#allocation291_spill] sm:$0xff] }
 0x7e8   : > { %v12566_v46 = vpop.permute.xlu0 %12565  ;;  %v13378_v50 = vsel %vm12973_vm0, %v24490_v39, %v20823_v52  ;;  %v21143_v52 = vrot.slane %v9542_v17, %v14280_v31  ;;  %v24506_v39 = vld [vmem:[#allocation338_spill] sm:$0xff]  ;;  %v9782_v26 = vcombine.high %v24513_v30, %v24512_v54 }
 0x7e9   : > { %12611 = vrot.lane.b32.xlu1 %v9622_v25, %s23506_s20  ;;  %v21111_v49 = vpop.permute.xlu1 %12387  ;;  %v13382_v2 = vsel %vm24491_vm1, %v13378_v50, %v20843_v9  ;;  %v10254_v9 = vcombine.high %v20998_v55, %v20974_v16  ;;  %v21168_v16 = vrot.slane %v9526_v29, %v14280_v31  ;;  %v13380_v55 = vsel %vm24496_vm6, %v13376_v38, %v20831_v56  ;;  %vm24504_vm6 = vmmov %vm24497_vm4  ;;  %v24514_v38 = vld [vmem:[#allocation223_spill] sm:$0xff] }
 0x7ea   : > { %12801 = vrot.lane.b32.xlu0 %v10034_v20, %s23820_s19  ;;  %v13386_v32 = vsel %vm24492_vm2, %v13382_v2, %v20885_v47  ;;  %v21162_v47 = vrot.slane %v9862_v24, %v14315_v11  ;;  %vm24499_vm1 = vcmask 195584   ;;  %v9573_v20 = vcombine.low %v21165_v44, %v21140_v10  ;;  %v24503_v24 = vld [vmem:[#allocation21_spill] sm:$0xff]  ;;  %v24509_v2 = vld [vmem:[#allocation431_spill] sm:$0xff] }
 0x7eb   : > { %v13390_v14 = vsel %vm12988_vm3, %v13386_v32, %v20969_v28  ;;  %v13384_v28 = vsel %vm24498_vm5, %v13380_v55, %v20862_v42  ;;  %v9605_v56 = vcombine.low %v21168_v16, %v21143_v52  ;;  %vm24500_vm2 = vcmask 228352  }
 0x7ec   : > { %v12578_v7 = vpop.permute.xlu0 %12577  ;;  %v13394_v5 = vsel %vm24497_vm4, %v13390_v14, %v21027_v12  ;;  %v13388_v12 = vsel %vm12988_vm3, %v13384_v28, %v20926_v15  ;;  %v9895_v29 = vcombine.low %v9844_v61, %v21162_v47  ;;  %v10268_v3 = vrot.slane %v10254_v9, %v14315_v11  ;;  %v24507_v15 = vld [vmem:[#allocation416_spill] sm:$0xff]  ;;  %vm24511_vm4 = vmmov %vm24499_vm1  ;;  %v24515_v14 = vld [vmem:[#allocation289_spill] sm:$0xff] }
 0x7ed   : > { %12615 = vrot.lane.b32.xlu1 %v9894_v37, %s23506_s20  ;;  %v21158_v59 = vpop.permute.xlu1 %12391  ;;  %v13398_v1 = vsel %vm24499_vm1, %v13394_v5, %v12566_v46  ;;  %v24501_v46 = vld [vmem:[#allocation79_spill] sm:$0xff]  ;;  %v13392_v37 = vsel %vm24504_vm6, %v13388_v12, %v24503_v24  ;;  %v10733_v50 = vcombine.low %v24506_v39, %v24505_v51  ;;  %v10749_v48 = vcombine.low %v24508_v33, %v24507_v15  ;;  %vm24516_vm5 = vmmov %vm24500_vm2  ;;  %v24519_v12 = vld [vmem:[#allocation194_spill] sm:$0xff] }
 0x7ee   : > { %12805 = vrot.lane.b32.xlu0 %v10306_v57, %s23820_s19  ;;  %v9814_v17 = vcombine.high %v24502_v40, %v24501_v46  ;;  %v24510_v57 = vld [vmem:[#allocation400_spill] sm:$0xff]  ;;  %v10307_v5 = vcombine.low %v10268_v3, %v21180_v36  ;;  %v24517_v28 = vld [vmem:[#allocation495_spill] sm:$0xff]  ;;  %v24520_v46 = vld [vmem:[#allocation318_spill] sm:$0xff]  ;;  %vm24523_vm1 = vcmask 261120   ;;  %v21222_v54 = vrot.slane %v9573_v20, %v14315_v11 }
 0x7ef   : > { %v10765_v32 = vcombine.low %v24510_v57, %v24509_v2  ;;  %v24521_v40 = vld [vmem:[#allocation315_spill] sm:$0xff]  ;;  %vm24529_vm6 = vcmask 97280  }
 0x7f0   : > { %v12582_v25 = vpop.permute.xlu0 %12581 }
 0x7f1   : > { %12627 = vrot.lane.b32.xlu1 %v9623_v13, %s23515_s21  ;;  %v13402_v42 = vsel %vm24500_vm2, %v13398_v1, %v12582_v25  ;;  %v21193_v63 = vpop.permute.xlu1 %12403  ;;  %v13396_v13 = vsel %vm24511_vm4, %v13392_v37, %v21058_v58  ;;  %v24518_v1 = vld [vmem:[#allocation457_spill] sm:$0xff]  ;;  %v24522_v58 = vcombine.low %v24520_v46, %v24521_v40  ;;  %vm24525_vm2 = vcmask 64512   ;;  %v24531_v40 = vld [vmem:[#allocation147_spill] sm:$0xff] }
 0x7f2   : > { %12817 = vrot.lane.b32.xlu0 %v10035_v8, %s23846_s9  ;;  %v9798_v8 = vcombine.high %v24515_v14, %v24514_v38  ;;  %v13400_v9 = vsel %vm24516_vm5, %v13396_v13, %v12578_v7  ;;  %v9766_v25 = vcombine.high %v24518_v1, %v24517_v28  ;;  %v21225_v7 = vrot.slane %v9814_v17, %v14280_v31  ;;  %v24528_v1 = vld [vmem:[#allocation470_spill] sm:$0xff]  ;;  %vm24537_vm5 = vmmov %vm24523_vm1 }
 0x7f3   : > { %v13253_v24 = vsel %vm12973_vm0, %v24522_v58, %v24519_v12  ;;  %v9624_v38 = vcombine.high %v21129_v22, %v21104_v60  ;;  %v21235_v14 = vrot.slane %v9605_v56, %v14315_v11  ;;  %v21240_v28 = vrot.slane %v10733_v50, %v14280_v31  ;;  %v24530_v56 = vld [vmem:[#allocation439_spill] sm:$0xff]  ;;  %v24532_v58 = vld [vmem:[#allocation206_spill] sm:$0xff] }
 0x7f4   : > { %v12594_v55 = vpop.permute.xlu0 %12593  ;;  %v21243_v17 = vrot.slane %v10765_v32, %v14280_v31  ;;  %v21248_v46 = vrot.slane %v10749_v48, %v14280_v31  ;;  %v21251_v60 = vrot.slane %v9782_v26, %v14280_v31  ;;  %v21254_v22 = vrot.slane %v9798_v8, %v14280_v31  ;;  %v24535_v26 = vld [vmem:[#allocation23_spill] sm:$0xff] }
 0x7f5   : > { %12631 = vrot.lane.b32.xlu1 %v9895_v29, %s23515_s21  ;;  %v13404_v37 = vsel %vm24523_vm1, %v13400_v9, %v12594_v55  ;;  %v24524_v29 = vld [vmem:[#allocation24_spill] sm:$0xff]  ;;  %v21229_v30 = vpop.permute.xlu1 %12407  ;;  %v24526_v9 = vld [vmem:[#allocation354_spill] sm:$0xff]  ;;  %v21260_v32 = vrot.slane %v9766_v25, %v14280_v31  ;;  %vm24536_vm4 = vcmask 162816   ;;  %vm24539_vm1 = vmmov %vm24525_vm2 }
 0x7f6   : > { %v13257_v13 = vsel %vm24525_vm2, %v13253_v24, %v24524_v29  ;;  %12821 = vrot.lane.b32.xlu0 %v10307_v5, %s23846_s9  ;;  %v24527_v55 = vld [vmem:[#allocation314_spill] sm:$0xff]  ;;  %vm24541_vm2 = vcmask 195584  }
 0x7f7   : > { %v10717_v20 = vcombine.low %v24527_v55, %v24526_v9  ;;  %v13261_v12 = vsel %vm24529_vm6, %v13257_v13, %v24528_v1  ;;  %v24533_v24 = vld [vmem:[#allocation270_spill] sm:$0xff]  ;;  %v9877_v1 = vcombine.low %v21254_v22, %v21225_v7 }
 0x7f8   : > { %v13265_v5 = vsel %vm12988_vm3, %v13261_v12, %v24530_v56  ;;  %v12598_v50 = vpop.permute.xlu0 %12597  ;;  %v24534_v48 = vcombine.low %v24532_v58, %v24533_v24  ;;  %v24538_v12 = vld [vmem:[#allocation108_spill] sm:$0xff]  ;;  %v24540_v56 = vld [vmem:[#allocation83_spill] sm:$0xff]  ;;  %v9896_v58 = vcombine.high %v9844_v61, %v21162_v47  ;;  %v24543_v24 = vld [vmem:[#allocation330_spill] sm:$0xff]  ;;  %v9845_v47 = vcombine.low %v21260_v32, %v21251_v60 }
 0x7f9   : > { %12643 = vrot.lane.b32.xlu1 %v9624_v38, %s24328_s30  ;;  %v13269_v13 = vsel %vm24536_vm4, %v13265_v5, %v24535_v26  ;;  %v13406_v8 = vsel %vm24537_vm5, %v13402_v42, %v12598_v50  ;;  %v21276_v6 = vpop.permute.xlu1 %12419  ;;  %v21284_v42 = vrot.slane %v10717_v20, %v14280_v31  ;;  %v10813_v5 = vcombine.low %v21248_v46, %v21243_v17  ;;  %v24542_v50 = vld [vmem:[#allocation519_spill] sm:$0xff]  ;;  %v24545_v61 = vld [vmem:[#allocation98_spill] sm:$0xff] }
 0x7fa   : > { %v13255_v29 = vsel %vm12973_vm0, %v24534_v48, %v24531_v40  ;;  %v13273_v25 = vsel %vm24541_vm2, %v13269_v13, %v24540_v56  ;;  %12833 = vrot.lane.b32.xlu0 %v10036_v21, %s23862_s18  ;;  %vm24544_vm4 = vcmask 228352   ;;  %v10308_v20 = vcombine.high %v10268_v3, %v21180_v36  ;;  %v24547_v26 = vld [vmem:[#allocation38_spill] sm:$0xff] }
 0x7fb   : > { %v13259_v38 = vsel %vm24539_vm1, %v13255_v29, %v24538_v12  ;;  %v13277_v48 = vsel %vm24544_vm4, %v13273_v25, %v24543_v24  ;;  %vm24548_vm1 = vcmask 162816   ;;  %v24549_v12 = vld [vmem:[#allocation193_spill] sm:$0xff]  ;;  %vm24550_vm2 = vcmask 293888  }
 0x7fc   : > { %v13263_v40 = vsel %vm24529_vm6, %v13259_v38, %v24542_v50  ;;  %v13281_v53 = vsel %vm24537_vm5, %v13277_v48, %v24546_v41  ;;  %v12610_v21 = vpop.permute.xlu0 %12609  ;;  %v9625_v56 = vcombine.low %v21222_v54, %v21235_v14  ;;  %vm24551_vm6 = vmmov %vm24550_vm2  ;;  %v10781_v50 = vcombine.low %v21284_v42, %v21240_v28  ;;  %v24554_v24 = vld [vmem:[#allocation501_spill] sm:$0xff] }
 0x7fd   : > { %v13267_v29 = vsel %vm12988_vm3, %v13263_v40, %v24545_v61  ;;  %12647 = vrot.lane.b32.xlu1 %v9896_v58, %s24328_s30  ;;  %v13285_v38 = vsel %vm24550_vm2, %v13281_v53, %v24549_v12  ;;  %v13408_v25 = vsel %vm24551_vm6, %v13404_v37, %v12610_v21  ;;  %v24552_v40 = vld [vmem:[#allocation392_spill] sm:$0xff]  ;;  %vm24553_vm4 = vcmask 195584   ;;  %v21313_v3 = vpop.permute.xlu1 %12423  ;;  %v24556_v61 = vld [vmem:[#allocation377_spill] sm:$0xff] }
 0x7fe   : > { %v13271_v13 = vsel %vm24548_vm1, %v13267_v29, %v24547_v26  ;;  %vm24555_vm5 = vcmask 326656   ;;  %12837 = vrot.lane.b32.xlu0 %v10308_v20, %s23862_s18  ;;  %v21317_v48 = vrot.slane %v9877_v1, %v14315_v11  ;;  %vm24557_vm1 = vcmask 228352   ;;  %v24558_v37 = vld [vmem:[#allocation145_spill] sm:$0xff]  ;;  %v24563_v1 = vld [vmem:[#allocation78_spill] sm:$0xff] }
 0x7ff   : > { %v13275_v58 = vsel %vm24553_vm4, %v13271_v13, %v24552_v40  ;;  %v13289_v36 = vsel %vm24555_vm5, %v13285_v38, %v24554_v24  ;;  %vm24559_vm2 = vcmask 359424   ;;  %v10573_v53 = vcombine.low %v21084_v23, %v21107_v35  ;;  %v24561_v13 = vld [vmem:[#allocation342_spill] sm:$0xff]  ;;  %v24565_v24 = vld [vmem:[#allocation533_spill] sm:$0xff] }
 0x800   : > { %v13279_v29 = vsel %vm24557_vm1, %v13275_v58, %v24556_v61  ;;  %v13293_v41 = vsel %vm24559_vm2, %v13289_v36, %v24558_v37  ;;  %v24560_v21 = vcombine.high %v21051_v18, %v21037_v45  ;;  %vm24562_vm6 = vcmask 261120   ;;  %v12614_v40 = vpop.permute.xlu0 %12613  ;;  %v24567_v45 = vld [vmem:[#allocation142_spill] sm:$0xff] }
 0x801   : > { %v13283_v20 = vsel %vm24562_vm6, %v13279_v29, %v24561_v13  ;;  %vm24564_vm4 = vcmask 392192   ;;  %12659 = vrot.lane.b32.xlu1 %v9625_v56, %s23542_s24  ;;  %v9853_v38 = vrot.slane %v9845_v47, %v14315_v11  ;;  %v21338_v58 = vrot.slane %v10813_v5, %v14315_v11  ;;  %v24570_v37 = vld [vmem:[#allocation486_spill] sm:$0xff] }
 0x802   : > { %v21329_v26 = vrot.slane %v24560_v21, %v14315_v11  ;;  %v13297_v12 = vsel %vm24564_vm4, %v13293_v41, %v24563_v1  ;;  %vm24566_vm5 = vcmask 293888   ;;  %vm24568_vm1 = vcmask 424960   ;;  %v24572_v41 = vld [vmem:[#allocation440_spill] sm:$0xff]  ;;  %v21351_v21 = vpop.permute.xlu1 %12435  ;;  %12849 = vrot.lane.b32.xlu0 %v10573_v53, %s24139_s22  ;;  %v24575_v1 = vld [vmem:[#allocation166_spill] sm:$0xff] }
 0x803   : > { %v13287_v36 = vsel %vm24566_vm5, %v13283_v20, %v24565_v24  ;;  %v13301_v18 = vsel %vm24568_vm1, %v13297_v12, %v24567_v45  ;;  %vm24569_vm2 = vmmov %vm24566_vm5  ;;  %v10574_v29 = vcombine.high %v21084_v23, %v21107_v35  ;;  %vm24571_vm6 = vcmask 326656   ;;  %v24574_v20 = vld [vmem:[#allocation205_spill] sm:$0xff]  ;;  %v24578_v35 = vld [vmem:[#allocation442_spill] sm:$0xff] }
 0x804   : > { %v13410_v61 = vsel %vm24569_vm2, %v13406_v8, %v12614_v40  ;;  %v13291_v56 = vsel %vm24571_vm6, %v13287_v36, %v24570_v37  ;;  %vm24573_vm4 = vcmask 457728   ;;  %v9897_v5 = vcombine.low %v9853_v38, %v21317_v48  ;;  %v24576_v12 = vld [vmem:[#allocation221_spill] sm:$0xff]  ;;  %v24580_v36 = vld [vmem:[#allocation127_spill] sm:$0xff]  ;;  %v24582_v37 = vld [vmem:[#allocation52_spill] sm:$0xff] }
 0x805   : > { %v13305_v47 = vsel %vm24573_vm4, %v13301_v18, %v24572_v41  ;;  %v10789_v13 = vrot.slane %v10781_v50, %v14315_v11  ;;  %v10037_v8 = vcombine.low %v24575_v1, %v24574_v20  ;;  %v24577_v40 = vld [vmem:[#allocation189_spill] sm:$0xff]  ;;  %vm24579_vm5 = vcmask 359424   ;;  %v24584_v41 = vld [vmem:[#allocation67_spill] sm:$0xff]  ;;  %v12626_v1 = vpop.permute.xlu0 %12625 }
 0x806   : > { %v10053_v23 = vcombine.low %v24577_v40, %v24576_v12  ;;  %v13295_v24 = vsel %vm24579_vm5, %v13291_v56, %v24578_v35  ;;  %vm24581_vm1 = vcmask 490496   ;;  %v9574_v18 = vcombine.high %v21165_v44, %v21140_v10  ;;  %12663 = vrot.lane.b32.xlu1 %v9897_v5, %s23542_s24  ;;  %v24586_v35 = vld [vmem:[#allocation112_spill] sm:$0xff] }
 0x807   : > { %v13309_v45 = vsel %vm24581_vm1, %v13305_v47, %v24580_v36  ;;  %vm24583_vm2 = vcmask 392192   ;;  %vm24585_vm6 = vcmask 523264   ;;  %v10845_v20 = vcombine.low %v10789_v13, %v21338_v58  ;;  %v24588_v36 = vld [vmem:[#allocation422_spill] sm:$0xff] }
 0x808   : > { %v13299_v53 = vsel %vm24583_vm2, %v13295_v24, %v24582_v37  ;;  %v13313_v50 = vsel %vm24585_vm6, %v13309_v45, %v24584_v41  ;;  %v9606_v56 = vcombine.high %v21168_v16, %v21143_v52  ;;  %vm24587_vm4 = vcmask 424960   ;;  %v24591_v24 = vld [vmem:[#allocation272_spill] sm:$0xff]  ;;  %v24593_v45 = vld [vmem:[#allocation197_spill] sm:$0xff]  ;;  %v21383_v41 = vpop.permute.xlu1 %12439 }
 0x809   : > { %v13303_v47 = vsel %vm24587_vm4, %v13299_v53, %v24586_v35  ;;  %vm24589_vm5 = vcmask 556032   ;;  %vm24590_vm1 = vcmask 326656   ;;  %vm24592_vm2 = vcmask 457728   ;;  %12853 = vrot.lane.b32.xlu0 %v10845_v20, %s24139_s22 }
 0x80a   : > { %v13317_v10 = vsel %vm24589_vm5, %v13313_v50, %v24588_v36  ;;  %v13412_v44 = vsel %vm24590_vm1, %v13408_v25, %v12626_v1  ;;  %v13307_v37 = vsel %vm24592_vm2, %v13303_v47, %v24591_v24  ;;  %vm24594_vm6 = vcmask 588800   ;;  %v24595_v1 = vld [vmem:[#allocation329_spill] sm:$0xff]  ;;  %v24597_v50 = vld [vmem:[#allocation407_spill] sm:$0xff] }
 0x80b   : > { %v13321_v5 = vsel %vm24594_vm6, %v13317_v10, %v24593_v45  ;;  %v9626_v40 = vcombine.high %v21222_v54, %v21235_v14  ;;  %v10575_v52 = vcombine.low %v21087_v62, %v21329_v26  ;;  %v21391_v16 = vrot.slane %v10037_v8, %v14280_v31  ;;  %v24599_v47 = vld [vmem:[#allocation269_spill] sm:$0xff]  ;;  %v24601_v14 = vld [vmem:[#allocation208_spill] sm:$0xff]  ;;  %v12630_v8 = vpop.permute.xlu0 %12629 }
 0x80c   : > { %v21394_v25 = vrot.slane %v10053_v23, %v14280_v31  ;;  %vm24596_vm4 = vcmask 490496   ;;  %vm24598_vm5 = vcmask 621568   ;;  %v24600_v36 = vld [vmem:[#allocation237_spill] sm:$0xff]  ;;  %vm24602_vm1 = vcmask 523264   ;;  %v24603_v10 = vld [vmem:[#allocation256_spill] sm:$0xff] }
 0x80d   : > { %v13311_v53 = vsel %vm24596_vm4, %v13307_v37, %v24595_v1  ;;  %v13325_v35 = vsel %vm24598_vm5, %v13321_v5, %v24597_v50  ;;  %v10069_v54 = vcombine.low %v24600_v36, %v24599_v47  ;;  %vm24604_vm2 = vcmask 654336   ;;  %12675 = vrot.lane.b32.xlu1 %v9626_v40, %s23566_s26  ;;  %v24605_v45 = vld [vmem:[#allocation360_spill] sm:$0xff]  ;;  %v24607_v1 = vld [vmem:[#allocation213_spill] sm:$0xff]  ;;  %12865 = vrot.lane.b32.xlu0 %v10574_v29, %s23741_s11 }
 0x80e   : > { %v13315_v20 = vsel %vm24602_vm1, %v13311_v53, %v24601_v14  ;;  %v13329_v24 = vsel %vm24604_vm2, %v13325_v35, %v24603_v10  ;;  %v21408_v23 = vrot.slane %v9574_v18, %v14315_v11  ;;  %vm24606_vm6 = vcmask 556032   ;;  %v24609_v35 = vld [vmem:[#allocation151_spill] sm:$0xff]  ;;  %v24611_v14 = vld [vmem:[#allocation224_spill] sm:$0xff]  ;;  %v12452_v10 = vpop.permute.xlu1 %12451 }
 0x80f   : > { %v13319_v37 = vsel %vm24606_vm6, %v13315_v20, %v24605_v45  ;;  %v13333_v5 = vsel %vm13073_vm10, %v13329_v24, %v24607_v1  ;;  %vm24608_vm4 = vcmask 326656   ;;  %v21416_v36 = vrot.slane %v9606_v56, %v14315_v11  ;;  %v24613_v24 = vld [vmem:[#allocation285_spill] sm:$0xff] }
 0x810   : > { %v13414_v50 = vsel %vm24608_vm4, %v13410_v61, %v12630_v8  ;;  %v9878_v53 = vcombine.high %v21254_v22, %v21225_v7  ;;  %vm24610_vm5 = vcmask 588800   ;;  %vm24612_vm1 = vcmask 719872   ;;  %v24614_v45 = vld [vmem:[#allocation253_spill] sm:$0xff]  ;;  %v24615_v8 = vld [vmem:[#allocation174_spill] sm:$0xff] }
 0x811   : > { %v13323_v40 = vsel %vm24610_vm5, %v13319_v37, %v24609_v35  ;;  %v13337_v18 = vsel %vm24612_vm1, %v13333_v5, %v24611_v14  ;;  %v9898_v20 = vcombine.high %v9853_v38, %v21317_v48  ;;  %v10085_v61 = vcombine.low %v24614_v45, %v24613_v24  ;;  %v24617_v22 = vld [vmem:[#allocation345_spill] sm:$0xff]  ;;  %v24619_v5 = vld [vmem:[#allocation192_spill] sm:$0xff]  ;;  %v24621_v38 = vld [vmem:[#allocation299_spill] sm:$0xff]  ;;  %v12642_v35 = vpop.permute.xlu0 %12641 }
 0x812   : > { %v10814_v56 = vcombine.high %v21248_v46, %v21243_v17  ;;  %vm24616_vm2 = vcmask 621568   ;;  %vm24618_vm6 = vcmask 752640   ;;  %v9846_v1 = vcombine.high %v21260_v32, %v21251_v60 }
 0x813   : > { %v13327_v7 = vsel %vm24616_vm2, %v13323_v40, %v24615_v8  ;;  %v13341_v37 = vsel %vm24618_vm6, %v13337_v18, %v24617_v22  ;;  %vm24620_vm4 = vcmask 654336   ;;  %12679 = vrot.lane.b32.xlu1 %v9898_v20, %s23566_s26  ;;  %v10846_v17 = vcombine.high %v10789_v13, %v21338_v58  ;;  %v24622_v40 = vld [vmem:[#allocation181_spill] sm:$0xff]  ;;  %v24624_v18 = vld [vmem:[#allocation467_spill] sm:$0xff]  ;;  %v24625_v13 = vld [vmem:[#allocation436_spill] sm:$0xff] }
 0x814   : > { %v13331_v48 = vsel %vm24620_vm4, %v13327_v7, %v24619_v5  ;;  %v13345_v29 = vsel %vm13088_vm15, %v13341_v37, %v24621_v38  ;;  %v10782_v46 = vcombine.high %v21284_v42, %v21240_v28  ;;  %vm24623_vm5 = vcmask 359424   ;;  %v12456_v7 = vpop.permute.xlu1 %12455  ;;  %vm24626_vm2 = vmmov %vm24618_vm6  ;;  %v24627_v22 = vld [vmem:[#allocation63_spill] sm:$0xff] }
 0x815   : > { %v13335_v14 = vsel %vm13073_vm10, %v13331_v48, %v24622_v40  ;;  %v13349_v60 = vsel %vm13093_vm14, %v13345_v29, %v21043_v34  ;;  %v13416_v32 = vsel %vm24623_vm5, %v13412_v44, %v12642_v35  ;;  %v9627_v58 = vcombine.low %v21408_v23, %v21416_v36  ;;  %12869 = vrot.lane.b32.xlu0 %v10846_v17, %s23741_s11  ;;  %vm24628_vm6 = vmmov %vm24623_vm5  ;;  %v24630_v35 = vld [vmem:[#allocation33_spill] sm:$0xff] }
 0x816   : > { %v13339_v8 = vsel %vm24612_vm1, %v13335_v14, %v24624_v18  ;;  %v13353_v20 = vsel %vm13098_vm7, %v13349_v60, %v21111_v49  ;;  %v21457_v28 = vrot.slane %v9878_v53, %v14315_v11  ;;  %v21460_v42 = vrot.slane %v10069_v54, %v14280_v31  ;;  %v12646_v53 = vpop.permute.xlu0 %12645  ;;  %v24631_v60 = vld [vmem:[#allocation512_spill] sm:$0xff] }
 0x817   : > { %v21463_v34 = vrot.slane %v10085_v61, %v14280_v31  ;;  %v13343_v44 = vsel %vm24626_vm2, %v13339_v8, %v24625_v13  ;;  %v13357_v49 = vsel %vm13103_vm8, %v13353_v20, %v21193_v63  ;;  %12691 = vrot.lane.b32.xlu1 %v9627_v58, %s23582_s13  ;;  %v9860_v54 = vrot.slane %v9846_v1, %v14315_v11  ;;  %v24634_v8 = vld [vmem:[#allocation403_spill] sm:$0xff] }
 0x818   : > { %v13347_v37 = vsel %vm13088_vm15, %v13343_v44, %v24627_v22  ;;  %v13361_v5 = vsel %vm13108_vm9, %v13357_v49, %v21276_v6  ;;  %v21476_v61 = vrot.slane %v10814_v56, %v14315_v11  ;;  %v13418_v38 = vsel %vm24628_vm6, %v13414_v50, %v12646_v53  ;;  %v24629_v6 = vld [vmem:[#allocation207_spill] sm:$0xff]  ;;  %v12468_v40 = vpop.permute.xlu1 %12467  ;;  %v24636_v49 = vld [vmem:[#allocation498_spill] sm:$0xff]  ;;  %v24637_v22 = vld [vmem:[#allocation461_spill] sm:$0xff] }
 0x819   : > { %v13351_v48 = vsel %vm13093_vm14, %v13347_v37, %v21071_v19  ;;  %v13365_v63 = vsel %vm13113_vm11, %v13361_v5, %v21351_v21  ;;  %v10796_v29 = vrot.slane %v10782_v46, %v14315_v11  ;;  %v10357_v17 = vcombine.low %v24630_v35, %v24629_v6  ;;  %12881 = vrot.lane.b32.xlu0 %v10575_v52, %s23764_s5 }
 0x81a   : > { %v13355_v1 = vsel %vm13098_vm7, %v13351_v48, %v21158_v59  ;;  %v13369_v56 = vsel %vm13118_vm12, %v13365_v63, %v12452_v10  ;;  %v9899_v14 = vcombine.low %v9860_v54, %v21457_v28  ;;  %v10133_v19 = vcombine.low %v21460_v42, %v21463_v34  ;;  %v24632_v59 = vld [vmem:[#allocation483_spill] sm:$0xff]  ;;  %v12658_v58 = vpop.permute.xlu0 %12657 }
 0x81b   : > { %v10766_v21 = vcombine.high %v24510_v57, %v24509_v2  ;;  %v13359_v50 = vsel %vm13103_vm8, %v13355_v1, %v21229_v30  ;;  %v13373_v46 = vsel %vm13123_vm13, %v13369_v56, %v12468_v40  ;;  %v10325_v18 = vcombine.low %v24632_v59, %v24631_v60  ;;  %v24633_v10 = vld [vmem:[#allocation287_spill] sm:$0xff] }
 0x81c   : > { %v10341_v20 = vcombine.low %v24634_v8, %v24633_v10  ;;  %v13363_v52 = vsel %vm13108_vm9, %v13359_v50, %v21313_v3  ;;  %13506 = vst [vmem:[%s17403_s25 + $0x30] sm:$0xff] %v13373_v46  ;;  %12695 = vrot.lane.b32.xlu1 %v9899_v14, %s23582_s13  ;;  %v10847_v2 = vcombine.low %v10796_v29, %v21476_v61  ;;  %vm24635_vm4 = vcmask 392192  }
 0x81d   : > { %v10734_v57 = vcombine.high %v24506_v39, %v24505_v51  ;;  %v13367_v30 = vsel %vm13113_vm11, %v13363_v52, %v21383_v41  ;;  %v9628_v13 = vcombine.high %v21408_v23, %v21416_v36  ;;  %v13420_v44 = vsel %vm24635_vm4, %v13416_v32, %v12658_v58  ;;  %v12472_v39 = vpop.permute.xlu1 %12471  ;;  %vm24638_vm5 = vmmov %vm24635_vm4 }
 0x81e   : > { %v10750_v3 = vcombine.high %v24508_v33, %v24507_v15  ;;  %v10309_v37 = vcombine.low %v24637_v22, %v24636_v49  ;;  %v21519_v5 = vrot.slane %v10357_v17, %v14280_v31  ;;  %v13371_v51 = vsel %vm13118_vm12, %v13367_v30, %v12456_v7  ;;  %12885 = vrot.lane.b32.xlu0 %v10847_v2, %s23764_s5  ;;  %v12662_v48 = vpop.permute.xlu0 %12661 }
 0x81f   : > { %v10557_v41 = vcombine.low %v21090_v0, %v21093_v4  ;;  %v10101_v36 = vcombine.low %v21391_v16, %v21394_v25  ;;  %v13375_v23 = vsel %vm13123_vm13, %v13371_v51, %v12472_v39  ;;  %v10576_v15 = vcombine.high %v21087_v62, %v21329_v26 }
 0x820   : > { %v10718_v33 = vcombine.high %v24527_v55, %v24526_v9  ;;  %v21533_v32 = vrot.slane %v10766_v21, %v14280_v31  ;;  %v21536_v7 = vrot.slane %v10325_v18, %v14280_v31  ;;  %v21539_v53 = vrot.slane %v10341_v20, %v14280_v31  ;;  %13514 = vst [vmem:[%s17403_s25 + $0x70] sm:$0xff] %v13375_v23 }
 0x821   : > { %12707 = vrot.lane.b32.xlu1 %v9628_v13, %s23601_s17  ;;  %v10525_v63 = vcombine.low %v21066_v43, %v21069_v27  ;;  %v21546_v62 = vrot.slane %v10734_v57, %v14280_v31  ;;  %v13422_v9 = vsel %vm24638_vm5, %v13418_v38, %v12662_v48  ;;  %v10141_v55 = vrot.slane %v10133_v19, %v14315_v11  ;;  %v21558_v56 = vpop.permute.xlu1 %12483 }
 0x822   : > { %v21551_v26 = vrot.slane %v10750_v3, %v14280_v31  ;;  %v21554_v17 = vrot.slane %v10309_v37, %v14280_v31  ;;  %v10405_v1 = vcombine.low %v21539_v53, %v21519_v5  ;;  %v9900_v40 = vcombine.high %v9860_v54, %v21457_v28  ;;  %12897 = vrot.lane.b32.xlu0 %v10576_v15, %s23777_s4  ;;  %v12674_v46 = vpop.permute.xlu0 %12673 }
 0x823   : > { %v10109_v14 = vrot.slane %v10101_v36, %v14315_v11  ;;  %v10565_v38 = vrot.slane %v10557_v41, %v14315_v11  ;;  %v21565_v19 = vrot.slane %v10718_v33, %v14280_v31  ;;  %v10848_v28 = vcombine.high %v10796_v29, %v21476_v61 }
 0x824   : > { %v10829_v21 = vcombine.low %v21551_v26, %v21533_v32  ;;  %v10373_v50 = vcombine.low %v21554_v17, %v21536_v7  ;;  %vm24639_vm1 = vcmask 424960   ;;  %v10413_v58 = vrot.slane %v10405_v1, %v14315_v11 }
 0x825   : > { %12711 = vrot.lane.b32.xlu1 %v9900_v40, %s23601_s17  ;;  %v13424_v54 = vsel %vm24639_vm1, %v13420_v44, %v12674_v46  ;;  %v10797_v18 = vcombine.low %v21565_v19, %v21546_v62  ;;  %v21576_v20 = vpop.permute.xlu1 %12487  ;;  %v10165_v52 = vcombine.low %v10109_v14, %v10141_v55  ;;  %v10533_v2 = vrot.slane %v10525_v63, %v14315_v11  ;;  %vm24640_vm2 = vmmov %vm24639_vm1  ;;  %v24646_v46 = vld [vmem:[#allocation237_spill] sm:$0xff] }
 0x826   : > { %12901 = vrot.lane.b32.xlu0 %v10848_v28, %s23777_s4  ;;  %v10381_v57 = vrot.slane %v10373_v50, %v14315_v11  ;;  %v12678_v30 = vpop.permute.xlu0 %12677  ;;  %v10837_v29 = vrot.slane %v10829_v21, %v14315_v11  ;;  %vm24641_vm6 = vcmask 457728   ;;  %v10134_v36 = vcombine.high %v21460_v42, %v21463_v34 }
 0x827   : > { %v10577_v61 = vcombine.low %v10533_v2, %v10565_v38  ;;  %v13426_v13 = vsel %vm24640_vm2, %v13422_v9, %v12678_v30  ;;  %v10805_v37 = vrot.slane %v10797_v18, %v14315_v11  ;;  %v10166_v15 = vcombine.high %v10109_v14, %v10141_v55  ;;  %vm24642_vm4 = vmmov %vm24641_vm6  ;;  %v24648_v18 = vld [vmem:[#allocation166_spill] sm:$0xff] }
 0x828   : > { %v10437_v3 = vcombine.low %v10381_v57, %v10413_v58  ;;  %v10558_v33 = vcombine.high %v21090_v0, %v21093_v4  ;;  %v10102_v48 = vcombine.high %v21391_v16, %v21394_v25  ;;  %v10578_v9 = vcombine.high %v10533_v2, %v10565_v38 }
 0x829   : > { %12723 = vrot.lane.b32.xlu1 %v10165_v52, %s23607_s27  ;;  %v21585_v44 = vpop.permute.xlu1 %12499  ;;  %v10849_v39 = vcombine.low %v10805_v37, %v10837_v29  ;;  %v10526_v1 = vcombine.high %v21066_v43, %v21069_v27  ;;  %v10406_v34 = vcombine.high %v21539_v53, %v21519_v5  ;;  %v10438_v40 = vcombine.high %v10381_v57, %v10413_v58 }
 0x82a   : > { %12913 = vrot.lane.b32.xlu0 %v10577_v61, %s23781_s3  ;;  %v12690_v51 = vpop.permute.xlu0 %12689  ;;  %v10148_v0 = vrot.slane %v10134_v36, %v14315_v11  ;;  %v10572_v4 = vrot.slane %v10558_v33, %v14315_v11  ;;  %v10830_v16 = vcombine.high %v21551_v26, %v21533_v32  ;;  %v10374_v43 = vcombine.high %v21554_v17, %v21536_v7  ;;  %v24645_v17 = vld [vmem:[#allocation189_spill] sm:$0xff] }
 0x82b   : > { %v13428_v41 = vsel %vm24641_vm6, %v13424_v54, %v12690_v51  ;;  %v10116_v27 = vrot.slane %v10102_v48, %v14315_v11  ;;  %v10850_v5 = vcombine.high %v10805_v37, %v10837_v29  ;;  %vm24644_vm5 = vcmask 490496  }
 0x82c   : > { %v10540_v14 = vrot.slane %v10526_v1, %v14315_v11  ;;  %v10086_v38 = vcombine.high %v24614_v45, %v24613_v24  ;;  %v10798_v21 = vcombine.high %v21565_v19, %v21546_v62  ;;  %v10420_v7 = vrot.slane %v10406_v34, %v14315_v11  ;;  %v24647_v19 = vld [vmem:[#allocation205_spill] sm:$0xff]  ;;  %vm24649_vm1 = vmmov %vm24644_vm5 }
 0x82d   : > { %12727 = vrot.lane.b32.xlu1 %v10437_v3, %s23607_s27  ;;  %v21593_v23 = vpop.permute.xlu1 %12503  ;;  %v10167_v26 = vcombine.low %v10116_v27, %v10148_v0  ;;  %v10054_v50 = vcombine.high %v24645_v17, %v24576_v12  ;;  %v10070_v28 = vcombine.high %v24646_v46, %v24599_v47  ;;  %v10388_v24 = vrot.slane %v10374_v43, %v14315_v11  ;;  %s13838_s27 = smov [#allocation5]  }
 0x82e   : > { %12917 = vrot.lane.b32.xlu0 %v10849_v39, %s23781_s3  ;;  %v12694_v63 = vpop.permute.xlu0 %12693  ;;  %v10579_v54 = vcombine.low %v10540_v14, %v10572_v4  ;;  %v10844_v62 = vrot.slane %v10830_v16, %v14315_v11  ;;  %v10038_v52 = vcombine.high %v24648_v18, %v24647_v19  ;;  %v21638_v2 = vrot.slane %v10086_v38, %v14280_v31 }
 0x82f   : > { %v13430_v42 = vsel %vm24642_vm4, %v13426_v13, %v12694_v63  ;;  %v10358_v12 = vcombine.high %v24630_v35, %v24629_v6  ;;  %v10439_v57 = vcombine.low %v10388_v24, %v10420_v7  ;;  %v10812_v30 = vrot.slane %v10798_v21, %v14315_v11 }
 0x830   : > { %v21647_v61 = vrot.slane %v10054_v50, %v14280_v31  ;;  %v10084_v29 = vrot.slane %v10070_v28, %v14280_v31  ;;  %v10326_v13 = vcombine.high %v24632_v59, %v24631_v60  ;;  %v10342_v3 = vcombine.high %v24634_v8, %v24633_v10 }
 0x831   : > { %12739 = vrot.lane.b32.xlu1 %v10166_v15, %s23612_s28  ;;  %v21606_v55 = vpop.permute.xlu1 %12515  ;;  %v10851_v35 = vcombine.low %v10812_v30, %v10844_v62  ;;  %v10052_v37 = vrot.slane %v10038_v52, %v14280_v31  ;;  %vm24650_vm2 = vcmask 523264   ;;  %v21661_v36 = vrot.slane %v10358_v12, %v14280_v31 }
 0x832   : > { %12929 = vrot.lane.b32.xlu0 %v10578_v9, %s24643_s1  ;;  %v12706_v25 = vpop.permute.xlu0 %12705  ;;  %v10149_v39 = vcombine.low %v10084_v29, %v21638_v2  ;;  %v10168_v59 = vcombine.high %v10116_v27, %v10148_v0  ;;  %v21666_v8 = vrot.slane %v10326_v13, %v14280_v31  ;;  %v10356_v15 = vrot.slane %v10342_v3, %v14280_v31  ;;  %vm24651_vm6 = vmmov %vm24650_vm2  ;;  %v24662_v13 = vld [vmem:[#allocation326_spill] sm:$0xff] }
 0x833   : > { %v13432_v53 = vsel %vm24644_vm5, %v13428_v41, %v12706_v25  ;;  %v10310_v41 = vcombine.high %v24637_v22, %v24636_v49  ;;  %v10117_v10 = vcombine.low %v10052_v37, %v21647_v61  ;;  %v10580_v48 = vcombine.high %v10540_v14, %v10572_v4 }
 0x834   : > { %v10421_v63 = vcombine.low %v10356_v15, %v21661_v36  ;;  %v10440_v1 = vcombine.high %v10388_v24, %v10420_v7  ;;  %v10852_v4 = vcombine.high %v10812_v30, %v10844_v62  ;;  %vm24652_vm4 = vcmask 556032  }
 0x835   : > { %12743 = vrot.lane.b32.xlu1 %v10438_v40, %s23612_s28  ;;  %v21623_v32 = vpop.permute.xlu1 %12519  ;;  %v10324_v22 = vrot.slane %v10310_v41, %v14280_v31  ;;  %v10125_v40 = vrot.slane %v10117_v10, %v14315_v11  ;;  %vm24653_vm5 = vmmov %vm24652_vm4  ;;  %v10150_v17 = vcombine.high %v10084_v29, %v21638_v2  ;;  %v10118_v28 = vcombine.high %v10052_v37, %v21647_v61  ;;  %v24661_v29 = vld [vmem:[#allocation328_spill] sm:$0xff]  ;;  %s13738_s28 = sshll.u32 %s13838_s27, 4  ;;  %s13739_s28 = int_to_ptr.vmem [resolvable:$false] %s13738_s28 }
 0x836   : > { %12933 = vrot.lane.b32.xlu0 %v10850_v5, %s24643_s1  ;;  %v12710_v45 = vpop.permute.xlu0 %12709  ;;  %v10429_v25 = vrot.slane %v10421_v63, %v14315_v11  ;;  %v10422_v52 = vcombine.high %v10356_v15, %v21661_v36  ;;  %v24664_v37 = vld [vmem:[#allocation284_spill] sm:$0xff] }
 0x837   : > { %v13434_v58 = vsel %vm24649_vm1, %v13430_v42, %v12710_v45  ;;  %v10157_v42 = vrot.slane %v10149_v39, %v14315_v11  ;;  %v10389_v34 = vcombine.low %v10324_v22, %v21666_v8  ;;  %vm24654_vm1 = vcmask 588800   ;;  %v24655_v45 = vld [vmem:[#allocation434_spill] sm:$0xff]  ;;  %v24675_v63 = vld [vmem:[#allocation236_spill] sm:$0xff] }
 0x838   : > { %v10390_v61 = vcombine.high %v10324_v22, %v21666_v8  ;;  %v10436_v8 = vrot.slane %v10422_v52, %v14315_v11  ;;  %v24674_v22 = vld [vmem:[#allocation268_spill] sm:$0xff]  ;;  %v24691_v52 = vld [vmem:[#allocation459_spill] sm:$0xff] }
 0x839   : > { %12755 = vrot.lane.b32.xlu1 %v10167_v26, %s23632_s29  ;;  %v21642_v47 = vpop.permute.xlu1 %12531  ;;  %v10169_v27 = vcombine.low %v10125_v40, %v10157_v42  ;;  %v10397_v5 = vrot.slane %v10389_v34, %v14315_v11  ;;  %v10170_v46 = vcombine.high %v10125_v40, %v10157_v42  ;;  %v24677_v40 = vld [vmem:[#allocation204_spill] sm:$0xff] }
 0x83a   : > { %12945 = vrot.lane.b32.xlu0 %v10579_v54, %s23791_s0  ;;  %v12722_v6 = vpop.permute.xlu0 %12721  ;;  %v24656_v54 = vld [vmem:[#allocation463_spill] sm:$0xff] }
 0x83b   : > { %v13436_v51 = vsel %vm24650_vm2, %v13432_v53, %v12722_v6  ;;  %v10441_v21 = vcombine.low %v10397_v5, %v10429_v25  ;;  %v24657_v62 = vcombine.low %v24655_v45, %v24656_v54  ;;  %vm24658_vm2 = vmmov %vm24654_vm1  ;;  %v10442_v12 = vcombine.high %v10397_v5, %v10429_v25  ;;  %v24682_v25 = vld [vmem:[#allocation528_spill] sm:$0xff] }
 0x83d   : > { %12759 = vrot.lane.b32.xlu1 %v10439_v57, %s23632_s29  ;;  %v12536_v60 = vpop.permute.xlu1 %12535  ;;  %v13379_v19 = vsel %vm12973_vm0, %v24657_v62, %v21576_v20  ;;  %v10164_v57 = vrot.slane %v10150_v17, %v14315_v11  ;;  %v24663_v20 = vcombine.low %v24661_v29, %v24662_v13  ;;  %v24685_v17 = vld [vmem:[#allocation513_spill] sm:$0xff]  ;;  %s13740_s29 = scalar_lea.vmem %s13739_s28, 4096 }
 0x83e   : > { %12949 = vrot.lane.b32.xlu0 %v10851_v35, %s23791_s0  ;;  %v12726_v33 = vpop.permute.xlu0 %12725 }
 0x83f   : > { %v13438_v49 = vsel %vm24651_vm6, %v13434_v58, %v12726_v33  ;;  %vm24659_vm6 = vcmask 64512   ;;  %v13377_v3 = vsel %vm12973_vm0, %v24663_v20, %v21558_v56  ;;  %vm24670_vm0 = vcmask 195584  }
 0x840   : > { %v13383_v58 = vsel %vm24659_vm6, %v13379_v19, %v21593_v23  ;;  %v10132_v23 = vrot.slane %v10118_v28, %v14315_v11  ;;  %v24688_v28 = vld [vmem:[#allocation526_spill] sm:$0xff] }
 0x841   : > { %12771 = vrot.lane.b32.xlu1 %v10168_v59, %s23794_s15  ;;  %v12548_v9 = vpop.permute.xlu1 %12547 }
 0x842   : > { %12961 = vrot.lane.b32.xlu0 %v10580_v48, %s23797_s8  ;;  %v12738_v0 = vpop.permute.xlu0 %12737  ;;  %v10171_v10 = vcombine.low %v10132_v23, %v10164_v57  ;;  %v24672_v48 = vld [vmem:[#allocation220_spill] sm:$0xff] }
 0x843   : > { %v13440_v16 = vsel %vm24652_vm4, %v13436_v51, %v12738_v0  ;;  %vm24660_vm4 = vcmask 97280   ;;  %v24665_v51 = vld [vmem:[#allocation252_spill] sm:$0xff] }
 0x844   : > { %v13387_v30 = vsel %vm24660_vm4, %v13383_v58, %v21623_v32  ;;  %v10629_v39 = vcombine.low %v24665_v51, %v24664_v37  ;;  %v24678_v0 = vld [vmem:[#allocation164_spill] sm:$0xff] }
 0x845   : > { %12775 = vrot.lane.b32.xlu1 %v10440_v1, %s23794_s15  ;;  %v12552_v43 = vpop.permute.xlu1 %12551  ;;  %v13391_v6 = vsel %vm12988_vm3, %v13387_v30, %v12536_v60  ;;  %v10613_v1 = vcombine.low %v24675_v63, %v24674_v22  ;;  %v10172_v30 = vcombine.high %v10132_v23, %v10164_v57  ;;  %s24728_s15 = sld [smem:[#allocation538_spill]] }
 0x846   : > { %12965 = vrot.lane.b32.xlu0 %v10852_v4, %s23797_s8  ;;  %v12742_v53 = vpop.permute.xlu0 %12741  ;;  %v10581_v4 = vcombine.low %v24678_v0, %v24677_v40 }
 0x847   : > { %v13442_v14 = vsel %vm24653_vm5, %v13438_v49, %v12742_v53  ;;  %vm24666_vm5 = vmmov %vm24659_vm6 }
 0x848   : > { %v13381_v32 = vsel %vm24666_vm5, %v13377_v3, %v21585_v44  ;;  %vm24669_vm6 = vmmov %vm24660_vm4  ;;  %vm24671_vm4 = vcmask 228352   ;;  %v24673_v44 = vld [vmem:[#allocation188_spill] sm:$0xff]  ;;  %v10589_v54 = vrot.slane %v10581_v4, %v14280_v31 }
 0x849   : > { %12787 = vrot.lane.b32.xlu1 %v10169_v27, %s23802_s7  ;;  %v12564_v38 = vpop.permute.xlu1 %12563  ;;  %v13385_v56 = vsel %vm24669_vm6, %v13381_v32, %v21606_v55  ;;  %v10597_v49 = vcombine.low %v24673_v44, %v24672_v48  ;;  %v10404_v55 = vrot.slane %v10390_v61, %v14315_v11  ;;  %v24681_v27 = vld [vmem:[#allocation19_spill] sm:$0xff]  ;;  %vm24684_vm6 = vcmask 261120  }
 0x84a   : > { %v12754_v26 = vpop.permute.xlu0 %12753  ;;  %v13389_v15 = vsel %vm12988_vm3, %v13385_v56, %v21642_v47  ;;  %v10901_v5 = vcombine.low %v24682_v25, %v24681_v27 }
 0x84b   : > { %v13444_v7 = vsel %vm24654_vm1, %v13440_v16, %v12754_v26  ;;  %vm24667_vm1 = vcmask 162816   ;;  %v10605_v26 = vrot.slane %v10597_v49, %v14280_v31 }
 0x84c   : > { %v13395_v41 = vsel %vm24667_vm1, %v13391_v6, %v12552_v43  ;;  %vm24676_vm5 = vmmov %vm24667_vm1  ;;  %v10637_v43 = vrot.slane %v10629_v39, %v14280_v31 }
 0x84d   : > { %12791 = vrot.lane.b32.xlu1 %v10441_v21, %s23802_s7  ;;  %v12568_v50 = vpop.permute.xlu1 %12567  ;;  %v13393_v42 = vsel %vm24676_vm5, %v13389_v15, %v12548_v9  ;;  %vm24679_vm1 = vmmov %vm24670_vm0  ;;  %v10645_v29 = vcombine.low %v10589_v54, %v10605_v26 }
 0x84e   : > { %v12758_v24 = vpop.permute.xlu0 %12757  ;;  %v13399_v60 = vsel %vm24670_vm0, %v13395_v41, %v12568_v50  ;;  %v13397_v47 = vsel %vm24679_vm1, %v13393_v42, %v12564_v38  ;;  %v24686_v50 = vld [vmem:[#allocation482_spill] sm:$0xff]  ;;  %vm24689_vm0 = vcmask 654336   ;;  %v10444_v41 = vcombine.high %v10404_v55, %v10436_v8 }
 0x84f   : > { %v13446_v18 = vsel %vm24658_vm2, %v13442_v14, %v12758_v24  ;;  %vm24668_vm2 = vcmask 621568   ;;  %v10443_v14 = vcombine.low %v10404_v55, %v10436_v8  ;;  %v10869_v38 = vcombine.low %v24686_v50, %v24685_v17  ;;  %vm24693_vm5 = vmmov %vm24689_vm0 }
 0x850   : > { %vm24680_vm3 = vmmov %vm24668_vm2  ;;  %vm24694_vm1 = vcmask 293888   ;;  %v10653_v56 = vrot.slane %v10645_v29, %v14315_v11  ;;  %v10614_v29 = vcombine.high %v24675_v63, %v24674_v22  ;;  %v10870_v63 = vcombine.high %v24686_v50, %v24685_v17 }
 0x851   : > { %12803 = vrot.lane.b32.xlu1 %v10170_v46, %s23820_s19  ;;  %v12580_v2 = vpop.permute.xlu1 %12579  ;;  %v24687_v46 = vld [vmem:[#allocation80_spill] sm:$0xff]  ;;  %v10877_v13 = vrot.slane %v10869_v38, %v14280_v31 }
 0x852   : > { %v12770_v35 = vpop.permute.xlu0 %12769  ;;  %v10885_v24 = vcombine.low %v24688_v28, %v24687_v46  ;;  %v10628_v22 = vrot.slane %v10614_v29, %v14280_v31  ;;  %v10884_v50 = vrot.slane %v10870_v63, %v14280_v31 }
 0x853   : > { %v13448_v36 = vsel %vm24668_vm2, %v13444_v7, %v12770_v35  ;;  %vm24683_vm2 = vmmov %vm24671_vm4  ;;  %v10621_v7 = vrot.slane %v10613_v1, %v14280_v31 }
 0x854   : > { %v13401_v53 = vsel %vm24683_vm2, %v13397_v47, %v12580_v2  ;;  %v10909_v2 = vrot.slane %v10901_v5, %v14280_v31  ;;  %v10893_v20 = vrot.slane %v10885_v24, %v14280_v31  ;;  %vm24696_vm2 = vcmask 326656  }
 0x855   : > { %12807 = vrot.lane.b32.xlu1 %v10442_v12, %s23820_s19  ;;  %v12584_v59 = vpop.permute.xlu1 %12583  ;;  %v10677_v19 = vcombine.low %v10621_v7, %v10637_v43  ;;  %s13517_s19 = scalar_lea.sflag [#allocation4], %s24726_s6 }
 0x856   : > { %v13403_v33 = vsel %vm24671_vm4, %v13399_v60, %v12584_v59  ;;  %v12774_v34 = vpop.permute.xlu0 %12773  ;;  %vm24692_vm4 = vmmov %vm24684_vm6  ;;  %v10949_v39 = vcombine.low %v10893_v20, %v10909_v2  ;;  %v10950_v38 = vcombine.high %v10893_v20, %v10909_v2 }
 0x857   : > { %v13450_v16 = vsel %vm24680_vm3, %v13446_v18, %v12774_v34  ;;  %v24690_v18 = vld [vmem:[#allocation497_spill] sm:$0xff]  ;;  %vm24695_vm3 = vmmov %vm24694_vm1 }
 0x858   : > { %v10853_v58 = vcombine.low %v24691_v52, %v24690_v18  ;;  %v10964_v2 = vrot.slane %v10950_v38, %v14315_v11 }
 0x859   : > { %12819 = vrot.lane.b32.xlu1 %v10171_v10, %s23846_s9  ;;  %v12596_v9 = vpop.permute.xlu1 %12595 }
 0x85a   : > { %v13405_v21 = vsel %vm24684_vm6, %v13401_v53, %v12596_v9  ;;  %v12786_v45 = vpop.permute.xlu0 %12785  ;;  %v10861_v35 = vrot.slane %v10853_v58, %v14280_v31  ;;  %vm24697_vm6 = vmmov %vm24696_vm2 }
 0x85b   : > { %v13452_v62 = vsel %vm24689_vm0, %v13448_v36, %v12786_v45  ;;  %v10685_v36 = vrot.slane %v10677_v19, %v14315_v11  ;;  %vm24698_vm0 = vcmask 359424  }
 0x85c   : > { %v10917_v23 = vcombine.low %v10861_v35, %v10877_v13  ;;  %v10918_v58 = vcombine.high %v10861_v35, %v10877_v13 }
 0x85d   : > { %12823 = vrot.lane.b32.xlu1 %v10443_v14, %s23846_s9  ;;  %v12600_v12 = vpop.permute.xlu1 %12599  ;;  %v10709_v15 = vcombine.low %v10653_v56, %v10685_v36  ;;  %v10710_v53 = vcombine.high %v10653_v56, %v10685_v36  ;;  %v10646_v14 = vcombine.high %v10589_v54, %v10605_v26  ;;  %v10630_v26 = vcombine.high %v24665_v51, %v24664_v37  ;;  %s13531_s9 = sshll.u32 %s17403_s25, 4  ;;  %s21918_s9 = int_to_ptr.vmem [resolvable:$true] %s13531_s9 }
 0x85e   : > { %v13407_v61 = vsel %vm24692_vm4, %v13403_v33, %v12600_v12  ;;  %v12790_v3 = vpop.permute.xlu0 %12789  ;;  %v10957_v33 = vrot.slane %v10949_v39, %v14315_v11  ;;  %v10925_v8 = vrot.slane %v10917_v23, %v14315_v11  ;;  %vm24699_vm4 = vmmov %vm24698_vm0  ;;  %v10932_v13 = vrot.slane %v10918_v58, %v14315_v11  ;;  %s13734_s23 = scalar_lea.vmem %s21918_s9, 2048  ;;  %p13741_p8 = scmp.lt.s32.totalorder %s21918_s9, %s13739_s28 }
 0x85f   : > { %v13454_v6 = vsel %vm24693_vm5, %v13450_v16, %v12790_v3  ;;  %v10678_v16 = vcombine.high %v10621_v7, %v10637_v43  ;;  %v10660_v43 = vrot.slane %v10646_v14, %v14315_v11  ;;  %v10582_v37 = vcombine.high %v24678_v0, %v24677_v40  ;;  %p13735_p6 = scmp.ne.s32.totalorder %s21918_s9, %s13734_s23  ;;  %p13742_p9 = scmp.lt.s32.totalorder %s13740_s29, %s13734_s23 }
 0x860   : > { %v10981_v34 = vcombine.low %v10925_v8, %v10957_v33  ;;  %v10982_v45 = vcombine.high %v10925_v8, %v10957_v33  ;;  %v10644_v51 = vrot.slane %v10630_v26, %v14280_v31  ;;  %v10902_v3 = vcombine.high %v24682_v25, %v24681_v27 }
 0x861   : > { %12835 = vrot.lane.b32.xlu1 %v10172_v30, %s23862_s18  ;;  %v12612_v32 = vpop.permute.xlu1 %12611  ;;  %v10983_v35 = vcombine.low %v10932_v13, %v10964_v2  ;;  %vm24700_vm5 = vcmask 392192   ;;  %v10886_v39 = vcombine.high %v24688_v28, %v24687_v46  ;;  %v10596_v0 = vrot.slane %v10582_v37, %v14280_v31  ;;  %p13743_p13 = por %p13742_p9, %p13741_p8 }
 0x862   : > { %v13409_v57 = vsel %vm24694_vm1, %v13405_v21, %v12612_v32  ;;  %v12802_v60 = vpop.permute.xlu0 %12801  ;;  %v10693_v27 = vcombine.low %v10628_v22, %v10644_v51  ;;  %v10854_v25 = vcombine.high %v24691_v52, %v24690_v18  ;;  %v10916_v32 = vrot.slane %v10902_v3, %v14280_v31  ;;  %vm24701_vm1 = vmmov %vm24700_vm5 }
 0x863   : > { %v21762_v59 = vsel %vm13073_vm10, %v13452_v62, %v12802_v60  ;;  %v10692_v62 = vrot.slane %v10678_v16, %v14315_v11  ;;  %v10900_v46 = vrot.slane %v10886_v39, %v14280_v31  ;;  %v10984_v18 = vcombine.high %v10932_v13, %v10964_v2 }
 0x864   : > { %v10868_v23 = vrot.slane %v10854_v25, %v14280_v31  ;;  %v10701_v52 = vrot.slane %v10693_v27, %v14315_v11  ;;  %v10694_v14 = vcombine.high %v10628_v22, %v10644_v51 }
 0x865   : > { %12839 = vrot.lane.b32.xlu1 %v10444_v41, %s23862_s18  ;;  %v12616_v10 = vpop.permute.xlu1 %12615  ;;  %v10711_v12 = vcombine.low %v10660_v43, %v10692_v62  ;;  %v10712_v36 = vcombine.high %v10660_v43, %v10692_v62  ;;  %v10965_v56 = vcombine.low %v10900_v46, %v10916_v32  ;;  %v10966_v58 = vcombine.high %v10900_v46, %v10916_v32 }
 0x866   : > { %v13411_v49 = vsel %vm24695_vm3, %v13407_v61, %v12616_v10  ;;  %v12806_v1 = vpop.permute.xlu0 %12805  ;;  %v10598_v61 = vcombine.high %v24673_v44, %v24672_v48  ;;  %vm24702_vm3 = vcmask 424960   ;;  %v10934_v2 = vcombine.high %v10868_v23, %v10884_v50 }
 0x867   : > { %v21769_v42 = vsel %vm13073_vm10, %v13454_v6, %v12806_v1  ;;  %v10980_v37 = vrot.slane %v10966_v58, %v14315_v11 }
 0x868   : > { %v10612_v44 = vrot.slane %v10598_v61, %v14280_v31  ;;  %v10948_v3 = vrot.slane %v10934_v2, %v14315_v11 }
 0x869   : > { %12851 = vrot.lane.b32.xlu1 %v10709_v15, %s24139_s22  ;;  %v12628_v55 = vpop.permute.xlu1 %12627  ;;  %v10933_v15 = vcombine.low %v10868_v23, %v10884_v50 }
 0x86a   : > { %v13413_v4 = vsel %vm24696_vm2, %v13409_v57, %v12628_v55  ;;  %v21773_v47 = vpop.permute.xlu0 %12817  ;;  %v10661_v17 = vcombine.low %v10596_v0, %v10612_v44  ;;  %v10973_v55 = vrot.slane %v10965_v56, %v14315_v11  ;;  %vm24703_vm2 = vmmov %vm24702_vm3  ;;  %v10662_v62 = vcombine.high %v10596_v0, %v10612_v44 }
 0x86b   : > { %v10941_v31 = vrot.slane %v10933_v15, %v14315_v11  ;;  %v10988_v32 = vcombine.high %v10948_v3, %v10980_v37 }
 0x86c   : > { %v10669_v33 = vrot.slane %v10661_v17, %v14315_v11 }
 0x86d   : > { %12855 = vrot.lane.b32.xlu1 %v10981_v34, %s24139_s22  ;;  %v12632_v5 = vpop.permute.xlu1 %12631  ;;  %v10986_v26 = vcombine.high %v10941_v31, %v10973_v55 }
 0x86e   : > { %v13415_v9 = vsel %vm24697_vm6, %v13411_v49, %v12632_v5  ;;  %v21777_v21 = vpop.permute.xlu0 %12821  ;;  %v10713_v1 = vcombine.low %v10669_v33, %v10701_v52  ;;  %v10985_v5 = vcombine.low %v10941_v31, %v10973_v55  ;;  %vm24704_vm6 = vcmask 457728  }
 0x871   : > { %12867 = vrot.lane.b32.xlu1 %v10710_v53, %s23741_s11  ;;  %v12644_v24 = vpop.permute.xlu1 %12643 }
 0x872   : > { %v13417_v19 = vsel %vm24698_vm0, %v13413_v4, %v12644_v24  ;;  %v21783_v7 = vpop.permute.xlu0 %12833  ;;  %v10714_v24 = vcombine.high %v10669_v33, %v10701_v52  ;;  %vm24705_vm0 = vmmov %vm24704_vm6 }
 0x875   : > { %12871 = vrot.lane.b32.xlu1 %v10982_v45, %s23741_s11  ;;  %v12648_v54 = vpop.permute.xlu1 %12647 }
 0x876   : > { %v13419_v30 = vsel %vm24699_vm4, %v13415_v9, %v12648_v54  ;;  %v21795_v20 = vpop.permute.xlu0 %12837  ;;  %v10708_v54 = vrot.slane %v10694_v14, %v14315_v11  ;;  %vm24706_vm4 = vcmask 490496  }
 0x879   : > { %12883 = vrot.lane.b32.xlu1 %v10711_v12, %s23764_s5  ;;  %v12660_v6 = vpop.permute.xlu1 %12659 }
 0x87a   : > { %v13421_v48 = vsel %vm24700_vm5, %v13417_v19, %v12660_v6  ;;  %v21810_v40 = vpop.permute.xlu0 %12849  ;;  %vm24707_vm5 = vmmov %vm24706_vm4 }
 0x87d   : > { %12887 = vrot.lane.b32.xlu1 %v10983_v35, %s23764_s5  ;;  %v12664_v41 = vpop.permute.xlu1 %12663 }
 0x87e   : > { %v13423_v57 = vsel %vm24701_vm1, %v13419_v30, %v12664_v41  ;;  %v21820_v28 = vpop.permute.xlu0 %12853  ;;  %v10676_v30 = vrot.slane %v10662_v62, %v14315_v11  ;;  %vm24708_vm1 = vcmask 523264  }
 0x880   : > { %v10715_v13 = vcombine.low %v10676_v30, %v10708_v54  ;;  %v10716_v39 = vcombine.high %v10676_v30, %v10708_v54 }
 0x881   : > { %12899 = vrot.lane.b32.xlu1 %v10712_v36, %s23777_s4  ;;  %v12676_v60 = vpop.permute.xlu1 %12675 }
 0x882   : > { %v13425_v10 = vsel %vm24702_vm3, %v13421_v48, %v12676_v60  ;;  %v12866_v49 = vpop.permute.xlu0 %12865  ;;  %v10987_v48 = vcombine.low %v10948_v3, %v10980_v37  ;;  %vm24709_vm3 = vmmov %vm24708_vm1 }
 0x885   : > { %12903 = vrot.lane.b32.xlu1 %v10984_v18, %s23777_s4  ;;  %v12680_v8 = vpop.permute.xlu1 %12679 }
 0x886   : > { %v13427_v34 = vsel %vm24703_vm2, %v13423_v57, %v12680_v8  ;;  %vm24710_vm2 = vcmask 556032  }
 0x887   : > { %v21831_v4 = vpop.permute.xlu0 %12869 }
 0x889   : > { %12915 = vrot.lane.b32.xlu1 %v10713_v1, %s23781_s3  ;;  %v12692_v16 = vpop.permute.xlu1 %12691 }
 0x88a   : > { %v13429_v53 = vsel %vm24704_vm6, %v13425_v10, %v12692_v16  ;;  %vm24711_vm6 = vmmov %vm24710_vm2 }
 0x88b   : > { %v12882_v9 = vpop.permute.xlu0 %12881 }
 0x88d   : > { %12919 = vrot.lane.b32.xlu1 %v10985_v5, %s23781_s3 }
 0x88e   : > { %v12696_v38 = vpop.permute.xlu1 %12695 }
 0x88f   : > { %v13431_v45 = vsel %vm24705_vm0, %v13427_v34, %v12696_v38  ;;  %vm24712_vm0 = vcmask 588800  }
 0x890   : > { %v12886_v19 = vpop.permute.xlu0 %12885 }
 0x891   : > { %12931 = vrot.lane.b32.xlu1 %v10714_v24, %s24643_s1 }
 0x893   : > { %v12708_v43 = vpop.permute.xlu1 %12707 }
 0x894   : > { %v13433_v12 = vsel %vm24706_vm4, %v13429_v53, %v12708_v43  ;;  %v12898_v61 = vpop.permute.xlu0 %12897  ;;  %vm24713_vm4 = vcmask 719872  }
 0x895   : > { %12935 = vrot.lane.b32.xlu1 %v10986_v26, %s24643_s1  ;;  %v13460_v23 = vsel %vm24713_vm4, %v21762_v59, %v21773_v47 }
 0x897   : > { %v12712_v29 = vpop.permute.xlu1 %12711 }
 0x898   : > { %v13435_v51 = vsel %vm24707_vm5, %v13431_v45, %v12712_v29  ;;  %v12902_v6 = vpop.permute.xlu0 %12901  ;;  %vm24714_vm5 = vcmask 752640  }
 0x899   : > { %12947 = vrot.lane.b32.xlu1 %v10715_v13, %s23791_s0  ;;  %v13464_v60 = vsel %vm24714_vm5, %v13460_v23, %v21783_v7 }
 0x89a   : > { %v13468_v18 = vsel %vm13088_vm15, %v13464_v60, %v21810_v40 }
 0x89b   : > { %v12724_v35 = vpop.permute.xlu1 %12723  ;;  %v13472_v10 = vsel %vm13093_vm14, %v13468_v18, %v12866_v49 }
 0x89c   : > { %v13437_v44 = vsel %vm24708_vm1, %v13433_v12, %v12724_v35  ;;  %v12914_v22 = vpop.permute.xlu0 %12913  ;;  %vm24715_vm1 = vmmov %vm24712_vm0  ;;  %v13476_v8 = vsel %vm13098_vm7, %v13472_v10, %v12882_v9 }
 0x89d   : > { %12951 = vrot.lane.b32.xlu1 %v10987_v48, %s23791_s0  ;;  %v13480_v47 = vsel %vm13103_vm8, %v13476_v8, %v12898_v61  ;;  %s24724_s0 = sld [smem:[#allocation12_spill]] }
 0x89e   : > { %v13484_v40 = vsel %vm13108_vm9, %v13480_v47, %v12914_v22 }
 0x89f   : > { %v12728_v63 = vpop.permute.xlu1 %12727 }
 0x8a0   : > { %v13439_v0 = vsel %vm24709_vm3, %v13435_v51, %v12728_v63  ;;  %v12918_v27 = vpop.permute.xlu0 %12917  ;;  %vm24716_vm3 = vmmov %vm24713_vm4  ;;  %vm24720_vm4 = vcmask 654336  }
 0x8a1   : > { %12963 = vrot.lane.b32.xlu1 %v10716_v39, %s23797_s8  ;;  %v13462_v33 = vsel %vm24716_vm3, %v21769_v42, %v21777_v21 }
 0x8a3   : > { %v12740_v25 = vpop.permute.xlu1 %12739  ;;  %s13621_s7 = sshll.u32 %s24724_s0, 11 }
 0x8a4   : > { %v13441_v41 = vsel %vm24710_vm2, %v13437_v44, %v12740_v25  ;;  %v12930_v11 = vpop.permute.xlu0 %12929  ;;  %vm24717_vm2 = vmmov %vm24714_vm5  ;;  %s21915_s18 = scalar_lea.hbm %s24728_s15, %s13621_s7 }
 0x8a5   : > { %12967 = vrot.lane.b32.xlu1 %v10988_v32, %s23797_s8  ;;  %v13466_v59 = vsel %vm24717_vm2, %v13462_v33, %v21795_v20  ;;  %v13488_v42 = vsel %vm13113_vm11, %v13484_v40, %v12930_v11  ;;  %vm24721_vm5 = vmmov %vm24720_vm4  ;;  %s24727_s8 = sld [smem:[#allocation15_spill]] }
 0x8a6   : > { %v13470_v7 = vsel %vm13088_vm15, %v13466_v59, %v21820_v28 }
 0x8a7   : > { %v12744_v36 = vpop.permute.xlu1 %12743  ;;  %v13474_v55 = vsel %vm13093_vm14, %v13470_v7, %v21831_v4 }
 0x8a8   : > { %v13443_v57 = vsel %vm24711_vm6, %v13439_v0, %v12744_v36  ;;  %v12934_v17 = vpop.permute.xlu0 %12933  ;;  %vm24718_vm6 = vcmask 621568   ;;  %v13478_v34 = vsel %vm13098_vm7, %v13474_v55, %v12886_v19 }
 0x8a9   : > { %v13482_v16 = vsel %vm13103_vm8, %v13478_v34, %v12902_v6 }
 0x8aa   : > { %v13486_v5 = vsel %vm13108_vm9, %v13482_v16, %v12918_v27 }
 0x8ab   : > { %v12756_v50 = vpop.permute.xlu1 %12755  ;;  %v13490_v4 = vsel %vm13113_vm11, %v13486_v5, %v12934_v17  ;;  %p24729_p10 = scmp.ne.s32.totalorder %s24727_s8, 0 }
 0x8ac   : > { %v13445_v46 = vsel %vm24712_vm0, %v13441_v41, %v12756_v50  ;;  %v12946_v56 = vpop.permute.xlu0 %12945  ;;  %vm24719_vm0 = vmmov %vm24718_vm6 }
 0x8ad   : > { %v13492_v20 = vsel %vm13118_vm12, %v13488_v42, %v12946_v56  ;;  %p13736_p11 = pnand %p13735_p6, %p24729_p10 }
 0x8af   : > { %v12760_v52 = vpop.permute.xlu1 %12759  ;;  %p13737_p12 = pneg %p13736_p11 }
 0x8b0   : > { %v13447_v15 = vsel %vm24715_vm1, %v13443_v57, %v12760_v52  ;;  %v12950_v1 = vpop.permute.xlu0 %12949  ;;  %vm24722_vm1 = vmmov %vm24716_vm3 }
 0x8b1   : > { %v13494_v14 = vsel %vm13118_vm12, %v13490_v4, %v12950_v1  ;;  %vm24725_vm3 = vmmov %vm24722_vm1  ;;  %p13744_p1 = pnand %p13743_p13, %p13737_p12 }
 0x8b3   : > { %v12772_v49 = vpop.permute.xlu1 %12771 }
 0x8b4   : > { %v13449_v21 = vsel %vm24718_vm6, %v13445_v46, %v12772_v49  ;;  %v12962_v31 = vpop.permute.xlu0 %12961 }
 0x8b5   : > { %v13496_v28 = vsel %vm13123_vm13, %v13492_v20, %v12962_v31 }
 0x8b6   : > { %13503 = vst [vmem:[%s17403_s25 + $0x18] sm:$0xff] %v13496_v28 }
 0x8b7   : > { %v12776_v53 = vpop.permute.xlu1 %12775 }
 0x8b8   : > { %v13451_v9 = vsel %vm24719_vm0, %v13447_v15, %v12776_v53  ;;  %v12966_v38 = vpop.permute.xlu0 %12965 }
 0x8b9   : > { %v13498_v24 = vsel %vm13123_vm13, %v13494_v14, %v12966_v38 }
 0x8ba   : > { %13511 = vst [vmem:[%s17403_s25 + $0x58] sm:$0xff] %v13498_v24 }
 0x8bb   : > { %v12788_v45 = vpop.permute.xlu1 %12787 }
 0x8bc   : > { %v13453_v62 = vsel %vm24720_vm4, %v13449_v21, %v12788_v45 }
 0x8bf   : > { %v12792_v19 = vpop.permute.xlu1 %12791 }
 0x8c0   : > { %v13455_v58 = vsel %vm24721_vm5, %v13451_v9, %v12792_v19 }
 0x8c3   : > { %v12804_v43 = vpop.permute.xlu1 %12803 }
 0x8c4   : > { %v13457_v26 = vsel %vm13073_vm10, %v13453_v62, %v12804_v43 }
 0x8c7   : > { %v12808_v54 = vpop.permute.xlu1 %12807 }
 0x8c8   : > { %v13459_v12 = vsel %vm13073_vm10, %v13455_v58, %v12808_v54  ;;  %vm24723_vm10 = vmmov %vm24717_vm2 }
 0x8cb   : > { %v12820_v2 = vpop.permute.xlu1 %12819 }
 0x8cc   : > { %v13461_v27 = vsel %vm24722_vm1, %v13457_v26, %v12820_v2 }
 0x8cf   : > { %v12824_v30 = vpop.permute.xlu1 %12823 }
 0x8d0   : > { %v13463_v36 = vsel %vm24725_vm3, %v13459_v12, %v12824_v30 }
 0x8d3   : > { %v12836_v61 = vpop.permute.xlu1 %12835 }
 0x8d4   : > { %v13465_v32 = vsel %vm24723_vm10, %v13461_v27, %v12836_v61 }
 0x8d7   : > { %v12840_v29 = vpop.permute.xlu1 %12839 }
 0x8d8   : > { %v13467_v50 = vsel %vm24717_vm2, %v13463_v36, %v12840_v29 }
 0x8db   : > { %v12852_v13 = vpop.permute.xlu1 %12851 }
 0x8dc   : > { %v13469_v41 = vsel %vm13088_vm15, %v13465_v32, %v12852_v13 }
 0x8df   : > { %v12856_v37 = vpop.permute.xlu1 %12855 }
 0x8e0   : > { %v13471_v23 = vsel %vm13088_vm15, %v13467_v50, %v12856_v37 }
 0x8e3   : > { %v12868_v51 = vpop.permute.xlu1 %12867 }
 0x8e4   : > { %v13473_v11 = vsel %vm13093_vm14, %v13469_v41, %v12868_v51 }
 0x8e7   : > { %v12872_v3 = vpop.permute.xlu1 %12871 }
 0x8e8   : > { %v13475_v60 = vsel %vm13093_vm14, %v13471_v23, %v12872_v3 }
 0x8eb   : > { %v12884_v6 = vpop.permute.xlu1 %12883 }
 0x8ec   : > { %v13477_v57 = vsel %vm13098_vm7, %v13473_v11, %v12884_v6 }
 0x8ef   : > { %v12888_v35 = vpop.permute.xlu1 %12887 }
 0x8f0   : > { %v13479_v52 = vsel %vm13098_vm7, %v13475_v60, %v12888_v35 }
 0x8f3   : > { %v12900_v48 = vpop.permute.xlu1 %12899 }
 0x8f4   : > { %v13481_v46 = vsel %vm13103_vm8, %v13477_v57, %v12900_v48 }
 0x8f7   : > { %v12904_v44 = vpop.permute.xlu1 %12903 }
 0x8f8   : > { %v13483_v33 = vsel %vm13103_vm8, %v13479_v52, %v12904_v44 }
 0x8fb   : > { %v12916_v22 = vpop.permute.xlu1 %12915 }
 0x8fc   : > { %v13485_v56 = vsel %vm13108_vm9, %v13481_v46, %v12916_v22 }
 0x8ff   : > { %v12920_v63 = vpop.permute.xlu1 %12919 }
 0x900   : > { %v13487_v1 = vsel %vm13108_vm9, %v13483_v33, %v12920_v63 }
 0x903   : > { %v12932_v39 = vpop.permute.xlu1 %12931 }
 0x904   : > { %v13489_v18 = vsel %vm13113_vm11, %v13485_v56, %v12932_v39 }
 0x907   : > { %v12936_v0 = vpop.permute.xlu1 %12935 }
 0x908   : > { %v13491_v59 = vsel %vm13113_vm11, %v13487_v1, %v12936_v0 }
 0x90b   : > { %v12948_v25 = vpop.permute.xlu1 %12947 }
 0x90c   : > { %v13493_v10 = vsel %vm13118_vm12, %v13489_v18, %v12948_v25 }
 0x90f   : > { %v12952_v17 = vpop.permute.xlu1 %12951 }
 0x910   : > { %v13495_v47 = vsel %vm13118_vm12, %v13491_v59, %v12952_v17 }
 0x913   : > { %v12964_v15 = vpop.permute.xlu1 %12963 }
 0x914   : > { %v13497_v8 = vsel %vm13123_vm13, %v13493_v10, %v12964_v15 }
 0x915   : > { %13507 = vst [vmem:[%s17403_s25 + $0x38] sm:$0xff] %v13497_v8 }
 0x917   : > { %v12968_v7 = vpop.permute.xlu1 %12967 }
 0x918   : > { %v13499_v40 = vsel %vm13123_vm13, %v13495_v47, %v12968_v7 }
 0x919   : > { %13515 = vst [vmem:[%s17403_s25 + $0x78] sm:$0xff] %v13499_v40 }
 0x91a   : > { %13747 = shalt.err (!%p13744_p1)
}
 0x91b   : > { %s13748_s25 = scalar_lea.hbm %s21915_s18, 2048  ;;  %s13752_s4 = scalar_lea.hbm %s24728_s15, 16384 }
 0x91c   : > { %p13749_p3 = scmp.ne.s32.totalorder %s21915_s18, %s13748_s25  ;;  %p13753_p0 = scmp.lt.u32.totalorder %s21915_s18, %s24728_s15 }
 0x91d   : > { %p13754_p2 = scmp.lt.u32.totalorder %s13752_s4, %s13748_s25  ;;  %p13756_p6 = scmp.lt.u32.totalorder %s13748_s25, %s21915_s18 }
 0x91e   : > { %p13750_p4 = pnand %p13749_p3, %p24729_p10 }
 0x91f   : > { %p13755_p7 = por %p13754_p2, %p13753_p0 }
 0x920   : > { %p13751_p5 = pneg %p13750_p4 }
 0x921   : > { %p13757_p11 = por %p13756_p6, %p13755_p7 }
 0x923   : > { %p13758_p12 = pnand %p13757_p11, %p13751_p5 }
 0x925   : > { %13761 = shalt.err (!%p13758_p12)
}
 0x926   : > { %s13839_s13 = smov 512  }
 0x927   : > { %13624 = dma.vmem_to_hbm [thread:$0]  (%p24729_p10), %s21918_s9, 2048, %s21915_s18, %s13517_s19, %s13839_s13, %s13839_s13, %s23496_s16  }
 0x928 PF: > { %s24730_s14 = sld [smem:[#allocation11_spill]]  ;;  %s24731_s20 = sld [smem:[#allocation8_spill]] }
 0x929   : > { %s24732_s21 = sld [smem:[#allocation16_spill]] }
 0x92e   : > { %p13635_p8 = scmp.ge.s32.totalorder %s24730_s14, 2  ;;  %s13546_s22 = sand.u32 1, %s24731_s20  }
 0x92f   : > { %p24733_p9 = scmp.ne.s32.totalorder %s24732_s21, 0  ;;  %s13547_s24 = scalar_lea.sflag [#allocation4], %s13546_s22 }
 0x931   : > { %p13631_p13 = pnand %p13635_p8, %p24733_p9 }
 0x933   : > { %13783 = dma.done.wait (!%p13631_p13), %s13547_s24, 2048  }
 0x934   : > { %13785 = vsyncadd (!%p13631_p13), %s13547_s24, 4294965248  ;;  %s24734_s9 = sld [smem:[#allocation13_spill]]  ;;  %s24735_s6 = sld [smem:[#allocation9_spill]] }
 0x935   : > { %s24736_s7 = sld [smem:[#allocation10_spill]]  ;;  %s24737_s8 = sld [smem:[#allocation14_spill]] }
 0x93a   : > { %p14_p1 = scmp.ge.s32.totalorder %s24734_s9, 10  }
 0x93c   :  { %16 = sbr.rel (!%p14_p1) target bundleno = 8 (0x8), region = 69 }
 0x943   :  { %13552 = vsyncpa [#allocation3], 1 }
 0x944   :  { %13554 = vsyncpa [#allocation3 + $0x1], 1 }
 0x945   :  { %13555 = vsyncpa [#allocation4], 1 }
 0x946   :  { %13557 = vsyncpa [#allocation4 + $0x1], 1 }

</bundles_post_ra>
